<compile_context>
chip_gen: v5e
topology: v5e:2x2
jax: 0.10.0
libtpu: 0.0.40
codegen_flags: <defaults>
</compile_context>

<pallas_src>
import functools

import jax
import jax.numpy as jnp
import numpy as np
from jax.experimental import pallas as pl
from jax.experimental.pallas import tpu as pltpu


# ----------------------------------------------------------------------------
# Static geometry of the net
# ----------------------------------------------------------------------------
C_IN = 3                 # input channels
K = 5                    # conv kernel size (both convs)
C1, C2 = 6, 16           # conv output channels
G1 = 16                  # padded pooled-grid side after conv1+pool (14 valid)
S1 = G1 * G1             # 256 lanes per sample on the pooled grid
P2 = 5                   # pooled grid side after conv2+pool
FC1, FC2, FC3 = 120, 84, 10
KC1 = 4 * 9 * C_IN       # 108 conv1 im2col rows: (b,d parity, sh, sw, ci)
KC2 = K * K * C1         # 150 conv2 im2col rows: (kh, kw, ci)
X_PAD = 384              # zero lane padding so shifted im2col reads stay in bounds


# ----------------------------------------------------------------------------
# The fused kernel (one invocation = one batch tile of `tb` samples)
# ----------------------------------------------------------------------------
def _net_kernel(x4_ref, w1_ref, b1_ref, w2_ref, b2_ref,
                u1_ref, fb1_ref, u2_ref, fb2_ref, u3_ref, fb3_ref,
                out_ref,
                col1_ref, o1_ref, a1_ref, col2_ref, a2_ref, m2_ref, xf_ref,
                *, tb):
    f32 = jnp.float32
    m1 = tb * S1           # valid pooled-grid lanes for this tile
    w1l = m1 + 256         # lane width of conv1 output / a1 (covers conv2 reads)
    w2l = m1 + 128         # lane width of conv2 output / a2 (covers pool2 reads)

    # ---- conv1 im2col (108, w1l): shifted whole slabs of the parity input ----
    # row ((2b+d)*9 + sh*3 + sw)*3 + ci  ==  X4[2b+d, ci, lane + sh*16 + sw]
    for g in range(4):
        for sh in range(3):
            for sw in range(3):
                r = (g * 9 + sh * 3 + sw) * 3
                s = sh * G1 + sw
                col1_ref[r:r + 3, :] = x4_ref[0, 3 * g:3 * g + 3, s:s + w1l]

    # ---- conv1: ONE MXU matmul for all 4 pooling phases (lane-dense output) --
    o1_ref[...] = jnp.dot(w1_ref[...], col1_ref[...], preferred_element_type=f32)

    # ---- pool1 = elementwise max of the 4 phase row-groups, then bias+relu ---
    a1_ref[...] = jnp.maximum(
        jnp.maximum(jnp.maximum(o1_ref[0:C1, :], o1_ref[8:8 + C1, :]),
                    jnp.maximum(o1_ref[16:16 + C1, :], o1_ref[24:24 + C1, :]))
        + b1_ref[...], 0.0)

    # ---- conv2 im2col (150, w2l): shifted whole slabs of a1 ------------------
    # row (kh*5 + kw)*6 + ci  ==  a1[ci, lane + kh*16 + kw]
    for kh in range(K):
        for kw in range(K):
            r = (kh * K + kw) * C1
            s = kh * G1 + kw
            col2_ref[r:r + C1, :] = a1_ref[:, s:s + w2l]

    # ---- conv2: ONE MXU matmul, bias + relu fused (lane-dense epilogue) ------
    a2_ref[...] = jnp.maximum(
        jnp.dot(w2_ref[...], col2_ref[...], preferred_element_type=f32)
        + b2_ref[...], 0.0)

    # ---- pool2 = windowed max of 4 lane shifts; stride-2 decimation is
    #      deferred to the lane-scattered fc1 weight (no strided gather here) --
    m2_ref[...] = jnp.maximum(
        jnp.maximum(a2_ref[:, 0:m1], a2_ref[:, 1:m1 + 1]),
        jnp.maximum(a2_ref[:, G1:m1 + G1], a2_ref[:, G1 + 1:m1 + G1 + 1]))

    # ---- flatten: 16*tb fully lane-aligned 256-lane copies -------------------
    for n in range(tb):
        for c in range(C2):
            xf_ref[n:n + 1, c * S1:(c + 1) * S1] = \
                m2_ref[c:c + 1, n * S1:(n + 1) * S1]

    # ---- FC head (batch in sublanes, features dense in lanes) ----------------
    h = jnp.maximum(
        jnp.dot(xf_ref[...], u1_ref[...], preferred_element_type=f32)
        + fb1_ref[...], 0.0)
    h = jnp.maximum(
        jnp.dot(h, u2_ref[...], preferred_element_type=f32) + fb2_ref[...], 0.0)
    out = jnp.dot(h, u3_ref[...], preferred_element_type=f32) + fb3_ref[...]
    out_ref[0, :, :] = out.astype(out_ref.dtype)


# ----------------------------------------------------------------------------
# Wrapper-side layout prep (compact: same byte count as the raw input)
# ----------------------------------------------------------------------------
def _prep_inputs(x, tb):
    """Parity-reordered input, pre-tiled over batch tiles.

    x4[tile, 3*(2b+d)+ci, local_n*256 + r*16 + u] = x[n, ci, 2r+b, 2u+d]
    (plus X_PAD trailing zero lanes per tile so shifted reads stay in bounds).
    """
    n = x.shape[0]
    nb = -(-n // tb)
    npad = nb * tb
    x = x.astype(jnp.float32)
    parts = []
    for b in (0, 1):
        for d in (0, 1):
            xbd = x[:, :, b::2, d::2]                        # (n, 3, 16, 16)
            parts.append(jnp.transpose(xbd, (1, 0, 2, 3)))   # (3, n, 16, 16)
    x4 = jnp.stack(parts, axis=0).reshape(12, n, S1)         # (12, n, 256)
    x4 = jnp.pad(x4, ((0, 0), (0, npad - n), (0, 0)))
    x4 = x4.reshape(12, nb, tb * S1)
    x4 = jnp.transpose(x4, (1, 0, 2))                        # (nb, 12, tb*256)
    x4 = jnp.pad(x4, ((0, 0), (0, 0), (0, X_PAD)))
    return x4, nb


def _prep_params(params):
    w1 = params["conv1_w"].astype(jnp.float32)
    w2 = params["conv2_w"].astype(jnp.float32)

    # conv1 weights folded over the 4 pooling phases (8-row-aligned groups) and
    # the 108-row im2col (parity b,d / shift sh,sw / channel ci).
    rows, cols, sel = [], [], []
    for p in (0, 1):
        for q in (0, 1):
            phase = 2 * p + q
            for co in range(C1):
                for ci in range(C_IN):
                    for kh in range(K):
                        for kw in range(K):
                            b, sh = (p + kh) % 2, (p + kh) // 2
                            d, sw = (q + kw) % 2, (q + kw) // 2
                            rows.append(phase * 8 + co)
                            cols.append(((2 * b + d) * 9 + sh * 3 + sw) * 3 + ci)
                            sel.append((co, ci, kh, kw))
    sel = np.asarray(sel).T
    w1a = jnp.zeros((32, KC1), jnp.float32).at[
        np.asarray(rows), np.asarray(cols)].set(
            w1[sel[0], sel[1], sel[2], sel[3]])
    b1 = params["conv1_b"].reshape(C1, 1).astype(jnp.float32)

    # conv2 weights: (co, ci, kh, kw) -> (co, (kh, kw, ci)) im2col row order.
    w2a = jnp.transpose(w2, (0, 2, 3, 1)).reshape(C2, KC2)
    b2 = params["conv2_b"].reshape(C2, 1).astype(jnp.float32)

    # fc1 weight scattered over the (16*256)-lane flattened pool2 window grid:
    # PyTorch feature (c, vh, vw) lives at lane c*256 + (2*vh)*16 + 2*vw, so the
    # pool2 stride-2 decimation + NCHW flatten are done by the MXU for free.
    c = np.arange(C2)[:, None, None]
    vh = np.arange(P2)[None, :, None]
    vw = np.arange(P2)[None, None, :]
    lanes = (c * S1 + 2 * vh * G1 + 2 * vw).reshape(-1)
    u1e = jnp.zeros((C2 * S1, FC1), jnp.float32).at[lanes].set(
        params["fc1_w"].T.astype(jnp.float32))
    fb1 = params["fc1_b"].reshape(1, FC1).astype(jnp.float32)

    u2 = params["fc2_w"].T.astype(jnp.float32)
    fb2 = params["fc2_b"].reshape(1, FC2).astype(jnp.float32)
    u3 = params["fc3_w"].T.astype(jnp.float32)
    fb3 = params["fc3_b"].reshape(1, FC3).astype(jnp.float32)
    return w1a, b1, w2a, b2, u1e, fb1, u2, fb2, u3, fb3


def net_forward(x, params, tb=None):
    n = x.shape[0]
    if tb is None:
        tb = min(n, 16)               # batch tile per grid step (VMEM-sized)
    x4, nb = _prep_inputs(x, tb)
    prepped = _prep_params(params)

    m1 = tb * S1
    w1l = m1 + 256
    w2l = m1 + 128
    xl = x4.shape[-1]

    kernel = functools.partial(_net_kernel, tb=tb)

    def _fixed(a):
        nd = a.ndim
        return pl.BlockSpec(a.shape, lambda i, _n=nd: (0,) * _n)

    out = pl.pallas_call(
        kernel,
        out_shape=jax.ShapeDtypeStruct((nb, tb, FC3), jnp.float32),
        grid=(nb,),
        in_specs=[pl.BlockSpec((1, 12, xl), lambda i: (i, 0, 0))]
                 + [_fixed(a) for a in prepped],
        out_specs=pl.BlockSpec((1, tb, FC3), lambda i: (i, 0, 0)),
        scratch_shapes=[
            pltpu.VMEM((KC1, w1l), jnp.float32),     # conv1 im2col
            pltpu.VMEM((32, w1l), jnp.float32),      # conv1 4-phase outputs
            pltpu.VMEM((C1, w1l), jnp.float32),      # a1 = pool1(relu(conv1))
            pltpu.VMEM((KC2, w2l), jnp.float32),     # conv2 im2col
            pltpu.VMEM((C2, w2l), jnp.float32),      # a2 = relu(conv2)
            pltpu.VMEM((C2, m1), jnp.float32),       # pool2 windowed max
            pltpu.VMEM((tb, C2 * S1), jnp.float32),  # lane-expanded fc1 input
        ],
        compiler_params=pltpu.CompilerParams(
            dimension_semantics=("parallel",),
            vmem_limit_bytes=32 * 1024 * 1024),
    )(x4, *prepped)
    return out.reshape(nb * tb, FC3)[:n]


# ----------------------------------------------------------------------------
# Pure-JAX reference (correctness sanity check)
# ----------------------------------------------------------------------------
def net_forward_ref(x, params):
    def conv(x, w, b):
        y = jax.lax.conv_general_dilated(
            x, w, window_strides=(1, 1), padding="VALID",
            dimension_numbers=("NCHW", "OIHW", "NCHW"))
        return y + b.reshape(1, -1, 1, 1)

    def pool(x):
        return jax.lax.reduce_window(
            x, -jnp.inf, jax.lax.max,
            window_dimensions=(1, 1, 2, 2), window_strides=(1, 1, 2, 2),
            padding="VALID")

    x = pool(jax.nn.relu(conv(x, params["conv1_w"], params["conv1_b"])))
    x = pool(jax.nn.relu(conv(x, params["conv2_w"], params["conv2_b"])))
    x = x.reshape(x.shape[0], 16 * 5 * 5)
    x = jax.nn.relu(x @ params["fc1_w"].T + params["fc1_b"])
    x = jax.nn.relu(x @ params["fc2_w"].T + params["fc2_b"])
    return x @ params["fc3_w"].T + params["fc3_b"]


# ----------------------------------------------------------------------------
# Deterministic parameter init (PyTorch-default-style uniform, same shapes)
# ----------------------------------------------------------------------------
def init_params(key):
    def uni(key, shape, fan_in):
        bound = 1.0 / np.sqrt(fan_in)
        return jax.random.uniform(key, shape, jnp.float32, -bound, bound)

    ks = jax.random.split(key, 10)
    return {
        "conv1_w": uni(ks[0], (6, 3, 5, 5), 3 * 5 * 5),
        "conv1_b": uni(ks[1], (6,), 3 * 5 * 5),
        "conv2_w": uni(ks[2], (16, 6, 5, 5), 6 * 5 * 5),
        "conv2_b": uni(ks[3], (16,), 6 * 5 * 5),
        "fc1_w": uni(ks[4], (120, 400), 400),
        "fc1_b": uni(ks[5], (120,), 400),
        "fc2_w": uni(ks[6], (84, 120), 120),
        "fc2_b": uni(ks[7], (84,), 120),
        "fc3_w": uni(ks[8], (10, 84), 84),
        "fc3_b": uni(ks[9], (10,), 84),
    }


if __name__ == "__main__":
    key = jax.random.PRNGKey(0)
    pkey, xkey = jax.random.split(key)
    params = init_params(pkey)

    # fc1 = 16*5*5 implies a 32x32 spatial input; batch = 2.
    x = jax.random.normal(xkey, (2, 3, 32, 32), dtype=jnp.float32)

    out = jax.block_until_ready(jax.jit(net_forward)(x, params))
    assert out.shape == (2, FC3) and out.dtype == jnp.float32

    ref = jax.block_until_ready(net_forward_ref(x, params))
    max_err = float(jnp.max(jnp.abs(out - ref)))
    assert max_err < 5e-3, f"mismatch vs reference: {max_err}"

    print("KERNEL_OK")
</pallas_src>

<mosaic_0001>
module attributes {stable_mosaic.version = 11 : i64} {
  func.func @_net_kernel(%arg0: i32, %arg1: memref<1x12x896xf32, #tpu.memory_space<vmem>>, %arg2: memref<32x108xf32, #tpu.memory_space<vmem>>, %arg3: memref<6x1xf32, #tpu.memory_space<vmem>>, %arg4: memref<16x150xf32, #tpu.memory_space<vmem>>, %arg5: memref<16x1xf32, #tpu.memory_space<vmem>>, %arg6: memref<4096x120xf32, #tpu.memory_space<vmem>>, %arg7: memref<1x120xf32, #tpu.memory_space<vmem>>, %arg8: memref<120x84xf32, #tpu.memory_space<vmem>>, %arg9: memref<1x84xf32, #tpu.memory_space<vmem>>, %arg10: memref<84x10xf32, #tpu.memory_space<vmem>>, %arg11: memref<1x10xf32, #tpu.memory_space<vmem>>, %arg12: memref<1x2x10xf32, #tpu.memory_space<vmem>>, %arg13: memref<108x768xf32, #tpu.memory_space<vmem>>, %arg14: memref<32x768xf32, #tpu.memory_space<vmem>>, %arg15: memref<6x768xf32, #tpu.memory_space<vmem>>, %arg16: memref<150x640xf32, #tpu.memory_space<vmem>>, %arg17: memref<16x640xf32, #tpu.memory_space<vmem>>, %arg18: memref<16x512xf32, #tpu.memory_space<vmem>>, %arg19: memref<2x4096xf32, #tpu.memory_space<vmem>>) attributes {dimension_semantics = [#tpu.dimension_semantics<parallel>], iteration_bounds = array<i64: 1>, scalar_prefetch = 0 : i64, scratch_operands = 7 : i64, tpu.core_type = #tpu.core_type<tc>, window_params = [{transform_indices = @transform_0, window_bounds = array<i64: 1, 12, 896>}, {pipeline_mode = #tpu.pipeline_mode<synchronous>, transform_indices = @transform_1, window_bounds = array<i64: 32, 108>}, {pipeline_mode = #tpu.pipeline_mode<synchronous>, transform_indices = @transform_2, window_bounds = array<i64: 6, 1>}, {pipeline_mode = #tpu.pipeline_mode<synchronous>, transform_indices = @transform_3, window_bounds = array<i64: 16, 150>}, {pipeline_mode = #tpu.pipeline_mode<synchronous>, transform_indices = @transform_4, window_bounds = array<i64: 16, 1>}, {pipeline_mode = #tpu.pipeline_mode<synchronous>, transform_indices = @transform_5, window_bounds = array<i64: 4096, 120>}, {pipeline_mode = #tpu.pipeline_mode<synchronous>, transform_indices = @transform_6, window_bounds = array<i64: 1, 120>}, {pipeline_mode = #tpu.pipeline_mode<synchronous>, transform_indices = @transform_7, window_bounds = array<i64: 120, 84>}, {pipeline_mode = #tpu.pipeline_mode<synchronous>, transform_indices = @transform_8, window_bounds = array<i64: 1, 84>}, {pipeline_mode = #tpu.pipeline_mode<synchronous>, transform_indices = @transform_9, window_bounds = array<i64: 84, 10>}, {pipeline_mode = #tpu.pipeline_mode<synchronous>, transform_indices = @transform_10, window_bounds = array<i64: 1, 10>}, {transform_indices = @transform_11, window_bounds = array<i64: 1, 2, 10>}]} {
    %c0 = arith.constant 0 : index
    %c0_0 = arith.constant 0 : index
    %c0_1 = arith.constant 0 : index
    %0 = vector.load %arg1[%c0, %c0_0, %c0_1] : memref<1x12x896xf32, #tpu.memory_space<vmem>>, vector<1x3x768xf32>
    %1 = vector.shape_cast %0 : vector<1x3x768xf32> to vector<3x768xf32>
    %c0_2 = arith.constant 0 : index
    %c0_3 = arith.constant 0 : index
    %2 = vector.load %arg13[%c0_2, %c0_3] : memref<108x768xf32, #tpu.memory_space<vmem>>, vector<3x768xf32>
    tpu.vector_store %arg13[%c0_2, %c0_3], %1 {strides = array<i32>} : memref<108x768xf32, #tpu.memory_space<vmem>>, vector<3x768xf32>,
    %c0_4 = arith.constant 0 : index
    %c0_5 = arith.constant 0 : index
    %c1 = arith.constant 1 : index
    %3 = vector.load %arg1[%c0_4, %c0_5, %c1] : memref<1x12x896xf32, #tpu.memory_space<vmem>>, vector<1x3x768xf32>
    %4 = vector.shape_cast %3 : vector<1x3x768xf32> to vector<3x768xf32>
    %c3 = arith.constant 3 : index
    %c0_6 = arith.constant 0 : index
    %5 = vector.load %arg13[%c3, %c0_6] : memref<108x768xf32, #tpu.memory_space<vmem>>, vector<3x768xf32>
    tpu.vector_store %arg13[%c3, %c0_6], %4 {strides = array<i32>} : memref<108x768xf32, #tpu.memory_space<vmem>>, vector<3x768xf32>,
    %c0_7 = arith.constant 0 : index
    %c0_8 = arith.constant 0 : index
    %c2 = arith.constant 2 : index
    %6 = vector.load %arg1[%c0_7, %c0_8, %c2] : memref<1x12x896xf32, #tpu.memory_space<vmem>>, vector<1x3x768xf32>
    %7 = vector.shape_cast %6 : vector<1x3x768xf32> to vector<3x768xf32>
    %c6 = arith.constant 6 : index
    %c0_9 = arith.constant 0 : index
    %8 = vector.load %arg13[%c6, %c0_9] : memref<108x768xf32, #tpu.memory_space<vmem>>, vector<3x768xf32>
    tpu.vector_store %arg13[%c6, %c0_9], %7 {strides = array<i32>} : memref<108x768xf32, #tpu.memory_space<vmem>>, vector<3x768xf32>,
    %c0_10 = arith.constant 0 : index
    %c0_11 = arith.constant 0 : index
    %c16 = arith.constant 16 : index
    %9 = vector.load %arg1[%c0_10, %c0_11, %c16] : memref<1x12x896xf32, #tpu.memory_space<vmem>>, vector<1x3x768xf32>
    %10 = vector.shape_cast %9 : vector<1x3x768xf32> to vector<3x768xf32>
    %c9 = arith.constant 9 : index
    %c0_12 = arith.constant 0 : index
    %11 = vector.load %arg13[%c9, %c0_12] : memref<108x768xf32, #tpu.memory_space<vmem>>, vector<3x768xf32>
    tpu.vector_store %arg13[%c9, %c0_12], %10 {strides = array<i32>} : memref<108x768xf32, #tpu.memory_space<vmem>>, vector<3x768xf32>,
    %c0_13 = arith.constant 0 : index
    %c0_14 = arith.constant 0 : index
    %c17 = arith.constant 17 : index
    %12 = vector.load %arg1[%c0_13, %c0_14, %c17] : memref<1x12x896xf32, #tpu.memory_space<vmem>>, vector<1x3x768xf32>
    %13 = vector.shape_cast %12 : vector<1x3x768xf32> to vector<3x768xf32>
    %c12 = arith.constant 12 : index
    %c0_15 = arith.constant 0 : index
    %14 = vector.load %arg13[%c12, %c0_15] : memref<108x768xf32, #tpu.memory_space<vmem>>, vector<3x768xf32>
    tpu.vector_store %arg13[%c12, %c0_15], %13 {strides = array<i32>} : memref<108x768xf32, #tpu.memory_space<vmem>>, vector<3x768xf32>,
    %c0_16 = arith.constant 0 : index
    %c0_17 = arith.constant 0 : index
    %c18 = arith.constant 18 : index
    %15 = vector.load %arg1[%c0_16, %c0_17, %c18] : memref<1x12x896xf32, #tpu.memory_space<vmem>>, vector<1x3x768xf32>
    %16 = vector.shape_cast %15 : vector<1x3x768xf32> to vector<3x768xf32>
    %c15 = arith.constant 15 : index
    %c0_18 = arith.constant 0 : index
    %17 = vector.load %arg13[%c15, %c0_18] : memref<108x768xf32, #tpu.memory_space<vmem>>, vector<3x768xf32>
    tpu.vector_store %arg13[%c15, %c0_18], %16 {strides = array<i32>} : memref<108x768xf32, #tpu.memory_space<vmem>>, vector<3x768xf32>,
    %c0_19 = arith.constant 0 : index
    %c0_20 = arith.constant 0 : index
    %c32 = arith.constant 32 : index
    %18 = vector.load %arg1[%c0_19, %c0_20, %c32] : memref<1x12x896xf32, #tpu.memory_space<vmem>>, vector<1x3x768xf32>
    %19 = vector.shape_cast %18 : vector<1x3x768xf32> to vector<3x768xf32>
    %c18_21 = arith.constant 18 : index
    %c0_22 = arith.constant 0 : index
    %20 = vector.load %arg13[%c18_21, %c0_22] : memref<108x768xf32, #tpu.memory_space<vmem>>, vector<3x768xf32>
    tpu.vector_store %arg13[%c18_21, %c0_22], %19 {strides = array<i32>} : memref<108x768xf32, #tpu.memory_space<vmem>>, vector<3x768xf32>,
    %c0_23 = arith.constant 0 : index
    %c0_24 = arith.constant 0 : index
    %c33 = arith.constant 33 : index
    %21 = vector.load %arg1[%c0_23, %c0_24, %c33] : memref<1x12x896xf32, #tpu.memory_space<vmem>>, vector<1x3x768xf32>
    %22 = vector.shape_cast %21 : vector<1x3x768xf32> to vector<3x768xf32>
    %c21 = arith.constant 21 : index
    %c0_25 = arith.constant 0 : index
    %23 = vector.load %arg13[%c21, %c0_25] : memref<108x768xf32, #tpu.memory_space<vmem>>, vector<3x768xf32>
    tpu.vector_store %arg13[%c21, %c0_25], %22 {strides = array<i32>} : memref<108x768xf32, #tpu.memory_space<vmem>>, vector<3x768xf32>,
    %c0_26 = arith.constant 0 : index
    %c0_27 = arith.constant 0 : index
    %c34 = arith.constant 34 : index
    %24 = vector.load %arg1[%c0_26, %c0_27, %c34] : memref<1x12x896xf32, #tpu.memory_space<vmem>>, vector<1x3x768xf32>
    %25 = vector.shape_cast %24 : vector<1x3x768xf32> to vector<3x768xf32>
    %c24 = arith.constant 24 : index
    %c0_28 = arith.constant 0 : index
    %26 = vector.load %arg13[%c24, %c0_28] : memref<108x768xf32, #tpu.memory_space<vmem>>, vector<3x768xf32>
    tpu.vector_store %arg13[%c24, %c0_28], %25 {strides = array<i32>} : memref<108x768xf32, #tpu.memory_space<vmem>>, vector<3x768xf32>,
    %c0_29 = arith.constant 0 : index
    %c3_30 = arith.constant 3 : index
    %c0_31 = arith.constant 0 : index
    %27 = vector.load %arg1[%c0_29, %c3_30, %c0_31] : memref<1x12x896xf32, #tpu.memory_space<vmem>>, vector<1x3x768xf32>
    %28 = vector.shape_cast %27 : vector<1x3x768xf32> to vector<3x768xf32>
    %c27 = arith.constant 27 : index
    %c0_32 = arith.constant 0 : index
    %29 = vector.load %arg13[%c27, %c0_32] : memref<108x768xf32, #tpu.memory_space<vmem>>, vector<3x768xf32>
    tpu.vector_store %arg13[%c27, %c0_32], %28 {strides = array<i32>} : memref<108x768xf32, #tpu.memory_space<vmem>>, vector<3x768xf32>,
    %c0_33 = arith.constant 0 : index
    %c3_34 = arith.constant 3 : index
    %c1_35 = arith.constant 1 : index
    %30 = vector.load %arg1[%c0_33, %c3_34, %c1_35] : memref<1x12x896xf32, #tpu.memory_space<vmem>>, vector<1x3x768xf32>
    %31 = vector.shape_cast %30 : vector<1x3x768xf32> to vector<3x768xf32>
    %c30 = arith.constant 30 : index
    %c0_36 = arith.constant 0 : index
    %32 = vector.load %arg13[%c30, %c0_36] : memref<108x768xf32, #tpu.memory_space<vmem>>, vector<3x768xf32>
    tpu.vector_store %arg13[%c30, %c0_36], %31 {strides = array<i32>} : memref<108x768xf32, #tpu.memory_space<vmem>>, vector<3x768xf32>,
    %c0_37 = arith.constant 0 : index
    %c3_38 = arith.constant 3 : index
    %c2_39 = arith.constant 2 : index
    %33 = vector.load %arg1[%c0_37, %c3_38, %c2_39] : memref<1x12x896xf32, #tpu.memory_space<vmem>>, vector<1x3x768xf32>
    %34 = vector.shape_cast %33 : vector<1x3x768xf32> to vector<3x768xf32>
    %c33_40 = arith.constant 33 : index
    %c0_41 = arith.constant 0 : index
    %35 = vector.load %arg13[%c33_40, %c0_41] : memref<108x768xf32, #tpu.memory_space<vmem>>, vector<3x768xf32>
    tpu.vector_store %arg13[%c33_40, %c0_41], %34 {strides = array<i32>} : memref<108x768xf32, #tpu.memory_space<vmem>>, vector<3x768xf32>,
    %c0_42 = arith.constant 0 : index
    %c3_43 = arith.constant 3 : index
    %c16_44 = arith.constant 16 : index
    %36 = vector.load %arg1[%c0_42, %c3_43, %c16_44] : memref<1x12x896xf32, #tpu.memory_space<vmem>>, vector<1x3x768xf32>
    %37 = vector.shape_cast %36 : vector<1x3x768xf32> to vector<3x768xf32>
    %c36 = arith.constant 36 : index
    %c0_45 = arith.constant 0 : index
    %38 = vector.load %arg13[%c36, %c0_45] : memref<108x768xf32, #tpu.memory_space<vmem>>, vector<3x768xf32>
    tpu.vector_store %arg13[%c36, %c0_45], %37 {strides = array<i32>} : memref<108x768xf32, #tpu.memory_space<vmem>>, vector<3x768xf32>,
    %c0_46 = arith.constant 0 : index
    %c3_47 = arith.constant 3 : index
    %c17_48 = arith.constant 17 : index
    %39 = vector.load %arg1[%c0_46, %c3_47, %c17_48] : memref<1x12x896xf32, #tpu.memory_space<vmem>>, vector<1x3x768xf32>
    %40 = vector.shape_cast %39 : vector<1x3x768xf32> to vector<3x768xf32>
    %c39 = arith.constant 39 : index
    %c0_49 = arith.constant 0 : index
    %41 = vector.load %arg13[%c39, %c0_49] : memref<108x768xf32, #tpu.memory_space<vmem>>, vector<3x768xf32>
    tpu.vector_store %arg13[%c39, %c0_49], %40 {strides = array<i32>} : memref<108x768xf32, #tpu.memory_space<vmem>>, vector<3x768xf32>,
    %c0_50 = arith.constant 0 : index
    %c3_51 = arith.constant 3 : index
    %c18_52 = arith.constant 18 : index
    %42 = vector.load %arg1[%c0_50, %c3_51, %c18_52] : memref<1x12x896xf32, #tpu.memory_space<vmem>>, vector<1x3x768xf32>
    %43 = vector.shape_cast %42 : vector<1x3x768xf32> to vector<3x768xf32>
    %c42 = arith.constant 42 : index
    %c0_53 = arith.constant 0 : index
    %44 = vector.load %arg13[%c42, %c0_53] : memref<108x768xf32, #tpu.memory_space<vmem>>, vector<3x768xf32>
    tpu.vector_store %arg13[%c42, %c0_53], %43 {strides = array<i32>} : memref<108x768xf32, #tpu.memory_space<vmem>>, vector<3x768xf32>,
    %c0_54 = arith.constant 0 : index
    %c3_55 = arith.constant 3 : index
    %c32_56 = arith.constant 32 : index
    %45 = vector.load %arg1[%c0_54, %c3_55, %c32_56] : memref<1x12x896xf32, #tpu.memory_space<vmem>>, vector<1x3x768xf32>
    %46 = vector.shape_cast %45 : vector<1x3x768xf32> to vector<3x768xf32>
    %c45 = arith.constant 45 : index
    %c0_57 = arith.constant 0 : index
    %47 = vector.load %arg13[%c45, %c0_57] : memref<108x768xf32, #tpu.memory_space<vmem>>, vector<3x768xf32>
    tpu.vector_store %arg13[%c45, %c0_57], %46 {strides = array<i32>} : memref<108x768xf32, #tpu.memory_space<vmem>>, vector<3x768xf32>,
    %c0_58 = arith.constant 0 : index
    %c3_59 = arith.constant 3 : index
    %c33_60 = arith.constant 33 : index
    %48 = vector.load %arg1[%c0_58, %c3_59, %c33_60] : memref<1x12x896xf32, #tpu.memory_space<vmem>>, vector<1x3x768xf32>
    %49 = vector.shape_cast %48 : vector<1x3x768xf32> to vector<3x768xf32>
    %c48 = arith.constant 48 : index
    %c0_61 = arith.constant 0 : index
    %50 = vector.load %arg13[%c48, %c0_61] : memref<108x768xf32, #tpu.memory_space<vmem>>, vector<3x768xf32>
    tpu.vector_store %arg13[%c48, %c0_61], %49 {strides = array<i32>} : memref<108x768xf32, #tpu.memory_space<vmem>>, vector<3x768xf32>,
    %c0_62 = arith.constant 0 : index
    %c3_63 = arith.constant 3 : index
    %c34_64 = arith.constant 34 : index
    %51 = vector.load %arg1[%c0_62, %c3_63, %c34_64] : memref<1x12x896xf32, #tpu.memory_space<vmem>>, vector<1x3x768xf32>
    %52 = vector.shape_cast %51 : vector<1x3x768xf32> to vector<3x768xf32>
    %c51 = arith.constant 51 : index
    %c0_65 = arith.constant 0 : index
    %53 = vector.load %arg13[%c51, %c0_65] : memref<108x768xf32, #tpu.memory_space<vmem>>, vector<3x768xf32>
    tpu.vector_store %arg13[%c51, %c0_65], %52 {strides = array<i32>} : memref<108x768xf32, #tpu.memory_space<vmem>>, vector<3x768xf32>,
    %c0_66 = arith.constant 0 : index
    %c6_67 = arith.constant 6 : index
    %c0_68 = arith.constant 0 : index
    %54 = vector.load %arg1[%c0_66, %c6_67, %c0_68] : memref<1x12x896xf32, #tpu.memory_space<vmem>>, vector<1x3x768xf32>
    %55 = vector.shape_cast %54 : vector<1x3x768xf32> to vector<3x768xf32>
    %c54 = arith.constant 54 : index
    %c0_69 = arith.constant 0 : index
    %56 = vector.load %arg13[%c54, %c0_69] : memref<108x768xf32, #tpu.memory_space<vmem>>, vector<3x768xf32>
    tpu.vector_store %arg13[%c54, %c0_69], %55 {strides = array<i32>} : memref<108x768xf32, #tpu.memory_space<vmem>>, vector<3x768xf32>,
    %c0_70 = arith.constant 0 : index
    %c6_71 = arith.constant 6 : index
    %c1_72 = arith.constant 1 : index
    %57 = vector.load %arg1[%c0_70, %c6_71, %c1_72] : memref<1x12x896xf32, #tpu.memory_space<vmem>>, vector<1x3x768xf32>
    %58 = vector.shape_cast %57 : vector<1x3x768xf32> to vector<3x768xf32>
    %c57 = arith.constant 57 : index
    %c0_73 = arith.constant 0 : index
    %59 = vector.load %arg13[%c57, %c0_73] : memref<108x768xf32, #tpu.memory_space<vmem>>, vector<3x768xf32>
    tpu.vector_store %arg13[%c57, %c0_73], %58 {strides = array<i32>} : memref<108x768xf32, #tpu.memory_space<vmem>>, vector<3x768xf32>,
    %c0_74 = arith.constant 0 : index
    %c6_75 = arith.constant 6 : index
    %c2_76 = arith.constant 2 : index
    %60 = vector.load %arg1[%c0_74, %c6_75, %c2_76] : memref<1x12x896xf32, #tpu.memory_space<vmem>>, vector<1x3x768xf32>
    %61 = vector.shape_cast %60 : vector<1x3x768xf32> to vector<3x768xf32>
    %c60 = arith.constant 60 : index
    %c0_77 = arith.constant 0 : index
    %62 = vector.load %arg13[%c60, %c0_77] : memref<108x768xf32, #tpu.memory_space<vmem>>, vector<3x768xf32>
    tpu.vector_store %arg13[%c60, %c0_77], %61 {strides = array<i32>} : memref<108x768xf32, #tpu.memory_space<vmem>>, vector<3x768xf32>,
    %c0_78 = arith.constant 0 : index
    %c6_79 = arith.constant 6 : index
    %c16_80 = arith.constant 16 : index
    %63 = vector.load %arg1[%c0_78, %c6_79, %c16_80] : memref<1x12x896xf32, #tpu.memory_space<vmem>>, vector<1x3x768xf32>
    %64 = vector.shape_cast %63 : vector<1x3x768xf32> to vector<3x768xf32>
    %c63 = arith.constant 63 : index
    %c0_81 = arith.constant 0 : index
    %65 = vector.load %arg13[%c63, %c0_81] : memref<108x768xf32, #tpu.memory_space<vmem>>, vector<3x768xf32>
    tpu.vector_store %arg13[%c63, %c0_81], %64 {strides = array<i32>} : memref<108x768xf32, #tpu.memory_space<vmem>>, vector<3x768xf32>,
    %c0_82 = arith.constant 0 : index
    %c6_83 = arith.constant 6 : index
    %c17_84 = arith.constant 17 : index
    %66 = vector.load %arg1[%c0_82, %c6_83, %c17_84] : memref<1x12x896xf32, #tpu.memory_space<vmem>>, vector<1x3x768xf32>
    %67 = vector.shape_cast %66 : vector<1x3x768xf32> to vector<3x768xf32>
    %c66 = arith.constant 66 : index
    %c0_85 = arith.constant 0 : index
    %68 = vector.load %arg13[%c66, %c0_85] : memref<108x768xf32, #tpu.memory_space<vmem>>, vector<3x768xf32>
    tpu.vector_store %arg13[%c66, %c0_85], %67 {strides = array<i32>} : memref<108x768xf32, #tpu.memory_space<vmem>>, vector<3x768xf32>,
    %c0_86 = arith.constant 0 : index
    %c6_87 = arith.constant 6 : index
    %c18_88 = arith.constant 18 : index
    %69 = vector.load %arg1[%c0_86, %c6_87, %c18_88] : memref<1x12x896xf32, #tpu.memory_space<vmem>>, vector<1x3x768xf32>
    %70 = vector.shape_cast %69 : vector<1x3x768xf32> to vector<3x768xf32>
    %c69 = arith.constant 69 : index
    %c0_89 = arith.constant 0 : index
    %71 = vector.load %arg13[%c69, %c0_89] : memref<108x768xf32, #tpu.memory_space<vmem>>, vector<3x768xf32>
    tpu.vector_store %arg13[%c69, %c0_89], %70 {strides = array<i32>} : memref<108x768xf32, #tpu.memory_space<vmem>>, vector<3x768xf32>,
    %c0_90 = arith.constant 0 : index
    %c6_91 = arith.constant 6 : index
    %c32_92 = arith.constant 32 : index
    %72 = vector.load %arg1[%c0_90, %c6_91, %c32_92] : memref<1x12x896xf32, #tpu.memory_space<vmem>>, vector<1x3x768xf32>
    %73 = vector.shape_cast %72 : vector<1x3x768xf32> to vector<3x768xf32>
    %c72 = arith.constant 72 : index
    %c0_93 = arith.constant 0 : index
    %74 = vector.load %arg13[%c72, %c0_93] : memref<108x768xf32, #tpu.memory_space<vmem>>, vector<3x768xf32>
    tpu.vector_store %arg13[%c72, %c0_93], %73 {strides = array<i32>} : memref<108x768xf32, #tpu.memory_space<vmem>>, vector<3x768xf32>,
    %c0_94 = arith.constant 0 : index
    %c6_95 = arith.constant 6 : index
    %c33_96 = arith.constant 33 : index
    %75 = vector.load %arg1[%c0_94, %c6_95, %c33_96] : memref<1x12x896xf32, #tpu.memory_space<vmem>>, vector<1x3x768xf32>
    %76 = vector.shape_cast %75 : vector<1x3x768xf32> to vector<3x768xf32>
    %c75 = arith.constant 75 : index
    %c0_97 = arith.constant 0 : index
    %77 = vector.load %arg13[%c75, %c0_97] : memref<108x768xf32, #tpu.memory_space<vmem>>, vector<3x768xf32>
    tpu.vector_store %arg13[%c75, %c0_97], %76 {strides = array<i32>} : memref<108x768xf32, #tpu.memory_space<vmem>>, vector<3x768xf32>,
    %c0_98 = arith.constant 0 : index
    %c6_99 = arith.constant 6 : index
    %c34_100 = arith.constant 34 : index
    %78 = vector.load %arg1[%c0_98, %c6_99, %c34_100] : memref<1x12x896xf32, #tpu.memory_space<vmem>>, vector<1x3x768xf32>
    %79 = vector.shape_cast %78 : vector<1x3x768xf32> to vector<3x768xf32>
    %c78 = arith.constant 78 : index
    %c0_101 = arith.constant 0 : index
    %80 = vector.load %arg13[%c78, %c0_101] : memref<108x768xf32, #tpu.memory_space<vmem>>, vector<3x768xf32>
    tpu.vector_store %arg13[%c78, %c0_101], %79 {strides = array<i32>} : memref<108x768xf32, #tpu.memory_space<vmem>>, vector<3x768xf32>,
    %c0_102 = arith.constant 0 : index
    %c9_103 = arith.constant 9 : index
    %c0_104 = arith.constant 0 : index
    %81 = vector.load %arg1[%c0_102, %c9_103, %c0_104] : memref<1x12x896xf32, #tpu.memory_space<vmem>>, vector<1x3x768xf32>
    %82 = vector.shape_cast %81 : vector<1x3x768xf32> to vector<3x768xf32>
    %c81 = arith.constant 81 : index
    %c0_105 = arith.constant 0 : index
    %83 = vector.load %arg13[%c81, %c0_105] : memref<108x768xf32, #tpu.memory_space<vmem>>, vector<3x768xf32>
    tpu.vector_store %arg13[%c81, %c0_105], %82 {strides = array<i32>} : memref<108x768xf32, #tpu.memory_space<vmem>>, vector<3x768xf32>,
    %c0_106 = arith.constant 0 : index
    %c9_107 = arith.constant 9 : index
    %c1_108 = arith.constant 1 : index
    %84 = vector.load %arg1[%c0_106, %c9_107, %c1_108] : memref<1x12x896xf32, #tpu.memory_space<vmem>>, vector<1x3x768xf32>
    %85 = vector.shape_cast %84 : vector<1x3x768xf32> to vector<3x768xf32>
    %c84 = arith.constant 84 : index
    %c0_109 = arith.constant 0 : index
    %86 = vector.load %arg13[%c84, %c0_109] : memref<108x768xf32, #tpu.memory_space<vmem>>, vector<3x768xf32>
    tpu.vector_store %arg13[%c84, %c0_109], %85 {strides = array<i32>} : memref<108x768xf32, #tpu.memory_space<vmem>>, vector<3x768xf32>,
    %c0_110 = arith.constant 0 : index
    %c9_111 = arith.constant 9 : index
    %c2_112 = arith.constant 2 : index
    %87 = vector.load %arg1[%c0_110, %c9_111, %c2_112] : memref<1x12x896xf32, #tpu.memory_space<vmem>>, vector<1x3x768xf32>
    %88 = vector.shape_cast %87 : vector<1x3x768xf32> to vector<3x768xf32>
    %c87 = arith.constant 87 : index
    %c0_113 = arith.constant 0 : index
    %89 = vector.load %arg13[%c87, %c0_113] : memref<108x768xf32, #tpu.memory_space<vmem>>, vector<3x768xf32>
    tpu.vector_store %arg13[%c87, %c0_113], %88 {strides = array<i32>} : memref<108x768xf32, #tpu.memory_space<vmem>>, vector<3x768xf32>,
    %c0_114 = arith.constant 0 : index
    %c9_115 = arith.constant 9 : index
    %c16_116 = arith.constant 16 : index
    %90 = vector.load %arg1[%c0_114, %c9_115, %c16_116] : memref<1x12x896xf32, #tpu.memory_space<vmem>>, vector<1x3x768xf32>
    %91 = vector.shape_cast %90 : vector<1x3x768xf32> to vector<3x768xf32>
    %c90 = arith.constant 90 : index
    %c0_117 = arith.constant 0 : index
    %92 = vector.load %arg13[%c90, %c0_117] : memref<108x768xf32, #tpu.memory_space<vmem>>, vector<3x768xf32>
    tpu.vector_store %arg13[%c90, %c0_117], %91 {strides = array<i32>} : memref<108x768xf32, #tpu.memory_space<vmem>>, vector<3x768xf32>,
    %c0_118 = arith.constant 0 : index
    %c9_119 = arith.constant 9 : index
    %c17_120 = arith.constant 17 : index
    %93 = vector.load %arg1[%c0_118, %c9_119, %c17_120] : memref<1x12x896xf32, #tpu.memory_space<vmem>>, vector<1x3x768xf32>
    %94 = vector.shape_cast %93 : vector<1x3x768xf32> to vector<3x768xf32>
    %c93 = arith.constant 93 : index
    %c0_121 = arith.constant 0 : index
    %95 = vector.load %arg13[%c93, %c0_121] : memref<108x768xf32, #tpu.memory_space<vmem>>, vector<3x768xf32>
    tpu.vector_store %arg13[%c93, %c0_121], %94 {strides = array<i32>} : memref<108x768xf32, #tpu.memory_space<vmem>>, vector<3x768xf32>,
    %c0_122 = arith.constant 0 : index
    %c9_123 = arith.constant 9 : index
    %c18_124 = arith.constant 18 : index
    %96 = vector.load %arg1[%c0_122, %c9_123, %c18_124] : memref<1x12x896xf32, #tpu.memory_space<vmem>>, vector<1x3x768xf32>
    %97 = vector.shape_cast %96 : vector<1x3x768xf32> to vector<3x768xf32>
    %c96 = arith.constant 96 : index
    %c0_125 = arith.constant 0 : index
    %98 = vector.load %arg13[%c96, %c0_125] : memref<108x768xf32, #tpu.memory_space<vmem>>, vector<3x768xf32>
    tpu.vector_store %arg13[%c96, %c0_125], %97 {strides = array<i32>} : memref<108x768xf32, #tpu.memory_space<vmem>>, vector<3x768xf32>,
    %c0_126 = arith.constant 0 : index
    %c9_127 = arith.constant 9 : index
    %c32_128 = arith.constant 32 : index
    %99 = vector.load %arg1[%c0_126, %c9_127, %c32_128] : memref<1x12x896xf32, #tpu.memory_space<vmem>>, vector<1x3x768xf32>
    %100 = vector.shape_cast %99 : vector<1x3x768xf32> to vector<3x768xf32>
    %c99 = arith.constant 99 : index
    %c0_129 = arith.constant 0 : index
    %101 = vector.load %arg13[%c99, %c0_129] : memref<108x768xf32, #tpu.memory_space<vmem>>, vector<3x768xf32>
    tpu.vector_store %arg13[%c99, %c0_129], %100 {strides = array<i32>} : memref<108x768xf32, #tpu.memory_space<vmem>>, vector<3x768xf32>,
    %c0_130 = arith.constant 0 : index
    %c9_131 = arith.constant 9 : index
    %c33_132 = arith.constant 33 : index
    %102 = vector.load %arg1[%c0_130, %c9_131, %c33_132] : memref<1x12x896xf32, #tpu.memory_space<vmem>>, vector<1x3x768xf32>
    %103 = vector.shape_cast %102 : vector<1x3x768xf32> to vector<3x768xf32>
    %c102 = arith.constant 102 : index
    %c0_133 = arith.constant 0 : index
    %104 = vector.load %arg13[%c102, %c0_133] : memref<108x768xf32, #tpu.memory_space<vmem>>, vector<3x768xf32>
    tpu.vector_store %arg13[%c102, %c0_133], %103 {strides = array<i32>} : memref<108x768xf32, #tpu.memory_space<vmem>>, vector<3x768xf32>,
    %c0_134 = arith.constant 0 : index
    %c9_135 = arith.constant 9 : index
    %c34_136 = arith.constant 34 : index
    %105 = vector.load %arg1[%c0_134, %c9_135, %c34_136] : memref<1x12x896xf32, #tpu.memory_space<vmem>>, vector<1x3x768xf32>
    %106 = vector.shape_cast %105 : vector<1x3x768xf32> to vector<3x768xf32>
    %c105 = arith.constant 105 : index
    %c0_137 = arith.constant 0 : index
    %107 = vector.load %arg13[%c105, %c0_137] : memref<108x768xf32, #tpu.memory_space<vmem>>, vector<3x768xf32>
    tpu.vector_store %arg13[%c105, %c0_137], %106 {strides = array<i32>} : memref<108x768xf32, #tpu.memory_space<vmem>>, vector<3x768xf32>,
    %c0_138 = arith.constant 0 : index
    %c0_139 = arith.constant 0 : index
    %108 = vector.load %arg2[%c0_138, %c0_139] : memref<32x108xf32, #tpu.memory_space<vmem>>, vector<32x108xf32>
    %c0_140 = arith.constant 0 : index
    %c0_141 = arith.constant 0 : index
    %109 = vector.load %arg13[%c0_140, %c0_141] : memref<108x768xf32, #tpu.memory_space<vmem>>, vector<108x768xf32>
    %cst = arith.constant dense<0.000000e+00> : vector<32x768xf32>
    %110 = tpu.matmul %108, %109, %cst {dimension_numbers = #tpu.dot_dimension_numbers<[1], [0], [0], [1], [0, 0, 1, 1], [], []>} : vector<32x108xf32>, vector<108x768xf32>, vector<32x768xf32> -> vector<32x768xf32>
    %c0_142 = arith.constant 0 : index
    %c0_143 = arith.constant 0 : index
    %111 = vector.load %arg14[%c0_142, %c0_143] : memref<32x768xf32, #tpu.memory_space<vmem>>, vector<32x768xf32>
    tpu.vector_store %arg14[%c0_142, %c0_143], %110 {strides = array<i32>} : memref<32x768xf32, #tpu.memory_space<vmem>>, vector<32x768xf32>,
    %c0_144 = arith.constant 0 : index
    %c0_145 = arith.constant 0 : index
    %112 = vector.load %arg14[%c0_144, %c0_145] : memref<32x768xf32, #tpu.memory_space<vmem>>, vector<6x768xf32>
    %c8 = arith.constant 8 : index
    %c0_146 = arith.constant 0 : index
    %113 = vector.load %arg14[%c8, %c0_146] : memref<32x768xf32, #tpu.memory_space<vmem>>, vector<6x768xf32>
    %114 = arith.maximumf %112, %113 : vector<6x768xf32>
    %c16_147 = arith.constant 16 : index
    %c0_148 = arith.constant 0 : index
    %115 = vector.load %arg14[%c16_147, %c0_148] : memref<32x768xf32, #tpu.memory_space<vmem>>, vector<6x768xf32>
    %c24_149 = arith.constant 24 : index
    %c0_150 = arith.constant 0 : index
    %116 = vector.load %arg14[%c24_149, %c0_150] : memref<32x768xf32, #tpu.memory_space<vmem>>, vector<6x768xf32>
    %117 = arith.maximumf %115, %116 : vector<6x768xf32>
    %118 = arith.maximumf %114, %117 : vector<6x768xf32>
    %c0_151 = arith.constant 0 : index
    %c0_152 = arith.constant 0 : index
    %119 = vector.load %arg3[%c0_151, %c0_152] : memref<6x1xf32, #tpu.memory_space<vmem>>, vector<6x1xf32>
    %120 = vector.broadcast %119 : vector<6x1xf32> to vector<6x768xf32>
    %121 = arith.addf %118, %120 : vector<6x768xf32>
    %cst_153 = arith.constant 0.000000e+00 : f32
    %122 = vector.broadcast %cst_153 : f32 to vector<6x768xf32>
    %123 = arith.maximumf %121, %122 : vector<6x768xf32>
    %c0_154 = arith.constant 0 : index
    %c0_155 = arith.constant 0 : index
    %124 = vector.load %arg15[%c0_154, %c0_155] : memref<6x768xf32, #tpu.memory_space<vmem>>, vector<6x768xf32>
    tpu.vector_store %arg15[%c0_154, %c0_155], %123 {strides = array<i32>} : memref<6x768xf32, #tpu.memory_space<vmem>>, vector<6x768xf32>,
    %c0_156 = arith.constant 0 : index
    %c0_157 = arith.constant 0 : index
    %125 = vector.load %arg15[%c0_156, %c0_157] : memref<6x768xf32, #tpu.memory_space<vmem>>, vector<6x640xf32>
    %c0_158 = arith.constant 0 : index
    %c0_159 = arith.constant 0 : index
    %126 = vector.load %arg16[%c0_158, %c0_159] : memref<150x640xf32, #tpu.memory_space<vmem>>, vector<6x640xf32>
    tpu.vector_store %arg16[%c0_158, %c0_159], %125 {strides = array<i32>} : memref<150x640xf32, #tpu.memory_space<vmem>>, vector<6x640xf32>,
    %c0_160 = arith.constant 0 : index
    %c1_161 = arith.constant 1 : index
    %127 = vector.load %arg15[%c0_160, %c1_161] : memref<6x768xf32, #tpu.memory_space<vmem>>, vector<6x640xf32>
    %c6_162 = arith.constant 6 : index
    %c0_163 = arith.constant 0 : index
    %128 = vector.load %arg16[%c6_162, %c0_163] : memref<150x640xf32, #tpu.memory_space<vmem>>, vector<6x640xf32>
    tpu.vector_store %arg16[%c6_162, %c0_163], %127 {strides = array<i32>} : memref<150x640xf32, #tpu.memory_space<vmem>>, vector<6x640xf32>,
    %c0_164 = arith.constant 0 : index
    %c2_165 = arith.constant 2 : index
    %129 = vector.load %arg15[%c0_164, %c2_165] : memref<6x768xf32, #tpu.memory_space<vmem>>, vector<6x640xf32>
    %c12_166 = arith.constant 12 : index
    %c0_167 = arith.constant 0 : index
    %130 = vector.load %arg16[%c12_166, %c0_167] : memref<150x640xf32, #tpu.memory_space<vmem>>, vector<6x640xf32>
    tpu.vector_store %arg16[%c12_166, %c0_167], %129 {strides = array<i32>} : memref<150x640xf32, #tpu.memory_space<vmem>>, vector<6x640xf32>,
    %c0_168 = arith.constant 0 : index
    %c3_169 = arith.constant 3 : index
    %131 = vector.load %arg15[%c0_168, %c3_169] : memref<6x768xf32, #tpu.memory_space<vmem>>, vector<6x640xf32>
    %c18_170 = arith.constant 18 : index
    %c0_171 = arith.constant 0 : index
    %132 = vector.load %arg16[%c18_170, %c0_171] : memref<150x640xf32, #tpu.memory_space<vmem>>, vector<6x640xf32>
    tpu.vector_store %arg16[%c18_170, %c0_171], %131 {strides = array<i32>} : memref<150x640xf32, #tpu.memory_space<vmem>>, vector<6x640xf32>,
    %c0_172 = arith.constant 0 : index
    %c4 = arith.constant 4 : index
    %133 = vector.load %arg15[%c0_172, %c4] : memref<6x768xf32, #tpu.memory_space<vmem>>, vector<6x640xf32>
    %c24_173 = arith.constant 24 : index
    %c0_174 = arith.constant 0 : index
    %134 = vector.load %arg16[%c24_173, %c0_174] : memref<150x640xf32, #tpu.memory_space<vmem>>, vector<6x640xf32>
    tpu.vector_store %arg16[%c24_173, %c0_174], %133 {strides = array<i32>} : memref<150x640xf32, #tpu.memory_space<vmem>>, vector<6x640xf32>,
    %c0_175 = arith.constant 0 : index
    %c16_176 = arith.constant 16 : index
    %135 = vector.load %arg15[%c0_175, %c16_176] : memref<6x768xf32, #tpu.memory_space<vmem>>, vector<6x640xf32>
    %c30_177 = arith.constant 30 : index
    %c0_178 = arith.constant 0 : index
    %136 = vector.load %arg16[%c30_177, %c0_178] : memref<150x640xf32, #tpu.memory_space<vmem>>, vector<6x640xf32>
    tpu.vector_store %arg16[%c30_177, %c0_178], %135 {strides = array<i32>} : memref<150x640xf32, #tpu.memory_space<vmem>>, vector<6x640xf32>,
    %c0_179 = arith.constant 0 : index
    %c17_180 = arith.constant 17 : index
    %137 = vector.load %arg15[%c0_179, %c17_180] : memref<6x768xf32, #tpu.memory_space<vmem>>, vector<6x640xf32>
    %c36_181 = arith.constant 36 : index
    %c0_182 = arith.constant 0 : index
    %138 = vector.load %arg16[%c36_181, %c0_182] : memref<150x640xf32, #tpu.memory_space<vmem>>, vector<6x640xf32>
    tpu.vector_store %arg16[%c36_181, %c0_182], %137 {strides = array<i32>} : memref<150x640xf32, #tpu.memory_space<vmem>>, vector<6x640xf32>,
    %c0_183 = arith.constant 0 : index
    %c18_184 = arith.constant 18 : index
    %139 = vector.load %arg15[%c0_183, %c18_184] : memref<6x768xf32, #tpu.memory_space<vmem>>, vector<6x640xf32>
    %c42_185 = arith.constant 42 : index
    %c0_186 = arith.constant 0 : index
    %140 = vector.load %arg16[%c42_185, %c0_186] : memref<150x640xf32, #tpu.memory_space<vmem>>, vector<6x640xf32>
    tpu.vector_store %arg16[%c42_185, %c0_186], %139 {strides = array<i32>} : memref<150x640xf32, #tpu.memory_space<vmem>>, vector<6x640xf32>,
    %c0_187 = arith.constant 0 : index
    %c19 = arith.constant 19 : index
    %141 = vector.load %arg15[%c0_187, %c19] : memref<6x768xf32, #tpu.memory_space<vmem>>, vector<6x640xf32>
    %c48_188 = arith.constant 48 : index
    %c0_189 = arith.constant 0 : index
    %142 = vector.load %arg16[%c48_188, %c0_189] : memref<150x640xf32, #tpu.memory_space<vmem>>, vector<6x640xf32>
    tpu.vector_store %arg16[%c48_188, %c0_189], %141 {strides = array<i32>} : memref<150x640xf32, #tpu.memory_space<vmem>>, vector<6x640xf32>,
    %c0_190 = arith.constant 0 : index
    %c20 = arith.constant 20 : index
    %143 = vector.load %arg15[%c0_190, %c20] : memref<6x768xf32, #tpu.memory_space<vmem>>, vector<6x640xf32>
    %c54_191 = arith.constant 54 : index
    %c0_192 = arith.constant 0 : index
    %144 = vector.load %arg16[%c54_191, %c0_192] : memref<150x640xf32, #tpu.memory_space<vmem>>, vector<6x640xf32>
    tpu.vector_store %arg16[%c54_191, %c0_192], %143 {strides = array<i32>} : memref<150x640xf32, #tpu.memory_space<vmem>>, vector<6x640xf32>,
    %c0_193 = arith.constant 0 : index
    %c32_194 = arith.constant 32 : index
    %145 = vector.load %arg15[%c0_193, %c32_194] : memref<6x768xf32, #tpu.memory_space<vmem>>, vector<6x640xf32>
    %c60_195 = arith.constant 60 : index
    %c0_196 = arith.constant 0 : index
    %146 = vector.load %arg16[%c60_195, %c0_196] : memref<150x640xf32, #tpu.memory_space<vmem>>, vector<6x640xf32>
    tpu.vector_store %arg16[%c60_195, %c0_196], %145 {strides = array<i32>} : memref<150x640xf32, #tpu.memory_space<vmem>>, vector<6x640xf32>,
    %c0_197 = arith.constant 0 : index
    %c33_198 = arith.constant 33 : index
    %147 = vector.load %arg15[%c0_197, %c33_198] : memref<6x768xf32, #tpu.memory_space<vmem>>, vector<6x640xf32>
    %c66_199 = arith.constant 66 : index
    %c0_200 = arith.constant 0 : index
    %148 = vector.load %arg16[%c66_199, %c0_200] : memref<150x640xf32, #tpu.memory_space<vmem>>, vector<6x640xf32>
    tpu.vector_store %arg16[%c66_199, %c0_200], %147 {strides = array<i32>} : memref<150x640xf32, #tpu.memory_space<vmem>>, vector<6x640xf32>,
    %c0_201 = arith.constant 0 : index
    %c34_202 = arith.constant 34 : index
    %149 = vector.load %arg15[%c0_201, %c34_202] : memref<6x768xf32, #tpu.memory_space<vmem>>, vector<6x640xf32>
    %c72_203 = arith.constant 72 : index
    %c0_204 = arith.constant 0 : index
    %150 = vector.load %arg16[%c72_203, %c0_204] : memref<150x640xf32, #tpu.memory_space<vmem>>, vector<6x640xf32>
    tpu.vector_store %arg16[%c72_203, %c0_204], %149 {strides = array<i32>} : memref<150x640xf32, #tpu.memory_space<vmem>>, vector<6x640xf32>,
    %c0_205 = arith.constant 0 : index
    %c35 = arith.constant 35 : index
    %151 = vector.load %arg15[%c0_205, %c35] : memref<6x768xf32, #tpu.memory_space<vmem>>, vector<6x640xf32>
    %c78_206 = arith.constant 78 : index
    %c0_207 = arith.constant 0 : index
    %152 = vector.load %arg16[%c78_206, %c0_207] : memref<150x640xf32, #tpu.memory_space<vmem>>, vector<6x640xf32>
    tpu.vector_store %arg16[%c78_206, %c0_207], %151 {strides = array<i32>} : memref<150x640xf32, #tpu.memory_space<vmem>>, vector<6x640xf32>,
    %c0_208 = arith.constant 0 : index
    %c36_209 = arith.constant 36 : index
    %153 = vector.load %arg15[%c0_208, %c36_209] : memref<6x768xf32, #tpu.memory_space<vmem>>, vector<6x640xf32>
    %c84_210 = arith.constant 84 : index
    %c0_211 = arith.constant 0 : index
    %154 = vector.load %arg16[%c84_210, %c0_211] : memref<150x640xf32, #tpu.memory_space<vmem>>, vector<6x640xf32>
    tpu.vector_store %arg16[%c84_210, %c0_211], %153 {strides = array<i32>} : memref<150x640xf32, #tpu.memory_space<vmem>>, vector<6x640xf32>,
    %c0_212 = arith.constant 0 : index
    %c48_213 = arith.constant 48 : index
    %155 = vector.load %arg15[%c0_212, %c48_213] : memref<6x768xf32, #tpu.memory_space<vmem>>, vector<6x640xf32>
    %c90_214 = arith.constant 90 : index
    %c0_215 = arith.constant 0 : index
    %156 = vector.load %arg16[%c90_214, %c0_215] : memref<150x640xf32, #tpu.memory_space<vmem>>, vector<6x640xf32>
    tpu.vector_store %arg16[%c90_214, %c0_215], %155 {strides = array<i32>} : memref<150x640xf32, #tpu.memory_space<vmem>>, vector<6x640xf32>,
    %c0_216 = arith.constant 0 : index
    %c49 = arith.constant 49 : index
    %157 = vector.load %arg15[%c0_216, %c49] : memref<6x768xf32, #tpu.memory_space<vmem>>, vector<6x640xf32>
    %c96_217 = arith.constant 96 : index
    %c0_218 = arith.constant 0 : index
    %158 = vector.load %arg16[%c96_217, %c0_218] : memref<150x640xf32, #tpu.memory_space<vmem>>, vector<6x640xf32>
    tpu.vector_store %arg16[%c96_217, %c0_218], %157 {strides = array<i32>} : memref<150x640xf32, #tpu.memory_space<vmem>>, vector<6x640xf32>,
    %c0_219 = arith.constant 0 : index
    %c50 = arith.constant 50 : index
    %159 = vector.load %arg15[%c0_219, %c50] : memref<6x768xf32, #tpu.memory_space<vmem>>, vector<6x640xf32>
    %c102_220 = arith.constant 102 : index
    %c0_221 = arith.constant 0 : index
    %160 = vector.load %arg16[%c102_220, %c0_221] : memref<150x640xf32, #tpu.memory_space<vmem>>, vector<6x640xf32>
    tpu.vector_store %arg16[%c102_220, %c0_221], %159 {strides = array<i32>} : memref<150x640xf32, #tpu.memory_space<vmem>>, vector<6x640xf32>,
    %c0_222 = arith.constant 0 : index
    %c51_223 = arith.constant 51 : index
    %161 = vector.load %arg15[%c0_222, %c51_223] : memref<6x768xf32, #tpu.memory_space<vmem>>, vector<6x640xf32>
    %c108 = arith.constant 108 : index
    %c0_224 = arith.constant 0 : index
    %162 = vector.load %arg16[%c108, %c0_224] : memref<150x640xf32, #tpu.memory_space<vmem>>, vector<6x640xf32>
    tpu.vector_store %arg16[%c108, %c0_224], %161 {strides = array<i32>} : memref<150x640xf32, #tpu.memory_space<vmem>>, vector<6x640xf32>,
    %c0_225 = arith.constant 0 : index
    %c52 = arith.constant 52 : index
    %163 = vector.load %arg15[%c0_225, %c52] : memref<6x768xf32, #tpu.memory_space<vmem>>, vector<6x640xf32>
    %c114 = arith.constant 114 : index
    %c0_226 = arith.constant 0 : index
    %164 = vector.load %arg16[%c114, %c0_226] : memref<150x640xf32, #tpu.memory_space<vmem>>, vector<6x640xf32>
    tpu.vector_store %arg16[%c114, %c0_226], %163 {strides = array<i32>} : memref<150x640xf32, #tpu.memory_space<vmem>>, vector<6x640xf32>,
    %c0_227 = arith.constant 0 : index
    %c64 = arith.constant 64 : index
    %165 = vector.load %arg15[%c0_227, %c64] : memref<6x768xf32, #tpu.memory_space<vmem>>, vector<6x640xf32>
    %c120 = arith.constant 120 : index
    %c0_228 = arith.constant 0 : index
    %166 = vector.load %arg16[%c120, %c0_228] : memref<150x640xf32, #tpu.memory_space<vmem>>, vector<6x640xf32>
    tpu.vector_store %arg16[%c120, %c0_228], %165 {strides = array<i32>} : memref<150x640xf32, #tpu.memory_space<vmem>>, vector<6x640xf32>,
    %c0_229 = arith.constant 0 : index
    %c65 = arith.constant 65 : index
    %167 = vector.load %arg15[%c0_229, %c65] : memref<6x768xf32, #tpu.memory_space<vmem>>, vector<6x640xf32>
    %c126 = arith.constant 126 : index
    %c0_230 = arith.constant 0 : index
    %168 = vector.load %arg16[%c126, %c0_230] : memref<150x640xf32, #tpu.memory_space<vmem>>, vector<6x640xf32>
    tpu.vector_store %arg16[%c126, %c0_230], %167 {strides = array<i32>} : memref<150x640xf32, #tpu.memory_space<vmem>>, vector<6x640xf32>,
    %c0_231 = arith.constant 0 : index
    %c66_232 = arith.constant 66 : index
    %169 = vector.load %arg15[%c0_231, %c66_232] : memref<6x768xf32, #tpu.memory_space<vmem>>, vector<6x640xf32>
    %c132 = arith.constant 132 : index
    %c0_233 = arith.constant 0 : index
    %170 = vector.load %arg16[%c132, %c0_233] : memref<150x640xf32, #tpu.memory_space<vmem>>, vector<6x640xf32>
    tpu.vector_store %arg16[%c132, %c0_233], %169 {strides = array<i32>} : memref<150x640xf32, #tpu.memory_space<vmem>>, vector<6x640xf32>,
    %c0_234 = arith.constant 0 : index
    %c67 = arith.constant 67 : index
    %171 = vector.load %arg15[%c0_234, %c67] : memref<6x768xf32, #tpu.memory_space<vmem>>, vector<6x640xf32>
    %c138 = arith.constant 138 : index
    %c0_235 = arith.constant 0 : index
    %172 = vector.load %arg16[%c138, %c0_235] : memref<150x640xf32, #tpu.memory_space<vmem>>, vector<6x640xf32>
    tpu.vector_store %arg16[%c138, %c0_235], %171 {strides = array<i32>} : memref<150x640xf32, #tpu.memory_space<vmem>>, vector<6x640xf32>,
    %c0_236 = arith.constant 0 : index
    %c68 = arith.constant 68 : index
    %173 = vector.load %arg15[%c0_236, %c68] : memref<6x768xf32, #tpu.memory_space<vmem>>, vector<6x640xf32>
    %c144 = arith.constant 144 : index
    %c0_237 = arith.constant 0 : index
    %174 = vector.load %arg16[%c144, %c0_237] : memref<150x640xf32, #tpu.memory_space<vmem>>, vector<6x640xf32>
    tpu.vector_store %arg16[%c144, %c0_237], %173 {strides = array<i32>} : memref<150x640xf32, #tpu.memory_space<vmem>>, vector<6x640xf32>,
    %c0_238 = arith.constant 0 : index
    %c0_239 = arith.constant 0 : index
    %175 = vector.load %arg4[%c0_238, %c0_239] : memref<16x150xf32, #tpu.memory_space<vmem>>, vector<16x150xf32>
    %c0_240 = arith.constant 0 : index
    %c0_241 = arith.constant 0 : index
    %176 = vector.load %arg16[%c0_240, %c0_241] : memref<150x640xf32, #tpu.memory_space<vmem>>, vector<150x640xf32>
    %cst_242 = arith.constant dense<0.000000e+00> : vector<16x640xf32>
    %177 = tpu.matmul %175, %176, %cst_242 {dimension_numbers = #tpu.dot_dimension_numbers<[1], [0], [0], [1], [0, 0, 1, 1], [], []>} : vector<16x150xf32>, vector<150x640xf32>, vector<16x640xf32> -> vector<16x640xf32>
    %c0_243 = arith.constant 0 : index
    %c0_244 = arith.constant 0 : index
    %178 = vector.load %arg5[%c0_243, %c0_244] : memref<16x1xf32, #tpu.memory_space<vmem>>, vector<16x1xf32>
    %179 = vector.broadcast %178 : vector<16x1xf32> to vector<16x640xf32>
    %180 = arith.addf %177, %179 : vector<16x640xf32>
    %cst_245 = arith.constant 0.000000e+00 : f32
    %181 = vector.broadcast %cst_245 : f32 to vector<16x640xf32>
    %182 = arith.maximumf %180, %181 : vector<16x640xf32>
    %c0_246 = arith.constant 0 : index
    %c0_247 = arith.constant 0 : index
    %183 = vector.load %arg17[%c0_246, %c0_247] : memref<16x640xf32, #tpu.memory_space<vmem>>, vector<16x640xf32>
    tpu.vector_store %arg17[%c0_246, %c0_247], %182 {strides = array<i32>} : memref<16x640xf32, #tpu.memory_space<vmem>>, vector<16x640xf32>,
    %c0_248 = arith.constant 0 : index
    %c0_249 = arith.constant 0 : index
    %184 = vector.load %arg17[%c0_248, %c0_249] : memref<16x640xf32, #tpu.memory_space<vmem>>, vector<16x512xf32>
    %c0_250 = arith.constant 0 : index
    %c1_251 = arith.constant 1 : index
    %185 = vector.load %arg17[%c0_250, %c1_251] : memref<16x640xf32, #tpu.memory_space<vmem>>, vector<16x512xf32>
    %186 = arith.maximumf %184, %185 : vector<16x512xf32>
    %c0_252 = arith.constant 0 : index
    %c16_253 = arith.constant 16 : index
    %187 = vector.load %arg17[%c0_252, %c16_253] : memref<16x640xf32, #tpu.memory_space<vmem>>, vector<16x512xf32>
    %c0_254 = arith.constant 0 : index
    %c17_255 = arith.constant 17 : index
    %188 = vector.load %arg17[%c0_254, %c17_255] : memref<16x640xf32, #tpu.memory_space<vmem>>, vector<16x512xf32>
    %189 = arith.maximumf %187, %188 : vector<16x512xf32>
    %190 = arith.maximumf %186, %189 : vector<16x512xf32>
    %c0_256 = arith.constant 0 : index
    %c0_257 = arith.constant 0 : index
    %191 = vector.load %arg18[%c0_256, %c0_257] : memref<16x512xf32, #tpu.memory_space<vmem>>, vector<16x512xf32>
    tpu.vector_store %arg18[%c0_256, %c0_257], %190 {strides = array<i32>} : memref<16x512xf32, #tpu.memory_space<vmem>>, vector<16x512xf32>,
    %c0_258 = arith.constant 0 : index
    %c0_259 = arith.constant 0 : index
    %192 = vector.load %arg18[%c0_258, %c0_259] : memref<16x512xf32, #tpu.memory_space<vmem>>, vector<1x256xf32>
    %c0_260 = arith.constant 0 : index
    %c0_261 = arith.constant 0 : index
    %193 = vector.load %arg19[%c0_260, %c0_261] : memref<2x4096xf32, #tpu.memory_space<vmem>>, vector<1x256xf32>
    tpu.vector_store %arg19[%c0_260, %c0_261], %192 {strides = array<i32>} : memref<2x4096xf32, #tpu.memory_space<vmem>>, vector<1x256xf32>,
    %c1_262 = arith.constant 1 : index
    %c0_263 = arith.constant 0 : index
    %194 = vector.load %arg18[%c1_262, %c0_263] : memref<16x512xf32, #tpu.memory_space<vmem>>, vector<1x256xf32>
    %c0_264 = arith.constant 0 : index
    %c256 = arith.constant 256 : index
    %195 = vector.load %arg19[%c0_264, %c256] : memref<2x4096xf32, #tpu.memory_space<vmem>>, vector<1x256xf32>
    tpu.vector_store %arg19[%c0_264, %c256], %194 {strides = array<i32>} : memref<2x4096xf32, #tpu.memory_space<vmem>>, vector<1x256xf32>,
    %c2_265 = arith.constant 2 : index
    %c0_266 = arith.constant 0 : index
    %196 = vector.load %arg18[%c2_265, %c0_266] : memref<16x512xf32, #tpu.memory_space<vmem>>, vector<1x256xf32>
    %c0_267 = arith.constant 0 : index
    %c512 = arith.constant 512 : index
    %197 = vector.load %arg19[%c0_267, %c512] : memref<2x4096xf32, #tpu.memory_space<vmem>>, vector<1x256xf32>
    tpu.vector_store %arg19[%c0_267, %c512], %196 {strides = array<i32>} : memref<2x4096xf32, #tpu.memory_space<vmem>>, vector<1x256xf32>,
    %c3_268 = arith.constant 3 : index
    %c0_269 = arith.constant 0 : index
    %198 = vector.load %arg18[%c3_268, %c0_269] : memref<16x512xf32, #tpu.memory_space<vmem>>, vector<1x256xf32>
    %c0_270 = arith.constant 0 : index
    %c768 = arith.constant 768 : index
    %199 = vector.load %arg19[%c0_270, %c768] : memref<2x4096xf32, #tpu.memory_space<vmem>>, vector<1x256xf32>
    tpu.vector_store %arg19[%c0_270, %c768], %198 {strides = array<i32>} : memref<2x4096xf32, #tpu.memory_space<vmem>>, vector<1x256xf32>,
    %c4_271 = arith.constant 4 : index
    %c0_272 = arith.constant 0 : index
    %200 = vector.load %arg18[%c4_271, %c0_272] : memref<16x512xf32, #tpu.memory_space<vmem>>, vector<1x256xf32>
    %c0_273 = arith.constant 0 : index
    %c1024 = arith.constant 1024 : index
    %201 = vector.load %arg19[%c0_273, %c1024] : memref<2x4096xf32, #tpu.memory_space<vmem>>, vector<1x256xf32>
    tpu.vector_store %arg19[%c0_273, %c1024], %200 {strides = array<i32>} : memref<2x4096xf32, #tpu.memory_space<vmem>>, vector<1x256xf32>,
    %c5 = arith.constant 5 : index
    %c0_274 = arith.constant 0 : index
    %202 = vector.load %arg18[%c5, %c0_274] : memref<16x512xf32, #tpu.memory_space<vmem>>, vector<1x256xf32>
    %c0_275 = arith.constant 0 : index
    %c1280 = arith.constant 1280 : index
    %203 = vector.load %arg19[%c0_275, %c1280] : memref<2x4096xf32, #tpu.memory_space<vmem>>, vector<1x256xf32>
    tpu.vector_store %arg19[%c0_275, %c1280], %202 {strides = array<i32>} : memref<2x4096xf32, #tpu.memory_space<vmem>>, vector<1x256xf32>,
    %c6_276 = arith.constant 6 : index
    %c0_277 = arith.constant 0 : index
    %204 = vector.load %arg18[%c6_276, %c0_277] : memref<16x512xf32, #tpu.memory_space<vmem>>, vector<1x256xf32>
    %c0_278 = arith.constant 0 : index
    %c1536 = arith.constant 1536 : index
    %205 = vector.load %arg19[%c0_278, %c1536] : memref<2x4096xf32, #tpu.memory_space<vmem>>, vector<1x256xf32>
    tpu.vector_store %arg19[%c0_278, %c1536], %204 {strides = array<i32>} : memref<2x4096xf32, #tpu.memory_space<vmem>>, vector<1x256xf32>,
    %c7 = arith.constant 7 : index
    %c0_279 = arith.constant 0 : index
    %206 = vector.load %arg18[%c7, %c0_279] : memref<16x512xf32, #tpu.memory_space<vmem>>, vector<1x256xf32>
    %c0_280 = arith.constant 0 : index
    %c1792 = arith.constant 1792 : index
    %207 = vector.load %arg19[%c0_280, %c1792] : memref<2x4096xf32, #tpu.memory_space<vmem>>, vector<1x256xf32>
    tpu.vector_store %arg19[%c0_280, %c1792], %206 {strides = array<i32>} : memref<2x4096xf32, #tpu.memory_space<vmem>>, vector<1x256xf32>,
    %c8_281 = arith.constant 8 : index
    %c0_282 = arith.constant 0 : index
    %208 = vector.load %arg18[%c8_281, %c0_282] : memref<16x512xf32, #tpu.memory_space<vmem>>, vector<1x256xf32>
    %c0_283 = arith.constant 0 : index
    %c2048 = arith.constant 2048 : index
    %209 = vector.load %arg19[%c0_283, %c2048] : memref<2x4096xf32, #tpu.memory_space<vmem>>, vector<1x256xf32>
    tpu.vector_store %arg19[%c0_283, %c2048], %208 {strides = array<i32>} : memref<2x4096xf32, #tpu.memory_space<vmem>>, vector<1x256xf32>,
    %c9_284 = arith.constant 9 : index
    %c0_285 = arith.constant 0 : index
    %210 = vector.load %arg18[%c9_284, %c0_285] : memref<16x512xf32, #tpu.memory_space<vmem>>, vector<1x256xf32>
    %c0_286 = arith.constant 0 : index
    %c2304 = arith.constant 2304 : index
    %211 = vector.load %arg19[%c0_286, %c2304] : memref<2x4096xf32, #tpu.memory_space<vmem>>, vector<1x256xf32>
    tpu.vector_store %arg19[%c0_286, %c2304], %210 {strides = array<i32>} : memref<2x4096xf32, #tpu.memory_space<vmem>>, vector<1x256xf32>,
    %c10 = arith.constant 10 : index
    %c0_287 = arith.constant 0 : index
    %212 = vector.load %arg18[%c10, %c0_287] : memref<16x512xf32, #tpu.memory_space<vmem>>, vector<1x256xf32>
    %c0_288 = arith.constant 0 : index
    %c2560 = arith.constant 2560 : index
    %213 = vector.load %arg19[%c0_288, %c2560] : memref<2x4096xf32, #tpu.memory_space<vmem>>, vector<1x256xf32>
    tpu.vector_store %arg19[%c0_288, %c2560], %212 {strides = array<i32>} : memref<2x4096xf32, #tpu.memory_space<vmem>>, vector<1x256xf32>,
    %c11 = arith.constant 11 : index
    %c0_289 = arith.constant 0 : index
    %214 = vector.load %arg18[%c11, %c0_289] : memref<16x512xf32, #tpu.memory_space<vmem>>, vector<1x256xf32>
    %c0_290 = arith.constant 0 : index
    %c2816 = arith.constant 2816 : index
    %215 = vector.load %arg19[%c0_290, %c2816] : memref<2x4096xf32, #tpu.memory_space<vmem>>, vector<1x256xf32>
    tpu.vector_store %arg19[%c0_290, %c2816], %214 {strides = array<i32>} : memref<2x4096xf32, #tpu.memory_space<vmem>>, vector<1x256xf32>,
    %c12_291 = arith.constant 12 : index
    %c0_292 = arith.constant 0 : index
    %216 = vector.load %arg18[%c12_291, %c0_292] : memref<16x512xf32, #tpu.memory_space<vmem>>, vector<1x256xf32>
    %c0_293 = arith.constant 0 : index
    %c3072 = arith.constant 3072 : index
    %217 = vector.load %arg19[%c0_293, %c3072] : memref<2x4096xf32, #tpu.memory_space<vmem>>, vector<1x256xf32>
    tpu.vector_store %arg19[%c0_293, %c3072], %216 {strides = array<i32>} : memref<2x4096xf32, #tpu.memory_space<vmem>>, vector<1x256xf32>,
    %c13 = arith.constant 13 : index
    %c0_294 = arith.constant 0 : index
    %218 = vector.load %arg18[%c13, %c0_294] : memref<16x512xf32, #tpu.memory_space<vmem>>, vector<1x256xf32>
    %c0_295 = arith.constant 0 : index
    %c3328 = arith.constant 3328 : index
    %219 = vector.load %arg19[%c0_295, %c3328] : memref<2x4096xf32, #tpu.memory_space<vmem>>, vector<1x256xf32>
    tpu.vector_store %arg19[%c0_295, %c3328], %218 {strides = array<i32>} : memref<2x4096xf32, #tpu.memory_space<vmem>>, vector<1x256xf32>,
    %c14 = arith.constant 14 : index
    %c0_296 = arith.constant 0 : index
    %220 = vector.load %arg18[%c14, %c0_296] : memref<16x512xf32, #tpu.memory_space<vmem>>, vector<1x256xf32>
    %c0_297 = arith.constant 0 : index
    %c3584 = arith.constant 3584 : index
    %221 = vector.load %arg19[%c0_297, %c3584] : memref<2x4096xf32, #tpu.memory_space<vmem>>, vector<1x256xf32>
    tpu.vector_store %arg19[%c0_297, %c3584], %220 {strides = array<i32>} : memref<2x4096xf32, #tpu.memory_space<vmem>>, vector<1x256xf32>,
    %c15_298 = arith.constant 15 : index
    %c0_299 = arith.constant 0 : index
    %222 = vector.load %arg18[%c15_298, %c0_299] : memref<16x512xf32, #tpu.memory_space<vmem>>, vector<1x256xf32>
    %c0_300 = arith.constant 0 : index
    %c3840 = arith.constant 3840 : index
    %223 = vector.load %arg19[%c0_300, %c3840] : memref<2x4096xf32, #tpu.memory_space<vmem>>, vector<1x256xf32>
    tpu.vector_store %arg19[%c0_300, %c3840], %222 {strides = array<i32>} : memref<2x4096xf32, #tpu.memory_space<vmem>>, vector<1x256xf32>,
    %c0_301 = arith.constant 0 : index
    %c256_302 = arith.constant 256 : index
    %224 = vector.load %arg18[%c0_301, %c256_302] : memref<16x512xf32, #tpu.memory_space<vmem>>, vector<1x256xf32>
    %c1_303 = arith.constant 1 : index
    %c0_304 = arith.constant 0 : index
    %225 = vector.load %arg19[%c1_303, %c0_304] : memref<2x4096xf32, #tpu.memory_space<vmem>>, vector<1x256xf32>
    tpu.vector_store %arg19[%c1_303, %c0_304], %224 {strides = array<i32>} : memref<2x4096xf32, #tpu.memory_space<vmem>>, vector<1x256xf32>,
    %c1_305 = arith.constant 1 : index
    %c256_306 = arith.constant 256 : index
    %226 = vector.load %arg18[%c1_305, %c256_306] : memref<16x512xf32, #tpu.memory_space<vmem>>, vector<1x256xf32>
    %c1_307 = arith.constant 1 : index
    %c256_308 = arith.constant 256 : index
    %227 = vector.load %arg19[%c1_307, %c256_308] : memref<2x4096xf32, #tpu.memory_space<vmem>>, vector<1x256xf32>
    tpu.vector_store %arg19[%c1_307, %c256_308], %226 {strides = array<i32>} : memref<2x4096xf32, #tpu.memory_space<vmem>>, vector<1x256xf32>,
    %c2_309 = arith.constant 2 : index
    %c256_310 = arith.constant 256 : index
    %228 = vector.load %arg18[%c2_309, %c256_310] : memref<16x512xf32, #tpu.memory_space<vmem>>, vector<1x256xf32>
    %c1_311 = arith.constant 1 : index
    %c512_312 = arith.constant 512 : index
    %229 = vector.load %arg19[%c1_311, %c512_312] : memref<2x4096xf32, #tpu.memory_space<vmem>>, vector<1x256xf32>
    tpu.vector_store %arg19[%c1_311, %c512_312], %228 {strides = array<i32>} : memref<2x4096xf32, #tpu.memory_space<vmem>>, vector<1x256xf32>,
    %c3_313 = arith.constant 3 : index
    %c256_314 = arith.constant 256 : index
    %230 = vector.load %arg18[%c3_313, %c256_314] : memref<16x512xf32, #tpu.memory_space<vmem>>, vector<1x256xf32>
    %c1_315 = arith.constant 1 : index
    %c768_316 = arith.constant 768 : index
    %231 = vector.load %arg19[%c1_315, %c768_316] : memref<2x4096xf32, #tpu.memory_space<vmem>>, vector<1x256xf32>
    tpu.vector_store %arg19[%c1_315, %c768_316], %230 {strides = array<i32>} : memref<2x4096xf32, #tpu.memory_space<vmem>>, vector<1x256xf32>,
    %c4_317 = arith.constant 4 : index
    %c256_318 = arith.constant 256 : index
    %232 = vector.load %arg18[%c4_317, %c256_318] : memref<16x512xf32, #tpu.memory_space<vmem>>, vector<1x256xf32>
    %c1_319 = arith.constant 1 : index
    %c1024_320 = arith.constant 1024 : index
    %233 = vector.load %arg19[%c1_319, %c1024_320] : memref<2x4096xf32, #tpu.memory_space<vmem>>, vector<1x256xf32>
    tpu.vector_store %arg19[%c1_319, %c1024_320], %232 {strides = array<i32>} : memref<2x4096xf32, #tpu.memory_space<vmem>>, vector<1x256xf32>,
    %c5_321 = arith.constant 5 : index
    %c256_322 = arith.constant 256 : index
    %234 = vector.load %arg18[%c5_321, %c256_322] : memref<16x512xf32, #tpu.memory_space<vmem>>, vector<1x256xf32>
    %c1_323 = arith.constant 1 : index
    %c1280_324 = arith.constant 1280 : index
    %235 = vector.load %arg19[%c1_323, %c1280_324] : memref<2x4096xf32, #tpu.memory_space<vmem>>, vector<1x256xf32>
    tpu.vector_store %arg19[%c1_323, %c1280_324], %234 {strides = array<i32>} : memref<2x4096xf32, #tpu.memory_space<vmem>>, vector<1x256xf32>,
    %c6_325 = arith.constant 6 : index
    %c256_326 = arith.constant 256 : index
    %236 = vector.load %arg18[%c6_325, %c256_326] : memref<16x512xf32, #tpu.memory_space<vmem>>, vector<1x256xf32>
    %c1_327 = arith.constant 1 : index
    %c1536_328 = arith.constant 1536 : index
    %237 = vector.load %arg19[%c1_327, %c1536_328] : memref<2x4096xf32, #tpu.memory_space<vmem>>, vector<1x256xf32>
    tpu.vector_store %arg19[%c1_327, %c1536_328], %236 {strides = array<i32>} : memref<2x4096xf32, #tpu.memory_space<vmem>>, vector<1x256xf32>,
    %c7_329 = arith.constant 7 : index
    %c256_330 = arith.constant 256 : index
    %238 = vector.load %arg18[%c7_329, %c256_330] : memref<16x512xf32, #tpu.memory_space<vmem>>, vector<1x256xf32>
    %c1_331 = arith.constant 1 : index
    %c1792_332 = arith.constant 1792 : index
    %239 = vector.load %arg19[%c1_331, %c1792_332] : memref<2x4096xf32, #tpu.memory_space<vmem>>, vector<1x256xf32>
    tpu.vector_store %arg19[%c1_331, %c1792_332], %238 {strides = array<i32>} : memref<2x4096xf32, #tpu.memory_space<vmem>>, vector<1x256xf32>,
    %c8_333 = arith.constant 8 : index
    %c256_334 = arith.constant 256 : index
    %240 = vector.load %arg18[%c8_333, %c256_334] : memref<16x512xf32, #tpu.memory_space<vmem>>, vector<1x256xf32>
    %c1_335 = arith.constant 1 : index
    %c2048_336 = arith.constant 2048 : index
    %241 = vector.load %arg19[%c1_335, %c2048_336] : memref<2x4096xf32, #tpu.memory_space<vmem>>, vector<1x256xf32>
    tpu.vector_store %arg19[%c1_335, %c2048_336], %240 {strides = array<i32>} : memref<2x4096xf32, #tpu.memory_space<vmem>>, vector<1x256xf32>,
    %c9_337 = arith.constant 9 : index
    %c256_338 = arith.constant 256 : index
    %242 = vector.load %arg18[%c9_337, %c256_338] : memref<16x512xf32, #tpu.memory_space<vmem>>, vector<1x256xf32>
    %c1_339 = arith.constant 1 : index
    %c2304_340 = arith.constant 2304 : index
    %243 = vector.load %arg19[%c1_339, %c2304_340] : memref<2x4096xf32, #tpu.memory_space<vmem>>, vector<1x256xf32>
    tpu.vector_store %arg19[%c1_339, %c2304_340], %242 {strides = array<i32>} : memref<2x4096xf32, #tpu.memory_space<vmem>>, vector<1x256xf32>,
    %c10_341 = arith.constant 10 : index
    %c256_342 = arith.constant 256 : index
    %244 = vector.load %arg18[%c10_341, %c256_342] : memref<16x512xf32, #tpu.memory_space<vmem>>, vector<1x256xf32>
    %c1_343 = arith.constant 1 : index
    %c2560_344 = arith.constant 2560 : index
    %245 = vector.load %arg19[%c1_343, %c2560_344] : memref<2x4096xf32, #tpu.memory_space<vmem>>, vector<1x256xf32>
    tpu.vector_store %arg19[%c1_343, %c2560_344], %244 {strides = array<i32>} : memref<2x4096xf32, #tpu.memory_space<vmem>>, vector<1x256xf32>,
    %c11_345 = arith.constant 11 : index
    %c256_346 = arith.constant 256 : index
    %246 = vector.load %arg18[%c11_345, %c256_346] : memref<16x512xf32, #tpu.memory_space<vmem>>, vector<1x256xf32>
    %c1_347 = arith.constant 1 : index
    %c2816_348 = arith.constant 2816 : index
    %247 = vector.load %arg19[%c1_347, %c2816_348] : memref<2x4096xf32, #tpu.memory_space<vmem>>, vector<1x256xf32>
    tpu.vector_store %arg19[%c1_347, %c2816_348], %246 {strides = array<i32>} : memref<2x4096xf32, #tpu.memory_space<vmem>>, vector<1x256xf32>,
    %c12_349 = arith.constant 12 : index
    %c256_350 = arith.constant 256 : index
    %248 = vector.load %arg18[%c12_349, %c256_350] : memref<16x512xf32, #tpu.memory_space<vmem>>, vector<1x256xf32>
    %c1_351 = arith.constant 1 : index
    %c3072_352 = arith.constant 3072 : index
    %249 = vector.load %arg19[%c1_351, %c3072_352] : memref<2x4096xf32, #tpu.memory_space<vmem>>, vector<1x256xf32>
    tpu.vector_store %arg19[%c1_351, %c3072_352], %248 {strides = array<i32>} : memref<2x4096xf32, #tpu.memory_space<vmem>>, vector<1x256xf32>,
    %c13_353 = arith.constant 13 : index
    %c256_354 = arith.constant 256 : index
    %250 = vector.load %arg18[%c13_353, %c256_354] : memref<16x512xf32, #tpu.memory_space<vmem>>, vector<1x256xf32>
    %c1_355 = arith.constant 1 : index
    %c3328_356 = arith.constant 3328 : index
    %251 = vector.load %arg19[%c1_355, %c3328_356] : memref<2x4096xf32, #tpu.memory_space<vmem>>, vector<1x256xf32>
    tpu.vector_store %arg19[%c1_355, %c3328_356], %250 {strides = array<i32>} : memref<2x4096xf32, #tpu.memory_space<vmem>>, vector<1x256xf32>,
    %c14_357 = arith.constant 14 : index
    %c256_358 = arith.constant 256 : index
    %252 = vector.load %arg18[%c14_357, %c256_358] : memref<16x512xf32, #tpu.memory_space<vmem>>, vector<1x256xf32>
    %c1_359 = arith.constant 1 : index
    %c3584_360 = arith.constant 3584 : index
    %253 = vector.load %arg19[%c1_359, %c3584_360] : memref<2x4096xf32, #tpu.memory_space<vmem>>, vector<1x256xf32>
    tpu.vector_store %arg19[%c1_359, %c3584_360], %252 {strides = array<i32>} : memref<2x4096xf32, #tpu.memory_space<vmem>>, vector<1x256xf32>,
    %c15_361 = arith.constant 15 : index
    %c256_362 = arith.constant 256 : index
    %254 = vector.load %arg18[%c15_361, %c256_362] : memref<16x512xf32, #tpu.memory_space<vmem>>, vector<1x256xf32>
    %c1_363 = arith.constant 1 : index
    %c3840_364 = arith.constant 3840 : index
    %255 = vector.load %arg19[%c1_363, %c3840_364] : memref<2x4096xf32, #tpu.memory_space<vmem>>, vector<1x256xf32>
    tpu.vector_store %arg19[%c1_363, %c3840_364], %254 {strides = array<i32>} : memref<2x4096xf32, #tpu.memory_space<vmem>>, vector<1x256xf32>,
    %c0_365 = arith.constant 0 : index
    %c0_366 = arith.constant 0 : index
    %256 = vector.load %arg19[%c0_365, %c0_366] : memref<2x4096xf32, #tpu.memory_space<vmem>>, vector<2x4096xf32>
    %c0_367 = arith.constant 0 : index
    %c0_368 = arith.constant 0 : index
    %257 = vector.load %arg6[%c0_367, %c0_368] : memref<4096x120xf32, #tpu.memory_space<vmem>>, vector<4096x120xf32>
    %cst_369 = arith.constant dense<0.000000e+00> : vector<2x120xf32>
    %258 = tpu.matmul %256, %257, %cst_369 {dimension_numbers = #tpu.dot_dimension_numbers<[1], [0], [0], [1], [0, 0, 1, 1], [], []>} : vector<2x4096xf32>, vector<4096x120xf32>, vector<2x120xf32> -> vector<2x120xf32>
    %c0_370 = arith.constant 0 : index
    %c0_371 = arith.constant 0 : index
    %259 = vector.load %arg7[%c0_370, %c0_371] : memref<1x120xf32, #tpu.memory_space<vmem>>, vector<1x120xf32>
    %260 = vector.broadcast %259 : vector<1x120xf32> to vector<2x120xf32>
    %261 = arith.addf %258, %260 : vector<2x120xf32>
    %cst_372 = arith.constant 0.000000e+00 : f32
    %262 = vector.broadcast %cst_372 : f32 to vector<2x120xf32>
    %263 = arith.maximumf %261, %262 : vector<2x120xf32>
    %c0_373 = arith.constant 0 : index
    %c0_374 = arith.constant 0 : index
    %264 = vector.load %arg8[%c0_373, %c0_374] : memref<120x84xf32, #tpu.memory_space<vmem>>, vector<120x84xf32>
    %cst_375 = arith.constant dense<0.000000e+00> : vector<2x84xf32>
    %265 = tpu.matmul %263, %264, %cst_375 {dimension_numbers = #tpu.dot_dimension_numbers<[1], [0], [0], [1], [0, 0, 1, 1], [], []>} : vector<2x120xf32>, vector<120x84xf32>, vector<2x84xf32> -> vector<2x84xf32>
    %c0_376 = arith.constant 0 : index
    %c0_377 = arith.constant 0 : index
    %266 = vector.load %arg9[%c0_376, %c0_377] : memref<1x84xf32, #tpu.memory_space<vmem>>, vector<1x84xf32>
    %267 = vector.broadcast %266 : vector<1x84xf32> to vector<2x84xf32>
    %268 = arith.addf %265, %267 : vector<2x84xf32>
    %cst_378 = arith.constant 0.000000e+00 : f32
    %269 = vector.broadcast %cst_378 : f32 to vector<2x84xf32>
    %270 = arith.maximumf %268, %269 : vector<2x84xf32>
    %c0_379 = arith.constant 0 : index
    %c0_380 = arith.constant 0 : index
    %271 = vector.load %arg10[%c0_379, %c0_380] : memref<84x10xf32, #tpu.memory_space<vmem>>, vector<84x10xf32>
    %cst_381 = arith.constant dense<0.000000e+00> : vector<2x10xf32>
    %272 = tpu.matmul %270, %271, %cst_381 {dimension_numbers = #tpu.dot_dimension_numbers<[1], [0], [0], [1], [0, 0, 1, 1], [], []>} : vector<2x84xf32>, vector<84x10xf32>, vector<2x10xf32> -> vector<2x10xf32>
    %c0_382 = arith.constant 0 : index
    %c0_383 = arith.constant 0 : index
    %273 = vector.load %arg11[%c0_382, %c0_383] : memref<1x10xf32, #tpu.memory_space<vmem>>, vector<1x10xf32>
    %274 = vector.broadcast %273 : vector<1x10xf32> to vector<2x10xf32>
    %275 = arith.addf %272, %274 : vector<2x10xf32>
    %c0_384 = arith.constant 0 : index
    %c0_385 = arith.constant 0 : index
    %c0_386 = arith.constant 0 : index
    %276 = vector.load %arg12[%c0_384, %c0_385, %c0_386] : memref<1x2x10xf32, #tpu.memory_space<vmem>>, vector<1x2x10xf32>
    %277 = vector.shape_cast %276 : vector<1x2x10xf32> to vector<2x10xf32>
    %278 = vector.shape_cast %275 : vector<2x10xf32> to vector<1x2x10xf32>
    tpu.vector_store %arg12[%c0_384, %c0_385, %c0_386], %278 {strides = array<i32>} : memref<1x2x10xf32, #tpu.memory_space<vmem>>, vector<1x2x10xf32>,
    return
  }
  func.func @transform_0(%arg0: i32) -> (i32, i32, i32) {
    %c0_i32 = arith.constant 0 : i32
    %c0_i32_0 = arith.constant 0 : i32
    %c0_i32_1 = arith.constant 0 : i32
    return %arg0, %c0_i32, %c0_i32_0 : i32, i32, i32
  }
  func.func @transform_1(%arg0: i32) -> (i32, i32) {
    %c0_i32 = arith.constant 0 : i32
    %c0_i32_0 = arith.constant 0 : i32
    %c0_i32_1 = arith.constant 0 : i32
    return %c0_i32, %c0_i32_0 : i32, i32
  }
  func.func @transform_2(%arg0: i32) -> (i32, i32) {
    %c0_i32 = arith.constant 0 : i32
    %c0_i32_0 = arith.constant 0 : i32
    %c0_i32_1 = arith.constant 0 : i32
    return %c0_i32, %c0_i32_0 : i32, i32
  }
  func.func @transform_3(%arg0: i32) -> (i32, i32) {
    %c0_i32 = arith.constant 0 : i32
    %c0_i32_0 = arith.constant 0 : i32
    %c0_i32_1 = arith.constant 0 : i32
    return %c0_i32, %c0_i32_0 : i32, i32
  }
  func.func @transform_4(%arg0: i32) -> (i32, i32) {
    %c0_i32 = arith.constant 0 : i32
    %c0_i32_0 = arith.constant 0 : i32
    %c0_i32_1 = arith.constant 0 : i32
    return %c0_i32, %c0_i32_0 : i32, i32
  }
  func.func @transform_5(%arg0: i32) -> (i32, i32) {
    %c0_i32 = arith.constant 0 : i32
    %c0_i32_0 = arith.constant 0 : i32
    %c0_i32_1 = arith.constant 0 : i32
    return %c0_i32, %c0_i32_0 : i32, i32
  }
  func.func @transform_6(%arg0: i32) -> (i32, i32) {
    %c0_i32 = arith.constant 0 : i32
    %c0_i32_0 = arith.constant 0 : i32
    %c0_i32_1 = arith.constant 0 : i32
    return %c0_i32, %c0_i32_0 : i32, i32
  }
  func.func @transform_7(%arg0: i32) -> (i32, i32) {
    %c0_i32 = arith.constant 0 : i32
    %c0_i32_0 = arith.constant 0 : i32
    %c0_i32_1 = arith.constant 0 : i32
    return %c0_i32, %c0_i32_0 : i32, i32
  }
  func.func @transform_8(%arg0: i32) -> (i32, i32) {
    %c0_i32 = arith.constant 0 : i32
    %c0_i32_0 = arith.constant 0 : i32
    %c0_i32_1 = arith.constant 0 : i32
    return %c0_i32, %c0_i32_0 : i32, i32
  }
  func.func @transform_9(%arg0: i32) -> (i32, i32) {
    %c0_i32 = arith.constant 0 : i32
    %c0_i32_0 = arith.constant 0 : i32
    %c0_i32_1 = arith.constant 0 : i32
    return %c0_i32, %c0_i32_0 : i32, i32
  }
  func.func @transform_10(%arg0: i32) -> (i32, i32) {
    %c0_i32 = arith.constant 0 : i32
    %c0_i32_0 = arith.constant 0 : i32
    %c0_i32_1 = arith.constant 0 : i32
    return %c0_i32, %c0_i32_0 : i32, i32
  }
  func.func @transform_11(%arg0: i32) -> (i32, i32, i32) {
    %c0_i32 = arith.constant 0 : i32
    %c0_i32_0 = arith.constant 0 : i32
    %c0_i32_1 = arith.constant 0 : i32
    return %arg0, %c0_i32, %c0_i32_0 : i32, i32, i32
  }
}

</mosaic_0001>

<bundles_post_ra>
// kernel: net_forward.1
= control target key start
LH: loop header
LB: loop body
LE: loop exit
PB: predicated region body
PF: predicated region fallthrough
CT: control target
= control target key end

     0   :  { %s5723_s23 = smov 127   ;;  %s10320_s0 = inlined_call_operand.vmem [shape: f32[1,12,896], index: 0, kind: input, shape index: {}]   ;;  %s10321_s1 = inlined_call_operand.vmem [shape: f32[32,108], index: 1, kind: input, shape index: {}]   ;;  %s10322_s2 = inlined_call_operand.vmem [shape: f32[6,1], index: 2, kind: input, shape index: {}]   ;;  %s10323_s3 = inlined_call_operand.vmem [shape: f32[16,150], index: 3, kind: input, shape index: {}]   ;;  %s10324_s4 = inlined_call_operand.vmem [shape: f32[16,1], index: 4, kind: input, shape index: {}]   ;;  %s10325_s5 = inlined_call_operand.vmem [shape: f32[4096,120], index: 5, kind: input, shape index: {}]   ;;  %s10326_s6 = inlined_call_operand.vmem [shape: f32[1,120], index: 6, kind: input, shape index: {}]   ;;  %s10327_s7 = inlined_call_operand.vmem [shape: f32[120,84], index: 7, kind: input, shape index: {}]   ;;  %s10328_s8 = inlined_call_operand.vmem [shape: f32[1,84], index: 8, kind: input, shape index: {}]   ;;  %s10329_s9 = inlined_call_operand.vmem [shape: f32[84,10], index: 9, kind: input, shape index: {}]   ;;  %s10330_s10 = inlined_call_operand.vmem [shape: f32[1,10], index: 10, kind: input, shape index: {}]   ;;  %s10331_s11 = inlined_call_operand.hbm [shape: f32[1,2,10], index: 11, kind: output, shape index: {}]  }
   0x1   :  { %v55_v0 = vld [vmem:[%s10320_s0 + $0x20] sm:$0x7]  ;;  %v53_v1 = vld [vmem:[%s10320_s0 + $0x10] sm:$0x7]  ;;  %v56_v6 = vld [vmem:[%s10320_s0 + $0x28] sm:$0x7] }
   0x2   :  { %v69_v2 = vrot.slane %v55_v0, 5  ;;  %v67_v3 = vrot.slane %v53_v1, 5  ;;  %v51_v4 = vld [vmem:[%s10320_s0] sm:$0x7]  ;;  %v54_v7 = vld [vmem:[%s10320_s0 + $0x18] sm:$0x7] }
   0x3   :  { %v65_v5 = vrot.slane %v51_v4, 5  ;;  %v52_v8 = vld [vmem:[%s10320_s0 + $0x8] sm:$0x7]  ;;  %v70_v9 = vrot.slane %v56_v6, 5  ;;  %v68_v10 = vrot.slane %v54_v7, 5 }
   0x4   :  { %80 = vrot.lane.b32.xlu2 %v69_v2, %s5723_s23  ;;  %76 = vrot.lane.b32.xlu1 %v67_v3, %s5723_s23  ;;  %v66_v11 = vrot.slane %v52_v8, 5 }
   0x5   :  { %72 = vrot.lane.b32.xlu0 %v65_v5, %s5723_s23 }
   0xc   :  { %82 = vrot.lane.b32.xlu2 %v70_v9, %s5723_s23  ;;  %78 = vrot.lane.b32.xlu1 %v68_v10, %s5723_s23 }
   0xd   :  { %16 = vsyncpa [#allocation10], 0  ;;  %74 = vrot.lane.b32.xlu0 %v66_v11, %s5723_s23  ;;  %v106_v12 = vld [vmem:[%s10320_s0 + $0x8] sm:$0x7]  ;;  %v105_v13 = vld [vmem:[%s10320_s0] sm:$0x7] }
   0xe   :  { %v57_v14 = vld [vmem:[%s10320_s0 + $0x30] sm:$0x7]  ;;  %v120_v15 = vrot.slane %v106_v12, 2  ;;  %v119_v16 = vrot.slane %v105_v13, 2  ;;  %s5724_s17 = smov 126   ;;  %s5725_s12 = smov 112  }
   0xf   :  { %v71_v17 = vrot.slane %v57_v14, 5  ;;  %v109_v18 = vld [vmem:[%s10320_s0 + $0x20] sm:$0x7]  ;;  %v108_v19 = vld [vmem:[%s10320_s0 + $0x18] sm:$0x7]  ;;  %s5726_s15 = smov 111  }
  0x10   :  { %v107_v20 = vld [vmem:[%s10320_s0 + $0x10] sm:$0x7]  ;;  %v123_v21 = vrot.slane %v109_v18, 2  ;;  %v122_v22 = vrot.slane %v108_v19, 2  ;;  %v165_v24 = vld [vmem:[%s10320_s0] sm:$0x7] }
  0x11   :  { %v121_v23 = vrot.slane %v107_v20, 2  ;;  %v111_v25 = vld [vmem:[%s10320_s0 + $0x30] sm:$0x7]  ;;  %v110_v26 = vld [vmem:[%s10320_s0 + $0x28] sm:$0x7]  ;;  %v179_v27 = vrot.slane %v165_v24, 7 }
  0x12   :  { %v125_v28 = vrot.slane %v111_v25, 2  ;;  %v124_v29 = vrot.slane %v110_v26, 2  ;;  %v168_v30 = vld [vmem:[%s10320_s0 + $0x18] sm:$0x7]  ;;  %v167_v31 = vld [vmem:[%s10320_s0 + $0x10] sm:$0x7] }
  0x13   :  { %v166_v32 = vld [vmem:[%s10320_s0 + $0x8] sm:$0x7]  ;;  %v182_v33 = vrot.slane %v168_v30, 7  ;;  %v181_v34 = vrot.slane %v167_v31, 7  ;;  %v171_v36 = vld [vmem:[%s10320_s0 + $0x30] sm:$0x7] }
  0x14   :  { %128 = vrot.lane.b32.xlu2 %v120_v15, %s5724_s17  ;;  %126 = vrot.lane.b32.xlu1 %v119_v16, %s5724_s17  ;;  %v180_v35 = vrot.slane %v166_v32, 7  ;;  %v170_v37 = vld [vmem:[%s10320_s0 + $0x28] sm:$0x7]  ;;  %v169_v38 = vld [vmem:[%s10320_s0 + $0x20] sm:$0x7]  ;;  %v185_v39 = vrot.slane %v171_v36, 7 }
  0x15   :  { %84 = vrot.lane.b32.xlu0 %v71_v17, %s5723_s23  ;;  %v184_v40 = vrot.slane %v170_v37, 7  ;;  %v183_v41 = vrot.slane %v169_v38, 7  ;;  %v221_v42 = vld [vmem:[%s10320_s0 + $0x10] sm:$0x7]  ;;  %v220_v43 = vld [vmem:[%s10320_s0 + $0x8] sm:$0x7] }
  0x16   :  { %v219_v44 = vld [vmem:[%s10320_s0] sm:$0x7]  ;;  %v235_v45 = vrot.slane %v221_v42, 4  ;;  %v234_v46 = vrot.slane %v220_v43, 4  ;;  %v224_v48 = vld [vmem:[%s10320_s0 + $0x28] sm:$0x7] }
  0x17   :  { %v233_v47 = vrot.slane %v219_v44, 4  ;;  %v223_v49 = vld [vmem:[%s10320_s0 + $0x20] sm:$0x7]  ;;  %v222_v50 = vld [vmem:[%s10320_s0 + $0x18] sm:$0x7]  ;;  %v238_v51 = vrot.slane %v224_v48, 4 }
  0x18   :  { %v237_v52 = vrot.slane %v223_v49, 4  ;;  %v236_v53 = vrot.slane %v222_v50, 4  ;;  %v274_v54 = vld [vmem:[%s10320_s0 + $0x8] sm:$0x7]  ;;  %v273_v55 = vld [vmem:[%s10320_s0] sm:$0x7] }
  0x19   :  { %v225_v56 = vld [vmem:[%s10320_s0 + $0x30] sm:$0x7]  ;;  %v288_v57 = vrot.slane %v274_v54, 1  ;;  %v287_v58 = vrot.slane %v273_v55, 1  ;;  %s10334_s30 = smov 110   ;;  %s5728_s21 = smov 95  }
  0x1a   :  { %v239_v59 = vrot.slane %v225_v56, 4  ;;  %v1988_v60 = vld [vmem:[%s10320_s0 + $0x40] sm:$0xe]  ;;  %v1987_v61 = vld [vmem:[%s10320_s0 + $0x38] sm:$0xe]  ;;  %s5729_s29 = smov 94  }
  0x1b   :  { %v275_v62 = vld [vmem:[%s10320_s0 + $0x10] sm:$0x7]  ;;  %v2002_v63 = vrot.slane %v1988_v60, 3  ;;  %v2001_v0 = vrot.slane %v1987_v61, 3  ;;  %v1989_v2 = vld [vmem:[%s10320_s0 + $0x48] sm:$0xe] }
  0x1c   :  { %134 = vrot.lane.b32.xlu2 %v123_v21, %s5724_s17  ;;  %132 = vrot.lane.b32.xlu1 %v122_v22, %s5724_s17  ;;  %v289_v1 = vrot.slane %v275_v62, 1  ;;  %v2047_v3 = vld [vmem:[%s10320_s0 + $0x40] sm:$0xe]  ;;  %v2046_v4 = vld [vmem:[%s10320_s0 + $0x38] sm:$0xe]  ;;  %v2003_v5 = vrot.slane %v1989_v2, 3 }
  0x1d   :  { %130 = vrot.lane.b32.xlu0 %v121_v23, %s5724_s17  ;;  %v1882_v6 = vld [vmem:[%s10320_s0 + $0x40] sm:$0xe]  ;;  %v1881_v7 = vld [vmem:[%s10320_s0 + $0x38] sm:$0xe]  ;;  %v2048_v11 = vld [vmem:[%s10320_s0 + $0x48] sm:$0xe] }
  0x1e   :  { %v1896_v9 = vrot.slane %v1882_v6, 1  ;;  %v1895_v10 = vrot.slane %v1881_v7, 1  ;;  %v1935_v12 = vld [vmem:[%s10320_s0 + $0x40] sm:$0xe]  ;;  %v1934_v13 = vld [vmem:[%s10320_s0 + $0x38] sm:$0xe] }
  0x1f   :  { %vm10345_vm0 = vcmask 1039360   ;;  %v1883_v15 = vld [vmem:[%s10320_s0 + $0x48] sm:$0xe]  ;;  %v1949_v17 = vrot.slane %v1935_v12, 6  ;;  %v1948_v18 = vrot.slane %v1934_v13, 6  ;;  %s10332_s13 = smov 96  }
  0x20   :  { %v1897_v19 = vrot.slane %v1883_v15, 1  ;;  %v1717_v20 = vld [vmem:[%s10320_s0 + $0x40] sm:$0xe]  ;;  %v1716_v21 = vld [vmem:[%s10320_s0 + $0x38] sm:$0xe]  ;;  %vm10349_vm1 = vcmask 1031168  }
  0x21   :  { %v39_v22 = vld [vmem:[%s10320_s0] sm:$0x7]  ;;  %v1936_v24 = vld [vmem:[%s10320_s0 + $0x48] sm:$0xe]  ;;  %v1731_v25 = vrot.slane %v1717_v20, 2  ;;  %v1730_v26 = vrot.slane %v1716_v21, 2 }
  0x22   :  { %45 = vst [vmem:[#allocation2 + $0xc8] sm:$0x7] %v39_v22  ;;  %v1776_v30 = vld [vmem:[%s10320_s0 + $0x40] sm:$0xe]  ;;  %v1775_v31 = vld [vmem:[%s10320_s0 + $0x38] sm:$0xe] }
  0x23   :  { %v1790_v37 = vrot.slane %v1776_v30, 7  ;;  %v1789_v38 = vrot.slane %v1775_v31, 7  ;;  %v1777_v44 = vld [vmem:[%s10320_s0 + $0x48] sm:$0xe]  ;;  %v1567_v61 = vld [vmem:[%s10320_s0 + $0x40] sm:$0x1] }
  0x24   :  { %186 = vrot.lane.b32.xlu2 %v179_v27, %s5725_s12  ;;  %138 = vrot.lane.b32.xlu1 %v125_v28, %s5724_s17  ;;  %v1950_v27 = vrot.slane %v1936_v24, 6  ;;  %v40_v28 = vld [vmem:[%s10320_s0 + $0x8] sm:$0x7]  ;;  %v1566_v62 = vld [vmem:[%s10320_s0 + $0x38] sm:$0x1]  ;;  %vm1423_vm2 = vcmask 1041408  }
  0x25   :  { %136 = vrot.lane.b32.xlu0 %v124_v29, %s5724_s17  ;;  %v41_v29 = vld [vmem:[%s10320_s0 + $0x10] sm:$0x7]  ;;  %46 = vst [vmem:[#allocation2 + $0x8] sm:$0x7] %v40_v28  ;;  %v44_v54 = vld [vmem:[%s10320_s0 + $0x28] sm:$0x7] }
  0x26   :  { %47 = vst [vmem:[#allocation2 + $0x40] sm:$0x7] %v41_v29  ;;  %v1403_v12 = vld [vmem:[%s10320_s0 + $0x40] sm:$0x1]  ;;  %v1395_v13 = vld [vmem:[%s10320_s0] sm:$0xc0] }
  0x27   :  { %50 = vst [vmem:[#allocation2 + $0xf0] sm:$0x7] %v44_v54  ;;  %v1478_v28 = vld [vmem:[%s10320_s0 + $0x8] sm:$0xc0]  ;;  %v1485_v29 = vld [vmem:[%s10320_s0 + $0x40] sm:$0x1] }
  0x28   :  { %v1477_v30 = vld [vmem:[%s10320_s0] sm:$0xc0]  ;;  %v1484_v31 = vld [vmem:[%s10320_s0 + $0x38] sm:$0x1]  ;;  %vm10344_vm3 = vcmask 916480   ;;  %vm1505_vm4 = vcmask 1044480  }
  0x29   :  { %vm254_vm5 = vcmask 908288   ;;  %vm1145_vm6 = vcmask 1040384   ;;  %vm10336_vm7 = vcmask 1043456   ;;  %vm10343_vm8 = vcmask 900096   ;;  %s10351_s14 = smov 110   ;;  %s5733_s26 = smov 63  }
  0x2a   :  { %vm1341_vm9 = vcmask 1046528   ;;  %vm422_vm10 = vcmask 777216   ;;  %vm981_vm11 = vcmask 1042432   ;;  %vm469_vm12 = vcmask 769024   ;;  %s5734_s27 = smov 77   ;;  %s5735_s28 = smov 76  }
  0x2b   :  { %vm10337_vm13 = vcmask 1045504   ;;  %vm10340_vm14 = vcmask 785408   ;;  %vm2180_vm15 = vcmask 883712   ;;  %s5736_s19 = smov 78   ;;  %s5737_s20 = smov 79  }
  0x2c   :  { %192 = vrot.lane.b32.xlu2 %v182_v33, %s5725_s12  ;;  %190 = vrot.lane.b32.xlu1 %v181_v34, %s5725_s12  ;;  %v1718_v34 = vld [vmem:[%s10320_s0 + $0x48] sm:$0xe]  ;;  %s10341_s25 = smov 92   ;;  %s5742_s16 = smov 109  }
  0x2d   :  { %188 = vrot.lane.b32.xlu0 %v180_v35, %s5725_s12  ;;  %v42_v35 = vld [vmem:[%s10320_s0 + $0x18] sm:$0x7]  ;;  %s5743_s18 = smov 124   ;;  %s5744_s22 = smov 125  }
  0x2e   :  { %48 = vst [vmem:[#allocation2 + $0x28] sm:$0x7] %v42_v35  ;;  %v1510_v35 = vrot.slane %v1485_v29, 3  ;;  %s5745_s24 = smov 60  }
  0x34   :  { %198 = vrot.lane.b32.xlu2 %v185_v39, %s5725_s12  ;;  %196 = vrot.lane.b32.xlu1 %v184_v40, %s5725_s12  ;;  %v1732_v39 = vrot.slane %v1718_v34, 2  ;;  %v1829_v40 = vld [vmem:[%s10320_s0 + $0x40] sm:$0xe]  ;;  %v1509_v34 = vrot.slane %v1478_v28, 3 }
  0x35   :  { %194 = vrot.lane.b32.xlu0 %v183_v41, %s5725_s12  ;;  %v1828_v41 = vld [vmem:[%s10320_s0 + $0x38] sm:$0xe]  ;;  %v1843_v50 = vrot.slane %v1829_v40, 4 }
  0x3c   :  { %244 = vrot.lane.b32.xlu2 %v235_v45, %s5726_s15  ;;  %242 = vrot.lane.b32.xlu1 %v234_v46, %s5726_s15 }
  0x3d   :  { %240 = vrot.lane.b32.xlu0 %v233_v47, %s5726_s15 }
  0x44   :  { %250 = vrot.lane.b32.xlu2 %v238_v51, %s5726_s15  ;;  %248 = vrot.lane.b32.xlu1 %v237_v52, %s5726_s15  ;;  %v1842_v51 = vrot.slane %v1828_v41, 4  ;;  %v1791_v52 = vrot.slane %v1777_v44, 7 }
  0x45   :  { %246 = vrot.lane.b32.xlu0 %v236_v53, %s5726_s15  ;;  %v43_v53 = vld [vmem:[%s10320_s0 + $0x20] sm:$0x7] }
  0x46   :  { %49 = vst [vmem:[#allocation2 + $0xe8] sm:$0x7] %v43_v53 }
  0x4c   :  { %296 = vrot.lane.b32.xlu2 %v288_v57, %s10334_s30  ;;  %294 = vrot.lane.b32.xlu1 %v287_v58, %s10334_s30  ;;  %v1830_v57 = vld [vmem:[%s10320_s0 + $0x48] sm:$0xe] }
  0x4d   :  { %252 = vrot.lane.b32.xlu0 %v239_v59, %s5726_s15 }
  0x54   :  { %2010 = vrot.lane.b32.xlu2 %v2002_v63, %s5728_s21  ;;  %2008 = vrot.lane.b32.xlu1 %v2001_v0, %s5728_s21  ;;  %v1844_v63 = vrot.slane %v1830_v57, 4  ;;  %v1664_v0 = vld [vmem:[%s10320_s0 + $0x40] sm:$0xe] }
  0x55   :  { %298 = vrot.lane.b32.xlu0 %v289_v1, %s10334_s30  ;;  %v1663_v1 = vld [vmem:[%s10320_s0 + $0x38] sm:$0xe] }
  0x5c   :  { %2062 = vrot.lane.b32.xlu2 %v2047_v3, %s5729_s29  ;;  %2060 = vrot.lane.b32.xlu1 %v2046_v4, %s5729_s29 }
  0x5d   :  { %2012 = vrot.lane.b32.xlu0 %v2003_v5, %s5728_s21 }
  0x5e   :  { %v81_v8 = vpop.permute.xlu2 %80 }
  0x64   :  { %1904 = vrot.lane.b32.xlu2 %v1896_v9, %s10334_s30  ;;  %1902 = vrot.lane.b32.xlu1 %v1895_v10, %s10334_s30  ;;  %v1677_v9 = vrot.slane %v1663_v1, 5  ;;  %v1568_v10 = vld [vmem:[%s10320_s0 + $0x48] sm:$0x1]  ;;  %v1124_v1 = vld [vmem:[%s10320_s0 + $0x38] sm:$0x1] }
  0x65   :  { %2064 = vrot.lane.b32.xlu0 %v2048_v11, %s5729_s29  ;;  %v1396_v11 = vld [vmem:[%s10320_s0 + $0x8] sm:$0xc0] }
  0x66   :  { %v5971_v14 = vpop.permute.xlu2 %82  ;;  %v1427_v15 = vrot.slane %v1396_v11, 6 }
  0x67   :  { %v91_v16 = vsel %vm10345_vm0, %v81_v8, %v5971_v14 }
  0x68   :  { %103 = vst [vmem:[#allocation2 + $0xe8] sm:$0x38] %v91_v16  ;;  %v1428_v16 = vrot.slane %v1403_v12, 6 }
  0x6c   :  { %1957 = vrot.lane.b32.xlu2 %v1949_v17, %s10332_s13  ;;  %1955 = vrot.lane.b32.xlu1 %v1948_v18, %s10332_s13  ;;  %v1424_v17 = vrot.slane %v1395_v13, 6  ;;  %v1561_v13 = vld [vmem:[%s10320_s0 + $0x10] sm:$0xc0] }
  0x6d   :  { %1906 = vrot.lane.b32.xlu0 %v1897_v19, %s10334_s30  ;;  %v1665_v19 = vld [vmem:[%s10320_s0 + $0x48] sm:$0xe] }
  0x6e   :  { %v5990_v23 = vpop.permute.xlu2 %128 }
  0x74   :  { %1739 = vrot.lane.b32.xlu2 %v1731_v25, %s5724_s17  ;;  %1737 = vrot.lane.b32.xlu1 %v1730_v26, %s5724_s17  ;;  %v1679_v25 = vrot.slane %v1665_v19, 5  ;;  %v1429_v26 = vsel %vm1423_vm2, %v1427_v15, %v1428_v16  ;;  %v1239_v15 = vld [vmem:[%s10320_s0 + $0x40] sm:$0x1]  ;;  %v1231_v16 = vld [vmem:[%s10320_s0] sm:$0xc0] }
  0x75   :  { %1959 = vrot.lane.b32.xlu0 %v1950_v27, %s10332_s13  ;;  %v1126_v19 = vld [vmem:[%s10320_s0 + $0x48] sm:$0x1] }
  0x76   :  { %v6010_v32 = vpop.permute.xlu2 %134  ;;  %v77_v33 = vpop.permute.xlu1 %76  ;;  %v1157_v28 = vrot.slane %v1126_v19, 7 }
  0x77   :  { %v73_v36 = vpop.permute.xlu0 %72 }
  0x7c   :  { %1798 = vrot.lane.b32.xlu2 %v1790_v37, %s5725_s12  ;;  %1796 = vrot.lane.b32.xlu1 %v1789_v38, %s5725_s12  ;;  %v1507_v37 = vrot.slane %v1484_v31, 3 }
  0x7d   :  { %1741 = vrot.lane.b32.xlu0 %v1732_v39, %s5724_s17 }
  0x7e   :  { %v6027_v42 = vpop.permute.xlu2 %186  ;;  %v79_v43 = vpop.permute.xlu1 %78 }
  0x7f   :  { %v89_v45 = vsel %vm10345_vm0, %v77_v33, %v79_v43  ;;  %v90_v46 = vsel %vm10345_vm0, %v79_v43, %v81_v8  ;;  %v75_v47 = vpop.permute.xlu0 %74  ;;  %v1678_v8 = vrot.slane %v1664_v0, 5  ;;  %v6169_v0 = vld [vmem:[%s10320_s0] sm:$0xc0] }
  0x80   :  { %101 = vst [vmem:[#allocation2 + $0x40] sm:$0x38] %v89_v45  ;;  %v87_v48 = vsel %vm10345_vm0, %v73_v36, %v75_v47  ;;  %v88_v49 = vsel %vm10345_vm0, %v75_v47, %v77_v33  ;;  %v1404_v33 = vld [vmem:[%s10320_s0 + $0x48] sm:$0x1]  ;;  %v1506_v36 = vrot.slane %v1477_v30, 3  ;;  %v1511_v47 = vsel %vm1505_vm4, %v1509_v34, %v1510_v35 }
  0x81   :  { %102 = vst [vmem:[#allocation2 + $0x28] sm:$0x38] %v90_v46  ;;  %v1431_v41 = vrot.slane %v1404_v33, 6  ;;  %v1314_v35 = vld [vmem:[%s10320_s0 + $0x8] sm:$0xc0] }
  0x82   :  { %99 = vst [vmem:[#allocation2 + $0xc8] sm:$0x38] %v87_v48  ;;  %v1508_v48 = vsel %vm1505_vm4, %v1506_v36, %v1507_v37  ;;  %v1321_v36 = vld [vmem:[%s10320_s0 + $0x40] sm:$0x1]  ;;  %v1313_v37 = vld [vmem:[%s10320_s0] sm:$0xc0] }
  0x83   :  { %100 = vst [vmem:[#allocation2 + $0x8] sm:$0x38] %v88_v49 }
  0x84   :  { %1851 = vrot.lane.b32.xlu2 %v1843_v50, %s5726_s15  ;;  %1849 = vrot.lane.b32.xlu1 %v1842_v51, %s5726_s15  ;;  %v1479_v50 = vld [vmem:[%s10320_s0 + $0x10] sm:$0xc0]  ;;  %v1486_v51 = vld [vmem:[%s10320_s0 + $0x48] sm:$0x1] }
  0x85   :  { %1800 = vrot.lane.b32.xlu0 %v1791_v52, %s5725_s12  ;;  %v1512_v53 = vrot.slane %v1479_v50, 3  ;;  %v1513_v54 = vrot.slane %v1486_v51, 3 }
  0x86   :  { %v6045_v55 = vpop.permute.xlu2 %192  ;;  %v127_v56 = vpop.permute.xlu1 %126 }
  0x87   :  { %v141_v58 = vsel %vm10349_vm1, %v127_v56, %v5990_v23  ;;  %v85_v59 = vpop.permute.xlu0 %84 }
  0x88   :  { %153 = vst [vmem:[#allocation2 + $0xc8] sm:$0xc0] %v141_v58  ;;  %v92_v60 = vsel %vm10345_vm0, %v5971_v14, %v85_v59  ;;  %v1402_v14 = vld [vmem:[%s10320_s0 + $0x38] sm:$0x1] }
  0x89   :  { %159 = vst [vmem:[#allocation2 + $0x70] sm:$0x1] %v141_v58  ;;  %v1425_v18 = vrot.slane %v1402_v14, 6  ;;  %v1232_v14 = vld [vmem:[%s10320_s0 + $0x8] sm:$0xc0] }
  0x8a   :  { %104 = vst [vmem:[#allocation2 + $0xf0] sm:$0x38] %v92_v60  ;;  %v1560_v60 = vld [vmem:[%s10320_s0 + $0x8] sm:$0xc0] }
  0x8b   :  { %v1426_v27 = vsel %vm1423_vm2, %v1424_v17, %v1425_v18  ;;  %v1238_v17 = vld [vmem:[%s10320_s0 + $0x38] sm:$0x1]  ;;  %v6208_v18 = vld [vmem:[%s10320_s0 + $0x10] sm:$0xc0] }
  0x8c   :  { %1603 = vrot.lane.b32.xlu2 %v1567_v61, %s5729_s29  ;;  %1601 = vrot.lane.b32.xlu1 %v1566_v62, %s5729_s29  ;;  %v1559_v61 = vld [vmem:[%s10320_s0] sm:$0xc0]  ;;  %v6160_v62 = vld [vmem:[%s10320_s0 + $0x8] sm:$0xc0] }
  0x8d   :  { %1853 = vrot.lane.b32.xlu0 %v1844_v63, %s5726_s15  ;;  %v1514_v63 = vsel %vm1505_vm4, %v1512_v53, %v1513_v54 }
  0x8e   :  { %v6069_v2 = vpop.permute.xlu2 %198  ;;  %v133_v3 = vpop.permute.xlu1 %132 }
  0x8f   :  { %v144_v4 = vsel %vm10349_vm1, %v133_v3, %v6010_v32  ;;  %v131_v5 = vpop.permute.xlu0 %130 }
  0x90   :  { %156 = vst [vmem:[#allocation2 + $0x28] sm:$0xc0] %v144_v4  ;;  %v142_v6 = vsel %vm10349_vm1, %v5990_v23, %v131_v5  ;;  %v143_v7 = vsel %vm10349_vm1, %v131_v5, %v133_v3  ;;  %v1153_v5 = vrot.slane %v1124_v1, 7 }
  0x91   :  { %162 = vst [vmem:[#allocation2 + $0x288] sm:$0x1] %v144_v4  ;;  %v1146_v4 = vrot.slane %v6169_v0, 7 }
  0x92   :  { %154 = vst [vmem:[#allocation2 + $0x8] sm:$0xc0] %v142_v6 }
  0x93   :  { %155 = vst [vmem:[#allocation2 + $0x40] sm:$0xc0] %v143_v7  ;;  %v1154_v12 = vsel %vm1145_vm6, %v1146_v4, %v1153_v5 }
  0x94   :  { %160 = vst [vmem:[#allocation2 + $0x120] sm:$0x1] %v142_v6  ;;  %1686 = vrot.lane.b32.xlu2 %v1678_v8, %s5723_s23  ;;  %1684 = vrot.lane.b32.xlu1 %v1677_v9, %s5723_s23 }
  0x95   :  { %161 = vst [vmem:[#allocation2 + $0xd8] sm:$0x1] %v143_v7  ;;  %1605 = vrot.lane.b32.xlu0 %v1568_v10, %s5729_s29 }
  0x96   :  { %v6097_v20 = vpop.permute.xlu2 %244  ;;  %v139_v21 = vpop.permute.xlu1 %138 }
  0x97   :  { %v137_v22 = vpop.permute.xlu0 %136 }
  0x98   :  { %v145_v23 = vsel %vm10349_vm1, %v6010_v32, %v137_v22  ;;  %v146_v24 = vsel %vm10349_vm1, %v137_v22, %v139_v21  ;;  %v1397_v32 = vld [vmem:[%s10320_s0 + $0x10] sm:$0xc0]  ;;  %v1263_v21 = vrot.slane %v1232_v14, 4  ;;  %v1264_v22 = vrot.slane %v1239_v15, 4 }
  0x99   :  { %157 = vst [vmem:[#allocation2 + $0xe8] sm:$0xc0] %v145_v23  ;;  %v1430_v40 = vrot.slane %v1397_v32, 6 }
  0x9a   :  { %158 = vst [vmem:[#allocation2 + $0xf0] sm:$0xc0] %v146_v24  ;;  %v1265_v33 = vsel %vm10336_vm7, %v1263_v21, %v1264_v22  ;;  %v1042_v21 = vld [vmem:[%s10320_s0 + $0x38] sm:$0x1]  ;;  %v955_v22 = vld [vmem:[%s10320_s0 + $0x10] sm:$0xc0] }
  0x9b   :  { %163 = vst [vmem:[#allocation2 + $0x150] sm:$0x1] %v145_v23  ;;  %v1432_v49 = vsel %vm1423_vm2, %v1430_v40, %v1431_v41  ;;  %v1260_v23 = vrot.slane %v1231_v16, 4  ;;  %v1233_v40 = vld [vmem:[%s10320_s0 + $0x10] sm:$0xc0] }
  0x9c   :  { %164 = vst [vmem:[#allocation2 + $0x160] sm:$0x1] %v146_v24  ;;  %1447 = vrot.lane.b32.xlu2 %v1429_v26, %s10332_s13  ;;  %1445 = vrot.lane.b32.xlu1 %v1426_v27, %s10332_s13  ;;  %v1261_v24 = vrot.slane %v1238_v17, 4  ;;  %v1148_v27 = vrot.slane %v6208_v18, 7  ;;  %v1240_v41 = vld [vmem:[%s10320_s0 + $0x48] sm:$0x1] }
  0x9d   :  { %1688 = vrot.lane.b32.xlu0 %v1679_v25, %s5723_s23  ;;  %v1267_v50 = vrot.slane %v1240_v41, 4  ;;  %v1036_v16 = vld [vmem:[%s10320_s0 + $0x8] sm:$0xc0]  ;;  %v1043_v17 = vld [vmem:[%s10320_s0 + $0x40] sm:$0x1] }
  0x9e   :  { %v6125_v38 = vpop.permute.xlu2 %250  ;;  %v191_v39 = vpop.permute.xlu1 %190  ;;  %v1262_v34 = vsel %vm10336_vm7, %v1260_v23, %v1261_v24  ;;  %v962_v23 = vld [vmem:[%s10320_s0 + $0x48] sm:$0x1]  ;;  %v1067_v24 = vrot.slane %v1036_v16, 2  ;;  %v884_v18 = vld [vmem:[%s10320_s0 + $0x8] sm:$0x38] }
  0x9f   :  { %v203_v43 = vsel %vm10344_vm3, %v191_v39, %v6045_v55  ;;  %v189_v44 = vpop.permute.xlu0 %188  ;;  %v1044_v41 = vld [vmem:[%s10320_s0 + $0x48] sm:$0x1]  ;;  %v885_v16 = vld [vmem:[%s10320_s0 + $0x10] sm:$0x38] }
  0xa0   :  { %215 = vst [vmem:[#allocation2 + $0xd8] sm:$0xe] %v203_v43  ;;  %v201_v45 = vsel %vm10344_vm3, %v6027_v42, %v189_v44  ;;  %v202_v46 = vsel %vm10344_vm3, %v189_v44, %v191_v39  ;;  %v1320_v39 = vld [vmem:[%s10320_s0 + $0x38] sm:$0x1]  ;;  %v1345_v43 = vrot.slane %v1314_v35, 1  ;;  %v1346_v44 = vrot.slane %v1321_v36, 1 }
  0xa1   :  { %213 = vst [vmem:[#allocation2 + $0x70] sm:$0xe] %v201_v45  ;;  %v1342_v45 = vrot.slane %v1313_v37, 1 }
  0xa2   :  { %214 = vst [vmem:[#allocation2 + $0x120] sm:$0xe] %v202_v46  ;;  %v1343_v46 = vrot.slane %v1320_v39, 1  ;;  %v1347_v54 = vsel %vm1341_vm9, %v1345_v43, %v1346_v44 }
  0xa4   :  { %1529 = vrot.lane.b32.xlu2 %v1511_v47, %s5728_s21  ;;  %1527 = vrot.lane.b32.xlu1 %v1508_v48, %s5728_s21 }
  0xa5   :  { %1449 = vrot.lane.b32.xlu0 %v1432_v49, %s10332_s13  ;;  %v1266_v49 = vrot.slane %v1233_v40, 4  ;;  %v1037_v40 = vld [vmem:[%s10320_s0 + $0x10] sm:$0xc0]  ;;  %s10350_s13 = smov 96  }
  0xa6   :  { %v6144_v42 = vpop.permute.xlu2 %296  ;;  %v197_v52 = vpop.permute.xlu1 %196  ;;  %v1070_v44 = vrot.slane %v1037_v40, 2 }
  0xa7   :  { %v206_v56 = vsel %vm10344_vm3, %v197_v52, %v6069_v2  ;;  %v195_v57 = vpop.permute.xlu0 %194  ;;  %v1147_v2 = vrot.slane %v6160_v62, 7 }
  0xa8   :  { %218 = vst [vmem:[#allocation2 + $0x160] sm:$0xe] %v206_v56  ;;  %v204_v58 = vsel %vm10344_vm3, %v6045_v55, %v195_v57  ;;  %v205_v59 = vsel %vm10344_vm3, %v195_v57, %v197_v52  ;;  %v1125_v55 = vld [vmem:[%s10320_s0 + $0x40] sm:$0x1]  ;;  %v1344_v56 = vsel %vm1341_vm9, %v1342_v45, %v1343_v46  ;;  %v954_v57 = vld [vmem:[%s10320_s0 + $0x8] sm:$0xc0] }
  0xa9   :  { %216 = vst [vmem:[#allocation2 + $0x288] sm:$0xe] %v204_v58  ;;  %v1155_v3 = vrot.slane %v1125_v55, 7  ;;  %v961_v58 = vld [vmem:[%s10320_s0 + $0x40] sm:$0x1]  ;;  %v1071_v45 = vrot.slane %v1044_v41, 2 }
  0xaa   :  { %217 = vst [vmem:[#allocation2 + $0x150] sm:$0xe] %v205_v59  ;;  %v1268_v59 = vsel %vm10336_vm7, %v1266_v49, %v1267_v50  ;;  %v1322_v55 = vld [vmem:[%s10320_s0 + $0x48] sm:$0x1]  ;;  %v986_v1 = vrot.slane %v961_v58, 5 }
  0xab   :  { %v1156_v11 = vsel %vm1145_vm6, %v1147_v2, %v1155_v3 }
  0xac   :  { %1589 = vrot.lane.b32.xlu2 %v1560_v60, %s5729_s29  ;;  %1587 = vrot.lane.b32.xlu1 %v1559_v61, %s5729_s29  ;;  %v960_v60 = vld [vmem:[%s10320_s0 + $0x38] sm:$0x1]  ;;  %v1315_v61 = vld [vmem:[%s10320_s0 + $0x10] sm:$0xc0] }
  0xad   :  { %1531 = vrot.lane.b32.xlu0 %v1514_v63, %s5728_s21  ;;  %v985_v63 = vrot.slane %v954_v57, 5  ;;  %v983_v5 = vrot.slane %v960_v60, 5 }
  0xae   :  { %v6179_v6 = vpop.permute.xlu2 %2010  ;;  %v243_v7 = vpop.permute.xlu1 %242 }
  0xaf   :  { %v256_v8 = vsel %vm254_vm5, %v243_v7, %v6097_v20  ;;  %v241_v9 = vpop.permute.xlu0 %240  ;;  %v987_v14 = vsel %vm981_vm11, %v985_v63, %v986_v1  ;;  %v666_v1 = vld [vmem:[%s10320_s0 + $0x8] sm:$0x38] }
  0xb0   :  { %268 = vst [vmem:[#allocation2 + $0x120] sm:$0x70] %v256_v8  ;;  %v255_v10 = vsel %vm254_vm5, %v241_v9, %v243_v7  ;;  %v1348_v9 = vrot.slane %v1315_v61, 1 }
  0xb1   :  { %267 = vst [vmem:[#allocation2 + $0x70] sm:$0x70] %v255_v10  ;;  %v1349_v10 = vrot.slane %v1322_v55, 1 }
  0xb3   :  { %v1350_v19 = vsel %vm1341_vm9, %v1348_v9, %v1349_v10 }
  0xb4   :  { %1183 = vrot.lane.b32.xlu2 %v1156_v11, %s5725_s12  ;;  %1181 = vrot.lane.b32.xlu1 %v1154_v12, %s5725_s12 }
  0xb5   :  { %1591 = vrot.lane.b32.xlu0 %v1561_v13, %s5729_s29 }
  0xb6   :  { %v6216_v25 = vpop.permute.xlu2 %2062  ;;  %v249_v26 = vpop.permute.xlu1 %248 }
  0xb7   :  { %v259_v29 = vsel %vm254_vm5, %v249_v26, %v6125_v38  ;;  %v247_v30 = vpop.permute.xlu0 %246 }
  0xb8   :  { %271 = vst [vmem:[#allocation2 + $0x150] sm:$0x70] %v259_v29  ;;  %v257_v31 = vsel %vm254_vm5, %v6097_v20, %v247_v30  ;;  %v258_v32 = vsel %vm254_vm5, %v247_v30, %v249_v26  ;;  %v1158_v20 = vsel %vm1145_vm6, %v1148_v27, %v1157_v28  ;;  %v1068_v26 = vrot.slane %v1043_v17, 2  ;;  %v725_v17 = vld [vmem:[%s10320_s0 + $0x8] sm:$0x38] }
  0xb9   :  { %269 = vst [vmem:[#allocation2 + $0xd8] sm:$0x70] %v257_v31  ;;  %v1065_v29 = vrot.slane %v1042_v21, 2 }
  0xba   :  { %270 = vst [vmem:[#allocation2 + $0x288] sm:$0x70] %v258_v32  ;;  %v988_v32 = vrot.slane %v955_v22, 5 }
  0xbc   :  { %1283 = vrot.lane.b32.xlu2 %v1265_v33, %s5726_s15  ;;  %1281 = vrot.lane.b32.xlu1 %v1262_v34, %s5726_s15  ;;  %v989_v33 = vrot.slane %v962_v23, 5  ;;  %v667_v23 = vld [vmem:[%s10320_s0 + $0x10] sm:$0x38] }
  0xbd   :  { %1185 = vrot.lane.b32.xlu0 %v1158_v20, %s5725_s12  ;;  %v1069_v20 = vsel %vm10337_vm13, %v1067_v24, %v1068_v26 }
  0xbe   :  { %v6250_v47 = vpop.permute.xlu2 %1904  ;;  %v295_v48 = vpop.permute.xlu1 %294  ;;  %v990_v39 = vsel %vm981_vm11, %v988_v32, %v989_v33  ;;  %v778_v32 = vld [vmem:[%s10320_s0 + $0x8] sm:$0x38]  ;;  %v777_v33 = vld [vmem:[%s10320_s0] sm:$0x38] }
  0xbf   :  { %v309_v51 = vsel %vm10343_vm8, %v295_v48, %v6144_v42  ;;  %v253_v52 = vpop.permute.xlu0 %252 }
  0xc0   :  { %321 = vst [vmem:[#allocation2 + $0x70] sm:$0x80] %v309_v51  ;;  %v260_v53 = vsel %vm254_vm5, %v6125_v38, %v253_v52  ;;  %v953_v38 = vld [vmem:[%s10320_s0] sm:$0xc0]  ;;  %v830_v52 = vld [vmem:[%s10320_s0] sm:$0x38] }
  0xc1   :  { %327 = vst [vmem:[#allocation2 + $0x110] sm:$0x3] %v309_v51  ;;  %v982_v3 = vrot.slane %v953_v38, 5  ;;  %v1072_v51 = vsel %vm10337_vm13, %v1070_v44, %v1071_v45  ;;  %v844_v57 = vrot.slane %v830_v52, 3  ;;  %v501_v45 = vld [vmem:[%s10320_s0 + $0x8] sm:$0x38] }
  0xc2   :  { %272 = vst [vmem:[#allocation2 + $0x160] sm:$0x70] %v260_v53 }
  0xc3   :  { %v984_v15 = vsel %vm981_vm11, %v982_v3, %v983_v5  ;;  %v665_v3 = vld [vmem:[%s10320_s0] sm:$0x38]  ;;  %v1651_v5 = vld [vmem:[%s10320_s0 + $0x38] sm:$0xe] }
  0xc4   :  { %1365 = vrot.lane.b32.xlu2 %v1347_v54, %s10334_s30  ;;  %1363 = vrot.lane.b32.xlu1 %v1344_v56, %s10334_s30  ;;  %1657 = vst [vmem:[#allocation2 + $0x88] sm:$0xe] %v1651_v5  ;;  %v612_v5 = vld [vmem:[%s10320_s0] sm:$0x38] }
  0xc5   :  { %1285 = vrot.lane.b32.xlu0 %v1268_v59, %s5726_s15 }
  0xc6   :  { %v6280_v7 = vpop.permute.xlu2 %1957  ;;  %v2009_v8 = vpop.permute.xlu1 %2008 }
  0xc7   :  { %v2022_v11 = vsel %vm422_vm10, %v2009_v8, %v6179_v6  ;;  %v6284_v12 = vpop.permute.xlu0 %298 }
  0xc8   :  { %2034 = vst [vmem:[#allocation2 + $0x290] sm:$0xc0] %v2022_v11  ;;  %v310_v13 = vsel %vm10343_vm8, %v6144_v42, %v6284_v12  ;;  %v1035_v42 = vld [vmem:[%s10320_s0] sm:$0xc0] }
  0xc9   :  { %2040 = vst [vmem:[#allocation2 + $0x188] sm:$0x1] %v2022_v11  ;;  %v1064_v28 = vrot.slane %v1035_v42, 2  ;;  %v1652_v42 = vld [vmem:[%s10320_s0 + $0x40] sm:$0xe] }
  0xca   :  { %322 = vst [vmem:[#allocation2 + $0x120] sm:$0x80] %v310_v13 }
  0xcb   :  { %328 = vst [vmem:[#allocation2 + $0x298] sm:$0x3] %v310_v13  ;;  %v1066_v37 = vsel %vm10337_vm13, %v1064_v28, %v1065_v29  ;;  %v680_v13 = vrot.slane %v666_v1, 4  ;;  %v739_v29 = vrot.slane %v725_v17, 1  ;;  %v626_v17 = vrot.slane %v612_v5, 7 }
  0xcc   :  { %1005 = vrot.lane.b32.xlu2 %v987_v14, %s5723_s23  ;;  %1003 = vrot.lane.b32.xlu1 %v984_v15, %s5723_s23  ;;  %v679_v14 = vrot.slane %v665_v3, 4  ;;  %1658 = vst [vmem:[#allocation2 + $0x200] sm:$0xe] %v1652_v42  ;;  %v613_v3 = vld [vmem:[%s10320_s0 + $0x8] sm:$0x38] }
  0xcd   :  { %1367 = vrot.lane.b32.xlu0 %v1350_v19, %s10334_s30  ;;  %v724_v19 = vld [vmem:[%s10320_s0] sm:$0x38] }
  0xce   :  { %v6313_v30 = vpop.permute.xlu2 %1739  ;;  %v2061_v31 = vpop.permute.xlu1 %2060 }
  0xcf   :  { %v2074_v34 = vsel %vm469_vm12, %v2061_v31, %v6216_v25  ;;  %v6317_v35 = vpop.permute.xlu0 %2012  ;;  %v681_v31 = vrot.slane %v667_v23, 4  ;;  %v614_v23 = vld [vmem:[%s10320_s0 + $0x10] sm:$0x38] }
  0xd0   :  { %2086 = vst [vmem:[#allocation2 + $0x188] sm:$0xe] %v2074_v34  ;;  %v2023_v36 = vsel %vm422_vm10, %v6179_v6, %v6317_v35 }
  0xd1   :  { %2035 = vst [vmem:[#allocation2 + $0x148] sm:$0xc0] %v2023_v36 }
  0xd2   :  { %2041 = vst [vmem:[#allocation2 + $0x1b0] sm:$0x1] %v2023_v36 }
  0xd4   :  { %1087 = vrot.lane.b32.xlu2 %v1069_v20, %s5724_s17  ;;  %1085 = vrot.lane.b32.xlu1 %v1066_v37, %s5724_s17  ;;  %v726_v20 = vld [vmem:[%s10320_s0 + $0x10] sm:$0x38] }
  0xd5   :  { %1007 = vrot.lane.b32.xlu0 %v990_v39, %s5723_s23  ;;  %v740_v44 = vrot.slane %v726_v20, 1 }
  0xd6   :  { %v6334_v6 = vpop.permute.xlu2 %1798  ;;  %v1903_v43 = vpop.permute.xlu1 %1902 }
  0xd7   :  { %v1916_v46 = vsel %vm10343_vm8, %v1903_v43, %v6250_v47  ;;  %v6338_v48 = vpop.permute.xlu0 %2064  ;;  %v2174_v49 = vld [vmem:[#allocation2 + $0x188] sm:$0xf]  ;;  %v791_v43 = vrot.slane %v777_v33, 6  ;;  %v333_v33 = vld [vmem:[%s10320_s0] sm:$0x7] }
  0xd8   :  { %1928 = vst [vmem:[#allocation2 + $0x290] sm:$0x7] %v1916_v46  ;;  %v2075_v50 = vsel %vm469_vm12, %v6216_v25, %v6338_v48  ;;  %5613 = vmatpush.msk.msra.mxu0 %vm10336_vm7, %v2174_v49  ;;  %v831_v25 = vld [vmem:[%s10320_s0 + $0x8] sm:$0x38]  ;;  %v500_v46 = vld [vmem:[%s10320_s0] sm:$0x38] }
  0xd9   :  { %2087 = vst [vmem:[#allocation2 + $0x1b0] sm:$0xe] %v2075_v50  ;;  %v845_v56 = vrot.slane %v831_v25, 3 }
  0xdc   :  { %1169 = vrot.lane.b32.xlu2 %v1147_v2, %s5725_s12  ;;  %1167 = vrot.lane.b32.xlu1 %v1146_v4, %s5725_s12 }
  0xdd   :  { %1089 = vrot.lane.b32.xlu0 %v1072_v51, %s5724_s17  ;;  %v779_v51 = vld [vmem:[%s10320_s0 + $0x10] sm:$0x38] }
  0xde   :  { %v6358_v53 = vpop.permute.xlu2 %1851  ;;  %v1956_v54 = vpop.permute.xlu1 %1955 }
  0xdf   :  { %v1969_v62 = vsel %vm10340_vm14, %v1956_v54, %v6280_v7  ;;  %v6362_v2 = vpop.permute.xlu0 %1906 }
  0xe0   :  { %1981 = vst [vmem:[#allocation2 + $0x290] sm:$0x38] %v1969_v62  ;;  %v1917_v0 = vsel %vm10343_vm8, %v6250_v47, %v6362_v2  ;;  %v2175_v4 = vld [vmem:[#allocation2 + $0x1b0] sm:$0xf]  ;;  %v832_v47 = vld [vmem:[%s10320_s0 + $0x10] sm:$0x38] }
  0xe1   :  { %1929 = vst [vmem:[#allocation2 + $0x148] sm:$0x7] %v1917_v0  ;;  %5618 = vmatpush.msk.msra.mxu1 %vm10336_vm7, %v2175_v4  ;;  %v846_v63 = vrot.slane %v832_v47, 3  ;;  %v515_v62 = vrot.slane %v501_v45, 5  ;;  %v514_v0 = vrot.slane %v500_v46, 5  ;;  %v793_v4 = vrot.slane %v779_v51, 6 }
  0xe2   :  { %v502_v47 = vld [vmem:[%s10320_s0 + $0x10] sm:$0x38]  ;;  %v388_v45 = vld [vmem:[%s10320_s0 + $0x8] sm:$0x7]  ;;  %v387_v46 = vld [vmem:[%s10320_s0] sm:$0x7] }
  0xe3   :  { %v516_v1 = vrot.slane %v502_v47, 5  ;;  %v335_v51 = vld [vmem:[%s10320_s0 + $0x10] sm:$0x7] }
  0xe4   :  { %853 = vrot.lane.b32.xlu2 %v845_v56, %s5728_s21  ;;  %851 = vrot.lane.b32.xlu1 %v844_v57, %s5728_s21  ;;  %v560_v56 = vld [vmem:[%s10320_s0 + $0x8] sm:$0x38]  ;;  %v559_v57 = vld [vmem:[%s10320_s0] sm:$0x38] }
  0xe5   :  { %1171 = vrot.lane.b32.xlu0 %v1148_v27, %s5725_s12  ;;  %v883_v27 = vld [vmem:[%s10320_s0] sm:$0x38] }
  0xe6   :  { %v6373_v58 = vpop.permute.xlu2 %1603  ;;  %v1738_v59 = vpop.permute.xlu1 %1737 }
  0xe7   :  { %v1751_v38 = vsel %vm10349_vm1, %v1738_v59, %v6313_v30  ;;  %v6380_v60 = vpop.permute.xlu0 %1959  ;;  %v2168_v61 = vld [vmem:[#allocation2 + $0x290] sm:$0xff] }
  0xe8   :  { %1763 = vst [vmem:[#allocation2 + $0x88] sm:$0x80] %v1751_v38  ;;  %v1970_v55 = vsel %vm10340_vm14, %v6280_v7, %v6380_v60  ;;  %2214 = vmatpush.msra.mxu0 %v2168_v61 }
  0xe9   :  { %1769 = vst [vmem:[#allocation2 + $0xa0] sm:$0x3] %v1751_v38 }
  0xea   :  { %1982 = vst [vmem:[#allocation2 + $0x148] sm:$0x38] %v1970_v55 }
  0xec   :  { %899 = vrot.lane.b32.xlu2 %v884_v18, %s5729_s29  ;;  %897 = vrot.lane.b32.xlu1 %v883_v27, %s5729_s29  ;;  %v574_v27 = vrot.slane %v560_v56, 2  ;;  %v349_v56 = vrot.slane %v335_v51, 6 }
  0xed   :  { %855 = vrot.lane.b32.xlu0 %v846_v63, %s5728_s21  ;;  %v573_v63 = vrot.slane %v559_v57, 2  ;;  %v1991_v57 = vld [vmem:[%s10320_s0 + $0x58] sm:$0xe] }
  0xee   :  { %v6403_v7 = vpop.permute.xlu2 %1686  ;;  %v1797_v8 = vpop.permute.xlu1 %1796 }
  0xef   :  { %v1810_v9 = vsel %vm10344_vm3, %v1797_v8, %v6334_v6  ;;  %v6407_v10 = vpop.permute.xlu0 %1741 }
  0xf0   :  { %1822 = vst [vmem:[#allocation2 + $0xa0] sm:$0x1c] %v1810_v9  ;;  %v1752_v11 = vsel %vm10349_vm1, %v6313_v30, %v6407_v10  ;;  %v738_v30 = vrot.slane %v724_v19, 1  ;;  %v561_v9 = vld [vmem:[%s10320_s0 + $0x10] sm:$0x38] }
  0xf1   :  { %1764 = vst [vmem:[#allocation2 + $0x200] sm:$0x80] %v1752_v11  ;;  %v2169_v15 = vld [vmem:[#allocation2 + $0x148] sm:$0xff]  ;;  %v575_v19 = vrot.slane %v561_v9, 2  ;;  %v936_v9 = vld [vmem:[%s10320_s0 + $0x40] sm:$0x1] }
  0xf2   :  { %1770 = vst [vmem:[#allocation2 + $0x48] sm:$0x3] %v1752_v11  ;;  %2243 = vmatpush.msra.mxu1 %v2169_v15 }
  0xf3   :  { %948 = vst [vmem:[#allocation2 + $0x1c0] sm:$0x1] %v936_v9 }
  0xf4   :  { %688 = vrot.lane.b32.xlu2 %v680_v13, %s5726_s15  ;;  %686 = vrot.lane.b32.xlu1 %v679_v14, %s5726_s15 }
  0xf5   :  { %901 = vrot.lane.b32.xlu0 %v885_v16, %s5729_s29  ;;  %v627_v16 = vrot.slane %v613_v3, 7 }
  0xf6   :  { %v6427_v21 = vpop.permute.xlu2 %1447  ;;  %v1850_v22 = vpop.permute.xlu1 %1849 }
  0xf7   :  { %v1863_v24 = vsel %vm254_vm5, %v1850_v22, %v6358_v53  ;;  %v6434_v26 = vpop.permute.xlu0 %1800 }
  0xf8   :  { %1875 = vst [vmem:[#allocation2 + $0xa0] sm:$0xe0] %v1863_v24  ;;  %v1811_v28 = vsel %vm10344_vm3, %v6334_v6, %v6434_v26  ;;  %v792_v6 = vrot.slane %v778_v32, 6  ;;  %v334_v32 = vld [vmem:[%s10320_s0 + $0x8] sm:$0x7] }
  0xf9   :  { %1823 = vst [vmem:[#allocation2 + $0x48] sm:$0x1c] %v1811_v28 }
  0xfc   :  { %747 = vrot.lane.b32.xlu2 %v739_v29, %s10334_s30  ;;  %745 = vrot.lane.b32.xlu1 %v738_v30, %s10334_s30  ;;  %v442_v29 = vld [vmem:[%s10320_s0 + $0x8] sm:$0x7]  ;;  %v441_v30 = vld [vmem:[%s10320_s0] sm:$0x7] }
  0xfd   :  { %690 = vrot.lane.b32.xlu0 %v681_v31, %s5726_s15  ;;  %v628_v31 = vrot.slane %v614_v23, 7  ;;  %v2049_v23 = vld [vmem:[%s10320_s0 + $0x50] sm:$0xe] }
  0xfe   :  { %v6448_v34 = vpop.permute.xlu2 %1529  ;;  %v1602_v36 = vpop.permute.xlu1 %1601 }
  0xff   :  { %v1621_v37 = vsel %vm469_vm12, %v1602_v36, %v6373_v58  ;;  %v6455_v39 = vpop.permute.xlu0 %1853  ;;  %v2162_v40 = vld [vmem:[#allocation2 + $0xa0] sm:$0xff] }
 0x100   :  { %1645 = vst [vmem:[#allocation2 + $0x88] sm:$0x1] %v1621_v37  ;;  %v1864_v41 = vsel %vm254_vm5, %v6358_v53, %v6455_v39  ;;  %2215 = vmatpush.msra.mxu0 %v2162_v40 }
 0x101   :  { %1876 = vst [vmem:[#allocation2 + $0x48] sm:$0xe0] %v1864_v41 }
 0x104   :  { %800 = vrot.lane.b32.xlu2 %v792_v6, %s10350_s13  ;;  %798 = vrot.lane.b32.xlu1 %v791_v43, %s10350_s13  ;;  %v348_v6 = vrot.slane %v334_v32, 6  ;;  %v347_v43 = vrot.slane %v333_v33, 6 }
 0x105   :  { %749 = vrot.lane.b32.xlu0 %v740_v44, %s10334_s30  ;;  %v443_v44 = vld [vmem:[%s10320_s0 + $0x10] sm:$0x7] }
 0x106   :  { %v6469_v49 = vpop.permute.xlu2 %1589  ;;  %v1685_v50 = vpop.permute.xlu1 %1684 }
 0x107   :  { %v1698_v25 = vsel %vm10345_vm0, %v1685_v50, %v6403_v7  ;;  %v6476_v52 = vpop.permute.xlu0 %1605 }
 0x108   :  { %1710 = vst [vmem:[#allocation2 + $0x88] sm:$0x70] %v1698_v25  ;;  %v1622_v53 = vsel %vm469_vm12, %v6373_v58, %v6476_v52  ;;  %v2163_v54 = vld [vmem:[#allocation2 + $0x48] sm:$0xff] }
 0x109   :  { %1646 = vst [vmem:[#allocation2 + $0x200] sm:$0x1] %v1622_v53  ;;  %2244 = vmatpush.msra.mxu1 %v2163_v54 }
 0x10c   :  { %523 = vrot.lane.b32.xlu2 %v515_v62, %s5723_s23  ;;  %521 = vrot.lane.b32.xlu1 %v514_v0, %s5723_s23  ;;  %v402_v0 = vrot.slane %v388_v45, 3 }
 0x10d   :  { %802 = vrot.lane.b32.xlu0 %v793_v4, %s10350_s13  ;;  %v401_v4 = vrot.slane %v387_v46, 3 }
 0x10e   :  { %v6490_v58 = vpop.permute.xlu2 %1183  ;;  %v1446_v59 = vpop.permute.xlu1 %1445 }
 0x10f   :  { %v1459_v38 = vsel %vm10340_vm14, %v1446_v59, %v6427_v21  ;;  %v6497_v61 = vpop.permute.xlu0 %1688  ;;  %v2156_v55 = vld [vmem:[#allocation2 + $0x88] sm:$0xff]  ;;  %v935_v59 = vld [vmem:[%s10320_s0 + $0x38] sm:$0x1] }
 0x110   :  { %1471 = vst [vmem:[#allocation2 + $0x260] sm:$0x7] %v1459_v38  ;;  %v1699_v18 = vsel %vm10345_vm0, %v6403_v7, %v6497_v61  ;;  %2216 = vmatpush.msra.mxu0 %v2156_v55  ;;  %v389_v55 = vld [vmem:[%s10320_s0 + $0x10] sm:$0x7] }
 0x111   :  { %1711 = vst [vmem:[#allocation2 + $0x200] sm:$0x70] %v1699_v18  ;;  %v403_v5 = vrot.slane %v389_v55, 3 }
 0x112   :  { %947 = vst [vmem:[#allocation2 + $0x158] sm:$0x1] %v935_v59  ;;  %v1779_v59 = vld [vmem:[%s10320_s0 + $0x58] sm:$0xe] }
 0x114   :  { %582 = vrot.lane.b32.xlu2 %v574_v27, %s5724_s17  ;;  %580 = vrot.lane.b32.xlu1 %v573_v63, %s5724_s17 }
 0x115   :  { %525 = vrot.lane.b32.xlu0 %v516_v1, %s5723_s23  ;;  %v2005_v1 = vrot.slane %v1991_v57, 3  ;;  %v1831_v57 = vld [vmem:[%s10320_s0 + $0x50] sm:$0xe] }
 0x116   :  { %v6511_v7 = vpop.permute.xlu2 %1283  ;;  %v1528_v8 = vpop.permute.xlu1 %1527 }
 0x117   :  { %v1541_v11 = vsel %vm422_vm10, %v1528_v8, %v6448_v34  ;;  %v6518_v13 = vpop.permute.xlu0 %1449  ;;  %v1884_v8 = vld [vmem:[%s10320_s0 + $0x50] sm:$0xe] }
 0x118   :  { %1553 = vst [vmem:[#allocation2 + $0x260] sm:$0x38] %v1541_v11  ;;  %v1460_v14 = vsel %vm10340_vm14, %v6427_v21, %v6518_v13  ;;  %v2157_v15 = vld [vmem:[#allocation2 + $0x200] sm:$0xff] }
 0x119   :  { %1472 = vst [vmem:[#allocation2 + $0x268] sm:$0x7] %v1460_v14  ;;  %2245 = vmatpush.msra.mxu1 %v2157_v15 }
 0x11c   :  { %635 = vrot.lane.b32.xlu2 %v627_v16, %s5725_s12  ;;  %633 = vrot.lane.b32.xlu1 %v626_v17, %s5725_s12 }
 0x11d   :  { %584 = vrot.lane.b32.xlu0 %v575_v19, %s5724_s17  ;;  %v1898_v19 = vrot.slane %v1884_v8, 1  ;;  %v1666_v8 = vld [vmem:[%s10320_s0 + $0x50] sm:$0xe] }
 0x11e   :  { %v6526_v42 = vpop.permute.xlu2 %1365  ;;  %v1588_v22 = vpop.permute.xlu1 %1587 }
 0x11f   :  { %v1615_v21 = vsel %vm469_vm12, %v1588_v22, %v6469_v49  ;;  %v6533_v24 = vpop.permute.xlu0 %1531  ;;  %v2050_v22 = vld [vmem:[%s10320_s0 + $0x58] sm:$0xe] }
 0x120   :  { %1639 = vst [vmem:[#allocation2 + $0x260] sm:$0xc0] %v1615_v21  ;;  %v1542_v28 = vsel %vm422_vm10, %v6448_v34, %v6533_v24  ;;  %v1937_v21 = vld [vmem:[%s10320_s0 + $0x50] sm:$0xe] }
 0x121   :  { %1554 = vst [vmem:[#allocation2 + $0x268] sm:$0x38] %v1542_v28  ;;  %v929_v28 = vld [vmem:[%s10320_s0] sm:$0xc0] }
 0x122   :  { %941 = vst [vmem:[#allocation2 + $0x10] sm:$0xc0] %v929_v28 }
 0x124   :  { %457 = vrot.lane.b32.xlu2 %v442_v29, %s5729_s29  ;;  %455 = vrot.lane.b32.xlu1 %v441_v30, %s5729_s29 }
 0x125   :  { %637 = vrot.lane.b32.xlu0 %v628_v31, %s5725_s12  ;;  %v1885_v31 = vld [vmem:[%s10320_s0 + $0x58] sm:$0xe] }
 0x126   :  { %v6553_v34 = vpop.permute.xlu2 %1005  ;;  %v1182_v36 = vpop.permute.xlu1 %1181 }
 0x127   :  { %v1201_v20 = vsel %vm10344_vm3, %v1182_v36, %v6490_v58  ;;  %v6557_v37 = vpop.permute.xlu0 %1591  ;;  %v2150_v40 = vld [vmem:[#allocation2 + $0x260] sm:$0xff] }
 0x128   :  { %1225 = vst [vmem:[#allocation2 + $0x1d8] sm:$0x3] %v1201_v20  ;;  %v1616_v41 = vsel %vm469_vm12, %v6469_v49, %v6557_v37  ;;  %2217 = vmatpush.msra.mxu0 %v2150_v40 }
 0x129   :  { %1640 = vst [vmem:[#allocation2 + $0x268] sm:$0xc0] %v1616_v41  ;;  %v1951_v41 = vrot.slane %v1937_v21, 6 }
 0x12c   :  { %356 = vrot.lane.b32.xlu2 %v348_v6, %s10350_s13  ;;  %354 = vrot.lane.b32.xlu1 %v347_v43, %s10350_s13  ;;  %v1899_v6 = vrot.slane %v1885_v31, 1  ;;  %v1778_v43 = vld [vmem:[%s10320_s0 + $0x50] sm:$0xe] }
 0x12d   :  { %459 = vrot.lane.b32.xlu0 %v443_v44, %s5729_s29  ;;  %v930_v44 = vld [vmem:[%s10320_s0 + $0x8] sm:$0xc0] }
 0x12e   :  { %v6574_v49 = vpop.permute.xlu2 %1087  ;;  %v1282_v50 = vpop.permute.xlu1 %1281  ;;  %942 = vst [vmem:[#allocation2 + $0xb0] sm:$0xc0] %v930_v44  ;;  %v1398_v44 = vld [vmem:[%s10320_s0 + $0x18] sm:$0xc0] }
 0x12f   :  { %v1295_v25 = vsel %vm254_vm5, %v1282_v50, %v6511_v7  ;;  %v6581_v53 = vpop.permute.xlu0 %1185  ;;  %v1719_v50 = vld [vmem:[%s10320_s0 + $0x50] sm:$0xe] }
 0x130   :  { %1307 = vst [vmem:[#allocation2 + $0x1d8] sm:$0x1c] %v1295_v25  ;;  %v1202_v54 = vsel %vm10344_vm3, %v6490_v58, %v6581_v53  ;;  %v2151_v62 = vld [vmem:[#allocation2 + $0x268] sm:$0xff] }
 0x131   :  { %1226 = vst [vmem:[#allocation2 + $0x228] sm:$0x3] %v1202_v54  ;;  %2246 = vmatpush.msra.mxu1 %v2151_v62  ;;  %v1990_v58 = vld [vmem:[%s10320_s0 + $0x50] sm:$0xe]  ;;  %v1792_v62 = vrot.slane %v1778_v43, 7 }
 0x132   :  { %v2004_v3 = vrot.slane %v1990_v58, 3  ;;  %v1487_v43 = vld [vmem:[%s10320_s0 + $0x50] sm:$0x1] }
 0x134   :  { %410 = vrot.lane.b32.xlu2 %v402_v0, %s5728_s21  ;;  %408 = vrot.lane.b32.xlu1 %v401_v4, %s5728_s21  ;;  %v1733_v4 = vrot.slane %v1719_v50, 2 }
 0x135   :  { %358 = vrot.lane.b32.xlu0 %v349_v56, %s10350_s13  ;;  %v1832_v56 = vld [vmem:[%s10320_s0 + $0x58] sm:$0xe] }
 0x136   :  { %v6598_v47 = vpop.permute.xlu2 %1169  ;;  %v1364_v38 = vpop.permute.xlu1 %1363 }
 0x137   :  { %v1377_v18 = vsel %vm10343_vm8, %v1364_v38, %v6526_v42  ;;  %v6605_v27 = vpop.permute.xlu0 %1285 }
 0x138   :  { %1389 = vst [vmem:[#allocation2 + $0x1d8] sm:$0xe0] %v1377_v18  ;;  %v1296_v63 = vsel %vm254_vm5, %v6511_v7, %v6605_v27 }
 0x139   :  { %1308 = vst [vmem:[#allocation2 + $0x228] sm:$0x1c] %v1296_v63 }
 0x13c   :  { %2016 = vrot.lane.b32.xlu2 %v2005_v1, %s5728_s21  ;;  %2014 = vrot.lane.b32.xlu1 %v2004_v3, %s5728_s21  ;;  %v1846_v1 = vrot.slane %v1832_v56, 4  ;;  %v1845_v3 = vrot.slane %v1831_v57, 4  ;;  %v1433_v56 = vrot.slane %v1398_v44, 6 }
 0x13d   :  { %412 = vrot.lane.b32.xlu0 %v403_v5, %s5728_s21  ;;  %v1793_v5 = vrot.slane %v1779_v59, 7 }
 0x13e   :  { %v6619_v11 = vpop.permute.xlu2 %853  ;;  %v1004_v7 = vpop.permute.xlu1 %1003 }
 0x13f   :  { %v1017_v14 = vsel %vm10345_vm0, %v1004_v7, %v6553_v34  ;;  %v6623_v15 = vpop.permute.xlu0 %1367  ;;  %v2144_v16 = vld [vmem:[#allocation2 + $0x1d8] sm:$0xff] }
 0x140   :  { %1029 = vst [vmem:[#allocation2 + $0x158] sm:$0xe] %v1017_v14  ;;  %v1378_v17 = vsel %vm10343_vm8, %v6526_v42, %v6623_v15  ;;  %2218 = vmatpush.msra.mxu0 %v2144_v16  ;;  %v1938_v42 = vld [vmem:[%s10320_s0 + $0x58] sm:$0xe] }
 0x141   :  { %1390 = vst [vmem:[#allocation2 + $0x228] sm:$0xe0] %v1378_v17  ;;  %v1952_v40 = vrot.slane %v1938_v42, 6  ;;  %v1667_v42 = vld [vmem:[%s10320_s0 + $0x58] sm:$0xe] }
 0x144   :  { %1908 = vrot.lane.b32.xlu2 %v1898_v19, %s10334_s30  ;;  %2068 = vrot.lane.b32.xlu1 %v2050_v22, %s5729_s29  ;;  %v1680_v19 = vrot.slane %v1666_v8, 5  ;;  %v1570_v22 = vld [vmem:[%s10320_s0 + $0x58] sm:$0x1] }
 0x145   :  { %2066 = vrot.lane.b32.xlu0 %v2049_v23, %s5729_s29  ;;  %v1569_v23 = vld [vmem:[%s10320_s0 + $0x50] sm:$0x1]  ;;  %v1488_v8 = vld [vmem:[%s10320_s0 + $0x58] sm:$0x1] }
 0x146   :  { %v6646_v29 = vpop.permute.xlu2 %899  ;;  %v1086_v30 = vpop.permute.xlu1 %1085 }
 0x147   :  { %v1099_v32 = vsel %vm10349_vm1, %v1086_v30, %v6574_v49  ;;  %v6653_v33 = vpop.permute.xlu0 %1007 }
 0x148   :  { %1111 = vst [vmem:[#allocation2 + $0x158] sm:$0x70] %v1099_v32  ;;  %v1018_v36 = vsel %vm10345_vm0, %v6553_v34, %v6653_v33  ;;  %v2145_v20 = vld [vmem:[#allocation2 + $0x228] sm:$0xff]  ;;  %v1720_v34 = vld [vmem:[%s10320_s0 + $0x58] sm:$0xe] }
 0x149   :  { %1030 = vst [vmem:[#allocation2 + $0x1c0] sm:$0xe] %v1018_v36  ;;  %2247 = vmatpush.msra.mxu1 %v2145_v20  ;;  %v1734_v0 = vrot.slane %v1720_v34, 2  ;;  %v2051_v20 = vld [vmem:[%s10320_s0 + $0x60] sm:$0xe] }
 0x14a   :  { %v1406_v34 = vld [vmem:[%s10320_s0 + $0x58] sm:$0x1] }
 0x14c   :  { %1963 = vrot.lane.b32.xlu2 %v1952_v40, %s10350_s13  ;;  %1961 = vrot.lane.b32.xlu1 %v1951_v41, %s10350_s13  ;;  %v1681_v41 = vrot.slane %v1667_v42, 5  ;;  %v6805_v42 = vld [vmem:[%s10320_s0 + $0x18] sm:$0xc0] }
 0x14d   :  { %1910 = vrot.lane.b32.xlu0 %v1899_v6, %s10334_s30  ;;  %v1480_v6 = vld [vmem:[%s10320_s0 + $0x18] sm:$0xc0] }
 0x14e   :  { %v6670_v45 = vpop.permute.xlu2 %688  ;;  %v1168_v46 = vpop.permute.xlu1 %1167  ;;  %v1515_v50 = vrot.slane %v1480_v6, 3 }
 0x14f   :  { %v1195_v51 = vsel %vm10344_vm3, %v1168_v46, %v6598_v47  ;;  %v6677_v25 = vpop.permute.xlu0 %1089  ;;  %v1405_v46 = vld [vmem:[%s10320_s0 + $0x50] sm:$0x1] }
 0x150   :  { %1219 = vst [vmem:[#allocation2 + $0x158] sm:$0x80] %v1195_v51  ;;  %v1100_v54 = vsel %vm10349_vm1, %v6574_v49, %v6677_v25  ;;  %v1516_v51 = vrot.slane %v1487_v43, 3  ;;  %v1434_v57 = vrot.slane %v1405_v46, 6 }
 0x151   :  { %1112 = vst [vmem:[#allocation2 + $0x1c0] sm:$0x70] %v1100_v54 }
 0x154   :  { %1802 = vrot.lane.b32.xlu2 %v1792_v62, %s5725_s12  ;;  %1745 = vrot.lane.b32.xlu1 %v1734_v0, %s5724_s17  ;;  %v1437_v62 = vrot.slane %v1406_v34, 6 }
 0x155   :  { %1743 = vrot.lane.b32.xlu0 %v1733_v4, %s5724_s17 }
 0x156   :  { %v6691_v58 = vpop.permute.xlu2 %747  ;;  %v852_v49 = vpop.permute.xlu1 %851 }
 0x157   :  { %v865_v38 = vsel %vm422_vm10, %v852_v49, %v6619_v11  ;;  %v6698_v55 = vpop.permute.xlu0 %1171  ;;  %v2138_v18 = vld [vmem:[#allocation2 + $0x158] sm:$0xff] }
 0x158   :  { %877 = vst [vmem:[#allocation2 + $0x10] sm:$0x7] %v865_v38  ;;  %v1196_v63 = vsel %vm10344_vm3, %v6598_v47, %v6698_v55  ;;  %2219 = vmatpush.msra.mxu0 %v2138_v18 }
 0x159   :  { %1220 = vst [vmem:[#allocation2 + $0x1c0] sm:$0x80] %v1196_v63  ;;  %v1517_v63 = vsel %vm1505_vm4, %v1515_v50, %v1516_v51 }
 0x15c   :  { %1857 = vrot.lane.b32.xlu2 %v1846_v1, %s5726_s15  ;;  %1855 = vrot.lane.b32.xlu1 %v1845_v3, %s5726_s15  ;;  %v1435_v3 = vsel %vm1423_vm2, %v1433_v56, %v1434_v57  ;;  %v6851_v56 = vld [vmem:[%s10320_s0 + $0x20] sm:$0xc0]  ;;  %v1128_v57 = vld [vmem:[%s10320_s0 + $0x58] sm:$0x1] }
 0x15d   :  { %1804 = vrot.lane.b32.xlu0 %v1793_v5, %s5725_s12  ;;  %v1481_v5 = vld [vmem:[%s10320_s0 + $0x20] sm:$0xc0] }
 0x15e   :  { %v6709_v9 = vpop.permute.xlu2 %800  ;;  %v898_v7 = vpop.permute.xlu1 %897 }
 0x15f   :  { %v911_v47 = vsel %vm469_vm12, %v898_v7, %v6646_v29  ;;  %v6713_v14 = vpop.permute.xlu0 %855 }
 0x160   :  { %923 = vst [vmem:[#allocation2 + $0x10] sm:$0x38] %v911_v47  ;;  %v866_v16 = vsel %vm422_vm10, %v6619_v11, %v6713_v14  ;;  %v2139_v17 = vld [vmem:[#allocation2 + $0x1c0] sm:$0xff]  ;;  %v1992_v11 = vld [vmem:[%s10320_s0 + $0x60] sm:$0xe]  ;;  %v1518_v47 = vrot.slane %v1481_v5, 3 }
 0x161   :  { %878 = vst [vmem:[#allocation2 + $0xb0] sm:$0x7] %v866_v16  ;;  %2248 = vmatpush.msra.mxu1 %v2139_v17  ;;  %v2006_v40 = vrot.slane %v1992_v11, 3  ;;  %v1519_v16 = vrot.slane %v1488_v8, 3  ;;  %v1562_v11 = vld [vmem:[%s10320_s0 + $0x18] sm:$0xc0] }
 0x162   :  { %v1150_v5 = vrot.slane %v6851_v56, 7  ;;  %v1161_v8 = vrot.slane %v1128_v57, 7  ;;  %v956_v57 = vld [vmem:[%s10320_s0 + $0x18] sm:$0xc0]  ;;  %v1668_v56 = vld [vmem:[%s10320_s0 + $0x60] sm:$0xe] }
 0x164   :  { %1690 = vrot.lane.b32.xlu2 %v1680_v19, %s5723_s23  ;;  %1609 = vrot.lane.b32.xlu1 %v1570_v22, %s5729_s29 }
 0x165   :  { %1607 = vrot.lane.b32.xlu0 %v1569_v23, %s5729_s29  ;;  %v1563_v23 = vld [vmem:[%s10320_s0 + $0x20] sm:$0xc0] }
 0x166   :  { %v6733_v21 = vpop.permute.xlu2 %523  ;;  %v687_v28 = vpop.permute.xlu1 %686 }
 0x167   :  { %v700_v30 = vsel %vm254_vm5, %v687_v28, %v6670_v45  ;;  %v6737_v31 = vpop.permute.xlu0 %901  ;;  %v2132_v32 = vld [vmem:[#allocation2 + $0x10] sm:$0xff]  ;;  %v1127_v28 = vld [vmem:[%s10320_s0 + $0x50] sm:$0x1] }
 0x168   :  { %712 = vst [vmem:[#allocation2 + $0x220] sm:$0x80] %v700_v30  ;;  %v912_v36 = vsel %vm469_vm12, %v6646_v29, %v6737_v31  ;;  %2220 = vmatpush.msra.mxu0 %v2132_v32  ;;  %v1399_v29 = vld [vmem:[%s10320_s0 + $0x20] sm:$0xc0]  ;;  %v1159_v32 = vrot.slane %v1127_v28, 7  ;;  %v1162_v28 = vsel %vm1145_vm6, %v1150_v5, %v1161_v8 }
 0x169   :  { %718 = vst [vmem:[#allocation2 + $0x258] sm:$0x3] %v700_v30  ;;  %v1436_v54 = vrot.slane %v1399_v29, 6  ;;  %v1149_v30 = vrot.slane %v6805_v42, 7  ;;  %v1780_v8 = vld [vmem:[%s10320_s0 + $0x60] sm:$0xe] }
 0x16a   :  { %924 = vst [vmem:[#allocation2 + $0xb0] sm:$0x38] %v912_v36  ;;  %v1939_v36 = vld [vmem:[%s10320_s0 + $0x60] sm:$0xe] }
 0x16b   :  { %v1438_v1 = vsel %vm1423_vm2, %v1436_v54, %v1437_v62  ;;  %v1953_v46 = vrot.slane %v1939_v36, 6  ;;  %v1160_v51 = vsel %vm1145_vm6, %v1149_v30, %v1159_v32  ;;  %v1235_v54 = vld [vmem:[%s10320_s0 + $0x20] sm:$0xc0]  ;;  %v1242_v62 = vld [vmem:[%s10320_s0 + $0x58] sm:$0x1] }
 0x16c   :  { %2070 = vrot.lane.b32.xlu2 %v2051_v20, %s5729_s29  ;;  %2018 = vrot.lane.b32.xlu1 %v2006_v40, %s5728_s21  ;;  %v1886_v20 = vld [vmem:[%s10320_s0 + $0x60] sm:$0xe]  ;;  %v1316_v32 = vld [vmem:[%s10320_s0 + $0x18] sm:$0xc0] }
 0x16d   :  { %1692 = vrot.lane.b32.xlu0 %v1681_v41, %s5723_s23  ;;  %v488_v40 = vld [vmem:[%s10320_s0] sm:$0x38]  ;;  %v1900_v50 = vrot.slane %v1886_v20, 1  ;;  %v1323_v36 = vld [vmem:[%s10320_s0 + $0x50] sm:$0x1] }
 0x16e   :  { %v6766_v0 = vpop.permute.xlu2 %582  ;;  %v746_v4 = vpop.permute.xlu1 %745  ;;  %494 = vst [vmem:[#allocation2 + $0x90] sm:$0x38] %v488_v40  ;;  %v1721_v20 = vld [vmem:[%s10320_s0 + $0x60] sm:$0xe] }
 0x16f   :  { %v759_v49 = vsel %vm10343_vm8, %v746_v4, %v6691_v58  ;;  %v6770_v59 = vpop.permute.xlu0 %690  ;;  %v1241_v4 = vld [vmem:[%s10320_s0 + $0x50] sm:$0x1] }
 0x170   :  { %771 = vst [vmem:[#allocation2 + $0x258] sm:$0x1c] %v759_v49  ;;  %v701_v38 = vsel %vm254_vm5, %v6670_v45, %v6770_v59  ;;  %v1272_v49 = vrot.slane %v1235_v54, 4 }
 0x171   :  { %713 = vst [vmem:[#allocation2 + $0x198] sm:$0x80] %v701_v38  ;;  %v2133_v18 = vld [vmem:[#allocation2 + $0xb0] sm:$0xff] }
 0x172   :  { %719 = vst [vmem:[#allocation2 + $0xc0] sm:$0x3] %v701_v38  ;;  %2249 = vmatpush.msra.mxu1 %v2133_v18  ;;  %v1273_v38 = vrot.slane %v1242_v62, 4  ;;  %v1735_v62 = vrot.slane %v1721_v20, 2  ;;  %v964_v20 = vld [vmem:[%s10320_s0 + $0x58] sm:$0x1] }
 0x174   :  { %1533 = vrot.lane.b32.xlu2 %v1517_v63, %s5728_s21  ;;  %1453 = vrot.lane.b32.xlu1 %v1438_v1, %s10350_s13  ;;  %v1270_v63 = vrot.slane %v1241_v4, 4 }
 0x175   :  { %1451 = vrot.lane.b32.xlu0 %v1435_v3, %s10350_s13 }
 0x176   :  { %v6787_v45 = vpop.permute.xlu2 %635  ;;  %v799_v7 = vpop.permute.xlu1 %798 }
 0x177   :  { %v812_v17 = vsel %vm10340_vm14, %v799_v7, %v6709_v9  ;;  %v6791_v19 = vpop.permute.xlu0 %749  ;;  %v489_v7 = vld [vmem:[%s10320_s0 + $0x8] sm:$0x38] }
 0x178   :  { %824 = vst [vmem:[#allocation2 + $0x258] sm:$0xe0] %v812_v17  ;;  %v760_v22 = vsel %vm10343_vm8, %v6691_v58, %v6791_v19  ;;  %v1520_v58 = vsel %vm1505_vm4, %v1518_v47, %v1519_v16 }
 0x179   :  { %772 = vst [vmem:[#allocation2 + $0xc0] sm:$0x1c] %v760_v22 }
 0x17a   :  { %495 = vst [vmem:[#allocation2 + $0xe0] sm:$0x38] %v489_v7 }
 0x17c   :  { %1595 = vrot.lane.b32.xlu2 %v1563_v23, %s5729_s29  ;;  %1593 = vrot.lane.b32.xlu1 %v1562_v11, %s5729_s29  ;;  %v1274_v23 = vsel %vm10336_vm7, %v1272_v49, %v1273_v38  ;;  %v963_v49 = vld [vmem:[%s10320_s0 + $0x50] sm:$0x1] }
 0x17d   :  { %1535 = vrot.lane.b32.xlu0 %v1520_v58, %s5728_s21  ;;  %v1317_v58 = vld [vmem:[%s10320_s0 + $0x20] sm:$0xc0]  ;;  %v992_v38 = vrot.slane %v963_v49, 5 }
 0x17e   :  { %v6824_v41 = vpop.permute.xlu2 %457  ;;  %v522_v6 = vpop.permute.xlu1 %521  ;;  %v1354_v40 = vrot.slane %v1317_v58, 1  ;;  %v1039_v58 = vld [vmem:[%s10320_s0 + $0x20] sm:$0xc0] }
 0x17f   :  { %v535_v43 = vsel %vm10345_vm0, %v522_v6, %v6733_v21  ;;  %v6828_v29 = vpop.permute.xlu0 %802  ;;  %v2126_v34 = vld [vmem:[#allocation2 + $0x258] sm:$0xff] }
 0x180   :  { %547 = vst [vmem:[#allocation2 + $0x90] sm:$0xc0] %v535_v43  ;;  %v813_v44 = vsel %vm10340_vm14, %v6709_v9, %v6828_v29  ;;  %2221 = vmatpush.msra.mxu0 %v2126_v34  ;;  %v1234_v9 = vld [vmem:[%s10320_s0 + $0x18] sm:$0xc0] }
 0x181   :  { %553 = vst [vmem:[#allocation2 + $0x220] sm:$0x1] %v535_v43  ;;  %v1269_v18 = vrot.slane %v1234_v9, 4 }
 0x182   :  { %825 = vst [vmem:[#allocation2 + $0xc0] sm:$0xe0] %v813_v44  ;;  %v1351_v44 = vrot.slane %v1316_v32, 1  ;;  %v1038_v32 = vld [vmem:[%s10320_s0 + $0x18] sm:$0xc0] }
 0x183   :  { %v1271_v11 = vsel %vm10336_vm7, %v1269_v18, %v1270_v63  ;;  %v1833_v18 = vld [vmem:[%s10320_s0 + $0x60] sm:$0xe] }
 0x184   :  { %1187 = vrot.lane.b32.xlu2 %v1160_v51, %s5725_s12  ;;  %1965 = vrot.lane.b32.xlu1 %v1953_v46, %s10350_s13  ;;  %v1352_v46 = vrot.slane %v1323_v36, 1  ;;  %v957_v36 = vld [vmem:[%s10320_s0 + $0x20] sm:$0xc0] }
 0x185   :  { %1912 = vrot.lane.b32.xlu0 %v1900_v50, %s10334_s30 }
 0x186   :  { %v6859_v1 = vpop.permute.xlu2 %356  ;;  %v581_v3 = vpop.permute.xlu1 %580  ;;  %v1353_v4 = vsel %vm1341_vm9, %v1351_v44, %v1352_v46 }
 0x187   :  { %v594_v47 = vsel %vm10349_vm1, %v581_v3, %v6766_v0  ;;  %v6867_v16 = vpop.permute.xlu0 %525 }
 0x188   :  { %606 = vst [vmem:[#allocation2 + $0x220] sm:$0xe] %v594_v47  ;;  %v536_v17 = vsel %vm10345_vm0, %v6733_v21, %v6867_v16  ;;  %v1324_v21 = vld [vmem:[%s10320_s0 + $0x58] sm:$0x1] }
 0x189   :  { %548 = vst [vmem:[#allocation2 + $0xe0] sm:$0xc0] %v536_v17  ;;  %v2127_v22 = vld [vmem:[#allocation2 + $0xc0] sm:$0xff]  ;;  %v1355_v6 = vrot.slane %v1324_v21, 1  ;;  %v1046_v21 = vld [vmem:[%s10320_s0 + $0x58] sm:$0x1] }
 0x18a   :  { %554 = vst [vmem:[#allocation2 + $0x198] sm:$0x1] %v536_v17  ;;  %2250 = vmatpush.msra.mxu1 %v2127_v22 }
 0x18b   :  { %v1356_v9 = vsel %vm1341_vm9, %v1354_v40, %v1355_v6  ;;  %v1076_v40 = vrot.slane %v1039_v58, 2  ;;  %v1077_v6 = vrot.slane %v1046_v21, 2 }
 0x18c   :  { %1289 = vrot.lane.b32.xlu2 %v1274_v23, %s5726_s15  ;;  %1287 = vrot.lane.b32.xlu1 %v1271_v11, %s5726_s15  ;;  %v1847_v23 = vrot.slane %v1833_v18, 4 }
 0x18d   :  { %1189 = vrot.lane.b32.xlu0 %v1162_v28, %s5725_s12  ;;  %v1794_v28 = vrot.slane %v1780_v8, 7  ;;  %v1078_v18 = vsel %vm10337_vm13, %v1076_v40, %v1077_v6  ;;  %v2102_v40 = vld [vmem:[#allocation2 + $0x70] sm:$0xff]  ;;  %v1682_v6 = vrot.slane %v1668_v56, 5 }
 0x18e   :  { %v6895_v43 = vpop.permute.xlu2 %410  ;;  %v634_v34 = vpop.permute.xlu1 %633 }
 0x18f   :  { %v647_v50 = vsel %vm10344_vm3, %v634_v34, %v6787_v45  ;;  %v6899_v51 = vpop.permute.xlu0 %584  ;;  %v1073_v34 = vrot.slane %v1038_v32, 2 }
 0x190   :  { %659 = vst [vmem:[#allocation2 + $0x220] sm:$0x70] %v647_v50  ;;  %v595_v54 = vsel %vm10349_vm1, %v6766_v0, %v6899_v51  ;;  %v991_v0 = vrot.slane %v956_v57, 5 }
 0x191   :  { %607 = vst [vmem:[#allocation2 + $0x198] sm:$0xe] %v595_v54  ;;  %v994_v54 = vrot.slane %v957_v36, 5 }
 0x192   :  { %v993_v11 = vsel %vm981_vm11, %v991_v0, %v992_v38 }
 0x194   :  { %1747 = vrot.lane.b32.xlu2 %v1735_v62, %s5724_s17  ;;  %1371 = vrot.lane.b32.xlu1 %v1356_v9, %s10334_s30  ;;  %v995_v62 = vrot.slane %v964_v20, 5 }
 0x195   :  { %1369 = vrot.lane.b32.xlu0 %v1353_v4, %s10334_s30  ;;  %s5741_s30 = smov 108  }
 0x196   :  { %v6918_v63 = vpop.permute.xlu2 %2016  ;;  %v456_v3 = vpop.permute.xlu1 %455 }
 0x197   :  { %v470_v7 = vsel %vm469_vm12, %v456_v3, %v6824_v41  ;;  %v6925_v47 = vpop.permute.xlu0 %637  ;;  %v2120_v17 = vld [vmem:[#allocation2 + $0x220] sm:$0xff] }
 0x198   :  { %482 = vst [vmem:[#allocation2 + $0x90] sm:$0x7] %v470_v7  ;;  %v648_v22 = vsel %vm10344_vm3, %v6787_v45, %v6925_v47  ;;  %2222 = vmatpush.msra.mxu0 %v2120_v17  ;;  %v1045_v45 = vld [vmem:[%s10320_s0 + $0x50] sm:$0x1] }
 0x199   :  { %660 = vst [vmem:[#allocation2 + $0x198] sm:$0x70] %v648_v22  ;;  %v1074_v44 = vrot.slane %v1045_v45, 2 }
 0x19b   :  { %v1075_v3 = vsel %vm10337_vm13, %v1073_v34, %v1074_v44  ;;  %v1407_v34 = vld [vmem:[%s10320_s0 + $0x60] sm:$0x1]  ;;  %v2096_v44 = vld [vmem:[#allocation2 + $0xc8] sm:$0xff] }
 0x19c   :  { %1009 = vrot.lane.b32.xlu2 %v993_v11, %s5723_s23  ;;  %1859 = vrot.lane.b32.xlu1 %v1847_v23, %s5726_s15  ;;  %v1571_v11 = vld [vmem:[%s10320_s0 + $0x60] sm:$0x1] }
 0x19d   :  { %1806 = vrot.lane.b32.xlu0 %v1794_v28, %s5725_s12  ;;  %v833_v28 = vld [vmem:[%s10320_s0 + $0x18] sm:$0x38] }
 0x19e   :  { %v6952_v46 = vpop.permute.xlu2 %1908  ;;  %v355_v50 = vpop.permute.xlu1 %354  ;;  %v847_v20 = vrot.slane %v833_v28, 3  ;;  %v2097_v28 = vld [vmem:[#allocation2 + $0x8] sm:$0xff] }
 0x19f   :  { %v1918_v9 = vsel %vm10343_vm8, %v6362_v2, %v6952_v46  ;;  %v369_v4 = vsel %vm10340_vm14, %v355_v50, %v6859_v1  ;;  %v6959_v57 = vpop.permute.xlu0 %459  ;;  %v2114_v49 = vld [vmem:[#allocation2 + $0x90] sm:$0xff]  ;;  %v996_v2 = vsel %vm981_vm11, %v994_v54, %v995_v62  ;;  %v1440_v50 = vrot.slane %v1407_v34, 6 }
 0x1a0   :  { %1930 = vst [vmem:[#allocation2 + $0x1c8] sm:$0x7] %v1918_v9  ;;  %v471_v0 = vsel %vm469_vm12, %v6824_v41, %v6959_v57  ;;  %2223 = vmatpush.msra.mxu0 %v2114_v49  ;;  %v2121_v38 = vld [vmem:[#allocation2 + $0x198] sm:$0xff] }
 0x1a1   :  { %381 = vst [vmem:[#allocation2 + $0x110] sm:$0x1c] %v369_v4  ;;  %2251 = vmatpush.msra.mxu1 %v2121_v38  ;;  %v887_v38 = vld [vmem:[%s10320_s0 + $0x20] sm:$0x38] }
 0x1a2   :  { %483 = vst [vmem:[#allocation2 + $0xe0] sm:$0x7] %v471_v0 }
 0x1a4   :  { %1093 = vrot.lane.b32.xlu2 %v1078_v18, %s5724_s17  ;;  %1091 = vrot.lane.b32.xlu1 %v1075_v3, %s5724_s17  ;;  %v886_v18 = vld [vmem:[%s10320_s0 + $0x18] sm:$0x38]  ;;  %v1482_v3 = vld [vmem:[%s10320_s0 + $0x28] sm:$0xc0] }
 0x1a5   :  { %1011 = vrot.lane.b32.xlu0 %v996_v2, %s5723_s23 }
 0x1a6   :  { %v6970_v8 = vpop.permute.xlu2 %1963  ;;  %v409_v41 = vpop.permute.xlu1 %408 }
 0x1a7   :  { %v423_v7 = vsel %vm422_vm10, %v409_v41, %v6895_v43  ;;  %v6974_v17 = vpop.permute.xlu0 %358  ;;  %v668_v41 = vld [vmem:[%s10320_s0 + $0x18] sm:$0x38] }
 0x1a8   :  { %435 = vst [vmem:[#allocation2 + $0x110] sm:$0xe0] %v423_v7  ;;  %v370_v22 = vsel %vm10340_vm14, %v6859_v1, %v6974_v17  ;;  %v834_v1 = vld [vmem:[%s10320_s0 + $0x20] sm:$0x38]  ;;  %v2103_v7 = vld [vmem:[#allocation2 + $0x120] sm:$0xff] }
 0x1a9   :  { %382 = vst [vmem:[#allocation2 + $0x298] sm:$0x1c] %v370_v22  ;;  %v2115_v23 = vld [vmem:[#allocation2 + $0xe0] sm:$0xff]  ;;  %v848_v36 = vrot.slane %v834_v1, 3 }
 0x1aa   :  { %2252 = vmatpush.msra.mxu1 %v2115_v23 }
 0x1ac   :  { %1611 = vrot.lane.b32.xlu2 %v1571_v11, %s5729_s29  ;;  %1175 = vrot.lane.b32.xlu1 %v1150_v5, %s5725_s12  ;;  %v1521_v11 = vrot.slane %v1482_v3, 3  ;;  %v7096_v3 = vld [vmem:[%s10320_s0 + $0x28] sm:$0xc0] }
 0x1ad   :  { %1173 = vrot.lane.b32.xlu0 %v1149_v30, %s5725_s12 }
 0x1ae   :  { %v6995_v58 = vpop.permute.xlu2 %1802  ;;  %v2015_v21 = vpop.permute.xlu1 %2014 }
 0x1af   :  { %v1812_v42 = vsel %vm10344_vm3, %v6434_v26, %v6995_v58  ;;  %v2024_v30 = vsel %vm422_vm10, %v6317_v35, %v2015_v21  ;;  %v2025_v5 = vsel %vm422_vm10, %v2015_v21, %v6918_v63  ;;  %v7007_v32 = vpop.permute.xlu0 %412  ;;  %v2108_v45 = vld [vmem:[#allocation2 + $0x110] sm:$0xff]  ;;  %v1400_v35 = vld [vmem:[%s10320_s0 + $0x28] sm:$0xc0] }
 0x1b0   :  { %1824 = vst [vmem:[#allocation2 + $0x218] sm:$0x1c] %v1812_v42  ;;  %2224 = vmatpush.msra.mxu0 %v2108_v45  ;;  %v424_v26 = vsel %vm422_vm10, %v6895_v43, %v7007_v32  ;;  %v1439_v43 = vrot.slane %v1400_v35, 6 }
 0x1b1   :  { %2036 = vst [vmem:[#allocation2 + $0x1c8] sm:$0xc0] %v2024_v30 }
 0x1b2   :  { %2037 = vst [vmem:[#allocation2 + $0x178] sm:$0xc0] %v2025_v5  ;;  %2225 = vmatpush.msra.mxu0 %v2102_v40  ;;  %v1441_v0 = vsel %vm1423_vm2, %v1439_v43, %v1440_v50 }
 0x1b3   :  { %2042 = vst [vmem:[#allocation2 + $0x78] sm:$0x1] %v2024_v30 }
 0x1b4   :  { %2043 = vst [vmem:[#allocation2 + $0x208] sm:$0x1] %v2025_v5  ;;  %859 = vrot.lane.b32.xlu2 %v848_v36, %s5728_s21  ;;  %857 = vrot.lane.b32.xlu1 %v847_v20, %s5728_s21  ;;  %v682_v5 = vrot.slane %v668_v41, 4  ;;  %v1564_v20 = vld [vmem:[%s10320_s0 + $0x28] sm:$0xc0] }
 0x1b5   :  { %436 = vst [vmem:[#allocation2 + $0x298] sm:$0xe0] %v424_v26  ;;  %1694 = vrot.lane.b32.xlu0 %v1682_v6, %s5723_s23  ;;  %2226 = vmatpush.msra.mxu0 %v2096_v44  ;;  %v727_v6 = vld [vmem:[%s10320_s0 + $0x18] sm:$0x38]  ;;  %v1654_v26 = vld [vmem:[%s10320_s0 + $0x50] sm:$0xe] }
 0x1b6   :  { %v7021_v54 = vpop.permute.xlu2 %1857  ;;  %v2069_v62 = vpop.permute.xlu1 %2068  ;;  %v669_v44 = vld [vmem:[%s10320_s0 + $0x20] sm:$0x38]  ;;  %1660 = vst [vmem:[#allocation2 + $0x138] sm:$0xe] %v1654_v26 }
 0x1b7   :  { %v2067_v9 = vpop.permute.xlu0 %2066  ;;  %v781_v41 = vld [vmem:[%s10320_s0 + $0x20] sm:$0x38] }
 0x1b8   :  { %v2076_v4 = vsel %vm469_vm12, %v6338_v48, %v2067_v9  ;;  %v2077_v49 = vsel %vm469_vm12, %v2067_v9, %v2069_v62  ;;  %v1489_v48 = vld [vmem:[%s10320_s0 + $0x60] sm:$0x1] }
 0x1b9   :  { %2088 = vst [vmem:[#allocation2 + $0x78] sm:$0xe] %v2076_v4  ;;  %v1522_v1 = vrot.slane %v1489_v48, 3  ;;  %v1151_v48 = vrot.slane %v7096_v3, 7 }
 0x1ba   :  { %2089 = vst [vmem:[#allocation2 + $0x208] sm:$0xe] %v2077_v49 }
 0x1bb   :  { %v1523_v40 = vsel %vm1505_vm4, %v1521_v11, %v1522_v1  ;;  %v780_v11 = vld [vmem:[%s10320_s0 + $0x18] sm:$0x38] }
 0x1bc   :  { %v2109_v2 = vld [vmem:[#allocation2 + $0x298] sm:$0xff]  ;;  %1455 = vrot.lane.b32.xlu2 %v1441_v0, %s10350_s13  ;;  %905 = vrot.lane.b32.xlu1 %v887_v38, %s5729_s29  ;;  %v741_v38 = vrot.slane %v727_v6, 1 }
 0x1bd   :  { %2253 = vmatpush.msra.mxu1 %v2109_v2  ;;  %903 = vrot.lane.b32.xlu0 %v886_v18, %s5729_s29  ;;  %v683_v18 = vrot.slane %v669_v44, 4 }
 0x1be   :  { %v7045_v22 = vpop.permute.xlu2 %1690  ;;  %v1962_v23 = vpop.permute.xlu1 %1961 }
 0x1bf   :  { %2254 = vmatpush.msra.mxu1 %v2103_v7  ;;  %v1700_v21 = vsel %vm10345_vm0, %v6497_v61, %v7045_v22  ;;  %v1971_v56 = vsel %vm10340_vm14, %v6380_v60, %v1962_v23  ;;  %v1972_v42 = vsel %vm10340_vm14, %v1962_v23, %v6970_v8  ;;  %v7054_v30 = vpop.permute.xlu0 %1910  ;;  %v1653_v61 = vld [vmem:[%s10320_s0 + $0x48] sm:$0xe] }
 0x1c0   :  { %1712 = vst [vmem:[#allocation2 + $0x128] sm:$0x70] %v1700_v21  ;;  %v1919_v45 = vsel %vm10343_vm8, %v6952_v46, %v7054_v30  ;;  %v2176_v36 = vld [vmem:[#allocation2 + $0x78] sm:$0xf] }
 0x1c1   :  { %2255 = vmatpush.msra.mxu1 %v2097_v28  ;;  %1983 = vst [vmem:[#allocation2 + $0x1c8] sm:$0x38] %v1971_v56  ;;  %5623 = vmatpush.msk.msra.mxu2 %vm10336_vm7, %v2176_v36  ;;  %v2177_v60 = vld [vmem:[#allocation2 + $0x208] sm:$0xf]  ;;  %v728_v46 = vld [vmem:[%s10320_s0 + $0x20] sm:$0x38] }
 0x1c2   :  { %1984 = vst [vmem:[#allocation2 + $0x178] sm:$0x38] %v1972_v42  ;;  %5628 = vmatpush.msk.msra.mxu3 %vm10336_vm7, %v2177_v60  ;;  %v742_v0 = vrot.slane %v728_v46, 1  ;;  %v1325_v36 = vld [vmem:[%s10320_s0 + $0x60] sm:$0x1] }
 0x1c3   :  { %1931 = vst [vmem:[#allocation2 + $0x178] sm:$0x7] %v1919_v45  ;;  %v503_v60 = vld [vmem:[%s10320_s0 + $0x18] sm:$0x38] }
 0x1c4   :  { %692 = vrot.lane.b32.xlu2 %v682_v5, %s5726_s15  ;;  %1597 = vrot.lane.b32.xlu1 %v1564_v20, %s5729_s29  ;;  %1659 = vst [vmem:[#allocation2 + $0x128] sm:$0xe] %v1653_v61  ;;  %v795_v5 = vrot.slane %v781_v41, 6  ;;  %v1243_v20 = vld [vmem:[%s10320_s0 + $0x60] sm:$0x1] }
 0x1c5   :  { %1537 = vrot.lane.b32.xlu0 %v1523_v40, %s5728_s21  ;;  %v1358_v40 = vrot.slane %v1325_v36, 1  ;;  %v1276_v44 = vrot.slane %v1243_v20, 4  ;;  %v504_v41 = vld [vmem:[%s10320_s0 + $0x20] sm:$0x38]  ;;  %v615_v20 = vld [vmem:[%s10320_s0 + $0x18] sm:$0x38] }
 0x1c6   :  { %v7080_v35 = vpop.permute.xlu2 %2070  ;;  %v7082_v34 = vpop.permute.xlu1 %1745 }
 0x1c7   :  { %v2078_v43 = vsel %vm469_vm12, %v2069_v62, %v7080_v35  ;;  %v1744_v50 = vpop.permute.xlu0 %1743 }
 0x1c8   :  { %2090 = vst [vmem:[#allocation2 + $0x108] sm:$0xe] %v2078_v43  ;;  %v1753_v9 = vsel %vm10349_vm1, %v6407_v10, %v1744_v50  ;;  %v1754_v4 = vsel %vm10349_vm1, %v1744_v50, %v7082_v34  ;;  %v2170_v49 = vld [vmem:[#allocation2 + $0x1c8] sm:$0xff]  ;;  %v1129_v10 = vld [vmem:[%s10320_s0 + $0x60] sm:$0x1] }
 0x1c9   :  { %1765 = vst [vmem:[#allocation2 + $0x128] sm:$0x80] %v1753_v9  ;;  %2272 = vmatpush.msra.mxu2 %v2170_v49  ;;  %v1163_v2 = vrot.slane %v1129_v10, 7  ;;  %v517_v49 = vrot.slane %v503_v60, 5 }
 0x1ca   :  { %1766 = vst [vmem:[#allocation2 + $0x138] sm:$0x80] %v1754_v4  ;;  %v2171_v62 = vld [vmem:[#allocation2 + $0x178] sm:$0xff] }
 0x1cb   :  { %1771 = vst [vmem:[#allocation2 + $0x218] sm:$0x3] %v1753_v9  ;;  %2301 = vmatpush.msra.mxu3 %v2171_v62  ;;  %v1164_v45 = vsel %vm1145_vm6, %v1151_v48, %v1163_v2  ;;  %v562_v62 = vld [vmem:[%s10320_s0 + $0x18] sm:$0x38] }
 0x1cc   :  { %1772 = vst [vmem:[#allocation2 + $0x30] sm:$0x3] %v1754_v4  ;;  %753 = vrot.lane.b32.xlu2 %v742_v0, %s10351_s14  ;;  %751 = vrot.lane.b32.xlu1 %v741_v38, %s10351_s14 }
 0x1cd   :  { %694 = vrot.lane.b32.xlu0 %v683_v18, %s5726_s15 }
 0x1ce   :  { %v7108_v7 = vpop.permute.xlu2 %1533  ;;  %v1856_v23 = vpop.permute.xlu1 %1855 }
 0x1cf   :  { %v1543_v1 = vsel %vm422_vm10, %v6533_v24, %v7108_v7  ;;  %v1865_v28 = vsel %vm254_vm5, %v6455_v39, %v1856_v23  ;;  %v1866_v21 = vsel %vm254_vm5, %v1856_v23, %v7021_v54  ;;  %v7120_v56 = vpop.permute.xlu0 %1804  ;;  %v794_v24 = vrot.slane %v780_v11, 6  ;;  %v1318_v39 = vld [vmem:[%s10320_s0 + $0x28] sm:$0xc0] }
 0x1d0   :  { %1555 = vst [vmem:[#allocation2 + $0x140] sm:$0x38] %v1543_v1  ;;  %v1813_v42 = vsel %vm10344_vm3, %v6995_v58, %v7120_v56  ;;  %v1236_v58 = vld [vmem:[%s10320_s0 + $0x28] sm:$0xc0]  ;;  %v1357_v61 = vrot.slane %v1318_v39, 1 }
 0x1d1   :  { %1877 = vst [vmem:[#allocation2 + $0x218] sm:$0xe0] %v1865_v28  ;;  %v1275_v26 = vrot.slane %v1236_v58, 4  ;;  %v616_v39 = vld [vmem:[%s10320_s0 + $0x20] sm:$0x38] }
 0x1d2   :  { %1878 = vst [vmem:[#allocation2 + $0x30] sm:$0xe0] %v1866_v21  ;;  %v1359_v0 = vsel %vm1341_vm9, %v1357_v61, %v1358_v40 }
 0x1d3   :  { %1825 = vst [vmem:[#allocation2 + $0x30] sm:$0x1c] %v1813_v42  ;;  %v1277_v18 = vsel %vm10336_vm7, %v1275_v26, %v1276_v44  ;;  %v630_v26 = vrot.slane %v616_v39, 7  ;;  %v277_v39 = vld [vmem:[%s10320_s0 + $0x20] sm:$0x7] }
 0x1d4   :  { %1191 = vrot.lane.b32.xlu2 %v1164_v45, %s5725_s12  ;;  %806 = vrot.lane.b32.xlu1 %v795_v5, %s10350_s13  ;;  %v576_v5 = vrot.slane %v562_v62, 2  ;;  %v518_v45 = vrot.slane %v504_v41, 5 }
 0x1d5   :  { %804 = vrot.lane.b32.xlu0 %v794_v24, %s10350_s13 }
 0x1d6   :  { %v7146_v46 = vpop.permute.xlu2 %1595  ;;  %v7148_v6 = vpop.permute.xlu1 %1609 }
 0x1d7   :  { %v1608_v43 = vpop.permute.xlu0 %1607 }
 0x1d8   :  { %v1623_v50 = vsel %vm469_vm12, %v6476_v52, %v1608_v43  ;;  %v1624_v9 = vsel %vm469_vm12, %v1608_v43, %v7148_v6  ;;  %v2164_v4 = vld [vmem:[#allocation2 + $0x218] sm:$0xff] }
 0x1d9   :  { %1647 = vst [vmem:[#allocation2 + $0x128] sm:$0x1] %v1623_v50  ;;  %2273 = vmatpush.msra.mxu2 %v2164_v4  ;;  %v563_v52 = vld [vmem:[%s10320_s0 + $0x20] sm:$0x38]  ;;  %v629_v50 = vrot.slane %v615_v20, 7 }
 0x1da   :  { %1648 = vst [vmem:[#allocation2 + $0x138] sm:$0x1] %v1624_v9  ;;  %v2165_v38 = vld [vmem:[#allocation2 + $0x30] sm:$0xff]  ;;  %v577_v42 = vrot.slane %v563_v52, 2  ;;  %v1040_v4 = vld [vmem:[%s10320_s0 + $0x28] sm:$0xc0] }
 0x1db   :  { %2302 = vmatpush.msra.mxu3 %v2165_v38  ;;  %v1079_v38 = vrot.slane %v1040_v4, 2  ;;  %v276_v20 = vld [vmem:[%s10320_s0 + $0x18] sm:$0x7]  ;;  %v938_v4 = vld [vmem:[%s10320_s0 + $0x50] sm:$0x1] }
 0x1dc   :  { %527 = vrot.lane.b32.xlu2 %v517_v49, %s5723_s23  ;;  %1373 = vrot.lane.b32.xlu1 %v1359_v0, %s10351_s14  ;;  %950 = vst [vmem:[#allocation2 + $0x280] sm:$0x1] %v938_v4 }
 0x1dd   :  { %1291 = vrot.lane.b32.xlu0 %v1277_v18, %s5726_s15 }
 0x1de   :  { %v7165_v10 = vpop.permute.xlu2 %1187  ;;  %v7167_v2 = vpop.permute.xlu1 %2018 }
 0x1df   :  { %v1203_v23 = vsel %vm10344_vm3, %v6581_v53, %v7165_v10  ;;  %v2026_v11 = vsel %vm422_vm10, %v6918_v63, %v7167_v2  ;;  %v7178_v1 = vpop.permute.xlu0 %1692  ;;  %v958_v53 = vld [vmem:[%s10320_s0 + $0x28] sm:$0xc0]  ;;  %v965_v63 = vld [vmem:[%s10320_s0 + $0x60] sm:$0x1] }
 0x1e0   :  { %1227 = vst [vmem:[#allocation2 + $0x118] sm:$0x3] %v1203_v23  ;;  %v1701_v28 = vsel %vm10345_vm0, %v7045_v22, %v7178_v1  ;;  %v2158_v21 = vld [vmem:[#allocation2 + $0x128] sm:$0xff]  ;;  %v997_v22 = vrot.slane %v958_v53, 5  ;;  %v998_v24 = vrot.slane %v965_v63, 5 }
 0x1e1   :  { %2038 = vst [vmem:[#allocation2 + $0x58] sm:$0xc0] %v2026_v11  ;;  %2274 = vmatpush.msra.mxu2 %v2158_v21  ;;  %v835_v21 = vld [vmem:[%s10320_s0 + $0x28] sm:$0x38] }
 0x1e2   :  { %2044 = vst [vmem:[#allocation2 + $0x108] sm:$0x1] %v2026_v11  ;;  %v999_v43 = vsel %vm981_vm11, %v997_v22, %v998_v24  ;;  %v888_v53 = vld [vmem:[%s10320_s0 + $0x28] sm:$0x38]  ;;  %v849_v63 = vrot.slane %v835_v21, 3 }
 0x1e3   :  { %1713 = vst [vmem:[#allocation2 + $0x138] sm:$0x70] %v1701_v28  ;;  %v444_v28 = vld [vmem:[%s10320_s0 + $0x18] sm:$0x7] }
 0x1e4   :  { %588 = vrot.lane.b32.xlu2 %v577_v42, %s5724_s17  ;;  %586 = vrot.lane.b32.xlu1 %v576_v5, %s5724_s17 }
 0x1e5   :  { %529 = vrot.lane.b32.xlu0 %v518_v45, %s5723_s23 }
 0x1e6   :  { %v7195_v36 = vpop.permute.xlu2 %1289  ;;  %v7197_v58 = vpop.permute.xlu1 %1453 }
 0x1e7   :  { %v1452_v60 = vpop.permute.xlu0 %1451 }
 0x1e8   :  { %v1461_v61 = vsel %vm10340_vm14, %v6518_v13, %v1452_v60  ;;  %v1462_v40 = vsel %vm10340_vm14, %v1452_v60, %v7197_v58  ;;  %v1047_v13 = vld [vmem:[%s10320_s0 + $0x60] sm:$0x1] }
 0x1e9   :  { %1473 = vst [vmem:[#allocation2 + $0x140] sm:$0x7] %v1461_v61  ;;  %v2178_v44 = vld [vmem:[#allocation2 + $0x108] sm:$0xf]  ;;  %v1080_v18 = vrot.slane %v1047_v13, 2 }
 0x1ea   :  { %1474 = vst [vmem:[#allocation2 + $0x1d0] sm:$0x7] %v1462_v40  ;;  %v2159_v9 = vld [vmem:[#allocation2 + $0x138] sm:$0xff]  ;;  %5633 = vmatpush.msk.msrb.mxu0 %vm10336_vm7, %v2178_v44 }
 0x1eb   :  { %2303 = vmatpush.msra.mxu3 %v2159_v9  ;;  %v290_v9 = vrot.slane %v276_v20, 1 }
 0x1ec   :  { %1013 = vrot.lane.b32.xlu2 %v999_v43, %s5723_s23  ;;  %641 = vrot.lane.b32.xlu1 %v630_v26, %s5725_s12 }
 0x1ed   :  { %639 = vrot.lane.b32.xlu0 %v629_v50, %s5725_s12  ;;  %v291_v50 = vrot.slane %v277_v39, 1 }
 0x1ee   :  { %v7217_v49 = vpop.permute.xlu2 %1747  ;;  %v1594_v0 = vpop.permute.xlu1 %1593 }
 0x1ef   :  { %v1755_v52 = vsel %vm10349_vm1, %v7082_v34, %v7217_v49  ;;  %v1617_v62 = vsel %vm469_vm12, %v6557_v37, %v1594_v0  ;;  %v7224_v41 = vpop.permute.xlu0 %1535  ;;  %v1618_v23 = vsel %vm469_vm12, %v1594_v0, %v7146_v46  ;;  %v1081_v34 = vsel %vm10337_vm13, %v1079_v38, %v1080_v18  ;;  %v390_v38 = vld [vmem:[%s10320_s0 + $0x18] sm:$0x7]  ;;  %v337_v18 = vld [vmem:[%s10320_s0 + $0x20] sm:$0x7] }
 0x1f0   :  { %1767 = vst [vmem:[#allocation2 + $0x1a0] sm:$0x80] %v1755_v52  ;;  %v1544_v11 = vsel %vm422_vm10, %v7108_v7, %v7224_v41  ;;  %v351_v21 = vrot.slane %v337_v18, 6 }
 0x1f1   :  { %1773 = vst [vmem:[#allocation2 + $0xb8] sm:$0x3] %v1755_v52 }
 0x1f2   :  { %1641 = vst [vmem:[#allocation2 + $0x140] sm:$0xc0] %v1617_v62 }
 0x1f3   :  { %1642 = vst [vmem:[#allocation2 + $0x1d0] sm:$0xc0] %v1618_v23 }
 0x1f4   :  { %1556 = vst [vmem:[#allocation2 + $0x1d0] sm:$0x38] %v1544_v11  ;;  %461 = vrot.lane.b32.xlu2 %v444_v28, %s5729_s29  ;;  %1177 = vrot.lane.b32.xlu1 %v1151_v48, %s5725_s12 }
 0x1f5   :  { %1095 = vrot.lane.b32.xlu0 %v1081_v34, %s5724_s17  ;;  %v404_v34 = vrot.slane %v390_v38, 3 }
 0x1f6   :  { %v7240_v37 = vpop.permute.xlu2 %1009  ;;  %v7242_v7 = vpop.permute.xlu1 %1965 }
 0x1f7   :  { %v1019_v42 = vsel %vm10345_vm0, %v6653_v33, %v7240_v37  ;;  %v1973_v5 = vsel %vm10340_vm14, %v6970_v8, %v7242_v7  ;;  %v7253_v3 = vpop.permute.xlu0 %1912  ;;  %v445_v33 = vld [vmem:[%s10320_s0 + $0x20] sm:$0x7] }
 0x1f8   :  { %1031 = vst [vmem:[#allocation2 + $0x248] sm:$0xe] %v1019_v42  ;;  %v1920_v48 = vsel %vm10343_vm8, %v7054_v30, %v7253_v3  ;;  %v336_v30 = vld [vmem:[%s10320_s0 + $0x18] sm:$0x7] }
 0x1f9   :  { %1985 = vst [vmem:[#allocation2 + $0x58] sm:$0x38] %v1973_v5  ;;  %v2152_v45 = vld [vmem:[#allocation2 + $0x140] sm:$0xff]  ;;  %v350_v44 = vrot.slane %v336_v30, 6  ;;  %v1655_v42 = vld [vmem:[%s10320_s0 + $0x58] sm:$0xe] }
 0x1fa   :  { %1932 = vst [vmem:[#allocation2 + $0x58] sm:$0x7] %v1920_v48  ;;  %2275 = vmatpush.msra.mxu2 %v2152_v45  ;;  %v729_v48 = vld [vmem:[%s10320_s0 + $0x28] sm:$0x38] }
 0x1fb   :  { %v2153_v8 = vld [vmem:[#allocation2 + $0x1d0] sm:$0xff]  ;;  %1661 = vst [vmem:[#allocation2 + $0x1a0] sm:$0xe] %v1655_v42  ;;  %v670_v45 = vld [vmem:[%s10320_s0 + $0x28] sm:$0x38]  ;;  %v743_v39 = vrot.slane %v729_v48, 1 }
 0x1fc   :  { %2304 = vmatpush.msra.mxu3 %v2153_v8  ;;  %907 = vrot.lane.b32.xlu2 %v888_v53, %s5729_s29  ;;  %v684_v20 = vrot.slane %v670_v45, 4  ;;  %v446_v45 = vld [vmem:[%s10320_s0 + $0x28] sm:$0x7] }
 0x1fd   :  { %861 = vrot.lane.b32.xlu1 %v849_v63, %s5728_s21  ;;  %463 = vrot.lane.b32.xlu0 %v445_v33, %s5729_s29 }
 0x1fe   :  { %v7270_v22 = vpop.permute.xlu2 %1093  ;;  %v1288_v24 = vpop.permute.xlu1 %1287 }
 0x1ff   :  { %v1297_v60 = vsel %vm254_vm5, %v6605_v27, %v1288_v24  ;;  %v1298_v61 = vsel %vm254_vm5, %v1288_v24, %v7195_v36  ;;  %v7282_v40 = vpop.permute.xlu0 %1189  ;;  %v937_v27 = vld [vmem:[%s10320_s0 + $0x48] sm:$0x1] }
 0x200   :  { %1309 = vst [vmem:[#allocation2 + $0x118] sm:$0x1c] %v1297_v60  ;;  %v1204_v26 = vsel %vm10344_vm3, %v7165_v10, %v7282_v40  ;;  %v391_v10 = vld [vmem:[%s10320_s0 + $0x20] sm:$0x7]  ;;  %v932_v60 = vld [vmem:[%s10320_s0 + $0x18] sm:$0xc0] }
 0x201   :  { %1310 = vst [vmem:[#allocation2 + $0x20] sm:$0x1c] %v1298_v61  ;;  %v2172_v43 = vld [vmem:[#allocation2 + $0x58] sm:$0xff]  ;;  %v405_v28 = vrot.slane %v391_v10, 3 }
 0x202   :  { %1228 = vst [vmem:[#allocation2 + $0x20] sm:$0x3] %v1204_v26  ;;  %2330 = vmatpush.msrb.mxu0 %v2172_v43  ;;  %v7358_v61 = vld [vmem:[%s10321_s1] sm:$0xff]  ;;  %v564_v43 = vld [vmem:[%s10320_s0 + $0x28] sm:$0x38] }
 0x203   :  { %949 = vst [vmem:[#allocation2 + $0x248] sm:$0x1] %v937_v27  ;;  %5614 = vmatmul.msk.f32.vlgmr.msra.gmra.mxu0 %vm2180_vm15, %v7358_v61  ;;  %5619 = vmatmul.msk.f32.vlgmr.msra.gmra.mxu1 %vm2180_vm15, %v7358_v61 }
 0x204   :  { %360 = vrot.lane.b32.xlu2 %v350_v44, %s10350_s13  ;;  %944 = vst [vmem:[#allocation2 + $0x1f0] sm:$0xc0] %v932_v60 }
 0x205   :  { %302 = vrot.lane.b32.xlu1 %v291_v50, %s10351_s14  ;;  %300 = vrot.lane.b32.xlu0 %v290_v9, %s10351_s14  ;;  %v505_v50 = vld [vmem:[%s10320_s0 + $0x28] sm:$0x38] }
 0x206   :  { %v7299_v13 = vpop.permute.xlu2 %1611  ;;  %v7301_v0 = vpop.permute.xlu1 %1371 }
 0x207   :  { %v1625_v52 = vsel %vm469_vm12, %v7148_v6, %v7299_v13  ;;  %v1370_v62 = vpop.permute.xlu0 %1369 }
 0x208   :  { %1649 = vst [vmem:[#allocation2 + $0x1a0] sm:$0x1] %v1625_v52  ;;  %v1379_v23 = vsel %vm10343_vm8, %v6623_v15, %v1370_v62  ;;  %v1380_v11 = vsel %vm10343_vm8, %v1370_v62, %v7301_v0  ;;  %v782_v15 = vld [vmem:[%s10320_s0 + $0x28] sm:$0x38]  ;;  %v578_v62 = vrot.slane %v564_v43, 2 }
 0x209   :  { %1391 = vst [vmem:[#allocation2 + $0x118] sm:$0xe0] %v1379_v23  ;;  %v796_v30 = vrot.slane %v782_v15, 6  ;;  %v2052_v15 = vld [vmem:[%s10320_s0 + $0x68] sm:$0xe] }
 0x20a   :  { %1392 = vst [vmem:[#allocation2 + $0x20] sm:$0xe0] %v1380_v11  ;;  %v1993_v11 = vld [vmem:[%s10320_s0 + $0x68] sm:$0xe] }
 0x20b   :  { %v2007_v48 = vrot.slane %v1993_v11, 3 }
 0x20c   :  { %416 = vrot.lane.b32.xlu2 %v405_v28, %s5728_s21 }
 0x20d   :  { %414 = vrot.lane.b32.xlu1 %v404_v34, %s5728_s21  ;;  %362 = vrot.lane.b32.xlu0 %v351_v21, %s10350_s13 }
 0x20e   :  { %v7325_v6 = vpop.permute.xlu2 %859  ;;  %v7327_v5 = vpop.permute.xlu1 %1859 }
 0x20f   :  { %v1867_v53 = vsel %vm254_vm5, %v7021_v54, %v7327_v5  ;;  %v7338_v63 = vpop.permute.xlu0 %1806  ;;  %v931_v54 = vld [vmem:[%s10320_s0 + $0x10] sm:$0xc0] }
 0x210   :  { %1879 = vst [vmem:[#allocation2 + $0xb8] sm:$0xe0] %v1867_v53  ;;  %v1814_v33 = vsel %vm10344_vm3, %v7120_v56, %v7338_v63  ;;  %v2146_v8 = vld [vmem:[#allocation2 + $0x118] sm:$0xff]  ;;  %v617_v56 = vld [vmem:[%s10320_s0 + $0x28] sm:$0x38] }
 0x211   :  { %1826 = vst [vmem:[#allocation2 + $0xb8] sm:$0x1c] %v1814_v33  ;;  %2276 = vmatpush.msra.mxu2 %v2146_v8  ;;  %v2147_v24 = vld [vmem:[#allocation2 + $0x20] sm:$0xff]  ;;  %v631_v52 = vrot.slane %v617_v56, 7 }
 0x212   :  { %2305 = vmatpush.msra.mxu3 %v2147_v24  ;;  %943 = vst [vmem:[#allocation2 + $0xa8] sm:$0xc0] %v931_v54  ;;  %v338_v8 = vld [vmem:[%s10320_s0 + $0x28] sm:$0x7] }
 0x214   :  { %808 = vrot.lane.b32.xlu2 %v796_v30, %s10350_s13  ;;  %v278_v30 = vld [vmem:[%s10320_s0 + $0x28] sm:$0x7] }
 0x215   :  { %755 = vrot.lane.b32.xlu1 %v743_v39, %s10351_s14  ;;  %696 = vrot.lane.b32.xlu0 %v684_v20, %s5726_s15  ;;  %v292_v43 = vrot.slane %v278_v30, 1 }
 0x216   :  { %v7360_v26 = vpop.permute.xlu2 %1455  ;;  %v1092_v44 = vpop.permute.xlu1 %1091 }
 0x217   :  { %v1463_v9 = vsel %vm10340_vm14, %v7197_v58, %v7360_v26  ;;  %v1101_v27 = vsel %vm10349_vm1, %v6677_v25, %v1092_v44  ;;  %v1102_v4 = vsel %vm10349_vm1, %v1092_v44, %v7270_v22  ;;  %v7379_v10 = vpop.permute.xlu0 %1011  ;;  %v519_v58 = vrot.slane %v505_v50, 5  ;;  %v7390_v25 = vld [vmem:[%s10321_s1 + $0x8] sm:$0xff] }
 0x218   :  { %1475 = vst [vmem:[#allocation2 + $0x180] sm:$0x7] %v1463_v9  ;;  %v1020_v38 = vsel %vm10345_vm0, %v7240_v37, %v7379_v10  ;;  %v2166_v18 = vld [vmem:[#allocation2 + $0xb8] sm:$0xff]  ;;  %5615 = vmatmul.msk.f32.gmra.mxu0 %vm2180_vm15, %v7390_v25  ;;  %5620 = vmatmul.msk.f32.gmra.mxu1 %vm2180_vm15, %v7390_v25  ;;  %v352_v44 = vrot.slane %v338_v8, 6 }
 0x219   :  { %1113 = vst [vmem:[#allocation2 + $0x248] sm:$0x70] %v1101_v27  ;;  %2331 = vmatpush.msrb.mxu0 %v2166_v18 }
 0x21a   :  { %1114 = vst [vmem:[#allocation2 + $0x280] sm:$0x70] %v1102_v4  ;;  %v1940_v4 = vld [vmem:[%s10320_s0 + $0x68] sm:$0xe] }
 0x21b   :  { %1032 = vst [vmem:[#allocation2 + $0x280] sm:$0xe] %v1020_v38  ;;  %v1887_v38 = vld [vmem:[%s10320_s0 + $0x68] sm:$0xe] }
 0x21c   :  { %643 = vrot.lane.b32.xlu2 %v631_v52, %s5725_s12 }
 0x21d   :  { %590 = vrot.lane.b32.xlu1 %v578_v62, %s5724_s17  ;;  %531 = vrot.lane.b32.xlu0 %v519_v58, %s5723_s23 }
 0x21e   :  { %v7392_v37 = vpop.permute.xlu2 %692  ;;  %v7394_v23 = vpop.permute.xlu1 %1175 }
 0x21f   :  { %v702_v28 = vsel %vm254_vm5, %v6770_v59, %v7392_v37  ;;  %v1174_v34 = vpop.permute.xlu0 %1173  ;;  %v7425_v59 = vld [vmem:[%s10321_s1 + $0x10] sm:$0xff] }
 0x220   :  { %714 = vst [vmem:[#allocation2 + $0x80] sm:$0x80] %v702_v28  ;;  %v1197_v21 = vsel %vm10344_vm3, %v6698_v55, %v1174_v34  ;;  %v1198_v42 = vsel %vm10344_vm3, %v1174_v34, %v7394_v23  ;;  %v392_v55 = vld [vmem:[%s10320_s0 + $0x28] sm:$0x7]  ;;  %5616 = vmatmul.msk.f32.gmra.mxu0 %vm2180_vm15, %v7425_v59  ;;  %5621 = vmatmul.msk.f32.gmra.mxu1 %vm2180_vm15, %v7425_v59  ;;  %v1954_v34 = vrot.slane %v1940_v4, 6 }
 0x221   :  { %720 = vst [vmem:[#allocation2 + $0x270] sm:$0x3] %v702_v28  ;;  %v406_v60 = vrot.slane %v392_v55, 3 }
 0x222   :  { %1221 = vst [vmem:[#allocation2 + $0x248] sm:$0x80] %v1197_v21  ;;  %v1901_v21 = vrot.slane %v1887_v38, 1 }
 0x223   :  { %1222 = vst [vmem:[#allocation2 + $0x280] sm:$0x80] %v1198_v42 }
 0x224   :  { %2072 = vrot.lane.b32.xlu2 %v2052_v15, %s5729_s29  ;;  %v1834_v15 = vld [vmem:[%s10320_s0 + $0x68] sm:$0xe] }
 0x225   :  { %2020 = vrot.lane.b32.xlu1 %v2007_v48, %s5728_s21  ;;  %465 = vrot.lane.b32.xlu0 %v446_v45, %s5729_s29  ;;  %v1781_v48 = vld [vmem:[%s10320_s0 + $0x68] sm:$0xe] }
 0x226   :  { %v7427_v53 = vpop.permute.xlu2 %753  ;;  %v858_v33 = vpop.permute.xlu1 %857 }
 0x227   :  { %v867_v24 = vsel %vm422_vm10, %v6713_v14, %v858_v33  ;;  %v868_v39 = vsel %vm422_vm10, %v858_v33, %v7325_v6  ;;  %v7443_v20 = vpop.permute.xlu0 %1694  ;;  %v1722_v14 = vld [vmem:[%s10320_s0 + $0x68] sm:$0xe] }
 0x228   :  { %879 = vst [vmem:[#allocation2 + $0xa8] sm:$0x7] %v867_v24  ;;  %v1702_v54 = vsel %vm10345_vm0, %v7178_v1, %v7443_v20  ;;  %v7457_v1 = vld [vmem:[%s10321_s1 + $0x18] sm:$0xff]  ;;  %v1736_v11 = vrot.slane %v1722_v14, 2  ;;  %v1572_v24 = vld [vmem:[%s10320_s0 + $0x68] sm:$0x1] }
 0x229   :  { %880 = vst [vmem:[#allocation2 + $0x1f0] sm:$0x7] %v868_v39  ;;  %v2140_v56 = vld [vmem:[#allocation2 + $0x248] sm:$0xff]  ;;  %5617 = vmatmul.msk.f32.gmra.mxu0 %vm2180_vm15, %v7457_v1  ;;  %5622 = vmatmul.msk.f32.gmra.mxu1 %vm2180_vm15, %v7457_v1 }
 0x22a   :  { %1714 = vst [vmem:[#allocation2 + $0x1a0] sm:$0x70] %v1702_v54  ;;  %2277 = vmatpush.msra.mxu2 %v2140_v56  ;;  %v2141_v50 = vld [vmem:[#allocation2 + $0x280] sm:$0xff]  ;;  %v1795_v54 = vrot.slane %v1781_v48, 7 }
 0x22b   :  { %2306 = vmatpush.msra.mxu3 %v2141_v50  ;;  %v1408_v56 = vld [vmem:[%s10320_s0 + $0x68] sm:$0x1] }
 0x22c   :  { %418 = vrot.lane.b32.xlu2 %v406_v60, %s5728_s21  ;;  %v1401_v60 = vld [vmem:[%s10320_s0 + $0x30] sm:$0xc0]  ;;  %v1443_v38 = vrot.slane %v1408_v56, 6  ;;  %v1130_v48 = vld [vmem:[%s10320_s0 + $0x68] sm:$0x1] }
 0x22d   :  { %364 = vrot.lane.b32.xlu1 %v352_v44, %s10350_s13  ;;  %304 = vrot.lane.b32.xlu0 %v292_v43, %s10351_s14  ;;  %v1442_v4 = vrot.slane %v1401_v60, 6  ;;  %v1565_v56 = vld [vmem:[%s10320_s0 + $0x30] sm:$0xc0] }
 0x22e   :  { %v7459_v9 = vpop.permute.xlu2 %1191  ;;  %v7461_v27 = vpop.permute.xlu1 %905 }
 0x22f   :  { %v1205_v18 = vsel %vm10344_vm3, %v7282_v40, %v7459_v9  ;;  %v904_v52 = vpop.permute.xlu0 %903  ;;  %v490_v40 = vld [vmem:[%s10320_s0 + $0x10] sm:$0x38] }
 0x230   :  { %1229 = vst [vmem:[#allocation2 + $0x1e8] sm:$0x3] %v1205_v18  ;;  %v913_v62 = vsel %vm469_vm12, %v6737_v31, %v904_v52  ;;  %v914_v58 = vsel %vm469_vm12, %v904_v52, %v7461_v27  ;;  %v1669_v18 = vld [vmem:[%s10320_s0 + $0x68] sm:$0xe] }
 0x231   :  { %925 = vst [vmem:[#allocation2 + $0xa8] sm:$0x38] %v913_v62  ;;  %v2160_v28 = vld [vmem:[#allocation2 + $0x1a0] sm:$0xff] }
 0x232   :  { %926 = vst [vmem:[#allocation2 + $0x1f0] sm:$0x38] %v914_v58  ;;  %2332 = vmatpush.msrb.mxu0 %v2160_v28 }
 0x233   :  { %496 = vst [vmem:[#allocation2 + $0x168] sm:$0x38] %v490_v40  ;;  %v1444_v40 = vsel %vm1423_vm2, %v1442_v4, %v1443_v38  ;;  %v1319_v4 = vld [vmem:[%s10320_s0 + $0x30] sm:$0xc0]  ;;  %v1326_v38 = vld [vmem:[%s10320_s0 + $0x68] sm:$0x1] }
 0x234   :  { %1749 = vrot.lane.b32.xlu2 %v1736_v11, %s5724_s17  ;;  %vm3400_vm2 = vcmask 523264  }
 0x235   :  { %1967 = vrot.lane.b32.xlu1 %v1954_v34, %s10350_s13  ;;  %1914 = vrot.lane.b32.xlu0 %v1901_v21, %s10351_s14  ;;  %v1683_v34 = vrot.slane %v1669_v18, 5  ;;  %v1237_v21 = vld [vmem:[%s10320_s0 + $0x30] sm:$0xc0]  ;;  %v939_v18 = vld [vmem:[%s10320_s0 + $0x58] sm:$0x1] }
 0x236   :  { %v7486_v31 = vpop.permute.xlu2 %527  ;;  %v7488_v42 = vpop.permute.xlu1 %1597  ;;  %951 = vst [vmem:[#allocation2 + $0x1f8] sm:$0x1] %v939_v18 }
 0x237   :  { %v537_v45 = vsel %vm10345_vm0, %v6867_v16, %v7486_v31  ;;  %v1619_v55 = vsel %vm469_vm12, %v7146_v46, %v7488_v42  ;;  %v7502_v33 = vpop.permute.xlu0 %1537  ;;  %v1848_v16 = vrot.slane %v1834_v15, 4  ;;  %v1483_v46 = vld [vmem:[%s10320_s0 + $0x30] sm:$0xc0]  ;;  %v1244_v15 = vld [vmem:[%s10320_s0 + $0x68] sm:$0x1] }
 0x238   :  { %549 = vst [vmem:[#allocation2 + $0x168] sm:$0xc0] %v537_v45  ;;  %v1545_v8 = vsel %vm422_vm10, %v7224_v41, %v7502_v33  ;;  %v2134_v30 = vld [vmem:[#allocation2 + $0xa8] sm:$0xff]  ;;  %v1490_v41 = vld [vmem:[%s10320_s0 + $0x68] sm:$0x1]  ;;  %v1524_v44 = vrot.slane %v1483_v46, 3 }
 0x239   :  { %555 = vst [vmem:[#allocation2 + $0x80] sm:$0x1] %v537_v45  ;;  %2278 = vmatpush.msra.mxu2 %v2134_v30  ;;  %v2135_v39 = vld [vmem:[#allocation2 + $0x1f0] sm:$0xff]  ;;  %v1525_v43 = vrot.slane %v1490_v41, 3  ;;  %v1278_v45 = vrot.slane %v1237_v21, 4 }
 0x23a   :  { %1643 = vst [vmem:[#allocation2 + $0x180] sm:$0xc0] %v1619_v55  ;;  %2307 = vmatpush.msra.mxu3 %v2135_v39  ;;  %v1279_v55 = vrot.slane %v1244_v15, 4  ;;  %v1165_v39 = vrot.slane %v1130_v48, 7 }
 0x23b   :  { %1557 = vst [vmem:[#allocation2 + $0x180] sm:$0x38] %v1545_v8  ;;  %v1526_v28 = vsel %vm1505_vm4, %v1524_v44, %v1525_v43  ;;  %v1041_v44 = vld [vmem:[%s10320_s0 + $0x30] sm:$0xc0]  ;;  %vm3446_vm4 = vcmask 515072  }
 0x23c   :  { %1613 = vrot.lane.b32.xlu2 %v1572_v24, %s5729_s29  ;;  %v1280_v60 = vsel %vm10336_vm7, %v1278_v45, %v1279_v55  ;;  %v959_v43 = vld [vmem:[%s10320_s0 + $0x30] sm:$0xc0] }
 0x23d   :  { %1861 = vrot.lane.b32.xlu1 %v1848_v16, %s5726_s15  ;;  %1808 = vrot.lane.b32.xlu0 %v1795_v54, %s5725_s12 }
 0x23e   :  { %v7525_v50 = vpop.permute.xlu2 %588  ;;  %v752_v14 = vpop.permute.xlu1 %751 }
 0x23f   :  { %v761_v52 = vsel %vm10343_vm8, %v6791_v19, %v752_v14  ;;  %v762_v62 = vsel %vm10343_vm8, %v752_v14, %v7427_v53  ;;  %v7534_v58 = vpop.permute.xlu0 %694  ;;  %v966_v14 = vld [vmem:[%s10320_s0 + $0x68] sm:$0x1] }
 0x240   :  { %773 = vst [vmem:[#allocation2 + $0x270] sm:$0x1c] %v761_v52  ;;  %v703_v11 = vsel %vm254_vm5, %v7392_v37, %v7534_v58  ;;  %v7550_v37 = vld [vmem:[%s10320_s0 + $0x30] sm:$0xc0]  ;;  %v1082_v52 = vrot.slane %v1041_v44, 2  ;;  %v1001_v21 = vrot.slane %v966_v14, 5 }
 0x241   :  { %774 = vst [vmem:[#allocation2 + $0x68] sm:$0x1c] %v762_v62  ;;  %v1152_v24 = vrot.slane %v7550_v37, 7 }
 0x242   :  { %715 = vst [vmem:[#allocation2] sm:$0x80] %v703_v11  ;;  %v2154_v19 = vld [vmem:[#allocation2 + $0x180] sm:$0xff] }
 0x243   :  { %721 = vst [vmem:[#allocation2 + $0x68] sm:$0x3] %v703_v11  ;;  %2333 = vmatpush.msrb.mxu0 %v2154_v19  ;;  %v1360_v19 = vrot.slane %v1319_v4, 1 }
 0x244   :  { %1539 = vrot.lane.b32.xlu2 %v1526_v28, %s5728_s21 }
 0x245   :  { %1457 = vrot.lane.b32.xlu1 %v1444_v40, %s10350_s13  ;;  %1696 = vrot.lane.b32.xlu0 %v1683_v34, %s5723_s23  ;;  %v1000_v34 = vrot.slane %v959_v43, 5  ;;  %v1361_v40 = vrot.slane %v1326_v38, 1  ;;  %v889_v38 = vld [vmem:[%s10320_s0 + $0x30] sm:$0x38] }
 0x246   :  { %v7558_v8 = vpop.permute.xlu2 %1013  ;;  %v7560_v30 = vpop.permute.xlu1 %806 }
 0x247   :  { %v1021_v16 = vsel %vm10345_vm0, %v7379_v10, %v7558_v8  ;;  %v805_v54 = vpop.permute.xlu0 %804  ;;  %v1166_v10 = vsel %vm1145_vm6, %v1152_v24, %v1165_v39  ;;  %vm3309_vm6 = vcmask 629760  }
 0x248   :  { %1033 = vst [vmem:[#allocation2 + $0x1f8] sm:$0xe] %v1021_v16  ;;  %v814_v46 = vsel %vm10340_vm14, %v6828_v29, %v805_v54  ;;  %v815_v41 = vsel %vm10340_vm14, %v805_v54, %v7560_v30  ;;  %v1048_v29 = vld [vmem:[%s10320_s0 + $0x68] sm:$0x1] }
 0x249   :  { %826 = vst [vmem:[#allocation2 + $0x270] sm:$0xe0] %v814_v46  ;;  %v1083_v62 = vrot.slane %v1048_v29, 2  ;;  %v1362_v46 = vsel %vm1341_vm9, %v1360_v19, %v1361_v40  ;;  %vm3360_vm9 = vcmask 621568  }
 0x24a   :  { %827 = vst [vmem:[#allocation2 + $0x68] sm:$0xe0] %v815_v41 }
 0x24b   :  { %v1084_v54 = vsel %vm10337_vm13, %v1082_v52, %v1083_v62  ;;  %v730_v52 = vld [vmem:[%s10320_s0 + $0x30] sm:$0x38]  ;;  %vm10339_vm13 = vcmask 752640  }
 0x24c   :  { %1293 = vrot.lane.b32.xlu2 %v1280_v60, %s5726_s15  ;;  %v671_v62 = vld [vmem:[%s10320_s0 + $0x30] sm:$0x38] }
 0x24d   :  { %1193 = vrot.lane.b32.xlu1 %v1166_v10, %s5725_s12  ;;  %1599 = vrot.lane.b32.xlu0 %v1565_v56, %s5729_s29  ;;  %v836_v56 = vld [vmem:[%s10320_s0 + $0x30] sm:$0x38] }
 0x24e   :  { %v7601_v11 = vpop.permute.xlu2 %461  ;;  %v7603_v28 = vpop.permute.xlu1 %1373 }
 0x24f   :  { %v472_v15 = vsel %vm469_vm12, %v6959_v57, %v7601_v11  ;;  %v1381_v48 = vsel %vm10343_vm8, %v7301_v0, %v7603_v28  ;;  %v7611_v45 = vpop.permute.xlu0 %1291  ;;  %v1002_v57 = vsel %vm981_vm11, %v1000_v34, %v1001_v21  ;;  %v491_v0 = vld [vmem:[%s10320_s0 + $0x18] sm:$0x38]  ;;  %v5731_v34 = vmov 0  }
 0x250   :  { %484 = vst [vmem:[#allocation2 + $0x168] sm:$0x7] %v472_v15  ;;  %v1299_v55 = vsel %vm254_vm5, %v7195_v36, %v7611_v45  ;;  %v2128_v39 = vld [vmem:[#allocation2 + $0x270] sm:$0xff]  ;;  %v933_v36 = vld [vmem:[%s10320_s0 + $0x20] sm:$0xc0]  ;;  %5687 = vset.pattern.permute.xlu1 %v5731_v34  ;;  %5688 = vset.pattern.permute.xlu2 %v5731_v34  ;;  %v744_v15 = vrot.slane %v730_v52, 1 }
 0x251   :  { %1393 = vst [vmem:[#allocation2 + $0x1e8] sm:$0xe0] %v1381_v48  ;;  %2279 = vmatpush.msra.mxu2 %v2128_v39  ;;  %v2129_v16 = vld [vmem:[#allocation2 + $0x68] sm:$0xff]  ;;  %5689 = vset.pattern.permute.xlu0 %v5731_v34  ;;  %v685_v48 = vrot.slane %v671_v62, 4  ;;  %vm10338_vm11 = vcmask 637952  }
 0x252   :  { %1311 = vst [vmem:[#allocation2 + $0x1e8] sm:$0x1c] %v1299_v55  ;;  %2308 = vmatpush.msra.mxu3 %v2129_v16  ;;  %v565_v39 = vld [vmem:[%s10320_s0 + $0x30] sm:$0x38] }
 0x253   :  { %497 = vst [vmem:[#allocation2 + $0x1e0] sm:$0x38] %v491_v0  ;;  %v506_v16 = vld [vmem:[%s10320_s0 + $0x30] sm:$0x38] }
 0x254   :  { %1097 = vrot.lane.b32.xlu2 %v1084_v54, %s5724_s17  ;;  %945 = vst [vmem:[#allocation2 + $0x1b8] sm:$0xc0] %v933_v36 }
 0x255   :  { %1015 = vrot.lane.b32.xlu1 %v1002_v57, %s5723_s23  ;;  %1375 = vrot.lane.b32.xlu0 %v1362_v46, %s10351_s14 }
 0x256   :  { %v7628_v41 = vpop.permute.xlu2 %907  ;;  %v587_v60 = vpop.permute.xlu1 %586 }
 0x257   :  { %v915_v44 = vsel %vm469_vm12, %v7461_v27, %v7628_v41  ;;  %v596_v10 = vsel %vm10349_vm1, %v6899_v51, %v587_v60  ;;  %v597_v29 = vsel %vm10349_vm1, %v587_v60, %v7525_v50  ;;  %v7640_v43 = vpop.permute.xlu0 %529  ;;  %v850_v27 = vrot.slane %v836_v56, 3  ;;  %v783_v51 = vld [vmem:[%s10320_s0 + $0x30] sm:$0x38] }
 0x258   :  { %927 = vst [vmem:[#allocation2 + $0x1b8] sm:$0x38] %v915_v44  ;;  %v538_v14 = vsel %vm10345_vm0, %v7486_v31, %v7640_v43  ;;  %v797_v40 = vrot.slane %v783_v51, 6  ;;  %v579_v56 = vrot.slane %v565_v39, 2  ;;  %v520_v44 = vrot.slane %v506_v16, 5 }
 0x259   :  { %608 = vst [vmem:[#allocation2 + $0x80] sm:$0xe] %v596_v10  ;;  %v2148_v4 = vld [vmem:[#allocation2 + $0x1e8] sm:$0xff] }
 0x25a   :  { %609 = vst [vmem:[#allocation2] sm:$0xe] %v597_v29  ;;  %2334 = vmatpush.msrb.mxu0 %v2148_v4  ;;  %v2116_v10 = vld [vmem:[#allocation2 + $0x168] sm:$0xff] }
 0x25b   :  { %550 = vst [vmem:[#allocation2 + $0x1e0] sm:$0xc0] %v538_v14  ;;  %v279_v29 = vld [vmem:[%s10320_s0 + $0x30] sm:$0x7] }
 0x25c   :  { %556 = vst [vmem:[#allocation2] sm:$0x1] %v538_v14  ;;  %909 = vrot.lane.b32.xlu2 %v889_v38, %s5729_s29  ;;  %v293_v34 = vrot.slane %v279_v29, 1 }
 0x25d   :  { %863 = vrot.lane.b32.xlu1 %v850_v27, %s5728_s21  ;;  %1179 = vrot.lane.b32.xlu0 %v1152_v24, %s5725_s12 }
 0x25e   :  { %v7656_v31 = vpop.permute.xlu2 %360  ;;  %v7658_v18 = vpop.permute.xlu1 %641 }
 0x25f   :  { %v371_v37 = vsel %vm10340_vm14, %v6974_v17, %v7656_v31  ;;  %v640_v24 = vpop.permute.xlu0 %639  ;;  %v618_v17 = vld [vmem:[%s10320_s0 + $0x30] sm:$0x38] }
 0x260   :  { %383 = vst [vmem:[#allocation2 + $0x230] sm:$0x1c] %v371_v37  ;;  %v649_v21 = vsel %vm10344_vm3, %v6925_v47, %v640_v24  ;;  %v650_v19 = vsel %vm10344_vm3, %v640_v24, %v7658_v18  ;;  %v632_v36 = vrot.slane %v618_v17, 7 }
 0x261   :  { %661 = vst [vmem:[#allocation2 + $0x80] sm:$0x70] %v649_v21 }
 0x262   :  { %662 = vst [vmem:[#allocation2] sm:$0x70] %v650_v19 }
 0x264   :  { %810 = vrot.lane.b32.xlu2 %v797_v40, %s10350_s13 }
 0x265   :  { %757 = vrot.lane.b32.xlu1 %v744_v15, %s10351_s14  ;;  %698 = vrot.lane.b32.xlu0 %v685_v48, %s5726_s15 }
 0x266   :  { %v7679_v55 = vpop.permute.xlu2 %416  ;;  %v7681_v47 = vpop.permute.xlu1 %1177 }
 0x267   :  { %v1199_v54 = vsel %vm10344_vm3, %v7394_v23, %v7681_v47  ;;  %v7692_v57 = vpop.permute.xlu0 %1095 }
 0x268   :  { %1223 = vst [vmem:[#allocation2 + $0x1f8] sm:$0x80] %v1199_v54  ;;  %v1103_v46 = vsel %vm10349_vm1, %v7270_v22, %v7692_v57  ;;  %v2122_v0 = vld [vmem:[#allocation2 + $0x80] sm:$0xff]  ;;  %v339_v22 = vld [vmem:[%s10320_s0 + $0x30] sm:$0x7] }
 0x269   :  { %1115 = vst [vmem:[#allocation2 + $0x1f8] sm:$0x70] %v1103_v46  ;;  %2280 = vmatpush.msra.mxu2 %v2122_v0  ;;  %v2123_v60 = vld [vmem:[#allocation2] sm:$0xff]  ;;  %v353_v62 = vrot.slane %v339_v22, 6 }
 0x26a   :  { %2309 = vmatpush.msra.mxu3 %v2123_v60 }
 0x26b   :  { %2281 = vmatpush.msra.mxu2 %v2116_v10 }
 0x26c   :  { %645 = vrot.lane.b32.xlu2 %v632_v36, %s5725_s12 }
 0x26d   :  { %592 = vrot.lane.b32.xlu1 %v579_v56, %s5724_s17  ;;  %533 = vrot.lane.b32.xlu0 %v520_v44, %s5723_s23 }
 0x26e   :  { %v7703_v23 = vpop.permute.xlu2 %808 }
 0x26f   :  { %v816_v14 = vsel %vm10340_vm14, %v7560_v30, %v7703_v23  ;;  %v7711_v4 = vpop.permute.xlu1 %861  ;;  %v7713_v38 = vpop.permute.xlu0 %463  ;;  %v447_v30 = vld [vmem:[%s10320_s0 + $0x30] sm:$0x7] }
 0x270   :  { %828 = vst [vmem:[#allocation2 + $0x278] sm:$0xe0] %v816_v14  ;;  %v869_v27 = vsel %vm422_vm10, %v7325_v6, %v7711_v4  ;;  %v473_v51 = vsel %vm469_vm12, %v7601_v11, %v7713_v38  ;;  %v2142_v52 = vld [vmem:[#allocation2 + $0x1f8] sm:$0xff]  ;;  %v393_v11 = vld [vmem:[%s10320_s0 + $0x30] sm:$0x7] }
 0x271   :  { %881 = vst [vmem:[#allocation2 + $0x1b8] sm:$0x7] %v869_v27  ;;  %2335 = vmatpush.msrb.mxu0 %v2142_v52  ;;  %v407_v17 = vrot.slane %v393_v11, 3  ;;  %v2098_v27 = vld [vmem:[#allocation2 + $0x40] sm:$0xff] }
 0x272   :  { %485 = vst [vmem:[#allocation2 + $0x1e0] sm:$0x7] %v473_v51  ;;  %v2099_v51 = vld [vmem:[#allocation2 + $0x28] sm:$0xff] }
 0x274   :  { %366 = vrot.lane.b32.xlu2 %v353_v62, %s10350_s13 }
 0x275   :  { %306 = vrot.lane.b32.xlu1 %v293_v34, %s10351_s14  ;;  %467 = vrot.lane.b32.xlu0 %v447_v30, %s5729_s29 }
 0x276   :  { %v7727_v6 = vpop.permute.xlu2 %643 }
 0x277   :  { %v651_v37 = vsel %vm10344_vm3, %v7658_v18, %v7727_v6  ;;  %v7735_v24 = vpop.permute.xlu1 %302  ;;  %v301_v21 = vpop.permute.xlu0 %300  ;;  %v2451_v18 = vld [vmem:[%s10322_s2] sm:$0x3f]  ;;  %s5740_s2 = smov 93  }
 0x278   :  { %663 = vst [vmem:[#allocation2 + $0x240] sm:$0x70] %v651_v37  ;;  %v311_v19 = vsel %vm10343_vm8, %v6284_v12, %v301_v21  ;;  %v312_v40 = vsel %vm10343_vm8, %v301_v21, %v7735_v24  ;;  %v2136_v15 = vld [vmem:[#allocation2 + $0x1b8] sm:$0xff] }
 0x279   :  { %323 = vst [vmem:[#allocation2 + $0xd8] sm:$0x80] %v311_v19  ;;  %v2117_v48 = vld [vmem:[#allocation2 + $0x1e0] sm:$0xff]  ;;  %2336 = vmatpush.msrb.mxu0 %v2136_v15  ;;  %v492_v12 = vld [vmem:[%s10320_s0 + $0x20] sm:$0x38] }
 0x27a   :  { %324 = vst [vmem:[#allocation2 + $0x288] sm:$0x80] %v312_v40  ;;  %2310 = vmatpush.msra.mxu3 %v2117_v48 }
 0x27b   :  { %329 = vst [vmem:[#allocation2 + $0x230] sm:$0x3] %v311_v19 }
 0x27c   :  { %330 = vst [vmem:[#allocation2 + $0xd0] sm:$0x3] %v312_v40 }
 0x27d   :  { %2454 = vperm.xlu1 %5687, %v2451_v18   ;;  %420 = vrot.lane.b32.xlu0 %v407_v17, %s5728_s21  ;;  %498 = vst [vmem:[#allocation2 + $0x1a8] sm:$0x38] %v492_v12  ;;  %v1656_v18 = vld [vmem:[%s10320_s0 + $0x60] sm:$0xe] }
 0x27e   :  { %v2073_v39 = vpop.permute.xlu2 %2072  ;;  %1662 = vst [vmem:[#allocation2 + $0xf8] sm:$0xe] %v1656_v18 }
 0x27f   :  { %v2079_v16 = vsel %vm469_vm12, %v7080_v35, %v2073_v39  ;;  %v415_v54 = vpop.permute.xlu1 %414  ;;  %v7750_v46 = vpop.permute.xlu0 %362 }
 0x280   :  { %2091 = vst [vmem:[#allocation2 + $0x38] sm:$0xe] %v2079_v16  ;;  %v425_v0 = vsel %vm422_vm10, %v7007_v32, %v415_v54  ;;  %v426_v36 = vsel %vm422_vm10, %v415_v54, %v7679_v55  ;;  %v372_v60 = vsel %vm10340_vm14, %v7656_v31, %v7750_v46  ;;  %v2104_v14 = vld [vmem:[#allocation2 + $0xd8] sm:$0xff]  ;;  %v2257_v37 = vpop.f32.mrf.mxu1 }
 0x281   :  { %437 = vst [vmem:[#allocation2 + $0x230] sm:$0xe0] %v425_v0 }
 0x282   :  { %438 = vst [vmem:[#allocation2 + $0xd0] sm:$0xe0] %v426_v36 }
 0x283   :  { %384 = vst [vmem:[#allocation2 + $0xd0] sm:$0x1c] %v372_v60 }
 0x284   :  { %2386 = vst [vmem:[#allocation3 + $0x48] sm:$0xff] %v2257_v37 }
 0x286   :  { %v7759_v56 = vpop.permute.xlu2 %418 }
 0x287   :  { %v427_v35 = vsel %vm422_vm10, %v7679_v55, %v7759_v56  ;;  %v7764_v44 = vpop.permute.xlu1 %755  ;;  %v7766_v10 = vpop.permute.xlu0 %696  ;;  %v2105_v55 = vld [vmem:[#allocation2 + $0x288] sm:$0xff] }
 0x288   :  { %439 = vst [vmem:[#allocation2 + $0x50] sm:$0xe0] %v427_v35  ;;  %v763_v32 = vsel %vm10343_vm8, %v7427_v53, %v7764_v44  ;;  %v704_v31 = vsel %vm254_vm5, %v7534_v58, %v7766_v10  ;;  %v2110_v22 = vld [vmem:[#allocation2 + $0x230] sm:$0xff] }
 0x289   :  { %775 = vst [vmem:[#allocation2 + $0x278] sm:$0x1c] %v763_v32  ;;  %2282 = vmatpush.msra.mxu2 %v2110_v22 }
 0x28a   :  { %716 = vst [vmem:[#allocation2 + $0x240] sm:$0x80] %v704_v31  ;;  %v2111_v29 = vld [vmem:[#allocation2 + $0xd0] sm:$0xff] }
 0x28b   :  { %722 = vst [vmem:[#allocation2 + $0x278] sm:$0x3] %v704_v31  ;;  %2311 = vmatpush.msra.mxu3 %v2111_v29  ;;  %2283 = vmatpush.msra.mxu2 %v2104_v14 }
 0x28d   :  { %2312 = vmatpush.msra.mxu3 %v2105_v55  ;;  %2284 = vmatpush.msra.mxu2 %v2098_v27 }
 0x28e   :  { %5624 = vmatmul.msk.f32.vlgmr.msra.gmra.mxu2 %vm2180_vm15, %v7358_v61  ;;  %v1750_v53 = vpop.permute.xlu2 %1749 }
 0x28f   :  { %2313 = vmatpush.msra.mxu3 %v2099_v51  ;;  %v1756_v58 = vsel %vm10349_vm1, %v7217_v49, %v1750_v53  ;;  %v7778_v52 = vpop.permute.xlu1 %590  ;;  %v7780_v62 = vpop.permute.xlu0 %531 }
 0x290   :  { %5629 = vmatmul.msk.f32.vlgmr.msra.gmra.mxu3 %vm2180_vm15, %v7358_v61  ;;  %1768 = vst [vmem:[#allocation2 + $0xf8] sm:$0x80] %v1756_v58  ;;  %v598_v34 = vsel %vm10349_vm1, %v7525_v50, %v7778_v52  ;;  %v539_v30 = vsel %vm10345_vm0, %v7640_v43, %v7780_v62  ;;  %v2228_v49 = vpop.f32.mrf.mxu0 }
 0x291   :  { %1774 = vst [vmem:[#allocation2 + $0x100] sm:$0x3] %v1756_v58 }
 0x292   :  { %610 = vst [vmem:[#allocation2 + $0x240] sm:$0xe] %v598_v34  ;;  %v2130_v11 = vld [vmem:[#allocation2 + $0x278] sm:$0xff] }
 0x293   :  { %551 = vst [vmem:[#allocation2 + $0x1a8] sm:$0xc0] %v539_v30  ;;  %2337 = vmatpush.msrb.mxu0 %v2130_v11  ;;  %v934_v11 = vld [vmem:[%s10320_s0 + $0x28] sm:$0xc0] }
 0x294   :  { %557 = vst [vmem:[#allocation2 + $0x240] sm:$0x1] %v539_v30 }
 0x295   :  { %2385 = vst [vmem:[#allocation3 + $0x98] sm:$0xff] %v2228_v49 }
 0x296   :  { %5625 = vmatmul.msk.f32.gmra.mxu2 %vm2180_vm15, %v7390_v25  ;;  %v1614_v21 = vpop.permute.xlu2 %1613  ;;  %946 = vst [vmem:[#allocation2 + $0x238] sm:$0xc0] %v934_v11 }
 0x297   :  { %v1626_v50 = vsel %vm469_vm12, %v7299_v13, %v1614_v21  ;;  %v2021_v19 = vpop.permute.xlu1 %2020  ;;  %v7794_v40 = vpop.permute.xlu0 %465 }
 0x298   :  { %5630 = vmatmul.msk.f32.gmra.mxu3 %vm2180_vm15, %v7390_v25  ;;  %1650 = vst [vmem:[#allocation2 + $0xf8] sm:$0x1] %v1626_v50  ;;  %v2027_v43 = vsel %vm422_vm10, %v7167_v2, %v2021_v19  ;;  %v474_v15 = vsel %vm469_vm12, %v7713_v38, %v7794_v40  ;;  %v2231_v17 = vpop.f32.mrf.mxu0  ;;  %v2260_v13 = vpop.f32.mrf.mxu1 }
 0x299   :  { %2039 = vst [vmem:[#allocation2 + $0x98] sm:$0xc0] %v2027_v43 }
 0x29a   :  { %2045 = vst [vmem:[#allocation2 + $0x38] sm:$0x1] %v2027_v43 }
 0x29b   :  { %486 = vst [vmem:[#allocation2 + $0x1a8] sm:$0x7] %v474_v15  ;;  %v2124_v48 = vld [vmem:[#allocation2 + $0x240] sm:$0xff] }
 0x29c   :  { %2338 = vmatpush.msrb.mxu0 %v2124_v48  ;;  %2391 = vst [vmem:[#allocation3 + $0x30] sm:$0xff] %v2231_v17 }
 0x29d   :  { %2392 = vst [vmem:[#allocation3 + $0x50] sm:$0xff] %v2260_v13 }
 0x29e   :  { %5626 = vmatmul.msk.f32.gmra.mxu2 %vm2180_vm15, %v7425_v59  ;;  %v1540_v2 = vpop.permute.xlu2 %1539 }
 0x29f   :  { %v1546_v38 = vsel %vm422_vm10, %v7502_v33, %v1540_v2  ;;  %v7810_v12 = vpop.permute.xlu1 %364  ;;  %v7812_v39 = vpop.permute.xlu0 %304 }
 0x2a0   :  { %5631 = vmatmul.msk.f32.gmra.mxu3 %vm2180_vm15, %v7425_v59  ;;  %1558 = vst [vmem:[#allocation2 + $0x60] sm:$0x38] %v1546_v38  ;;  %v373_v16 = vsel %vm10340_vm14, %v7750_v46, %v7810_v12  ;;  %v313_v54 = vsel %vm10343_vm8, %v7735_v24, %v7812_v39  ;;  %v2234_v36 = vpop.f32.mrf.mxu0  ;;  %v2263_v60 = vpop.f32.mrf.mxu1 }
 0x2a1   :  { %385 = vst [vmem:[#allocation2 + $0x50] sm:$0x1c] %v373_v16  ;;  %v2179_v0 = vld [vmem:[#allocation2 + $0x38] sm:$0xf] }
 0x2a2   :  { %325 = vst [vmem:[#allocation2 + $0x150] sm:$0x80] %v313_v54  ;;  %v2118_v33 = vld [vmem:[#allocation2 + $0x1a8] sm:$0xff]  ;;  %5638 = vmatpush.msk.msrb.mxu1 %vm10336_vm7, %v2179_v0  ;;  %vm10348_vm7 = vcmask 646144  }
 0x2a3   :  { %331 = vst [vmem:[#allocation2 + $0x50] sm:$0x3] %v313_v54  ;;  %2339 = vmatpush.msrb.mxu0 %v2118_v33 }
 0x2a4   :  { %2397 = vst [vmem:[#allocation3 + $0xb8] sm:$0xff] %v2234_v36 }
 0x2a5   :  { %2398 = vst [vmem:[#allocation3 + $0x8] sm:$0xff] %v2263_v60 }
 0x2a6   :  { %5627 = vmatmul.msk.f32.gmra.mxu2 %vm2180_vm15, %v7457_v1  ;;  %v1294_v46 = vpop.permute.xlu2 %1293 }
 0x2a7   :  { %v1300_v35 = vsel %vm254_vm5, %v7611_v45, %v1294_v46  ;;  %v1968_v24 = vpop.permute.xlu1 %1967  ;;  %v1915_v32 = vpop.permute.xlu0 %1914  ;;  %v2100_v45 = vld [vmem:[#allocation2 + $0xe8] sm:$0xff] }
 0x2a8   :  { %5632 = vmatmul.msk.f32.gmra.mxu3 %vm2180_vm15, %v7457_v1  ;;  %1312 = vst [vmem:[#allocation2 + $0x18] sm:$0x1c] %v1300_v35  ;;  %v1974_v31 = vsel %vm10340_vm14, %v7242_v7, %v1968_v24  ;;  %v1921_v22 = vsel %vm10343_vm8, %v7253_v3, %v1915_v32  ;;  %v2237_v14 = vpop.f32.mrf.mxu0  ;;  %v2266_v55 = vpop.f32.mrf.mxu1  ;;  %v2410_v24 = vld [vmem:[#allocation3 + $0x48] sm:$0x3f]  ;;  %v2415_v32 = vld [vmem:[#allocation3 + $0x30] sm:$0x3f] }
 0x2a9   :  { %1986 = vst [vmem:[#allocation2 + $0x98] sm:$0x38] %v1974_v31  ;;  %v2106_v27 = vld [vmem:[#allocation2 + $0x150] sm:$0xff] }
 0x2aa   :  { %1933 = vst [vmem:[#allocation2 + $0x98] sm:$0x7] %v1921_v22  ;;  %v2112_v29 = vld [vmem:[#allocation2 + $0x50] sm:$0xff] }
 0x2ab   :  { %2340 = vmatpush.msrb.mxu0 %v2112_v29  ;;  %2403 = vst [vmem:[#allocation3 + $0x90] sm:$0xff] %v2237_v14  ;;  %v2416_v31 = vld [vmem:[#allocation3 + $0x50] sm:$0x3f]  ;;  %v2427_v22 = vld [vmem:[#allocation3 + $0xb8] sm:$0x3f] }
 0x2ac   :  { %2404 = vst [vmem:[#allocation3 + $0x10] sm:$0xff] %v2266_v55  ;;  %v2428_v55 = vld [vmem:[#allocation3 + $0x8] sm:$0x3f] }
 0x2ad   :  { %2341 = vmatpush.msrb.mxu0 %v2106_v27 }
 0x2ae   :  { %v1098_v51 = vpop.permute.xlu2 %1097 }
 0x2af   :  { %2342 = vmatpush.msrb.mxu0 %v2100_v45  ;;  %v1104_v53 = vsel %vm10349_vm1, %v7692_v57, %v1098_v51  ;;  %v1862_v7 = vpop.permute.xlu1 %1861  ;;  %v1809_v58 = vpop.permute.xlu0 %1808  ;;  %v940_v57 = vld [vmem:[%s10320_s0 + $0x60] sm:$0x1] }
 0x2b0   :  { %5634 = vmatmul.msk.f32.vlgmr.msrb.gmra.mxu0 %vm2180_vm15, %v7358_v61  ;;  %1116 = vst [vmem:[#allocation2 + $0x130] sm:$0x70] %v1104_v53  ;;  %v1868_v3 = vsel %vm254_vm5, %v7327_v5, %v1862_v7  ;;  %v1815_v34 = vsel %vm10344_vm3, %v7338_v63, %v1809_v58  ;;  %v2422_v7 = vmax.f32 %v2410_v24, %v2416_v31 }
 0x2b1   :  { %1880 = vst [vmem:[#allocation2 + $0x100] sm:$0xe0] %v1868_v3  ;;  %v2173_v30 = vld [vmem:[#allocation2 + $0x98] sm:$0xff] }
 0x2b2   :  { %1827 = vst [vmem:[#allocation2 + $0x100] sm:$0x1c] %v1815_v34  ;;  %2359 = vmatpush.msrb.mxu1 %v2173_v30  ;;  %v2433_v27 = vld [vmem:[#allocation3 + $0x90] sm:$0x3f] }
 0x2b3   :  { %952 = vst [vmem:[#allocation2 + $0x130] sm:$0x1] %v940_v57  ;;  %v2434_v45 = vld [vmem:[#allocation3 + $0x10] sm:$0x3f]  ;;  %v2439_v58 = vmax.f32 %v2427_v22, %v2433_v27 }
 0x2b4   :  { %v2440_v3 = vmax.f32 %v2428_v55, %v2434_v45 }
 0x2b6   :  { %v910_v61 = vpop.permute.xlu2 %909  ;;  %v2446_v30 = vmax.f32 %v2422_v7, %v2440_v3 }
 0x2b7   :  { %v916_v5 = vsel %vm469_vm12, %v7628_v41, %v910_v61  ;;  %v1458_v49 = vpop.permute.xlu1 %1457  ;;  %v1697_v63 = vpop.permute.xlu0 %1696 }
 0x2b8   :  { %5635 = vmatmul.msk.f32.gmra.mxu0 %vm2180_vm15, %v7390_v25  ;;  %928 = vst [vmem:[#allocation2 + $0x238] sm:$0x38] %v916_v5  ;;  %v1464_v37 = vsel %vm10340_vm14, %v7360_v26, %v1458_v49  ;;  %v1703_v21 = vsel %vm10345_vm0, %v7443_v20, %v1697_v63 }
 0x2b9   :  { %1476 = vst [vmem:[#allocation2 + $0x60] sm:$0x7] %v1464_v37  ;;  %v2167_v50 = vld [vmem:[#allocation2 + $0x100] sm:$0xff] }
 0x2ba   :  { %1715 = vst [vmem:[#allocation2 + $0xf8] sm:$0x70] %v1703_v21  ;;  %2360 = vmatpush.msrb.mxu1 %v2167_v50 }
 0x2be   :  { %v811_v19 = vpop.permute.xlu2 %810 }
 0x2bf   :  { %v817_v41 = vsel %vm10340_vm14, %v7703_v23, %v811_v19  ;;  %v1194_v43 = vpop.permute.xlu1 %1193  ;;  %v1600_v15 = vpop.permute.xlu0 %1599 }
 0x2c0   :  { %5636 = vmatmul.msk.f32.gmra.mxu0 %vm2180_vm15, %v7425_v59  ;;  %829 = vst [vmem:[#allocation2 + $0x170] sm:$0xe0] %v817_v41  ;;  %v1206_v26 = vsel %vm10344_vm3, %v7459_v9, %v1194_v43  ;;  %v1620_v25 = vsel %vm469_vm12, %v7488_v42, %v1600_v15  ;;  %v2101_v43 = vld [vmem:[#allocation2 + $0xf0] sm:$0xff] }
 0x2c1   :  { %1230 = vst [vmem:[#allocation2 + $0x18] sm:$0x3] %v1206_v26  ;;  %v2161_v20 = vld [vmem:[#allocation2 + $0xf8] sm:$0xff] }
 0x2c2   :  { %1644 = vst [vmem:[#allocation2 + $0x60] sm:$0xc0] %v1620_v25  ;;  %2361 = vmatpush.msrb.mxu1 %v2161_v20 }
 0x2c6   :  { %v646_v48 = vpop.permute.xlu2 %645 }
 0x2c7   :  { %v652_v23 = vsel %vm10344_vm3, %v7727_v6, %v646_v48  ;;  %v1016_v17 = vpop.permute.xlu1 %1015  ;;  %v1376_v13 = vpop.permute.xlu0 %1375  ;;  %v493_v6 = vld [vmem:[%s10320_s0 + $0x28] sm:$0x38]  ;;  %s5732_s0 = smov 64  }
 0x2c8   :  { %5637 = vmatmul.msk.f32.gmra.mxu0 %vm2180_vm15, %v7457_v1  ;;  %664 = vst [vmem:[#allocation2 + $0x190] sm:$0x70] %v652_v23  ;;  %v1022_v59 = vsel %vm10345_vm0, %v7558_v8, %v1016_v17  ;;  %v1382_v9 = vsel %vm10343_vm8, %v7603_v28, %v1376_v13  ;;  %v5694_v13 = vld [vmem:[%s10321_s1 + $0x8] sm:$0xff] }
 0x2c9   :  { %1034 = vst [vmem:[#allocation2 + $0x130] sm:$0xe] %v1022_v59  ;;  %v2155_v42 = vld [vmem:[#allocation2 + $0x60] sm:$0xff] }
 0x2ca   :  { %1394 = vst [vmem:[#allocation2 + $0x18] sm:$0xe0] %v1382_v9  ;;  %2362 = vmatpush.msrb.mxu1 %v2155_v42 }
 0x2cb   :  { %499 = vst [vmem:[#allocation2 + $0x250] sm:$0x38] %v493_v6 }
 0x2ce   :  { %v367_v18 = vpop.permute.xlu2 %366 }
 0x2cf   :  { %v374_v1 = vsel %vm10340_vm14, %v7810_v12, %v367_v18  ;;  %v864_v2 = vpop.permute.xlu1 %863  ;;  %v1180_v38 = vpop.permute.xlu0 %1179 }
 0x2d0   :  { %386 = vst [vmem:[#allocation2 + $0x210] sm:$0x1c] %v374_v1  ;;  %v870_v8 = vsel %vm422_vm10, %v7711_v4, %v864_v2  ;;  %v1200_v28 = vsel %vm10344_vm3, %v7681_v47, %v1180_v38  ;;  %v5695_v2 = vld [vmem:[%s10321_s1 + $0x10] sm:$0xff] }
 0x2d1   :  { %882 = vst [vmem:[#allocation2 + $0x238] sm:$0x7] %v870_v8  ;;  %v2149_v16 = vld [vmem:[#allocation2 + $0x18] sm:$0xff] }
 0x2d2   :  { %1224 = vst [vmem:[#allocation2 + $0x130] sm:$0x80] %v1200_v28  ;;  %2363 = vmatpush.msrb.mxu1 %v2149_v16 }
 0x2d7   :  { %v758_v54 = vpop.permute.xlu1 %757  ;;  %v699_v0 = vpop.permute.xlu0 %698 }
 0x2d8   :  { %v764_v33 = vsel %vm10343_vm8, %v7764_v44, %v758_v54  ;;  %v705_v12 = vsel %vm254_vm5, %v7766_v10, %v699_v0  ;;  %v2137_v4 = vld [vmem:[#allocation2 + $0x238] sm:$0xff] }
 0x2d9   :  { %776 = vst [vmem:[#allocation2 + $0x170] sm:$0x1c] %v764_v33  ;;  %v2143_v36 = vld [vmem:[#allocation2 + $0x130] sm:$0xff]  ;;  %v2409_v10 = vld [vmem:[#allocation3 + $0x98] sm:$0x3f] }
 0x2da   :  { %717 = vst [vmem:[#allocation2 + $0x190] sm:$0x80] %v705_v12  ;;  %2364 = vmatpush.msrb.mxu1 %v2143_v36  ;;  %v2421_v53 = vmax.f32 %v2409_v10, %v2415_v32  ;;  %v5696_v36 = vld [vmem:[%s10321_s1 + $0x18] sm:$0xff] }
 0x2db   :  { %723 = vst [vmem:[#allocation2 + $0x170] sm:$0x3] %v705_v12 }
 0x2dc   :  { %2365 = vmatpush.msrb.mxu1 %v2137_v4  ;;  %v2445_v34 = vmax.f32 %v2421_v53, %v2439_v58 }
 0x2df   :  { %v593_v47 = vpop.permute.xlu1 %592  ;;  %v534_v60 = vpop.permute.xlu0 %533 }
 0x2e0   :  { %v599_v46 = vsel %vm10349_vm1, %v7778_v52, %v593_v47  ;;  %v540_v35 = vsel %vm10345_vm0, %v7780_v62, %v534_v60 }
 0x2e1   :  { %611 = vst [vmem:[#allocation2 + $0x190] sm:$0xe] %v599_v46 }
 0x2e2   :  { %552 = vst [vmem:[#allocation2 + $0x250] sm:$0xc0] %v540_v35  ;;  %v2131_v44 = vld [vmem:[#allocation2 + $0x170] sm:$0xff] }
 0x2e3   :  { %558 = vst [vmem:[#allocation2 + $0x190] sm:$0x1] %v540_v35  ;;  %2366 = vmatpush.msrb.mxu1 %v2131_v44 }
 0x2e7   :  { %v307_v29 = vpop.permute.xlu1 %306  ;;  %v468_v14 = vpop.permute.xlu0 %467 }
 0x2e8   :  { %v314_v52 = vsel %vm10343_vm8, %v7812_v39, %v307_v29  ;;  %v475_v62 = vsel %vm469_vm12, %v7794_v40, %v468_v14 }
 0x2e9   :  { %326 = vst [vmem:[#allocation2 + $0x160] sm:$0x80] %v314_v52 }
 0x2ea   :  { %332 = vst [vmem:[#allocation2 + $0x210] sm:$0x3] %v314_v52  ;;  %v2125_v51 = vld [vmem:[#allocation2 + $0x190] sm:$0xff] }
 0x2eb   :  { %487 = vst [vmem:[#allocation2 + $0x250] sm:$0x7] %v475_v62  ;;  %2367 = vmatpush.msrb.mxu1 %v2125_v51 }
 0x2ef   :  { %v7892_v57 = vpop.permute.xlu1 %2454  ;;  %v421_v11 = vpop.permute.xlu0 %420 }
 0x2f0   :  { %v2457_v61 = vadd.f32 %v7892_v57, %v2445_v34  ;;  %v2458_v39 = vadd.f32 %v7892_v57, %v2446_v30  ;;  %v428_v40 = vsel %vm422_vm10, %v7759_v56, %v421_v11  ;;  %v2107_v21 = vld [vmem:[#allocation2 + $0x160] sm:$0xff]  ;;  %v5693_v56 = vld [vmem:[%s10321_s1] sm:$0xff]  ;;  %s10342_s1 = smov 80  }
 0x2f1   :  { %440 = vst [vmem:[#allocation2 + $0x210] sm:$0xe0] %v428_v40 }
 0x2f2   :  { %v2463_v5 = vmax.f32 %v2457_v61, 0.0  ;;  %v2464_v49 = vmax.f32 %v2458_v39, 0.0  ;;  %v2119_v63 = vld [vmem:[#allocation2 + $0x250] sm:$0xff] }
 0x2f3   :  { %2368 = vmatpush.msrb.mxu1 %v2119_v63 }
 0x2f4   :  { %2469 = vst [vmem:[#allocation4] sm:$0x3f] %v2463_v5 }
 0x2f5   :  { %2470 = vst [vmem:[#allocation4 + $0x8] sm:$0x3f] %v2464_v49 }
 0x2f8   :  { %v2113_v37 = vld [vmem:[#allocation2 + $0x210] sm:$0xff] }
 0x2f9   :  { %2369 = vmatpush.msrb.mxu1 %v2113_v37 }
 0x2fb   :  { %2370 = vmatpush.msrb.mxu1 %v2107_v21  ;;  %v3376_v50 = vld [vmem:[#allocation4] sm:$0x3f] }
 0x2fc   :  { %v3416_v19 = vld [vmem:[#allocation4] sm:$0x3f]  ;;  %v3377_v41 = vld [vmem:[#allocation4 + $0x8] sm:$0x3f]  ;;  %3388 = vrot.lane.b32.xlu2 %v3376_v50, %s5732_s0 }
 0x2fd   :  { %v3428_v15 = vrot.slane %v3416_v19, 2  ;;  %3390 = vrot.lane.b32.xlu0 %v3377_v41, %s5732_s0  ;;  %2371 = vmatpush.msrb.mxu1 %v2101_v43  ;;  %v3417_v26 = vld [vmem:[#allocation4 + $0x8] sm:$0x3f]  ;;  %v3279_v25 = vld [vmem:[#allocation4] sm:$0x3f] }
 0x2fe   :  { %5639 = vmatmul.msk.f32.vlgmr.msrb.gmra.mxu1 %vm2180_vm15, %v5693_v56  ;;  %v3280_v20 = vld [vmem:[#allocation4 + $0x8] sm:$0x3f]  ;;  %v3429_v48 = vrot.slane %v3417_v26, 2  ;;  %v3291_v23 = vrot.slane %v3279_v25, 4  ;;  %v3330_v59 = vld [vmem:[#allocation4] sm:$0x3f] }
 0x2ff   :  { %3434 = vrot.lane.b32.xlu1 %v3428_v15, %s5733_s26  ;;  %v3292_v17 = vrot.slane %v3280_v20, 4  ;;  %v3331_v9 = vld [vmem:[#allocation4 + $0x8] sm:$0x3f]  ;;  %v3228_v42 = vld [vmem:[#allocation4] sm:$0x3f]  ;;  %v3342_v6 = vrot.slane %v3330_v59, 6 }
 0x300   :  { %v3343_v18 = vrot.slane %v3331_v9, 6  ;;  %v3240_v1 = vrot.slane %v3228_v42, 2  ;;  %v3229_v38 = vld [vmem:[#allocation4 + $0x8] sm:$0x3f]  ;;  %v2475_v54 = vld [vmem:[#allocation4] sm:$0x3f] }
 0x301   :  { %v3241_v28 = vrot.slane %v3229_v38, 2  ;;  %v2476_v0 = vld [vmem:[#allocation4 + $0x8] sm:$0x3f]  ;;  %v3188_v33 = vld [vmem:[#allocation4] sm:$0x3f] }
 0x302   :  { %v3189_v12 = vld [vmem:[#allocation4 + $0x8] sm:$0x3f]  ;;  %2480 = vst [vmem:[#allocation5 + $0x20] sm:$0x3f] %v2475_v54  ;;  %v3091_v4 = vld [vmem:[#allocation4] sm:$0x3f] }
 0x303   :  { %2481 = vst [vmem:[#allocation5 + $0x118] sm:$0x3f] %v2476_v0  ;;  %v3092_v47 = vld [vmem:[#allocation4 + $0x8] sm:$0x3f]  ;;  %v3142_v46 = vld [vmem:[#allocation4] sm:$0x3f] }
 0x304   :  { %3436 = vrot.lane.b32.xlu2 %v3429_v48, %s5733_s26  ;;  %v3103_v35 = vrot.slane %v3091_v4, 4  ;;  %v3104_v10 = vrot.slane %v3092_v47, 4  ;;  %v3154_v24 = vrot.slane %v3142_v46, 6  ;;  %v3143_v32 = vld [vmem:[#allocation4 + $0x8] sm:$0x3f] }
 0x305   :  { %3297 = vrot.lane.b32.xlu0 %v3291_v23, %s5734_s27  ;;  %v3040_v31 = vld [vmem:[#allocation4] sm:$0x3f]  ;;  %v3041_v29 = vld [vmem:[#allocation4 + $0x8] sm:$0x3f]  ;;  %v3155_v14 = vrot.slane %v3143_v32, 6 }
 0x306   :  { %5640 = vmatmul.msk.f32.gmra.mxu1 %vm2180_vm15, %v5694_v13  ;;  %v3052_v27 = vrot.slane %v3040_v31, 2  ;;  %v3053_v45 = vrot.slane %v3041_v29, 2  ;;  %v2906_v62 = vld [vmem:[#allocation4] sm:$0x3f]  ;;  %v3002_v7 = vld [vmem:[#allocation4 + $0x8] sm:$0x3f] }
 0x307   :  { %3299 = vrot.lane.b32.xlu1 %v3292_v17, %s5734_s27  ;;  %v3001_v53 = vld [vmem:[#allocation4] sm:$0x3f]  ;;  %v2918_v58 = vrot.slane %v2906_v62, 4  ;;  %v2907_v11 = vld [vmem:[#allocation4 + $0x8] sm:$0x3f] }
 0x308   :  { %v2956_v49 = vld [vmem:[#allocation4] sm:$0x3f]  ;;  %v2957_v21 = vld [vmem:[#allocation4 + $0x8] sm:$0x3f]  ;;  %v2919_v41 = vrot.slane %v2907_v11, 4 }
 0x309   :  { %v2968_v15 = vrot.slane %v2956_v49, 6  ;;  %v2969_v25 = vrot.slane %v2957_v21, 6  ;;  %v2856_v17 = vld [vmem:[#allocation4] sm:$0x3f]  ;;  %v2857_v13 = vld [vmem:[#allocation4 + $0x8] sm:$0x3f] }
 0x30a   :  { %v2868_v42 = vrot.slane %v2856_v17, 2  ;;  %v2721_v38 = vld [vmem:[#allocation4] sm:$0x3f]  ;;  %v2672_v31 = vld [vmem:[#allocation4 + $0x8] sm:$0x3f] }
 0x30b   :  { %v2684_v29 = vrot.slane %v2672_v31, 2  ;;  %v2535_v62 = vld [vmem:[#allocation4] sm:$0x3f] }
 0x30c   :  { %3348 = vrot.lane.b32.xlu2 %v3342_v6, %s5735_s28 }
 0x30d   :  { %3350 = vrot.lane.b32.xlu0 %v3343_v18, %s5735_s28  ;;  %v2869_v18 = vrot.slane %v2857_v13, 2 }
 0x30e   :  { %5641 = vmatmul.msk.f32.gmra.mxu1 %vm2180_vm15, %v5695_v2  ;;  %v2816_v2 = vld [vmem:[#allocation4] sm:$0x3f] }
 0x30f   :  { %3246 = vrot.lane.b32.xlu1 %v3240_v1, %s5736_s19 }
 0x311   :  { %v2286_v8 = vpop.f32.mrf.mxu2 }
 0x312   :  { %2387 = vst [vmem:[#allocation3 + $0x28] sm:$0xff] %v2286_v8  ;;  %v2722_v8 = vld [vmem:[#allocation4 + $0x8] sm:$0x3f] }
 0x313   :  { %v2315_v16 = vpop.f32.mrf.mxu3  ;;  %v2734_v54 = vrot.slane %v2722_v8, 4 }
 0x314   :  { %2388 = vst [vmem:[#allocation3 + $0x78] sm:$0xff] %v2315_v16  ;;  %3248 = vrot.lane.b32.xlu2 %v3241_v28, %s5736_s19  ;;  %v2817_v28 = vld [vmem:[#allocation4 + $0x8] sm:$0x3f]  ;;  %v2733_v16 = vrot.slane %v2721_v38, 4 }
 0x315   :  { %3200 = vrot.lane.b32.xlu0 %v3188_v33, %s5737_s20  ;;  %v2771_v33 = vld [vmem:[#allocation4] sm:$0x3f] }
 0x316   :  { %5642 = vmatmul.msk.f32.gmra.mxu1 %vm2180_vm15, %v5696_v36  ;;  %v2671_v36 = vld [vmem:[#allocation4] sm:$0x3f]  ;;  %v2783_v4 = vrot.slane %v2771_v33, 6 }
 0x317   :  { %3202 = vrot.lane.b32.xlu1 %v3189_v12, %s5737_s20  ;;  %v2772_v12 = vld [vmem:[#allocation4 + $0x8] sm:$0x3f] }
 0x318   :  { %v2784_v47 = vrot.slane %v2772_v12, 6 }
 0x319   :  { %v2289_v60 = vpop.f32.mrf.mxu2  ;;  %v2411_v3 = vld [vmem:[#allocation3 + $0x28] sm:$0x3f] }
 0x31a   :  { %2393 = vst [vmem:[#allocation3 + $0x58] sm:$0xff] %v2289_v60 }
 0x31b   :  { %v2318_v44 = vpop.f32.mrf.mxu3  ;;  %v2412_v61 = vld [vmem:[#allocation3 + $0x78] sm:$0x3f] }
 0x31c   :  { %2394 = vst [vmem:[#allocation3 + $0x18] sm:$0xff] %v2318_v44  ;;  %3109 = vrot.lane.b32.xlu2 %v3103_v35, %s10341_s25  ;;  %v2683_v44 = vrot.slane %v2671_v36, 2 }
 0x31d   :  { %3111 = vrot.lane.b32.xlu0 %v3104_v10, %s10341_s25 }
 0x31f   :  { %3160 = vrot.lane.b32.xlu1 %v3154_v24, %s10342_s1 }
 0x321   :  { %v2292_v22 = vpop.f32.mrf.mxu2  ;;  %v2417_v34 = vld [vmem:[#allocation3 + $0x58] sm:$0x3f] }
 0x322   :  { %2399 = vst [vmem:[#allocation3 + $0x80] sm:$0xff] %v2292_v22  ;;  %v2423_v5 = vmax.f32 %v2411_v3, %v2417_v34 }
 0x323   :  { %v2321_v55 = vpop.f32.mrf.mxu3  ;;  %v2418_v39 = vld [vmem:[#allocation3 + $0x18] sm:$0x3f] }
 0x324   :  { %2400 = vst [vmem:[#allocation3 + $0x60] sm:$0xff] %v2321_v55  ;;  %3162 = vrot.lane.b32.xlu2 %v3155_v14, %s10342_s1  ;;  %v2424_v50 = vmax.f32 %v2412_v61, %v2418_v39  ;;  %v2631_v55 = vld [vmem:[#allocation4] sm:$0x3f]  ;;  %v2586_v61 = vld [vmem:[#allocation4 + $0x8] sm:$0x3f] }
 0x325   :  { %3058 = vrot.lane.b32.xlu0 %v3052_v27, %s5740_s2  ;;  %v2485_v39 = vld [vmem:[#allocation4] sm:$0x3f] }
 0x326   :  { %v2497_v49 = vrot.slane %v2485_v39, 2 }
 0x327   :  { %3060 = vrot.lane.b32.xlu1 %v3053_v45, %s5740_s2  ;;  %v2632_v45 = vld [vmem:[#allocation4 + $0x8] sm:$0x3f] }
 0x329   :  { %v2295_v52 = vpop.f32.mrf.mxu2  ;;  %v2429_v40 = vld [vmem:[#allocation3 + $0x80] sm:$0x3f] }
 0x32a   :  { %2405 = vst [vmem:[#allocation3 + $0xb0] sm:$0xff] %v2295_v52 }
 0x32b   :  { %v2324_v51 = vpop.f32.mrf.mxu3  ;;  %v2430_v63 = vld [vmem:[#allocation3 + $0x60] sm:$0x3f] }
 0x32c   :  { %2406 = vst [vmem:[#allocation3 + $0x68] sm:$0xff] %v2324_v51  ;;  %3013 = vrot.lane.b32.xlu2 %v3001_v53, %s5729_s29  ;;  %v2536_v51 = vld [vmem:[#allocation4 + $0x8] sm:$0x3f]  ;;  %v2585_v53 = vld [vmem:[#allocation4] sm:$0x3f] }
 0x32d   :  { %v2344_v30 = vpop.f32.mrf.mxu0  ;;  %3015 = vrot.lane.b32.xlu0 %v3002_v7, %s5729_s29  ;;  %v2547_v7 = vrot.slane %v2535_v62, 4  ;;  %v2548_v34 = vrot.slane %v2536_v51, 4 }
 0x32e   :  { %2389 = vst [vmem:[#allocation3 + $0xa8] sm:$0xff] %v2344_v30  ;;  %v2597_v30 = vrot.slane %v2585_v53, 6 }
 0x32f   :  { %2924 = vrot.lane.b32.xlu1 %v2918_v58, %s10350_s13 }
 0x331   :  { %v2435_v37 = vld [vmem:[#allocation3 + $0xb0] sm:$0x3f] }
 0x332   :  { %v2441_v19 = vmax.f32 %v2429_v40, %v2435_v37  ;;  %v2486_v40 = vld [vmem:[#allocation4 + $0x8] sm:$0x3f] }
 0x333   :  { %v2436_v43 = vld [vmem:[#allocation3 + $0x68] sm:$0x3f] }
 0x334   :  { %v2447_v56 = vmax.f32 %v2423_v5, %v2441_v19  ;;  %v2442_v26 = vmax.f32 %v2430_v63, %v2436_v43  ;;  %2926 = vrot.lane.b32.xlu2 %v2919_v41, %s10350_s13  ;;  %v2598_v5 = vrot.slane %v2586_v61, 6  ;;  %v2498_v63 = vrot.slane %v2486_v40, 2 }
 0x335   :  { %v2347_v20 = vpop.f32.mrf.mxu0  ;;  %2974 = vrot.lane.b32.xlu0 %v2968_v15, %s5728_s21  ;;  %v2413_v60 = vld [vmem:[#allocation3 + $0xa8] sm:$0x3f] }
 0x336   :  { %v2448_v48 = vmax.f32 %v2424_v50, %v2442_v26  ;;  %2395 = vst [vmem:[#allocation3 + $0x88] sm:$0xff] %v2347_v20  ;;  %v2459_v23 = vadd.f32 %v7892_v57, %v2447_v56 }
 0x337   :  { %2976 = vrot.lane.b32.xlu1 %v2969_v25, %s5728_s21 }
 0x338   :  { %v2460_v59 = vadd.f32 %v7892_v57, %v2448_v48  ;;  %v2465_v9 = vmax.f32 %v2459_v23, 0.0 }
 0x33a   :  { %v2466_v6 = vmax.f32 %v2460_v59, 0.0  ;;  %2471 = vst [vmem:[#allocation4 + $0x20] sm:$0x3f] %v2465_v9 }
 0x33c   :  { %2874 = vrot.lane.b32.xlu2 %v2868_v42, %s5741_s30  ;;  %2472 = vst [vmem:[#allocation4 + $0x18] sm:$0x3f] %v2466_v6 }
 0x33d   :  { %v2350_v1 = vpop.f32.mrf.mxu0  ;;  %2876 = vrot.lane.b32.xlu0 %v2869_v18, %s5741_s30  ;;  %v2419_v46 = vld [vmem:[#allocation3 + $0x88] sm:$0x3f] }
 0x33e   :  { %2401 = vst [vmem:[#allocation3 + $0x70] sm:$0xff] %v2350_v1  ;;  %v2425_v24 = vmax.f32 %v2413_v60, %v2419_v46 }
 0x33f   :  { %2828 = vrot.lane.b32.xlu1 %v2816_v2, %s5742_s16 }
 0x341   :  { %v2477_v3 = vld [vmem:[#allocation4 + $0x20] sm:$0x3f] }
 0x342   :  { %2482 = vst [vmem:[#allocation5 + $0x228] sm:$0x3f] %v2477_v3  ;;  %v3332_v3 = vld [vmem:[#allocation4 + $0x20] sm:$0x3f] }
 0x343   :  { %v2478_v58 = vld [vmem:[#allocation4 + $0x18] sm:$0x3f] }
 0x344   :  { %2830 = vrot.lane.b32.xlu2 %v2817_v28, %s5742_s16  ;;  %2483 = vst [vmem:[#allocation5 + $0xf8] sm:$0x3f] %v2478_v58  ;;  %v3419_v50 = vld [vmem:[#allocation4 + $0x18] sm:$0x3f] }
 0x345   :  { %v2353_v0 = vpop.f32.mrf.mxu0  ;;  %2739 = vrot.lane.b32.xlu0 %v2733_v16, %s5726_s15  ;;  %v2431_v35 = vld [vmem:[#allocation3 + $0x70] sm:$0x3f]  ;;  %v3379_v19 = vld [vmem:[#allocation4 + $0x18] sm:$0x3f]  ;;  %v3431_v43 = vrot.slane %v3419_v50, 2 }
 0x346   :  { %2407 = vst [vmem:[#allocation3 + $0x20] sm:$0xff] %v2353_v0  ;;  %v3282_v48 = vld [vmem:[#allocation4 + $0x18] sm:$0x3f] }
 0x347   :  { %2741 = vrot.lane.b32.xlu1 %v2734_v54, %s5726_s15  ;;  %v3294_v59 = vrot.slane %v3282_v48, 4  ;;  %v3333_v18 = vld [vmem:[#allocation4 + $0x18] sm:$0x3f] }
 0x348   :  { %v3231_v28 = vld [vmem:[#allocation4 + $0x18] sm:$0x3f]  ;;  %v3345_v16 = vrot.slane %v3333_v18, 6 }
 0x349   :  { %v3243_v33 = vrot.slane %v3231_v28, 2  ;;  %v3191_v62 = vld [vmem:[#allocation4 + $0x18] sm:$0x3f] }
 0x34a   :  { %v3094_v61 = vld [vmem:[#allocation4 + $0x18] sm:$0x3f] }
 0x34c   :  { %2789 = vrot.lane.b32.xlu2 %v2783_v4, %s10351_s14 }
 0x34d   :  { %v2437_v10 = vld [vmem:[#allocation3 + $0x20] sm:$0x3f]  ;;  %2791 = vrot.lane.b32.xlu0 %v2784_v47, %s10351_s14 }
 0x34e   :  { %v2443_v32 = vmax.f32 %v2431_v35, %v2437_v10  ;;  %v3418_v35 = vld [vmem:[#allocation4 + $0x20] sm:$0x3f] }
 0x34f   :  { %2689 = vrot.lane.b32.xlu1 %v2683_v44, %s5725_s12 }
 0x350   :  { %v2449_v22 = vmax.f32 %v2425_v24, %v2443_v32  ;;  %v3378_v24 = vld [vmem:[#allocation4 + $0x20] sm:$0x3f]  ;;  %v3430_v32 = vrot.slane %v3418_v35, 2 }
 0x352   :  { %v2461_v14 = vadd.f32 %v7892_v57, %v2449_v22 }
 0x354   :  { %2691 = vrot.lane.b32.xlu2 %v2684_v29, %s5725_s12  ;;  %v2467_v27 = vmax.f32 %v2461_v14, 0.0 }
 0x355   :  { %2643 = vrot.lane.b32.xlu0 %v2631_v55, %s5743_s18 }
 0x356   :  { %v3389_v52 = vpop.permute.xlu2 %3388  ;;  %2473 = vst [vmem:[#allocation4 + $0x28] sm:$0x3f] %v2467_v27  ;;  %v3281_v27 = vld [vmem:[#allocation4 + $0x20] sm:$0x3f] }
 0x357   :  { %2645 = vrot.lane.b32.xlu1 %v2632_v45, %s5743_s18  ;;  %v3293_v53 = vrot.slane %v3281_v27, 4  ;;  %v3566_v27 = vld [vmem:[#allocation4 + $0x20] sm:$0x3f] }
 0x35c   :  { %2553 = vrot.lane.b32.xlu2 %v2547_v7, %s5724_s17 }
 0x35d   :  { %2555 = vrot.lane.b32.xlu0 %v2548_v34, %s5724_s17  ;;  %v2479_v21 = vld [vmem:[#allocation4 + $0x28] sm:$0x3f] }
 0x35e   :  { %v7955_v11 = vpop.permute.xlu2 %3436  ;;  %2484 = vst [vmem:[#allocation5 + $0x70] sm:$0x3f] %v2479_v21  ;;  %v3380_v41 = vld [vmem:[#allocation4 + $0x28] sm:$0x3f] }
 0x35f   :  { %2603 = vrot.lane.b32.xlu1 %v2597_v30, %s5744_s22  ;;  %v3420_v26 = vld [vmem:[#allocation4 + $0x28] sm:$0x3f] }
 0x360   :  { %v3283_v17 = vld [vmem:[#allocation4 + $0x28] sm:$0x3f]  ;;  %v3432_v13 = vrot.slane %v3420_v26, 2  ;;  %v3145_v26 = vld [vmem:[#allocation4 + $0x18] sm:$0x3f] }
 0x361   :  { %v3295_v9 = vrot.slane %v3283_v17, 4  ;;  %v3334_v2 = vld [vmem:[#allocation4 + $0x28] sm:$0x3f]  ;;  %v3230_v17 = vld [vmem:[#allocation4 + $0x20] sm:$0x3f] }
 0x362   :  { %v3346_v0 = vrot.slane %v3334_v2, 6  ;;  %v3232_v4 = vld [vmem:[#allocation4 + $0x28] sm:$0x3f]  ;;  %v3242_v2 = vrot.slane %v3230_v17, 2  ;;  %v3469_v17 = vld [vmem:[#allocation4 + $0x20] sm:$0x3f] }
 0x363   :  { %v3244_v44 = vrot.slane %v3232_v4, 2  ;;  %v3192_v51 = vld [vmem:[#allocation4 + $0x28] sm:$0x3f] }
 0x364   :  { %2605 = vrot.lane.b32.xlu2 %v2598_v5, %s5744_s22  ;;  %v3095_v5 = vld [vmem:[#allocation4 + $0x28] sm:$0x3f] }
 0x365   :  { %2503 = vrot.lane.b32.xlu0 %v2497_v49, %s5723_s23  ;;  %v3344_v49 = vrot.slane %v3332_v3, 6  ;;  %v3107_v21 = vrot.slane %v3095_v5, 4 }
 0x366   :  { %v3349_v37 = vpop.permute.xlu2 %3348 }
 0x367   :  { %2505 = vrot.lane.b32.xlu1 %v2498_v63, %s5723_s23 }
 0x36c   :  { %3394 = vrot.lane.b32.xlu2 %v3379_v19, %s5732_s0 }
 0x36d   :  { %3396 = vrot.lane.b32.xlu0 %v3380_v41, %s5732_s0 }
 0x36e   :  { %v7963_v15 = vpop.permute.xlu2 %3248 }
 0x36f   :  { %3440 = vrot.lane.b32.xlu1 %v3431_v43, %s5733_s26  ;;  %v7966_v56 = vpop.permute.xlu0 %3390 }
 0x370   :  { %v3401_v25 = vsel %vm3400_vm2, %v3389_v52, %v7966_v56 }
 0x371   :  { %v3435_v20 = vpop.permute.xlu1 %3434  ;;  %3411 = vst [vmem:[#allocation5 + $0x10] sm:$0x3f] %v3401_v25 }
 0x372   :  { %v3447_v23 = vsel %vm3446_vm4, %v3435_v20, %v7955_v11  ;;  %v3146_v20 = vld [vmem:[#allocation4 + $0x28] sm:$0x3f] }
 0x373   :  { %3457 = vst [vmem:[#allocation5 + $0x10] sm:$0xc0] %v3447_v23 }
 0x374   :  { %3462 = vst [vmem:[#allocation5 + $0x1c0] sm:$0xf] %v3447_v23  ;;  %3442 = vrot.lane.b32.xlu2 %v3432_v13, %s5733_s26 }
 0x375   :  { %3303 = vrot.lane.b32.xlu0 %v3294_v59, %s5734_s27 }
 0x376   :  { %v7974_v42 = vpop.permute.xlu2 %3109 }
 0x377   :  { %3305 = vrot.lane.b32.xlu1 %v3295_v9, %s5734_s27  ;;  %v3298_v6 = vpop.permute.xlu0 %3297  ;;  %v3157_v9 = vrot.slane %v3145_v26, 6 }
 0x379   :  { %v7977_v1 = vpop.permute.xlu1 %3299 }
 0x37a   :  { %v3310_v38 = vsel %vm3309_vm6, %v3298_v6, %v7977_v1  ;;  %v3683_v8 = vld [vmem:[#allocation5 + $0x10] sm:$0xff]  ;;  %v3158_v6 = vrot.slane %v3146_v20, 6 }
 0x37b   :  { %3320 = vst [vmem:[#allocation5 + $0x158] sm:$0xf0] %v3310_v38  ;;  %3737 = vmatpush.msrb.mxu2 %v3683_v8  ;;  %v2373_v54 = vpop.f32.mrf.mxu1 }
 0x37c   :  { %3325 = vst [vmem:[#allocation5 + $0x290] sm:$0x3] %v3310_v38  ;;  %3354 = vrot.lane.b32.xlu2 %v3345_v16, %s5735_s28  ;;  %v3043_v16 = vld [vmem:[#allocation4 + $0x18] sm:$0x3f] }
 0x37d   :  { %2390 = vst [vmem:[#allocation3 + $0xa0] sm:$0xff] %v2373_v54  ;;  %3356 = vrot.lane.b32.xlu0 %v3346_v0, %s5735_s28 }
 0x37e   :  { %v7983_v12 = vpop.permute.xlu2 %3162 }
 0x37f   :  { %3252 = vrot.lane.b32.xlu1 %v3243_v33, %s5736_s19  ;;  %v7986_v36 = vpop.permute.xlu0 %3350  ;;  %v3044_v33 = vld [vmem:[#allocation4 + $0x28] sm:$0x3f] }
 0x380   :  { %v3361_v47 = vsel %vm3360_vm9, %v3349_v37, %v7986_v36  ;;  %v3106_v37 = vrot.slane %v3094_v61, 4  ;;  %v3005_v61 = vld [vmem:[#allocation4 + $0x28] sm:$0x3f] }
 0x381   :  { %v3247_v60 = vpop.permute.xlu1 %3246  ;;  %3371 = vst [vmem:[#allocation5 + $0x290] sm:$0xfc] %v3361_v47 }
 0x382   :  { %v3259_v46 = vsel %vm10338_vm11, %v3247_v60, %v7963_v15  ;;  %vm10347_vm11 = vcmask 654336  }
 0x383   :  { %3269 = vst [vmem:[#allocation5 + $0x270] sm:$0xc0] %v3259_v46  ;;  %v2376_v10 = vpop.f32.mrf.mxu1 }
 0x384   :  { %3274 = vst [vmem:[#allocation5 + $0x158] sm:$0xf] %v3259_v46  ;;  %3254 = vrot.lane.b32.xlu2 %v3244_v44, %s5736_s19  ;;  %v2414_v19 = vld [vmem:[#allocation3 + $0xa0] sm:$0x3f]  ;;  %v3055_v46 = vrot.slane %v3043_v16, 2  ;;  %v3056_v44 = vrot.slane %v3044_v33, 2 }
 0x385   :  { %2396 = vst [vmem:[#allocation3 + $0x38] sm:$0xff] %v2376_v10  ;;  %3392 = vrot.lane.b32.xlu0 %v3378_v24, %s5732_s0  ;;  %v3190_v10 = vld [vmem:[#allocation4 + $0x20] sm:$0x3f] }
 0x386   :  { %v7994_v31 = vpop.permute.xlu2 %3013 }
 0x387   :  { %3438 = vrot.lane.b32.xlu1 %v3430_v32, %s5733_s26  ;;  %v3201_v22 = vpop.permute.xlu0 %3200 }
 0x388   :  { %v3678_v29 = vld [vmem:[#allocation5 + $0x290] sm:$0xff] }
 0x389   :  { %v7997_v14 = vpop.permute.xlu1 %3202  ;;  %3738 = vmatpush.msrb.mxu2 %v3678_v29  ;;  %v3564_v29 = vld [vmem:[#allocation4] sm:$0x3f] }
 0x38a   :  { %v3213_v55 = vsel %vm10348_vm7, %v3201_v22, %v7997_v14 }
 0x38b   :  { %3223 = vst [vmem:[#allocation5 + $0x270] sm:$0x3f] %v3213_v55  ;;  %v3673_v45 = vld [vmem:[#allocation5 + $0x158] sm:$0xff]  ;;  %v2379_v52 = vpop.f32.mrf.mxu1 }
 0x38c   :  { %3739 = vmatpush.msrb.mxu2 %v3673_v45  ;;  %2402 = vst [vmem:[#allocation3] sm:$0xff] %v2379_v52  ;;  %3206 = vrot.lane.b32.xlu2 %v3191_v62, %s5737_s20  ;;  %v2420_v41 = vld [vmem:[#allocation3 + $0x38] sm:$0x3f]  ;;  %v3565_v55 = vld [vmem:[#allocation4 + $0x8] sm:$0x3f] }
 0x38d   :  { %3208 = vrot.lane.b32.xlu0 %v3192_v51, %s5737_s20  ;;  %v2426_v13 = vmax.f32 %v2414_v19, %v2420_v41  ;;  %v3468_v19 = vld [vmem:[#allocation4 + $0x8] sm:$0x3f] }
 0x38e   :  { %v8003_v7 = vpop.permute.xlu2 %2926  ;;  %v3480_v20 = vrot.slane %v3468_v19, 4 }
 0x38f   :  { %3301 = vrot.lane.b32.xlu1 %v3293_v53, %s5734_s27  ;;  %v8006_v58 = vpop.permute.xlu0 %3111 }
 0x390   :  { %v3122_v34 = vsel %vm10339_vm13, %v7974_v42, %v8006_v58  ;;  %vm3070_vm13 = vcmask 760832  }
 0x391   :  { %v3161_v30 = vpop.permute.xlu1 %3160  ;;  %3132 = vst [vmem:[#allocation5 + $0x280] sm:$0xf0] %v3122_v34 }
 0x392   :  { %v3173_v39 = vsel %vm10347_vm11, %v3161_v30, %v7983_v12  ;;  %v3668_v40 = vld [vmem:[#allocation5 + $0x270] sm:$0xff]  ;;  %3137 = vst [vmem:[#allocation5 + $0xe8] sm:$0x3] %v3122_v34  ;;  %v3004_v30 = vld [vmem:[#allocation4 + $0x18] sm:$0x3f] }
 0x393   :  { %3740 = vmatpush.msrb.mxu2 %v3668_v40  ;;  %3183 = vst [vmem:[#allocation5 + $0xe8] sm:$0xfc] %v3173_v39  ;;  %v2382_v63 = vpop.f32.mrf.mxu1  ;;  %v2432_v48 = vld [vmem:[#allocation3] sm:$0x3f] }
 0x394   :  { %2408 = vst [vmem:[#allocation3 + $0x40] sm:$0xff] %v2382_v63  ;;  %3352 = vrot.lane.b32.xlu2 %v3344_v49, %s5735_s28  ;;  %v3093_v34 = vld [vmem:[#allocation4 + $0x20] sm:$0x3f] }
 0x395   :  { %3115 = vrot.lane.b32.xlu0 %v3106_v37, %s10341_s25  ;;  %v3105_v39 = vrot.slane %v3093_v34, 4  ;;  %v3144_v49 = vld [vmem:[#allocation4 + $0x20] sm:$0x3f] }
 0x396   :  { %v8015_v50 = vpop.permute.xlu2 %2874  ;;  %v3467_v37 = vld [vmem:[#allocation4] sm:$0x3f] }
 0x397   :  { %3117 = vrot.lane.b32.xlu1 %v3107_v21, %s10341_s25  ;;  %v3059_v43 = vpop.permute.xlu0 %3058  ;;  %v3479_v26 = vrot.slane %v3467_v37, 4 }
 0x399   :  { %v8018_v25 = vpop.permute.xlu1 %3060 }
 0x39a   :  { %v3071_v23 = vsel %vm3070_vm13, %v3059_v43, %v8018_v25  ;;  %v3663_v59 = vld [vmem:[#allocation5 + $0xe8] sm:$0xff]  ;;  %v3156_v43 = vrot.slane %v3144_v49, 6  ;;  %v2860_v49 = vld [vmem:[#allocation4 + $0x28] sm:$0x3f] }
 0x39b   :  { %3081 = vst [vmem:[#allocation5 + $0x40] sm:$0xc0] %v3071_v23  ;;  %v2438_v42 = vld [vmem:[#allocation3 + $0x40] sm:$0x3f]  ;;  %3741 = vmatpush.msrb.mxu2 %v3663_v59  ;;  %v2872_v19 = vrot.slane %v2860_v49, 2 }
 0x39c   :  { %3086 = vst [vmem:[#allocation5 + $0x280] sm:$0xf] %v3071_v23  ;;  %v2444_v18 = vmax.f32 %v2432_v48, %v2438_v42  ;;  %3166 = vrot.lane.b32.xlu2 %v3157_v9, %s10342_s1  ;;  %v3518_v9 = vld [vmem:[#allocation4] sm:$0x3f] }
 0x39d   :  { %3168 = vrot.lane.b32.xlu0 %v3158_v6, %s10342_s1  ;;  %v3519_v6 = vld [vmem:[#allocation4 + $0x8] sm:$0x3f] }
 0x39e   :  { %v2450_v38 = vmax.f32 %v2426_v13, %v2444_v18  ;;  %v8024_v8 = vpop.permute.xlu2 %2830  ;;  %v3481_v18 = vrot.slane %v3469_v17, 4 }
 0x39f   :  { %3250 = vrot.lane.b32.xlu1 %v3242_v2, %s5736_s19  ;;  %v8027_v28 = vpop.permute.xlu0 %3015  ;;  %v3530_v2 = vrot.slane %v3518_v9, 6 }
 0x3a0   :  { %v3025_v54 = vsel %vm469_vm12, %v7994_v31, %v8027_v28  ;;  %v2462_v4 = vadd.f32 %v7892_v57, %v2450_v38  ;;  %v3531_v38 = vrot.slane %v3519_v6, 6 }
 0x3a1   :  { %v2925_v0 = vpop.permute.xlu1 %2924  ;;  %3035 = vst [vmem:[#allocation5 + $0x40] sm:$0x3f] %v3025_v54 }
 0x3a2   :  { %v2936_v47 = vsel %vm10340_vm14, %v2925_v0, %v8003_v7  ;;  %v2468_v35 = vmax.f32 %v2462_v4, 0.0  ;;  %vm2840_vm14 = vcmask 891904   ;;  %v3520_v0 = vld [vmem:[#allocation4 + $0x20] sm:$0x3f] }
 0x3a3   :  { %2946 = vst [vmem:[#allocation5 + $0x1c8] sm:$0xf0] %v2936_v47  ;;  %v3658_v60 = vld [vmem:[#allocation5 + $0x280] sm:$0xff] }
 0x3a4   :  { %2951 = vst [vmem:[#allocation5 + $0x238] sm:$0x3] %v2936_v47  ;;  %3742 = vmatpush.msrb.mxu2 %v3658_v60  ;;  %3064 = vrot.lane.b32.xlu2 %v3055_v46, %s5740_s2  ;;  %v2909_v47 = vld [vmem:[#allocation4 + $0x18] sm:$0x3f]  ;;  %v2910_v46 = vld [vmem:[#allocation4 + $0x28] sm:$0x3f] }
 0x3a5   :  { %2474 = vst [vmem:[#allocation4 + $0x10] sm:$0x3f] %v2468_v35  ;;  %3066 = vrot.lane.b32.xlu0 %v3056_v44, %s5740_s2  ;;  %v3532_v44 = vrot.slane %v3520_v0, 6  ;;  %v2958_v0 = vld [vmem:[#allocation4 + $0x20] sm:$0x3f] }
 0x3a6   :  { %v2790_v24 = vpop.permute.xlu2 %2789 }
 0x3a7   :  { %3204 = vrot.lane.b32.xlu1 %v3190_v10, %s5737_s20  ;;  %v2975_v57 = vpop.permute.xlu0 %2974  ;;  %v2921_v10 = vrot.slane %v2909_v47, 4  ;;  %v2724_v47 = vld [vmem:[#allocation4 + $0x18] sm:$0x3f] }
 0x3a8   :  { %v3653_v32 = vld [vmem:[#allocation5 + $0x40] sm:$0xff] }
 0x3a9   :  { %v8038_v31 = vpop.permute.xlu1 %2976  ;;  %3743 = vmatpush.msrb.mxu2 %v3653_v32 }
 0x3aa   :  { %v2986_v22 = vsel %vm422_vm10, %v2975_v57, %v8038_v31 }
 0x3ab   :  { %2996 = vst [vmem:[#allocation5 + $0x238] sm:$0xfc] %v2986_v22  ;;  %v2959_v22 = vld [vmem:[#allocation4 + $0x18] sm:$0x3f] }
 0x3ac   :  { %3576 = vrot.lane.b32.xlu2 %v3564_v29, %s5745_s24 }
 0x3ad   :  { %3578 = vrot.lane.b32.xlu0 %v3565_v55, %s5745_s24 }
 0x3ae   :  { %v8044_v45 = vpop.permute.xlu2 %2691 }
 0x3af   :  { %3580 = vrot.lane.b32.xlu1 %v3566_v27, %s5745_s24  ;;  %v8047_v52 = vpop.permute.xlu0 %2876  ;;  %v2960_v27 = vld [vmem:[#allocation4 + $0x28] sm:$0x3f] }
 0x3b0   :  { %v2886_v62 = vsel %vm2180_vm15, %v8015_v50, %v8047_v52  ;;  %v2972_v34 = vrot.slane %v2960_v27, 6  ;;  %v2774_v27 = vld [vmem:[#allocation4 + $0x18] sm:$0x3f] }
 0x3b1   :  { %v2829_v51 = vpop.permute.xlu1 %2828  ;;  %2896 = vst [vmem:[#allocation5 + $0xd8] sm:$0xc0] %v2886_v62 }
 0x3b2   :  { %v2841_v53 = vsel %vm2840_vm14, %v2829_v51, %v8024_v8  ;;  %v3648_v3 = vld [vmem:[#allocation5 + $0x238] sm:$0xff]  ;;  %2901 = vst [vmem:[#allocation5 + $0x1c8] sm:$0xf] %v2886_v62 }
 0x3b3   :  { %3744 = vmatpush.msrb.mxu2 %v3648_v3  ;;  %2851 = vst [vmem:[#allocation5 + $0xd8] sm:$0x3f] %v2841_v53  ;;  %v3042_v53 = vld [vmem:[#allocation4 + $0x20] sm:$0x3f]  ;;  %v2971_v3 = vrot.slane %v2959_v22, 6 }
 0x3b4   :  { %3019 = vrot.lane.b32.xlu2 %v3004_v30, %s5729_s29  ;;  %v3054_v30 = vrot.slane %v3042_v53, 2  ;;  %v2775_v53 = vld [vmem:[#allocation4 + $0x28] sm:$0x3f] }
 0x3b5   :  { %3021 = vrot.lane.b32.xlu0 %v3005_v61, %s5729_s29 }
 0x3b6   :  { %v8056_v40 = vpop.permute.xlu2 %2553 }
 0x3b7   :  { %3113 = vrot.lane.b32.xlu1 %v3105_v39, %s10341_s25  ;;  %v2740_v5 = vpop.permute.xlu0 %2739  ;;  %s5746_s25 = smov 62  }
 0x3b9   :  { %v8059_v63 = vpop.permute.xlu1 %2741  ;;  %v3643_v21 = vld [vmem:[#allocation5 + $0x1c8] sm:$0xff] }
 0x3ba   :  { %v2751_v50 = vsel %vm254_vm5, %v2740_v5, %v8059_v63  ;;  %3745 = vmatpush.msrb.mxu2 %v3643_v21  ;;  %v3638_v41 = vld [vmem:[#allocation5 + $0xd8] sm:$0xff] }
 0x3bb   :  { %2761 = vst [vmem:[#allocation5 + $0x2d0] sm:$0xf0] %v2751_v50 }
 0x3bc   :  { %2766 = vst [vmem:[#allocation5 + $0x160] sm:$0x3] %v2751_v50  ;;  %3746 = vmatpush.msrb.mxu2 %v3638_v41  ;;  %3164 = vrot.lane.b32.xlu2 %v3156_v43, %s10342_s1  ;;  %s5747_s1 = smov 61   ;;  %v3003_v41 = vld [vmem:[#allocation4 + $0x20] sm:$0x3f] }
 0x3bd   :  { %3485 = vrot.lane.b32.xlu0 %v3479_v26, %s5746_s25 }
 0x3be   :  { %v8065_v48 = vpop.permute.xlu2 %2605 }
 0x3bf   :  { %3487 = vrot.lane.b32.xlu1 %v3480_v20, %s5746_s25  ;;  %v8068_v23 = vpop.permute.xlu0 %2791 }
 0x3c0   :  { %v2801_v13 = vsel %vm10343_vm8, %v2790_v24, %v8068_v23  ;;  %vm2655_vm8 = vcmask 1014784   ;;  %v2922_v24 = vrot.slane %v2910_v46, 4  ;;  %v2725_v46 = vld [vmem:[#allocation4 + $0x28] sm:$0x3f] }
 0x3c1   :  { %v2690_v59 = vpop.permute.xlu1 %2689  ;;  %2811 = vst [vmem:[#allocation5 + $0x160] sm:$0xfc] %v2801_v13 }
 0x3c2   :  { %v2701_v42 = vsel %vm10344_vm3, %v2690_v59, %v8044_v45  ;;  %vm10346_vm3 = vcmask 1022976   ;;  %v2908_v59 = vld [vmem:[#allocation4 + $0x20] sm:$0x3f] }
 0x3c3   :  { %2711 = vst [vmem:[#allocation5 + $0xa0] sm:$0xc0] %v2701_v42 }
 0x3c4   :  { %2716 = vst [vmem:[#allocation5 + $0x2d0] sm:$0xf] %v2701_v42  ;;  %3489 = vrot.lane.b32.xlu2 %v3481_v18, %s5746_s25  ;;  %v2819_v42 = vld [vmem:[#allocation4 + $0x18] sm:$0x3f]  ;;  %v2820_v18 = vld [vmem:[#allocation4 + $0x28] sm:$0x3f] }
 0x3c5   :  { %3536 = vrot.lane.b32.xlu0 %v3530_v2, %s5747_s1  ;;  %v2920_v2 = vrot.slane %v2908_v59, 4 }
 0x3c6   :  { %v8076_v16 = vpop.permute.xlu2 %3394 }
 0x3c7   :  { %3538 = vrot.lane.b32.xlu1 %v3531_v38, %s5747_s1  ;;  %v2644_v54 = vpop.permute.xlu0 %2643 }
 0x3c8   :  { %v3633_v33 = vld [vmem:[#allocation5 + $0x160] sm:$0xff] }
 0x3c9   :  { %v8079_v4 = vpop.permute.xlu1 %2645  ;;  %3747 = vmatpush.msrb.mxu2 %v3633_v33 }
 0x3ca   :  { %v2656_v60 = vsel %vm2655_vm8, %v2644_v54, %v8079_v4 }
 0x3cb   :  { %2666 = vst [vmem:[#allocation5 + $0xa0] sm:$0x3f] %v2656_v60  ;;  %v3628_v35 = vld [vmem:[#allocation5 + $0x2d0] sm:$0xff] }
 0x3cc   :  { %3748 = vmatpush.msrb.mxu2 %v3628_v35  ;;  %3540 = vrot.lane.b32.xlu2 %v3532_v44, %s5747_s1  ;;  %v2970_v35 = vrot.slane %v2958_v0, 6  ;;  %v2736_v44 = vrot.slane %v2724_v47, 4 }
 0x3cd   :  { %2930 = vrot.lane.b32.xlu0 %v2921_v10, %s10350_s13  ;;  %v2737_v10 = vrot.slane %v2725_v46, 4  ;;  %v2818_v46 = vld [vmem:[#allocation4 + $0x20] sm:$0x3f] }
 0x3ce   :  { %v8085_v57 = vpop.permute.xlu2 %3442 }
 0x3cf   :  { %2932 = vrot.lane.b32.xlu1 %v2922_v24, %s10350_s13  ;;  %v8088_v32 = vpop.permute.xlu0 %2555 }
 0x3d0   :  { %v2565_v29 = vsel %vm10349_vm1, %v8056_v40, %v8088_v32  ;;  %v2859_v40 = vld [vmem:[#allocation4 + $0x18] sm:$0x3f] }
 0x3d1   :  { %v2604_v55 = vpop.permute.xlu1 %2603  ;;  %2575 = vst [vmem:[#allocation5 + $0x220] sm:$0xf0] %v2565_v29  ;;  %v2871_v50 = vrot.slane %v2859_v40, 2 }
 0x3d2   :  { %v2616_v62 = vsel %vm10346_vm3, %v2604_v55, %v8065_v48  ;;  %v3623_v51 = vld [vmem:[#allocation5 + $0xa0] sm:$0xff]  ;;  %2580 = vst [vmem:[#allocation5 + $0x2e0] sm:$0x3] %v2565_v29 }
 0x3d3   :  { %3749 = vmatpush.msrb.mxu2 %v3623_v51  ;;  %2626 = vst [vmem:[#allocation5 + $0x2e0] sm:$0xfc] %v2616_v62 }
 0x3d4   :  { %2980 = vrot.lane.b32.xlu2 %v2971_v3, %s5728_s21 }
 0x3d5   :  { %2982 = vrot.lane.b32.xlu0 %v2972_v34, %s5728_s21  ;;  %v2858_v34 = vld [vmem:[#allocation4 + $0x20] sm:$0x3f] }
 0x3d6   :  { %v3355_v61 = vpop.permute.xlu2 %3354 }
 0x3d7   :  { %3062 = vrot.lane.b32.xlu1 %v3054_v30, %s5740_s2  ;;  %v2504_v39 = vpop.permute.xlu0 %2503  ;;  %v2786_v30 = vrot.slane %v2774_v27, 6 }
 0x3d9   :  { %v8098_v5 = vpop.permute.xlu1 %2505 }
 0x3da   :  { %v2515_v37 = vsel %vm10345_vm0, %v2504_v39, %v8098_v5  ;;  %v3618_v21 = vld [vmem:[#allocation5 + $0x2e0] sm:$0xff]  ;;  %vm10352_vm0 = vcmask 637952   ;;  %v2870_v39 = vrot.slane %v2858_v34, 2 }
 0x3db   :  { %2525 = vst [vmem:[#allocation5 + $0x20] sm:$0xc0] %v2515_v37  ;;  %3750 = vmatpush.msrb.mxu2 %v3618_v21 }
 0x3dc   :  { %2530 = vst [vmem:[#allocation5 + $0x220] sm:$0xf] %v2515_v37  ;;  %2880 = vrot.lane.b32.xlu2 %v2871_v50, %s5741_s30  ;;  %v3421_v50 = vld [vmem:[#allocation4 + $0x10] sm:$0x3f] }
 0x3dd   :  { %2882 = vrot.lane.b32.xlu0 %v2872_v19, %s5741_s30  ;;  %v3433_v59 = vrot.slane %v3421_v50, 2 }
 0x3de   :  { %v8104_v43 = vpop.permute.xlu2 %3254 }
 0x3df   :  { %3017 = vrot.lane.b32.xlu1 %v3003_v41, %s5729_s29  ;;  %v8107_v26 = vpop.permute.xlu0 %3396 }
 0x3e0   :  { %v3404_v20 = vsel %vm3400_vm2, %v8076_v16, %v8107_v26 }
 0x3e1   :  { %v3441_v17 = vpop.permute.xlu1 %3440  ;;  %3414 = vst [vmem:[#allocation5 + $0x1f8] sm:$0x3f] %v3404_v20  ;;  %v2674_v20 = vld [vmem:[#allocation4 + $0x18] sm:$0x3f] }
 0x3e2   :  { %v3450_v13 = vsel %vm3446_vm4, %v3441_v17, %v8085_v57  ;;  %v3608_v6 = vld [vmem:[#allocation5 + $0x20] sm:$0xff] }
 0x3e3   :  { %3460 = vst [vmem:[#allocation5 + $0x1f8] sm:$0xc0] %v3450_v13  ;;  %v3613_v9 = vld [vmem:[#allocation5 + $0x220] sm:$0xff] }
 0x3e4   :  { %3465 = vst [vmem:[#allocation5 + $0xc0] sm:$0xf] %v3450_v13  ;;  %3751 = vmatpush.msrb.mxu2 %v3613_v9  ;;  %2834 = vrot.lane.b32.xlu2 %v2819_v42, %s5742_s16  ;;  %v3381_v13 = vld [vmem:[#allocation4 + $0x10] sm:$0x3f] }
 0x3e5   :  { %2836 = vrot.lane.b32.xlu0 %v2820_v18, %s5742_s16 }
 0x3e6   :  { %3752 = vmatpush.msrb.mxu2 %v3608_v6  ;;  %v8116_v38 = vpop.permute.xlu2 %3206 }
 0x3e7   :  { %2928 = vrot.lane.b32.xlu1 %v2920_v2, %s10350_s13  ;;  %v8119_v54 = vpop.permute.xlu0 %3303  ;;  %v3284_v2 = vld [vmem:[#allocation4 + $0x10] sm:$0x3f] }
 0x3e9   :  { %v8121_v33 = vpop.permute.xlu1 %3305 }
 0x3ea   :  { %v3313_v60 = vsel %vm3309_vm6, %v8119_v54, %v8121_v33 }
 0x3eb   :  { %3323 = vst [vmem:[#allocation5 + $0x210] sm:$0xf0] %v3313_v60 }
 0x3ec   :  { %3328 = vst [vmem:[#allocation5 + $0xd0] sm:$0x3] %v3313_v60  ;;  %2978 = vrot.lane.b32.xlu2 %v2970_v35, %s5728_s21  ;;  %v3296_v35 = vrot.slane %v3284_v2, 4 }
 0x3ed   :  { %2745 = vrot.lane.b32.xlu0 %v2736_v44, %s5726_s15  ;;  %v3335_v44 = vld [vmem:[#allocation4 + $0x10] sm:$0x3f] }
 0x3ee   :  { %v3353_v24 = vpop.permute.xlu2 %3352 }
 0x3ef   :  { %2747 = vrot.lane.b32.xlu1 %v2737_v10, %s5726_s15  ;;  %v8129_v22 = vpop.permute.xlu0 %3356  ;;  %v3362_v29 = vsel %vm3360_vm9, %v7986_v36, %v3353_v24  ;;  %v3363_v55 = vsel %vm3360_vm9, %v3353_v24, %v3355_v61  ;;  %v2787_v36 = vrot.slane %v2775_v53, 6  ;;  %v2635_v53 = vld [vmem:[#allocation4 + $0x28] sm:$0x3f] }
 0x3f0   :  { %v3364_v62 = vsel %vm3360_vm9, %v3355_v61, %v8129_v22  ;;  %3372 = vst [vmem:[#allocation5 + $0x100] sm:$0xfc] %v3362_v29  ;;  %v3347_v29 = vrot.slane %v3335_v44, 6  ;;  %v2673_v44 = vld [vmem:[#allocation4 + $0x20] sm:$0x3f] }
 0x3f1   :  { %v8136_v51 = vpop.permute.xlu1 %3252  ;;  %3374 = vst [vmem:[#allocation5 + $0xd0] sm:$0xfc] %v3364_v62  ;;  %v2634_v62 = vld [vmem:[#allocation4 + $0x18] sm:$0x3f] }
 0x3f2   :  { %v3262_v3 = vsel %vm10352_vm0, %v8136_v51, %v8104_v43  ;;  %3373 = vst [vmem:[#allocation5 + $0x2a0] sm:$0xfc] %v3363_v55  ;;  %vm10353_vm0 = vcmask 752640  }
 0x3f3   :  { %3272 = vst [vmem:[#allocation5 + $0x150] sm:$0xc0] %v3262_v3 }
 0x3f4   :  { %3277 = vst [vmem:[#allocation5 + $0x210] sm:$0xf] %v3262_v3  ;;  %2795 = vrot.lane.b32.xlu2 %v2786_v30, %s10351_s14  ;;  %v2723_v30 = vld [vmem:[#allocation4 + $0x20] sm:$0x3f] }
 0x3f5   :  { %2797 = vrot.lane.b32.xlu0 %v2787_v36, %s10351_s14  ;;  %v2735_v50 = vrot.slane %v2723_v30, 4 }
 0x3f6   :  { %v8143_v61 = vpop.permute.xlu2 %3166 }
 0x3f7   :  { %2878 = vrot.lane.b32.xlu1 %v2870_v39, %s5741_s30  ;;  %v3393_v40 = vpop.permute.xlu0 %3392 }
 0x3f8   :  { %v3402_v49 = vsel %vm3400_vm2, %v7966_v56, %v3393_v40  ;;  %v3403_v37 = vsel %vm3400_vm2, %v3393_v40, %v8076_v16  ;;  %v2686_v56 = vrot.slane %v2674_v20, 2  ;;  %v2773_v40 = vld [vmem:[#allocation4 + $0x20] sm:$0x3f] }
 0x3f9   :  { %v3439_v21 = vpop.permute.xlu1 %3438  ;;  %3412 = vst [vmem:[#allocation5 + $0x248] sm:$0x3f] %v3402_v49 }
 0x3fa   :  { %v3448_v19 = vsel %vm3446_vm4, %v7955_v11, %v3439_v21  ;;  %v3449_v41 = vsel %vm3446_vm4, %v3439_v21, %v3441_v17  ;;  %3413 = vst [vmem:[#allocation5 + $0x50] sm:$0x3f] %v3403_v37  ;;  %v2675_v17 = vld [vmem:[#allocation4 + $0x28] sm:$0x3f]  ;;  %v3233_v21 = vld [vmem:[#allocation4 + $0x10] sm:$0x3f] }
 0x3fb   :  { %3458 = vst [vmem:[#allocation5 + $0x248] sm:$0xc0] %v3448_v19  ;;  %v2687_v47 = vrot.slane %v2675_v17, 2 }
 0x3fc   :  { %3459 = vst [vmem:[#allocation5 + $0x50] sm:$0xc0] %v3449_v41  ;;  %3398 = vrot.lane.b32.xlu2 %v3381_v13, %s5732_s0 }
 0x3fd   :  { %3463 = vst [vmem:[#allocation5 + $0x18] sm:$0xf] %v3448_v19  ;;  %3444 = vrot.lane.b32.xlu0 %v3433_v59, %s5733_s26  ;;  %v2785_v19 = vrot.slane %v2773_v40, 6  ;;  %v2538_v59 = vld [vmem:[#allocation4 + $0x18] sm:$0x3f] }
 0x3fe   :  { %3464 = vst [vmem:[#allocation5 + $0x278] sm:$0xf] %v3449_v41  ;;  %v8155_v16 = vpop.permute.xlu2 %3064  ;;  %v3245_v41 = vrot.slane %v3233_v21, 2 }
 0x3ff   :  { %2695 = vrot.lane.b32.xlu1 %v2686_v56, %s5725_s12  ;;  %v8158_v11 = vpop.permute.xlu0 %3208 }
 0x400   :  { %v3216_v9 = vsel %vm10348_vm7, %v8116_v38, %v8158_v11 }
 0x401   :  { %v3302_v42 = vpop.permute.xlu1 %3301  ;;  %3226 = vst [vmem:[#allocation5 + $0x150] sm:$0x3f] %v3216_v9  ;;  %v2539_v9 = vld [vmem:[#allocation4 + $0x28] sm:$0x3f] }
 0x402   :  { %v3311_v6 = vsel %vm3309_vm6, %v7977_v1, %v3302_v42  ;;  %v3312_v18 = vsel %vm3309_vm6, %v3302_v42, %v8119_v54  ;;  %v3684_v0 = vld [vmem:[#allocation5 + $0x248] sm:$0xff]  ;;  %v2551_v2 = vrot.slane %v2539_v9, 4 }
 0x403   :  { %3321 = vst [vmem:[#allocation5 + $0x2f0] sm:$0xf0] %v3311_v6  ;;  %3783 = vmatpush.msra.mxu0 %v3684_v0  ;;  %v3685_v60 = vld [vmem:[#allocation5 + $0x50] sm:$0xff] }
 0x404   :  { %3322 = vst [vmem:[#allocation5 + $0x80] sm:$0xf0] %v3312_v18  ;;  %3829 = vmatpush.msra.mxu1 %v3685_v60  ;;  %2697 = vrot.lane.b32.xlu2 %v2687_v47, %s5725_s12  ;;  %v2589_v60 = vld [vmem:[#allocation4 + $0x28] sm:$0x3f] }
 0x405   :  { %3326 = vst [vmem:[#allocation5 + $0x100] sm:$0x3] %v3311_v6  ;;  %2832 = vrot.lane.b32.xlu0 %v2818_v46, %s5742_s16  ;;  %v2588_v6 = vld [vmem:[#allocation4 + $0x18] sm:$0x3f] }
 0x406   :  { %3327 = vst [vmem:[#allocation5 + $0x2a0] sm:$0x3] %v3312_v18  ;;  %v8169_v1 = vpop.permute.xlu2 %3576  ;;  %v2600_v47 = vrot.slane %v2588_v6, 6 }
 0x407   :  { %3307 = vrot.lane.b32.xlu1 %v3296_v35, %s5734_s27  ;;  %v8172_v54 = vpop.permute.xlu0 %3115  ;;  %s10360_s27 = smov 92  }
 0x409   :  { %v8174_v10 = vpop.permute.xlu1 %3117 }
 0x40a   :  { %v3125_v24 = vsel %vm10353_vm0, %v8172_v54, %v8174_v10  ;;  %vm10354_vm0 = vcmask 637952  }
 0x40b   :  { %3135 = vst [vmem:[#allocation5 + $0x148] sm:$0xf0] %v3125_v24  ;;  %vm10355_vm3 = vmmov %vm10354_vm0 }
 0x40c   :  { %3140 = vst [vmem:[#allocation5 + $0x2e8] sm:$0x3] %v3125_v24  ;;  %v3679_v55 = vld [vmem:[#allocation5 + $0x100] sm:$0xff]  ;;  %3358 = vrot.lane.b32.xlu2 %v3347_v29, %s5735_s28  ;;  %v2601_v29 = vrot.slane %v2589_v60, 6  ;;  %s10361_s28 = smov 80  }
 0x40d   :  { %3784 = vmatpush.msra.mxu0 %v3679_v55  ;;  %v3680_v27 = vld [vmem:[#allocation5 + $0x2a0] sm:$0xff]  ;;  %2649 = vrot.lane.b32.xlu0 %v2634_v62, %s5743_s18 }
 0x40e   :  { %3830 = vmatpush.msra.mxu1 %v3680_v27  ;;  %v8181_v3 = vpop.permute.xlu2 %3019  ;;  %v2685_v27 = vrot.slane %v2673_v44, 2 }
 0x40f   :  { %2651 = vrot.lane.b32.xlu1 %v2635_v53, %s5743_s18  ;;  %v8184_v34 = vpop.permute.xlu0 %3168  ;;  %v3193_v53 = vld [vmem:[#allocation4 + $0x10] sm:$0x3f] }
 0x410   :  { %v3176_v36 = vsel %vm10347_vm11, %v8143_v61, %v8184_v34 }
 0x411   :  { %v3251_v39 = vpop.permute.xlu1 %3250  ;;  %3186 = vst [vmem:[#allocation5 + $0x2e8] sm:$0xfc] %v3176_v36 }
 0x412   :  { %v3260_v49 = vsel %vm10354_vm0, %v7963_v15, %v3251_v39  ;;  %v3261_v37 = vsel %vm10355_vm3, %v3251_v39, %v8136_v51  ;;  %vm3588_vm3 = vcmask 490496   ;;  %vm10356_vm0 = vcmask 752640  }
 0x413   :  { %3270 = vst [vmem:[#allocation5 + $0x1e8] sm:$0xc0] %v3260_v49 }
 0x414   :  { %3271 = vst [vmem:[#allocation5 + $0x180] sm:$0xc0] %v3261_v37  ;;  %2743 = vrot.lane.b32.xlu2 %v2735_v50, %s5726_s15 }
 0x415   :  { %3275 = vst [vmem:[#allocation5 + $0x2f0] sm:$0xf] %v3260_v49  ;;  %2793 = vrot.lane.b32.xlu0 %v2785_v19, %s10351_s14 }
 0x416   :  { %3276 = vst [vmem:[#allocation5 + $0x80] sm:$0xf] %v3261_v37  ;;  %v3165_v20 = vpop.permute.xlu2 %3164  ;;  %v2488_v37 = vld [vmem:[#allocation4 + $0x18] sm:$0x3f] }
 0x417   :  { %3256 = vrot.lane.b32.xlu1 %v3245_v41, %s5736_s19  ;;  %v3174_v15 = vsel %vm10347_vm11, %v7983_v12, %v3165_v20  ;;  %v3175_v51 = vsel %vm10347_vm11, %v3165_v20, %v8143_v61  ;;  %v8200_v13 = vpop.permute.xlu0 %3066  ;;  %v2550_v61 = vrot.slane %v2538_v59, 4  ;;  %vm10357_vm11 = vmmov %vm10356_vm0  ;;  %v2489_v41 = vld [vmem:[#allocation4 + $0x28] sm:$0x3f]  ;;  %v3567_v20 = vld [vmem:[#allocation4 + $0x18] sm:$0x3f] }
 0x418   :  { %3184 = vst [vmem:[#allocation5 + $0x1b0] sm:$0xfc] %v3174_v15  ;;  %v3074_v56 = vsel %vm3070_vm13, %v8155_v16, %v8200_v13  ;;  %v2500_v15 = vrot.slane %v2488_v37, 2  ;;  %v3045_v37 = vld [vmem:[#allocation4 + $0x10] sm:$0x3f] }
 0x419   :  { %v3205_v17 = vpop.permute.xlu1 %3204  ;;  %3185 = vst [vmem:[#allocation5 + $0x288] sm:$0xfc] %v3175_v51  ;;  %v2501_v51 = vrot.slane %v2489_v41, 2 }
 0x41a   :  { %v3214_v42 = vsel %vm10348_vm7, %v7997_v14, %v3205_v17  ;;  %3084 = vst [vmem:[#allocation5 + $0x120] sm:$0xc0] %v3074_v56  ;;  %v3215_v12 = vsel %vm10348_vm7, %v3205_v17, %v8116_v38  ;;  %vm10358_vm7 = vcmask 1045504  }
 0x41b   :  { %3089 = vst [vmem:[#allocation5 + $0x148] sm:$0xf] %v3074_v56  ;;  %vm10359_vm1 = vmmov %vm10358_vm7  ;;  %v3096_v56 = vld [vmem:[#allocation4 + $0x10] sm:$0x3f] }
 0x41c   :  { %v3674_v18 = vld [vmem:[#allocation5 + $0x2f0] sm:$0xff]  ;;  %3224 = vst [vmem:[#allocation5 + $0x1e8] sm:$0x3f] %v3214_v42  ;;  %2559 = vrot.lane.b32.xlu2 %v2550_v61, %s5724_s17  ;;  %v3147_v42 = vld [vmem:[#allocation4 + $0x10] sm:$0x3f]  ;;  %v3108_v61 = vrot.slane %v3096_v56, 4 }
 0x41d   :  { %3785 = vmatpush.msra.mxu0 %v3674_v18  ;;  %v3675_v0 = vld [vmem:[#allocation5 + $0x80] sm:$0xff]  ;;  %3225 = vst [vmem:[#allocation5 + $0x180] sm:$0x3f] %v3215_v12  ;;  %2561 = vrot.lane.b32.xlu0 %v2551_v2, %s5724_s17  ;;  %v2633_v12 = vld [vmem:[#allocation4 + $0x20] sm:$0x3f]  ;;  %v3159_v2 = vrot.slane %v3147_v42, 6 }
 0x41e   :  { %3831 = vmatpush.msra.mxu1 %v3675_v0  ;;  %v8211_v14 = vpop.permute.xlu2 %3489  ;;  %v3686_v56 = vld [vmem:[#allocation5 + $0x1f8] sm:$0xff] }
 0x41f   :  { %2609 = vrot.lane.b32.xlu1 %v2600_v47, %s5744_s22  ;;  %v3579_v38 = vpop.permute.xlu0 %3578 }
 0x420   :  { %v3589_v46 = vsel %vm3588_vm3, %v8169_v1, %v3579_v38  ;;  %v8225_v1 = vld [vmem:[%s10323_s3] sm:$0xff] }
 0x421   :  { %v8216_v35 = vpop.permute.xlu1 %3580  ;;  %3599 = vst [vmem:[#allocation5 + $0x60] sm:$0x3f] %v3589_v46  ;;  %3753 = vmatmul.f32.vlgmr.msrb.gmra.mxu2 %v8225_v1  ;;  %v3521_v46 = vld [vmem:[#allocation4 + $0x18] sm:$0x3f] }
 0x422   :  { %v3590_v24 = vsel %vm3588_vm3, %v3579_v38, %v8216_v35  ;;  %v3470_v38 = vld [vmem:[#allocation4 + $0x18] sm:$0x3f] }
 0x423   :  { %3600 = vst [vmem:[#allocation5 + $0x88] sm:$0x3f] %v3590_v24  ;;  %v3669_v55 = vld [vmem:[#allocation5 + $0x1e8] sm:$0xff] }
 0x424   :  { %3786 = vmatpush.msra.mxu0 %v3669_v55  ;;  %v3670_v62 = vld [vmem:[#allocation5 + $0x180] sm:$0xff]  ;;  %2611 = vrot.lane.b32.xlu2 %v2601_v29, %s5744_s22  ;;  %v2537_v29 = vld [vmem:[#allocation4 + $0x20] sm:$0x3f]  ;;  %v3482_v55 = vrot.slane %v3470_v38, 4 }
 0x425   :  { %3832 = vmatpush.msra.mxu1 %v3670_v62  ;;  %2693 = vrot.lane.b32.xlu0 %v2685_v27, %s5725_s12  ;;  %v3533_v27 = vrot.slane %v3521_v46, 6  ;;  %v2549_v62 = vrot.slane %v2537_v29, 4  ;;  %v3676_v38 = vld [vmem:[#allocation5 + $0x210] sm:$0xff] }
 0x426   :  { %v8227_v30 = vpop.permute.xlu2 %3540  ;;  %v3671_v46 = vld [vmem:[#allocation5 + $0x150] sm:$0xff] }
 0x427   :  { %3210 = vrot.lane.b32.xlu1 %v3193_v53, %s5737_s20  ;;  %v8231_v36 = vpop.permute.xlu0 %3021 }
 0x428   :  { %v3028_v39 = vsel %vm469_vm12, %v8181_v3, %v8231_v36  ;;  %v3698_v49 = vld [vmem:[#allocation5 + $0x60] sm:$0x3f] }
 0x429   :  { %v3114_v40 = vpop.permute.xlu1 %3113  ;;  %3038 = vst [vmem:[#allocation5 + $0x120] sm:$0x3f] %v3028_v39  ;;  %5643 = vmatpush.msk.msrb.mxu3 %vm10358_vm7, %v3698_v49  ;;  %vm3497_vm7 = vcmask 506880  }
 0x42a   :  { %v3123_v21 = vsel %vm10356_vm0, %v8006_v58, %v3114_v40  ;;  %v3124_v50 = vsel %vm10357_vm11, %v3114_v40, %v8172_v54  ;;  %v3699_v19 = vld [vmem:[#allocation5 + $0x88] sm:$0x3f]  ;;  %v2587_v40 = vld [vmem:[#allocation4 + $0x20] sm:$0x3f]  ;;  %vm10362_vm11 = vcmask 785408  }
 0x42b   :  { %3133 = vst [vmem:[#allocation5 + $0x2a8] sm:$0xf0] %v3123_v21  ;;  %5646 = vmatpush.msk.msra.mxu2 %vm10359_vm1, %v3699_v19  ;;  %vm3548_vm1 = vcmask 498688   ;;  %v2487_v19 = vld [vmem:[#allocation4 + $0x20] sm:$0x3f]  ;;  %vm10363_vm0 = vmmov %vm10362_vm11 }
 0x42c   :  { %3134 = vst [vmem:[#allocation5 + $0xc8] sm:$0xf0] %v3124_v50  ;;  %3582 = vrot.lane.b32.xlu2 %v3567_v20, %s5745_s24  ;;  %v2599_v20 = vrot.slane %v2587_v40, 6 }
 0x42d   :  { %3138 = vst [vmem:[#allocation5 + $0x1b0] sm:$0x3] %v3123_v21  ;;  %2509 = vrot.lane.b32.xlu0 %v2500_v15, %s5723_s23 }
 0x42e   :  { %3139 = vst [vmem:[#allocation5 + $0x288] sm:$0x3] %v3124_v50  ;;  %v8244_v58 = vpop.permute.xlu2 %2980 }
 0x42f   :  { %2511 = vrot.lane.b32.xlu1 %v2501_v51, %s5723_s23  ;;  %v3486_v54 = vpop.permute.xlu0 %3485  ;;  %v3057_v51 = vrot.slane %v3045_v37, 2 }
 0x431   :  { %v3488_v59 = vpop.permute.xlu1 %3487 }
 0x432   :  { %v3498_v17 = vsel %vm3497_vm7, %v3486_v54, %v3488_v59  ;;  %v3499_v9 = vsel %vm3497_vm7, %v3488_v59, %v8211_v14  ;;  %v2499_v59 = vrot.slane %v2487_v19, 2  ;;  %v2726_v19 = vld [vmem:[#allocation4 + $0x10] sm:$0x3f] }
 0x433   :  { %3508 = vst [vmem:[#allocation5 + $0x1c0] sm:$0xf0] %v3498_v17 }
 0x434   :  { %3509 = vst [vmem:[#allocation5 + $0x18] sm:$0xf0] %v3499_v9  ;;  %v3664_v6 = vld [vmem:[#allocation5 + $0x1b0] sm:$0xff]  ;;  %2647 = vrot.lane.b32.xlu2 %v2633_v12, %s5743_s18 }
 0x435   :  { %3513 = vst [vmem:[#allocation5 + $0x1f0] sm:$0x3] %v3498_v17  ;;  %3787 = vmatpush.msra.mxu0 %v3664_v6  ;;  %v3665_v18 = vld [vmem:[#allocation5 + $0x288] sm:$0xff]  ;;  %3119 = vrot.lane.b32.xlu0 %v3108_v61, %s10360_s27  ;;  %v3681_v12 = vld [vmem:[#allocation5 + $0xd0] sm:$0xff] }
 0x436   :  { %3514 = vst [vmem:[#allocation5 + $0xf0] sm:$0x3] %v3499_v9  ;;  %3833 = vmatpush.msra.mxu1 %v3665_v18  ;;  %v8252_v0 = vpop.permute.xlu2 %2880 }
 0x437   :  { %3170 = vrot.lane.b32.xlu1 %v3159_v2, %s10361_s28  ;;  %v3537_v47 = vpop.permute.xlu0 %3536  ;;  %v2911_v2 = vld [vmem:[#allocation4 + $0x10] sm:$0x3f] }
 0x439   :  { %v3539_v60 = vpop.permute.xlu1 %3538 }
 0x43a   :  { %v3549_v44 = vsel %vm3548_vm1, %v3537_v47, %v3539_v60  ;;  %v3550_v24 = vsel %vm3548_vm1, %v3539_v60, %v8227_v30  ;;  %v3688_v15 = vld [vmem:[#allocation5 + $0x1c0] sm:$0xff] }
 0x43b   :  { %3559 = vst [vmem:[#allocation5 + $0x1f0] sm:$0xfc] %v3549_v44  ;;  %v3689_v54 = vld [vmem:[#allocation5 + $0x18] sm:$0xff]  ;;  %v2961_v60 = vld [vmem:[#allocation4 + $0x10] sm:$0x3f] }
 0x43c   :  { %3560 = vst [vmem:[#allocation5 + $0xf0] sm:$0xfc] %v3550_v24  ;;  %3491 = vrot.lane.b32.xlu2 %v3482_v55, %s5746_s25  ;;  %v3006_v44 = vld [vmem:[#allocation4 + $0x10] sm:$0x3f]  ;;  %v2923_v24 = vrot.slane %v2911_v2, 4  ;;  %v3661_v55 = vld [vmem:[#allocation5 + $0x148] sm:$0xff] }
 0x43d   :  { %3542 = vrot.lane.b32.xlu0 %v3533_v27, %s5747_s1  ;;  %v2861_v27 = vld [vmem:[#allocation4 + $0x10] sm:$0x3f] }
 0x43e   :  { %v8260_v53 = vpop.permute.xlu2 %2834 }
 0x43f   :  { %2557 = vrot.lane.b32.xlu1 %v2549_v62, %s5724_s17  ;;  %v8263_v39 = vpop.permute.xlu0 %2930 }
 0x441   :  { %v8265_v49 = vpop.permute.xlu1 %2932 }
 0x442   :  { %v2939_v21 = vsel %vm10362_vm11, %v8263_v39, %v8265_v49  ;;  %v3693_v50 = vld [vmem:[#allocation5 + $0x1f0] sm:$0xff]  ;;  %vm10364_vm11 = vmmov %vm10363_vm0 }
 0x443   :  { %2949 = vst [vmem:[#allocation5 + $0x240] sm:$0xf0] %v2939_v21  ;;  %3774 = vmatpush.msrb.mxu3 %v3693_v50  ;;  %v3694_v41 = vld [vmem:[#allocation5 + $0xf0] sm:$0xff]  ;;  %v3656_v50 = vld [vmem:[#allocation5 + $0x120] sm:$0xff] }
 0x444   :  { %2954 = vst [vmem:[#allocation5 + $0x78] sm:$0x3] %v2939_v21  ;;  %3820 = vmatpush.msra.mxu2 %v3694_v41  ;;  %2607 = vrot.lane.b32.xlu2 %v2599_v20, %s5744_s22  ;;  %v2873_v41 = vrot.slane %v2861_v27, 2 }
 0x445   :  { %3775 = vmatpush.msrb.mxu3 %v3688_v15  ;;  %3068 = vrot.lane.b32.xlu0 %v3057_v51, %s5740_s2  ;;  %v2821_v51 = vld [vmem:[#allocation4 + $0x10] sm:$0x3f] }
 0x446   :  { %3821 = vmatpush.msra.mxu2 %v3689_v54  ;;  %v2979_v17 = vpop.permute.xlu2 %2978  ;;  %v2738_v54 = vrot.slane %v2726_v19, 4  ;;  %v3472_v19 = vld [vmem:[#allocation4 + $0x10] sm:$0x3f] }
 0x447   :  { %2507 = vrot.lane.b32.xlu1 %v2499_v59, %s5723_s23  ;;  %v2987_v9 = vsel %vm422_vm10, %v8038_v31, %v2979_v17  ;;  %v2988_v42 = vsel %vm422_vm10, %v2979_v17, %v8244_v58  ;;  %v8277_v6 = vpop.permute.xlu0 %2982  ;;  %v2776_v17 = vld [vmem:[#allocation4 + $0x10] sm:$0x3f] }
 0x448   :  { %3875 = vmatpush.msrb.mxu2 %v3686_v56  ;;  %2997 = vst [vmem:[#allocation5 + $0x1e0] sm:$0xfc] %v2987_v9  ;;  %v2989_v61 = vsel %vm422_vm10, %v8244_v58, %v8277_v6  ;;  %v2973_v58 = vrot.slane %v2961_v60, 6 }
 0x449   :  { %v3063_v18 = vpop.permute.xlu1 %3062  ;;  %2998 = vst [vmem:[#allocation5 + $0x198] sm:$0xfc] %v2988_v42 }
 0x44a   :  { %3876 = vmatpush.msrb.mxu2 %v3681_v12  ;;  %v3072_v47 = vsel %vm3070_vm13, %v8018_v25, %v3063_v18  ;;  %v3073_v31 = vsel %vm3070_vm13, %v3063_v18, %v8155_v16  ;;  %2999 = vst [vmem:[#allocation5 + $0x78] sm:$0xfc] %v2989_v61  ;;  %v3666_v25 = vld [vmem:[#allocation5 + $0x2e8] sm:$0xff]  ;;  %v2676_v12 = vld [vmem:[#allocation4 + $0x10] sm:$0x3f] }
 0x44b   :  { %3082 = vst [vmem:[#allocation5 + $0x1d0] sm:$0xc0] %v3072_v47 }
 0x44c   :  { %3877 = vmatpush.msrb.mxu2 %v3676_v38  ;;  %3083 = vst [vmem:[#allocation5 + $0x178] sm:$0xc0] %v3073_v31  ;;  %3023 = vrot.lane.b32.xlu2 %v3006_v44, %s5729_s29  ;;  %v2688_v38 = vrot.slane %v2676_v12, 2 }
 0x44d   :  { %3087 = vst [vmem:[#allocation5 + $0x2a8] sm:$0xf] %v3072_v47  ;;  %2934 = vrot.lane.b32.xlu0 %v2923_v24, %s10350_s13  ;;  %v2788_v47 = vrot.slane %v2776_v17, 6 }
 0x44e   :  { %3878 = vmatpush.msrb.mxu2 %v3671_v46  ;;  %3088 = vst [vmem:[#allocation5 + $0xc8] sm:$0xf] %v3073_v31  ;;  %v8288_v16 = vpop.permute.xlu2 %2795 }
 0x44f   :  { %2984 = vrot.lane.b32.xlu1 %v2973_v58, %s5728_s21  ;;  %v8291_v29 = vpop.permute.xlu0 %2882  ;;  %v3471_v58 = vld [vmem:[#allocation4 + $0x28] sm:$0x3f] }
 0x450   :  { %3879 = vmatpush.msrb.mxu2 %v3666_v25  ;;  %v2889_v62 = vsel %vm2180_vm15, %v8252_v0, %v8291_v29 }
 0x451   :  { %v3018_v40 = vpop.permute.xlu1 %3017  ;;  %2899 = vst [vmem:[#allocation5 + $0x2b0] sm:$0xc0] %v2889_v62  ;;  %v3651_v20 = vld [vmem:[#allocation5 + $0x78] sm:$0xff] }
 0x452   :  { %3880 = vmatpush.msrb.mxu2 %v3661_v55  ;;  %v3026_v37 = vsel %vm469_vm12, %v8027_v28, %v3018_v40  ;;  %v3027_v21 = vsel %vm469_vm12, %v3018_v40, %v8181_v3  ;;  %2904 = vst [vmem:[#allocation5 + $0x240] sm:$0xf] %v2889_v62  ;;  %v3569_v55 = vld [vmem:[#allocation4 + $0x10] sm:$0x3f]  ;;  %v3483_v40 = vrot.slane %v3471_v58, 4 }
 0x453   :  { %3036 = vst [vmem:[#allocation5 + $0x1d0] sm:$0x3f] %v3026_v37  ;;  %v2636_v62 = vld [vmem:[#allocation4 + $0x10] sm:$0x3f] }
 0x454   :  { %3881 = vmatpush.msrb.mxu2 %v3656_v50  ;;  %3037 = vst [vmem:[#allocation5 + $0x178] sm:$0x3f] %v3027_v21  ;;  %v3659_v15 = vld [vmem:[#allocation5 + $0x2a8] sm:$0xff]  ;;  %2884 = vrot.lane.b32.xlu2 %v2873_v41, %s5741_s30 }
 0x455   :  { %3788 = vmatpush.msra.mxu0 %v3659_v15  ;;  %v3660_v59 = vld [vmem:[#allocation5 + $0xc8] sm:$0xff]  ;;  %2838 = vrot.lane.b32.xlu0 %v2821_v51, %s5742_s16  ;;  %v3522_v15 = vld [vmem:[#allocation4 + $0x28] sm:$0x3f] }
 0x456   :  { %3882 = vmatpush.msrb.mxu2 %v3651_v20  ;;  %3834 = vmatpush.msra.mxu1 %v3660_v59  ;;  %v3399_v28 = vpop.permute.xlu2 %3398  ;;  %v3523_v59 = vld [vmem:[#allocation4 + $0x10] sm:$0x3f] }
 0x457   :  { %2749 = vrot.lane.b32.xlu1 %v2738_v54, %s5726_s15  ;;  %v3405_v3 = vsel %vm3400_vm2, %v8107_v26, %v3399_v28  ;;  %v8305_v56 = vpop.permute.xlu0 %2836  ;;  %vm10365_vm2 = vcmask 900096   ;;  %v3484_v28 = vrot.slane %v3472_v19, 4 }
 0x458   :  { %3415 = vst [vmem:[#allocation5 + $0x28] sm:$0x3f] %v3405_v3  ;;  %v2844_v9 = vsel %vm2840_vm14, %v8260_v53, %v8305_v56  ;;  %v3535_v3 = vrot.slane %v3523_v59, 6 }
 0x459   :  { %v2929_v42 = vpop.permute.xlu1 %2928  ;;  %2854 = vst [vmem:[#allocation5 + $0x2b0] sm:$0x3f] %v2844_v9  ;;  %v3646_v2 = vld [vmem:[#allocation5 + $0x240] sm:$0xff] }
 0x45a   :  { %v2937_v61 = vsel %vm10363_vm0, %v8003_v7, %v2929_v42  ;;  %v2938_v18 = vsel %vm10364_vm11, %v2929_v42, %v8263_v39  ;;  %3883 = vmatpush.msrb.mxu2 %v3646_v2  ;;  %v3654_v26 = vld [vmem:[#allocation5 + $0x1d0] sm:$0xff]  ;;  %v3568_v7 = vld [vmem:[#allocation4 + $0x28] sm:$0x3f]  ;;  %v2590_v2 = vld [vmem:[#allocation4 + $0x10] sm:$0x3f]  ;;  %vm10369_vm0 = vcmask 637952  }
 0x45b   :  { %2947 = vst [vmem:[#allocation5 + $0xa8] sm:$0xf0] %v2937_v61  ;;  %3789 = vmatpush.msra.mxu0 %v3654_v26  ;;  %v3655_v31 = vld [vmem:[#allocation5 + $0x178] sm:$0xff]  ;;  %v2490_v26 = vld [vmem:[#allocation4 + $0x10] sm:$0x3f]  ;;  %vm10370_vm11 = vcmask 1031168  }
 0x45c   :  { %2948 = vst [vmem:[#allocation5 + $0x268] sm:$0xf0] %v2938_v18  ;;  %3835 = vmatpush.msra.mxu1 %v3655_v31  ;;  %2799 = vrot.lane.b32.xlu2 %v2788_v47, %s10351_s14 }
 0x45d   :  { %2952 = vst [vmem:[#allocation5 + $0x1e0] sm:$0x3] %v2937_v61  ;;  %2699 = vrot.lane.b32.xlu0 %v2688_v38, %s5725_s12  ;;  %v2602_v38 = vrot.slane %v2590_v2, 6 }
 0x45e   :  { %2953 = vst [vmem:[#allocation5 + $0x198] sm:$0x3] %v2938_v18  ;;  %v8316_v60 = vpop.permute.xlu2 %2697 }
 0x45f   :  { %3584 = vrot.lane.b32.xlu1 %v3568_v7, %s5745_s24  ;;  %v2746_v39 = vpop.permute.xlu0 %2745  ;;  %v2502_v7 = vrot.slane %v2490_v26, 2 }
 0x460   :  { %v3641_v46 = vld [vmem:[#allocation5 + $0x2b0] sm:$0xff] }
 0x461   :  { %v8319_v44 = vpop.permute.xlu1 %2747  ;;  %3884 = vmatpush.msrb.mxu2 %v3641_v46 }
 0x462   :  { %v2754_v24 = vsel %vm254_vm5, %v2746_v39, %v8319_v44 }
 0x463   :  { %2764 = vst [vmem:[#allocation5 + $0x48] sm:$0xf0] %v2754_v24 }
 0x464   :  { %2769 = vst [vmem:[#allocation5 + $0x130] sm:$0x3] %v2754_v24  ;;  %v3649_v25 = vld [vmem:[#allocation5 + $0x1e0] sm:$0xff]  ;;  %3586 = vrot.lane.b32.xlu2 %v3569_v55, %s5745_s24 }
 0x465   :  { %3790 = vmatpush.msra.mxu0 %v3649_v25  ;;  %v3650_v27 = vld [vmem:[#allocation5 + $0x198] sm:$0xff]  ;;  %2653 = vrot.lane.b32.xlu0 %v2636_v62, %s5743_s18 }
 0x466   :  { %3836 = vmatpush.msra.mxu1 %v3650_v27  ;;  %v3359_v37 = vpop.permute.xlu2 %3358 }
 0x467   :  { %3493 = vrot.lane.b32.xlu1 %v3483_v40, %s5746_s25  ;;  %v8326_v21 = vpop.permute.xlu0 %2797  ;;  %v3365_v50 = vsel %vm3360_vm9, %v8129_v22, %v3359_v37  ;;  %v3534_v22 = vrot.slane %v3522_v15, 6  ;;  %vm10366_vm9 = vcmask 916480  }
 0x468   :  { %v2804_v41 = vsel %vm10365_vm2, %v8288_v16, %v8326_v21  ;;  %3375 = vst [vmem:[#allocation5 + $0x8] sm:$0xfc] %v3365_v50 }
 0x469   :  { %v2879_v20 = vpop.permute.xlu1 %2878  ;;  %2814 = vst [vmem:[#allocation5 + $0x130] sm:$0xfc] %v2804_v41 }
 0x46a   :  { %v2887_v51 = vsel %vm2180_vm15, %v8047_v52, %v2879_v20  ;;  %v2888_v54 = vsel %vm2180_vm15, %v2879_v20, %v8252_v0  ;;  %v2540_v0 = vld [vmem:[#allocation4 + $0x10] sm:$0x3f] }
 0x46b   :  { %2897 = vst [vmem:[#allocation5 + $0x1a8] sm:$0xc0] %v2887_v51  ;;  %v2552_v47 = vrot.slane %v2540_v0, 4  ;;  %v8394_v0 = vld [vmem:[%s10323_s3 + $0x8] sm:$0xff] }
 0x46c   :  { %2898 = vst [vmem:[#allocation5 + $0x1d8] sm:$0xc0] %v2888_v54  ;;  %3495 = vrot.lane.b32.xlu2 %v3484_v28, %s5746_s25 }
 0x46d   :  { %2902 = vst [vmem:[#allocation5 + $0xa8] sm:$0xf] %v2887_v51  ;;  %3544 = vrot.lane.b32.xlu0 %v3534_v22, %s5747_s1 }
 0x46e   :  { %2903 = vst [vmem:[#allocation5 + $0x268] sm:$0xf] %v2888_v54  ;;  %v2744_v17 = vpop.permute.xlu2 %2743 }
 0x46f   :  { %3546 = vrot.lane.b32.xlu1 %v3535_v3, %s5747_s1  ;;  %v3445_v9 = vpop.permute.xlu0 %3444  ;;  %v2752_v52 = vsel %vm254_vm5, %v8059_v63, %v2744_v17  ;;  %v2753_v12 = vsel %vm254_vm5, %v2744_v17, %v2746_v39 }
 0x470   :  { %v3451_v42 = vsel %vm3446_vm4, %v8085_v57, %v3445_v9  ;;  %2762 = vst [vmem:[#allocation5 + $0x298] sm:$0xf0] %v2752_v52  ;;  %v3636_v61 = vld [vmem:[#allocation5 + $0x130] sm:$0xff]  ;;  %vm10367_vm4 = vmmov %vm10365_vm2 }
 0x471   :  { %v8345_v18 = vpop.permute.xlu1 %2695  ;;  %3461 = vst [vmem:[#allocation5 + $0x28] sm:$0xc0] %v3451_v42  ;;  %3885 = vmatpush.msrb.mxu2 %v3636_v61 }
 0x472   :  { %3466 = vst [vmem:[#allocation5 + $0x170] sm:$0xf] %v3451_v42  ;;  %v2704_v63 = vsel %vm10366_vm9, %v8345_v18, %v8316_v60  ;;  %vm10372_vm9 = vcmask 1022976  }
 0x473   :  { %2763 = vst [vmem:[#allocation5 + $0x2c8] sm:$0xf0] %v2753_v12 }
 0x474   :  { %v3644_v31 = vld [vmem:[#allocation5 + $0xa8] sm:$0xff]  ;;  %2767 = vst [vmem:[#allocation5] sm:$0x3] %v2752_v52  ;;  %2563 = vrot.lane.b32.xlu2 %v2552_v47, %s5724_s17 }
 0x475   :  { %3791 = vmatpush.msra.mxu0 %v3644_v31  ;;  %v3645_v57 = vld [vmem:[#allocation5 + $0x268] sm:$0xff]  ;;  %2768 = vst [vmem:[#allocation5 + $0x108] sm:$0x3] %v2753_v12  ;;  %2613 = vrot.lane.b32.xlu0 %v2602_v38, %s5744_s22  ;;  %s5748_s22 = smov [#allocation9]  }
 0x476   :  { %3837 = vmatpush.msra.mxu1 %v3645_v57  ;;  %2714 = vst [vmem:[#allocation5 + $0x68] sm:$0xc0] %v2704_v63  ;;  %v8352_v39 = vpop.permute.xlu2 %2559  ;;  %s5602_s24 = sshll.u32 %s5748_s22, 4  ;;  %s5603_s24 = int_to_ptr.vmem [resolvable:$true] %s5602_s24 }
 0x477   :  { %2513 = vrot.lane.b32.xlu1 %v2502_v7, %s5723_s23  ;;  %2719 = vst [vmem:[#allocation5 + $0x48] sm:$0xf] %v2704_v63  ;;  %v2833_v46 = vpop.permute.xlu0 %2832 }
 0x478   :  { %v2842_v24 = vsel %vm2840_vm14, %v8024_v8, %v2833_v46  ;;  %v2843_v58 = vsel %vm2840_vm14, %v2833_v46, %v8260_v53 }
 0x479   :  { %v3308_v25 = vpop.permute.xlu1 %3307  ;;  %2852 = vst [vmem:[#allocation5 + $0x1a8] sm:$0x3f] %v2842_v24 }
 0x47a   :  { %v3314_v55 = vsel %vm3309_vm6, %v8121_v33, %v3308_v25  ;;  %2853 = vst [vmem:[#allocation5 + $0x1d8] sm:$0x3f] %v2843_v58  ;;  %vm10368_vm6 = vmmov %vm10365_vm2  ;;  %vm10371_vm2 = vcmask 1045504  }
 0x47b   :  { %3324 = vst [vmem:[#allocation5 + $0x2b8] sm:$0xf0] %v3314_v55 }
 0x47c   :  { %3329 = vst [vmem:[#allocation5 + $0x8] sm:$0x3] %v3314_v55 }
 0x47e   :  { %v3631_v27 = vld [vmem:[#allocation5 + $0x48] sm:$0xff]  ;;  %v8361_v62 = vpop.permute.xlu2 %2611 }
 0x47f   :  { %3886 = vmatpush.msrb.mxu2 %v3631_v27  ;;  %v2650_v40 = vpop.permute.xlu0 %2649 }
 0x480   :  { %v3639_v37 = vld [vmem:[#allocation5 + $0x1a8] sm:$0xff] }
 0x481   :  { %v8363_v50 = vpop.permute.xlu1 %2651  ;;  %3792 = vmatpush.msra.mxu0 %v3639_v37  ;;  %v3640_v8 = vld [vmem:[#allocation5 + $0x1d8] sm:$0xff] }
 0x482   :  { %v2659_v53 = vsel %vm2655_vm8, %v2650_v40, %v8363_v50  ;;  %3838 = vmatpush.msra.mxu1 %v3640_v8 }
 0x483   :  { %2669 = vst [vmem:[#allocation5 + $0x68] sm:$0x3f] %v2659_v53 }
 0x486   :  { %v8367_v19 = vpop.permute.xlu2 %3582 }
 0x487   :  { %v2794_v33 = vpop.permute.xlu0 %2793  ;;  %v3591_v41 = vsel %vm3588_vm3, %v8216_v35, %v8367_v19 }
 0x488   :  { %v2802_v20 = vsel %vm10367_vm4, %v8068_v23, %v2794_v33  ;;  %v2803_v15 = vsel %vm10368_vm6, %v2794_v33, %v8288_v16  ;;  %3601 = vst [vmem:[#allocation5 + $0x218] sm:$0x3f] %v3591_v41  ;;  %vm3715_vm4 = vcmask 179200   ;;  %vm10373_vm6 = vcmask 916480  }
 0x489   :  { %v3257_v51 = vpop.permute.xlu1 %3256  ;;  %2812 = vst [vmem:[#allocation5] sm:$0xfc] %v2802_v20  ;;  %5644 = vmatmul.msk.f32.vlgmr.msrb.gmra.mxu3 %vm3715_vm4, %v8394_v0 }
 0x48a   :  { %v3263_v54 = vsel %vm10369_vm0, %v8104_v43, %v3257_v51  ;;  %v3626_v59 = vld [vmem:[#allocation5 + $0x68] sm:$0xff]  ;;  %2813 = vst [vmem:[#allocation5 + $0x108] sm:$0xfc] %v2803_v15  ;;  %vm10374_vm0 = vmmov %vm10373_vm6 }
 0x48b   :  { %3887 = vmatpush.msrb.mxu2 %v3626_v59  ;;  %3273 = vst [vmem:[#allocation5 + $0x98] sm:$0xc0] %v3263_v54 }
 0x48c   :  { %3278 = vst [vmem:[#allocation5 + $0x2b8] sm:$0xf] %v3263_v54 }
 0x48e   :  { %v2648_v28 = vpop.permute.xlu2 %2647 }
 0x48f   :  { %v2657_v35 = vsel %vm2655_vm8, %v8079_v4, %v2648_v28  ;;  %v2658_v23 = vsel %vm2655_vm8, %v2648_v28, %v2650_v40  ;;  %v8381_v22 = vpop.permute.xlu0 %2561  ;;  %v3700_v16 = vld [vmem:[#allocation5 + $0x218] sm:$0x3f] }
 0x490   :  { %2667 = vst [vmem:[#allocation5 + $0x1b8] sm:$0x3f] %v2657_v35  ;;  %v2568_v3 = vsel %vm10370_vm11, %v8352_v39, %v8381_v22  ;;  %v3634_v43 = vld [vmem:[#allocation5] sm:$0xff]  ;;  %5649 = vmatpush.msk.msra.mxu3 %vm10371_vm2, %v3700_v16  ;;  %vm10375_vm11 = vcmask 646144   ;;  %vm10376_vm2 = vmmov %vm10372_vm9 }
 0x491   :  { %v2610_v17 = vpop.permute.xlu1 %2609  ;;  %2668 = vst [vmem:[#allocation5 + $0xe0] sm:$0x3f] %v2658_v23  ;;  %3793 = vmatpush.msra.mxu0 %v3634_v43  ;;  %v3635_v9 = vld [vmem:[#allocation5 + $0x108] sm:$0xff] }
 0x492   :  { %v2619_v4 = vsel %vm10372_vm9, %v2610_v17, %v8361_v62  ;;  %2578 = vst [vmem:[#allocation5 + $0x138] sm:$0xf0] %v2568_v3  ;;  %3839 = vmatpush.msra.mxu1 %v3635_v9  ;;  %vm10377_vm9 = vmmov %vm10376_vm2 }
 0x493   :  { %2583 = vst [vmem:[#allocation5 + $0x110] sm:$0x3] %v2568_v3 }
 0x494   :  { %2629 = vst [vmem:[#allocation5 + $0x110] sm:$0xfc] %v2619_v4 }
 0x496   :  { %v8389_v52 = vpop.permute.xlu2 %3491 }
 0x497   :  { %v3500_v42 = vsel %vm3497_vm7, %v8211_v14, %v8389_v52  ;;  %v2694_v12 = vpop.permute.xlu0 %2693 }
 0x498   :  { %3510 = vst [vmem:[#allocation5 + $0x278] sm:$0xf0] %v3500_v42  ;;  %v2702_v61 = vsel %vm10373_vm6, %v8044_v45, %v2694_v12  ;;  %v2703_v2 = vsel %vm10374_vm0, %v2694_v12, %v8345_v18  ;;  %v8410_v45 = vld [vmem:[%s10323_s3 + $0x10] sm:$0xff]  ;;  %v8415_v18 = vld [vmem:[%s10323_s3 + $0x18] sm:$0xff]  ;;  %vm10378_vm6 = vcmask 1039360   ;;  %vm10379_vm0 = vcmask 752640  }
 0x499   :  { %v3211_v26 = vpop.permute.xlu1 %3210  ;;  %3515 = vst [vmem:[#allocation5 + $0x190] sm:$0x3] %v3500_v42  ;;  %3756 = vmatmul.f32.gmra.mxu2 %v8410_v45  ;;  %5645 = vmatmul.msk.f32.gmra.mxu3 %vm3715_vm4, %v8415_v18 }
 0x49a   :  { %2712 = vst [vmem:[#allocation5 + $0x1b8] sm:$0xc0] %v2702_v61  ;;  %v3217_v47 = vsel %vm10375_vm11, %v8158_v11, %v3211_v26  ;;  %vm10380_vm11 = vcmask 654336  }
 0x49b   :  { %2713 = vst [vmem:[#allocation5 + $0xe0] sm:$0xc0] %v2703_v2  ;;  %v3621_v63 = vld [vmem:[#allocation5 + $0x110] sm:$0xff] }
 0x49c   :  { %2717 = vst [vmem:[#allocation5 + $0x298] sm:$0xf] %v2702_v61  ;;  %3888 = vmatpush.msrb.mxu2 %v3621_v63  ;;  %v3703_v63 = vld [vmem:[%s10324_s4] sm:$0xff] }
 0x49d   :  { %2718 = vst [vmem:[#allocation5 + $0x2c8] sm:$0xf] %v2703_v2  ;;  %3707 = vperm.xlu2 %5688, %v3703_v63  }
 0x49e   :  { %3227 = vst [vmem:[#allocation5 + $0x98] sm:$0x3f] %v3217_v47  ;;  %v2608_v14 = vpop.permute.xlu2 %2607 }
 0x49f   :  { %v2617_v31 = vsel %vm10376_vm2, %v8065_v48, %v2608_v14  ;;  %v2618_v11 = vsel %vm10377_vm9, %v2608_v14, %v2610_v17  ;;  %v2510_v38 = vpop.permute.xlu0 %2509  ;;  %vm10384_vm9 = vmmov %vm10378_vm6  ;;  %v3690_v23 = vld [vmem:[#allocation5 + $0x278] sm:$0xff]  ;;  %v3682_v14 = vld [vmem:[#allocation5 + $0x8] sm:$0xff] }
 0x4a0   :  { %2627 = vst [vmem:[#allocation5 + $0x2d8] sm:$0xfc] %v2617_v31  ;;  %v3677_v31 = vld [vmem:[#allocation5 + $0x2b8] sm:$0xff] }
 0x4a1   :  { %v8423_v57 = vpop.permute.xlu1 %2511  ;;  %2628 = vst [vmem:[#allocation5 + $0x38] sm:$0xfc] %v2618_v11  ;;  %v3624_v24 = vld [vmem:[#allocation5 + $0x1b8] sm:$0xff]  ;;  %5647 = vmatmul.msk.f32.vlgmr.msra.gmra.mxu2 %vm3715_vm4, %v8394_v0 }
 0x4a2   :  { %v2518_v7 = vsel %vm10378_vm6, %v2510_v38, %v8423_v57  ;;  %v3625_v58 = vld [vmem:[#allocation5 + $0xe0] sm:$0xff] }
 0x4a3   :  { %2528 = vst [vmem:[#allocation5 + $0xf8] sm:$0xc0] %v2518_v7  ;;  %v3629_v46 = vld [vmem:[#allocation5 + $0x298] sm:$0xff] }
 0x4a4   :  { %2533 = vst [vmem:[#allocation5 + $0x138] sm:$0xf] %v2518_v7  ;;  %3794 = vmatpush.msra.mxu0 %v3629_v46  ;;  %v3630_v48 = vld [vmem:[#allocation5 + $0x2c8] sm:$0xff] }
 0x4a5   :  { %3840 = vmatpush.msra.mxu1 %v3630_v48 }
 0x4a6   :  { %3795 = vmatpush.msra.mxu0 %v3624_v24  ;;  %v3024_v25 = vpop.permute.xlu2 %3023 }
 0x4a7   :  { %3841 = vmatpush.msra.mxu1 %v3625_v58  ;;  %v3029_v55 = vsel %vm469_vm12, %v8231_v36, %v3024_v25  ;;  %v3120_v27 = vpop.permute.xlu0 %3119  ;;  %vm10381_vm12 = vcmask 1031168  }
 0x4a8   :  { %3039 = vst [vmem:[#allocation5 + $0x250] sm:$0x3f] %v3029_v55  ;;  %v3126_v40 = vsel %vm10379_vm0, %v8174_v10, %v3120_v27  ;;  %vm10382_vm2 = vmmov %vm10381_vm12 }
 0x4a9   :  { %v3171_v37 = vpop.permute.xlu1 %3170  ;;  %3136 = vst [vmem:[#allocation5 + $0x188] sm:$0xf0] %v3126_v40  ;;  %5648 = vmatmul.msk.f32.gmra.mxu2 %vm3715_vm4, %v8415_v18 }
 0x4aa   :  { %v3177_v8 = vsel %vm10380_vm11, %v8184_v34, %v3171_v37  ;;  %3141 = vst [vmem:[#allocation5 + $0x58] sm:$0x3] %v3126_v40  ;;  %v3611_v33 = vld [vmem:[#allocation5 + $0xf8] sm:$0xff] }
 0x4ab   :  { %v3616_v53 = vld [vmem:[#allocation5 + $0x138] sm:$0xff]  ;;  %3187 = vst [vmem:[#allocation5 + $0x58] sm:$0xfc] %v3177_v8 }
 0x4ac   :  { %3889 = vmatpush.msrb.mxu2 %v3616_v53 }
 0x4ae   :  { %3890 = vmatpush.msrb.mxu2 %v3611_v33  ;;  %v2885_v36 = vpop.permute.xlu2 %2884 }
 0x4af   :  { %v2890_v41 = vsel %vm2180_vm15, %v8291_v29, %v2885_v36  ;;  %v8437_v20 = vpop.permute.xlu0 %3542  ;;  %vm10383_vm15 = vcmask 900096  }
 0x4b0   :  { %2900 = vst [vmem:[#allocation5 + $0x168] sm:$0xc0] %v2890_v41  ;;  %v3551_v10 = vsel %vm3548_vm1, %v8227_v30, %v8437_v20 }
 0x4b1   :  { %v2558_v34 = vpop.permute.xlu1 %2557  ;;  %2905 = vst [vmem:[#allocation5 + $0x140] sm:$0xf] %v2890_v41  ;;  %3891 = vmatmul.f32.vlgmr.msrb.gmra.mxu2 %v8225_v1 }
 0x4b2   :  { %v2566_v15 = vsel %vm10381_vm12, %v8088_v32, %v2558_v34  ;;  %v2567_v51 = vsel %vm10382_vm2, %v2558_v34, %v8352_v39  ;;  %3561 = vst [vmem:[#allocation5 + $0x190] sm:$0xfc] %v3551_v10  ;;  %v3667_v46 = vld [vmem:[#allocation5 + $0x58] sm:$0xff] }
 0x4b3   :  { %2576 = vst [vmem:[#allocation5 + $0x90] sm:$0xf0] %v2566_v15 }
 0x4b4   :  { %2577 = vst [vmem:[#allocation5 + $0x200] sm:$0xf0] %v2567_v51 }
 0x4b5   :  { %2581 = vst [vmem:[#allocation5 + $0x2d8] sm:$0x3] %v2566_v15 }
 0x4b6   :  { %2582 = vst [vmem:[#allocation5 + $0x38] sm:$0x3] %v2567_v51  ;;  %v2800_v29 = vpop.permute.xlu2 %2799 }
 0x4b7   :  { %v2805_v54 = vsel %vm10383_vm15, %v8326_v21, %v2800_v29  ;;  %v3069_v59 = vpop.permute.xlu0 %3068 }
 0x4b8   :  { %2815 = vst [vmem:[#allocation5 + $0x208] sm:$0xfc] %v2805_v54  ;;  %v3075_v30 = vsel %vm3070_vm13, %v8200_v13, %v3069_v59  ;;  %vm10385_vm13 = vcmask 785408  }
 0x4b9   :  { %v2508_v32 = vpop.permute.xlu1 %2507  ;;  %3085 = vst [vmem:[#allocation5 + $0x250] sm:$0xc0] %v3075_v30  ;;  %v3695_v28 = vld [vmem:[#allocation5 + $0x190] sm:$0xff]  ;;  %3894 = vmatmul.f32.gmra.mxu2 %v8410_v45 }
 0x4ba   :  { %v2516_v39 = vsel %vm10384_vm9, %v8098_v5, %v2508_v32  ;;  %v2517_v35 = vsel %vm10378_vm6, %v2508_v32, %v2510_v38  ;;  %3090 = vst [vmem:[#allocation5 + $0x188] sm:$0xf] %v3075_v30  ;;  %3866 = vmatpush.msra.mxu3 %v3695_v28 }
 0x4bb   :  { %2526 = vst [vmem:[#allocation5 + $0x118] sm:$0xc0] %v2516_v39 }
 0x4bc   :  { %2527 = vst [vmem:[#allocation5 + $0x228] sm:$0xc0] %v2517_v35  ;;  %v3619_v21 = vld [vmem:[#allocation5 + $0x2d8] sm:$0xff]  ;;  %3867 = vmatpush.msra.mxu3 %v3690_v23 }
 0x4bd   :  { %2531 = vst [vmem:[#allocation5 + $0x90] sm:$0xf] %v2516_v39  ;;  %3796 = vmatpush.msra.mxu0 %v3619_v21  ;;  %v3620_v16 = vld [vmem:[#allocation5 + $0x38] sm:$0xff]  ;;  %5650 = vmatmul.msk.f32.vlgmr.msra.gmra.mxu3 %vm3715_vm4, %v8394_v0  ;;  %v3754_v21 = vpop.f32.mrf.mxu2 }
 0x4be   :  { %2532 = vst [vmem:[#allocation5 + $0x200] sm:$0xf] %v2517_v35  ;;  %3842 = vmatpush.msra.mxu1 %v3620_v16  ;;  %v3587_v13 = vpop.permute.xlu2 %3586 }
 0x4bf   :  { %v2935_v3 = vpop.permute.xlu0 %2934 }
 0x4c0   :  { %v2940_v5 = vsel %vm10385_vm13, %v8265_v49, %v2935_v3  ;;  %v3687_v49 = vld [vmem:[#allocation5 + $0x28] sm:$0xff]  ;;  %v3657_v25 = vld [vmem:[#allocation5 + $0x250] sm:$0xff] }
 0x4c1   :  { %v2985_v43 = vpop.permute.xlu1 %2984  ;;  %2950 = vst [vmem:[#allocation5 + $0x140] sm:$0xf0] %v2940_v5  ;;  %v3662_v58 = vld [vmem:[#allocation5 + $0x188] sm:$0xff] }
 0x4c2   :  { %v2990_v17 = vsel %vm422_vm10, %v8277_v6, %v2985_v43  ;;  %2955 = vst [vmem:[#allocation5 + $0x1a0] sm:$0x3] %v2940_v5  ;;  %v3609_v42 = vld [vmem:[#allocation5 + $0x118] sm:$0xff]  ;;  %vm10386_vm10 = vmmov %vm10382_vm2 }
 0x4c3   :  { %3000 = vst [vmem:[#allocation5 + $0x1a0] sm:$0xfc] %v2990_v17  ;;  %v3610_v61 = vld [vmem:[#allocation5 + $0x228] sm:$0xff] }
 0x4c4   :  { %v3614_v9 = vld [vmem:[#allocation5 + $0x90] sm:$0xff] }
 0x4c5   :  { %3797 = vmatpush.msra.mxu0 %v3614_v9  ;;  %v3615_v4 = vld [vmem:[#allocation5 + $0x200] sm:$0xff]  ;;  %5651 = vmatmul.msk.f32.gmra.mxu3 %vm3715_vm4, %v8415_v18 }
 0x4c6   :  { %3843 = vmatpush.msra.mxu1 %v3615_v4  ;;  %v3496_v12 = vpop.permute.xlu2 %3495 }
 0x4c7   :  { %3798 = vmatpush.msra.mxu0 %v3609_v42  ;;  %v2839_v2 = vpop.permute.xlu0 %2838 }
 0x4c8   :  { %3844 = vmatpush.msra.mxu1 %v3610_v61  ;;  %3799 = vmatmul.f32.vlgmr.msra.gmra.mxu0 %v8225_v1  ;;  %v2845_v6 = vsel %vm2840_vm14, %v8305_v56, %v2839_v2  ;;  %v3672_v56 = vld [vmem:[#allocation5 + $0x98] sm:$0xff]  ;;  %v3647_v27 = vld [vmem:[#allocation5 + $0x140] sm:$0xff]  ;;  %vm10388_vm14 = vcmask 1045504  }
 0x4c9   :  { %v2750_v26 = vpop.permute.xlu1 %2749  ;;  %3845 = vmatmul.f32.vlgmr.msra.gmra.mxu1 %v8225_v1  ;;  %3921 = vmatpush.msrb.mxu0 %v3687_v49  ;;  %2855 = vst [vmem:[#allocation5 + $0x168] sm:$0x3f] %v2845_v6  ;;  %v3704_v49 = vld [vmem:[%s10324_s4 + $0x8] sm:$0xff] }
 0x4ca   :  { %v2755_v47 = vsel %vm254_vm5, %v8319_v44, %v2750_v26  ;;  %vm10387_vm5 = vcmask 916480  }
 0x4cb   :  { %2765 = vst [vmem:[#allocation5 + $0x128] sm:$0xf0] %v2755_v47  ;;  %3922 = vmatpush.msrb.mxu0 %v3682_v14  ;;  %vm10396_vm12 = vmmov %vm10387_vm5 }
 0x4cc   :  { %2770 = vst [vmem:[#allocation5 + $0x208] sm:$0x3] %v2755_v47  ;;  %vm10397_vm2 = vmmov %vm10387_vm5 }
 0x4cd   :  { %3923 = vmatpush.msrb.mxu0 %v3677_v31  ;;  %vm10400_vm9 = vmmov %vm10397_vm2 }
 0x4ce   :  { %v2564_v11 = vpop.permute.xlu2 %2563 }
 0x4cf   :  { %3924 = vmatpush.msrb.mxu0 %v3672_v56  ;;  %v2569_v38 = vsel %vm10386_vm10, %v8381_v22, %v2564_v11  ;;  %v2700_v7 = vpop.permute.xlu0 %2699 }
 0x4d0   :  { %2579 = vst [vmem:[#allocation5 + $0x260] sm:$0xf0] %v2569_v38  ;;  %v2705_v44 = vsel %vm10387_vm5, %v8316_v60, %v2700_v7  ;;  %3802 = vmatmul.f32.gmra.mxu0 %v8410_v45  ;;  %v3652_v60 = vld [vmem:[#allocation5 + $0x1a0] sm:$0xff]  ;;  %v3642_v53 = vld [vmem:[#allocation5 + $0x168] sm:$0xff] }
 0x4d1   :  { %v3585_v48 = vpop.permute.xlu1 %3584  ;;  %3925 = vmatpush.msrb.mxu0 %v3667_v46  ;;  %2584 = vst [vmem:[#allocation5 + $0x230] sm:$0x3] %v2569_v38  ;;  %3848 = vmatmul.f32.gmra.mxu1 %v8410_v45 }
 0x4d2   :  { %v3592_v24 = vsel %vm3588_vm3, %v8367_v19, %v3585_v48  ;;  %2715 = vst [vmem:[#allocation5 + $0x30] sm:$0xc0] %v2705_v44  ;;  %v3593_v22 = vsel %vm3588_vm3, %v3585_v48, %v3587_v13  ;;  %vm10390_vm3 = vcmask 1022976  }
 0x4d3   :  { %2720 = vst [vmem:[#allocation5 + $0x128] sm:$0xf] %v2705_v44  ;;  %3926 = vmatpush.msrb.mxu0 %v3662_v58  ;;  %v3637_v36 = vld [vmem:[#allocation5 + $0x208] sm:$0xff] }
 0x4d4   :  { %3602 = vst [vmem:[#allocation5 + $0xb8] sm:$0x3f] %v3592_v24 }
 0x4d5   :  { %3603 = vst [vmem:[#allocation5 + $0x258] sm:$0x3f] %v3593_v22  ;;  %3927 = vmatpush.msrb.mxu0 %v3657_v25 }
 0x4d7   :  { %3928 = vmatpush.msrb.mxu0 %v3652_v60  ;;  %v2654_v55 = vpop.permute.xlu0 %2653 }
 0x4d8   :  { %v2660_v40 = vsel %vm2655_vm8, %v8363_v50, %v2654_v55  ;;  %vm10389_vm8 = vmmov %vm10388_vm14 }
 0x4d9   :  { %v3494_v19 = vpop.permute.xlu1 %3493  ;;  %3929 = vmatpush.msrb.mxu0 %v3647_v27  ;;  %2670 = vst [vmem:[#allocation5 + $0x30] sm:$0x3f] %v2660_v40 }
 0x4da   :  { %v3501_v37 = vsel %vm3497_vm7, %v8389_v52, %v3494_v19  ;;  %v3502_v8 = vsel %vm3497_vm7, %v3494_v19, %v3496_v12  ;;  %v3632_v50 = vld [vmem:[#allocation5 + $0x128] sm:$0xff]  ;;  %vm10391_vm7 = vmmov %vm10378_vm6 }
 0x4db   :  { %3511 = vst [vmem:[#allocation5 + $0xc0] sm:$0xf0] %v3501_v37  ;;  %3930 = vmatpush.msrb.mxu0 %v3642_v53  ;;  %v3701_v33 = vld [vmem:[#allocation5 + $0xb8] sm:$0x3f] }
 0x4dc   :  { %3512 = vst [vmem:[#allocation5 + $0x170] sm:$0xf0] %v3502_v8  ;;  %5652 = vmatpush.msk.msrb.mxu3 %vm10388_vm14, %v3701_v33  ;;  %v3702_v41 = vld [vmem:[#allocation5 + $0x258] sm:$0x3f] }
 0x4dd   :  { %3516 = vst [vmem:[#allocation5 + $0x2c0] sm:$0x3] %v3501_v37  ;;  %3931 = vmatpush.msrb.mxu0 %v3637_v36  ;;  %5655 = vmatpush.msk.msra.mxu2 %vm10389_vm8, %v3702_v41  ;;  %vm10406_vm8 = vmmov %vm10397_vm2 }
 0x4de   :  { %3517 = vst [vmem:[#allocation5 + $0xb0] sm:$0x3] %v3502_v8 }
 0x4df   :  { %3932 = vmatpush.msrb.mxu0 %v3632_v50  ;;  %v3545_v10 = vpop.permute.xlu0 %3544 }
 0x4e0   :  { %v3552_v52 = vsel %vm3548_vm1, %v8437_v20, %v3545_v10  ;;  %v3627_v34 = vld [vmem:[#allocation5 + $0x30] sm:$0xff] }
 0x4e1   :  { %v3547_v15 = vpop.permute.xlu1 %3546  ;;  %3562 = vst [vmem:[#allocation5 + $0x2c0] sm:$0xfc] %v3552_v52  ;;  %3933 = vmatpush.msrb.mxu0 %v3627_v34 }
 0x4e2   :  { %v3553_v51 = vsel %vm3548_vm1, %v3545_v10, %v3547_v15  ;;  %v3691_v20 = vld [vmem:[#allocation5 + $0xc0] sm:$0xff]  ;;  %vm10392_vm1 = vmmov %vm10378_vm6 }
 0x4e3   :  { %3563 = vst [vmem:[#allocation5 + $0xb0] sm:$0xfc] %v3553_v51  ;;  %v3692_v39 = vld [vmem:[#allocation5 + $0x170] sm:$0xff]  ;;  %vm10394_vm0 = vmmov %vm10392_vm1 }
 0x4e4   :  { %vm10395_vm11 = vmmov %vm10394_vm0 }
 0x4e5   :  { %vm10401_vm6 = vmmov %vm10397_vm2 }
 0x4e6   :  { %vm10402_vm13 = vmmov %vm10394_vm0 }
 0x4e7   :  { %v2614_v29 = vpop.permute.xlu0 %2613  ;;  %vm10403_vm10 = vmmov %vm10394_vm0 }
 0x4e8   :  { %v2620_v54 = vsel %vm10390_vm3, %v8361_v62, %v2614_v29  ;;  %v3696_v59 = vld [vmem:[#allocation5 + $0x2c0] sm:$0xff]  ;;  %vm10404_vm5 = vmmov %vm10394_vm0 }
 0x4e9   :  { %v2514_v30 = vpop.permute.xlu1 %2513  ;;  %2630 = vst [vmem:[#allocation5 + $0x230] sm:$0xfc] %v2620_v54  ;;  %3912 = vmatpush.msrb.mxu3 %v3696_v59  ;;  %vm10405_vm14 = vmmov %vm10394_vm0 }
 0x4ea   :  { %v2519_v32 = vsel %vm10391_vm7, %v8423_v57, %v2514_v30  ;;  %v3697_v28 = vld [vmem:[#allocation5 + $0xb0] sm:$0xff]  ;;  %vm10407_vm3 = vmmov %vm10397_vm2 }
 0x4eb   :  { %2529 = vst [vmem:[#allocation5 + $0x70] sm:$0xc0] %v2519_v32  ;;  %3958 = vmatpush.msra.mxu2 %v3697_v28  ;;  %3913 = vmatpush.msrb.mxu3 %v3691_v20  ;;  %vm10408_vm7 = vmmov %vm10397_vm2 }
 0x4ec   :  { %2534 = vst [vmem:[#allocation5 + $0x260] sm:$0xf] %v2519_v32  ;;  %5653 = vmatmul.msk.f32.vlgmr.msrb.gmra.mxu3 %vm3715_vm4, %v8394_v0 }
 0x4ed   :  { %3959 = vmatpush.msra.mxu2 %v3692_v39 }
 0x4ee   :  { %5656 = vmatmul.msk.f32.vlgmr.msra.gmra.mxu2 %vm3715_vm4, %v8394_v0 }
 0x4f0   :  { %v3622_v62 = vld [vmem:[#allocation5 + $0x230] sm:$0xff] }
 0x4f1   :  { %3934 = vmatpush.msrb.mxu0 %v3622_v62 }
 0x4f2   :  { %v3612_v23 = vld [vmem:[#allocation5 + $0x70] sm:$0xff] }
 0x4f3   :  { %v3617_v35 = vld [vmem:[#allocation5 + $0x260] sm:$0xff] }
 0x4f4   :  { %3935 = vmatpush.msrb.mxu0 %v3617_v35  ;;  %5654 = vmatmul.msk.f32.gmra.mxu3 %vm3715_vm4, %v8415_v18 }
 0x4f6   :  { %3936 = vmatpush.msrb.mxu0 %v3612_v23  ;;  %5657 = vmatmul.msk.f32.gmra.mxu2 %vm3715_vm4, %v8415_v18  ;;  %vm10393_vm4 = vmmov %vm10392_vm1 }
 0x4f7   :  { %3937 = vmatmul.f32.vlgmr.msrb.gmra.mxu0 %v8225_v1  ;;  %v3708_v57 = vpop.permute.xlu2 %3707 }
 0x4f8   :  { %v3755_v16 = vadd.f32 %v3754_v21, %v3708_v57 }
 0x4ff   :  { %3940 = vmatmul.f32.gmra.mxu0 %v8410_v45 }
 0x50c   :  { %v3777_v0 = vpop.f32.mrf.mxu3 }
 0x50d   :  { %v3778_v13 = vadd.f32 %v3777_v0, %v3755_v16  ;;  %v4286_v0 = vld [vmem:[%s10325_s5 + $0x78] sm:$0xff] }
 0x50e   :  { %4868 = vmatpush.msra.mxu3 %v4286_v0  ;;  %v4275_v0 = vld [vmem:[%s10325_s5 + $0x20] sm:$0xff] }
 0x50f   :  { %v3967_v3 = vmax.f32 %v3778_v13, 0.0  ;;  %v4302_v13 = vld [vmem:[%s10325_s5 + $0xf8] sm:$0xff] }
 0x510   :  { %4888 = vmatpush.msrb.mxu1 %v4302_v13  ;;  %v4291_v13 = vld [vmem:[%s10325_s5 + $0xa0] sm:$0xff] }
 0x511   :  { %4015 = vrot.lane.b32.xlu0 %v3967_v3, %s5723_s23 }
 0x51c   :  { %v3757_v5 = vpop.f32.mrf.mxu2  ;;  %v3780_v43 = vpop.f32.mrf.mxu3 }
 0x524   :  { %v3823_v9 = vpop.f32.mrf.mxu2 }
 0x52c   :  { %v3826_v6 = vpop.f32.mrf.mxu2 }
 0x534   :  { %v3892_v26 = vpop.f32.mrf.mxu2 }
 0x535   :  { %v3893_v31 = vadd.f32 %v3892_v26, %v3708_v57  ;;  %v4299_v26 = vld [vmem:[%s10325_s5 + $0xe0] sm:$0xff] }
 0x53c   :  { %v3895_v14 = vpop.f32.mrf.mxu2 }
 0x540   :  { %v3869_v12 = vpop.f32.mrf.mxu3 }
 0x545   :  { %v3800_v17 = vpop.f32.mrf.mxu0 }
 0x546   :  { %v3801_v4 = vadd.f32 %v3800_v17, %v3708_v57  ;;  %v3846_v42 = vpop.f32.mrf.mxu1  ;;  %v4301_v17 = vld [vmem:[%s10325_s5 + $0xf0] sm:$0xff] }
 0x547   :  { %v3847_v18 = vadd.f32 %v3846_v42, %v3708_v57  ;;  %v4284_v42 = vld [vmem:[%s10325_s5 + $0x68] sm:$0xff]  ;;  %4889 = vmatpush.msrb.mxu1 %v4301_v17  ;;  %v4134_v17 = vlaneseq }
 0x548   :  { %v3824_v61 = vadd.f32 %v3823_v9, %v3801_v4  ;;  %v3872_v47 = vpop.f32.mrf.mxu3  ;;  %v4317_v9 = vld [vmem:[%s10325_s5 + $0x170] sm:$0xff] }
 0x549   :  { %v3870_v1 = vadd.f32 %v3869_v12, %v3847_v18  ;;  %v4333_v4 = vld [vmem:[%s10325_s5 + $0x1f0] sm:$0xff]  ;;  %v4300_v12 = vld [vmem:[%s10325_s5 + $0xe8] sm:$0xff]  ;;  %vm8757_vm15 = vcmp.lt.s32.totalorder %v4134_v17, 256 }
 0x54a   :  { %v3968_v2 = vmax.f32 %v3824_v61, 0.0  ;;  %4890 = vmatpush.msrb.mxu1 %v4300_v12  ;;  %v4289_v12 = vld [vmem:[%s10325_s5 + $0x90] sm:$0xff]  ;;  %v4392_v17 = vld [vmem:[%s10325_s5 + $0x3c8] sm:$0xff] }
 0x54b   :  { %v3969_v45 = vmax.f32 %v3870_v1, 0.0 }
 0x54c   :  { %4017 = vrot.lane.b32.xlu1 %v3968_v2, %s5723_s23  ;;  %4891 = vmatpush.msrb.mxu1 %v4299_v26  ;;  %v4271_v26 = vld [vmem:[%s10325_s5] sm:$0xff] }
 0x54d   :  { %4019 = vrot.lane.b32.xlu2 %v3969_v45, %s5723_s23  ;;  %v3803_v63 = vpop.f32.mrf.mxu0 }
 0x54e   :  { %v3849_v36 = vpop.f32.mrf.mxu1 }
 0x555   :  { %3712 = vperm.xlu2 %5688, %v3704_v49   ;;  %v4332_v49 = vld [vmem:[%s10325_s5 + $0x1e8] sm:$0xff] }
 0x56f   :  { %v3915_v56 = vpop.f32.mrf.mxu3 }
 0x570   :  { %v3916_v11 = vadd.f32 %v3915_v56, %v3893_v31  ;;  %v4298_v31 = vld [vmem:[%s10325_s5 + $0xd8] sm:$0xff] }
 0x571   :  { %v3961_v46 = vpop.f32.mrf.mxu2  ;;  %v4314_v56 = vld [vmem:[%s10325_s5 + $0x158] sm:$0xff]  ;;  %4892 = vmatpush.msrb.mxu1 %v4298_v31 }
 0x572   :  { %v3970_v38 = vmax.f32 %v3916_v11, 0.0  ;;  %v4330_v11 = vld [vmem:[%s10325_s5 + $0x1d8] sm:$0xff] }
 0x573   :  { %v4350_v31 = vld [vmem:[%s10325_s5 + $0x278] sm:$0xff] }
 0x574   :  { %v3938_v7 = vpop.f32.mrf.mxu0  ;;  %4021 = vrot.lane.b32.xlu0 %v3970_v38, %s5723_s23 }
 0x575   :  { %v3939_v44 = vadd.f32 %v3938_v7, %v3708_v57  ;;  %v4297_v7 = vld [vmem:[%s10325_s5 + $0xd0] sm:$0xff] }
 0x576   :  { %4893 = vmatpush.msrb.mxu1 %v4297_v7  ;;  %v4382_v7 = vld [vmem:[%s10325_s5 + $0x378] sm:$0xff] }
 0x577   :  { %v3962_v48 = vadd.f32 %v3961_v46, %v3939_v44  ;;  %v3918_v59 = vpop.f32.mrf.mxu3  ;;  %v4313_v46 = vld [vmem:[%s10325_s5 + $0x150] sm:$0xff] }
 0x578   :  { %v4329_v44 = vld [vmem:[%s10325_s5 + $0x1d0] sm:$0xff] }
 0x579   :  { %v3971_v24 = vmax.f32 %v3962_v48, 0.0  ;;  %v3964_v23 = vpop.f32.mrf.mxu2  ;;  %v4280_v48 = vld [vmem:[%s10325_s5 + $0x48] sm:$0xff] }
 0x57b   :  { %4023 = vrot.lane.b32.xlu1 %v3971_v24, %s5723_s23 }
 0x57c   :  { %v3941_v28 = vpop.f32.mrf.mxu0 }
 0x583   :  { %v4016_v58 = vpop.permute.xlu0 %4015 }
 0x5a7   :  { %v4020_v22 = vpop.permute.xlu2 %4019 }
 0x5af   :  { %v3713_v19 = vpop.permute.xlu2 %3712 }
 0x5b0   :  { %v3758_v53 = vadd.f32 %v3757_v5, %v3713_v19  ;;  %v3850_v10 = vadd.f32 %v3849_v36, %v3713_v19  ;;  %v3804_v15 = vadd.f32 %v3803_v63, %v3713_v19  ;;  %v3896_v29 = vadd.f32 %v3895_v14, %v3713_v19  ;;  %v4334_v5 = vld [vmem:[%s10325_s5 + $0x1f8] sm:$0xff]  ;;  %v4331_v63 = vld [vmem:[%s10325_s5 + $0x1e0] sm:$0xff]  ;;  %v4277_v36 = vld [vmem:[%s10325_s5 + $0x30] sm:$0xff] }
 0x5b1   :  { %v3942_v62 = vadd.f32 %v3941_v28, %v3713_v19  ;;  %4928 = vmatpush.msra.mxu0 %v4334_v5  ;;  %v4282_v14 = vld [vmem:[%s10325_s5 + $0x58] sm:$0xff]  ;;  %v4308_v28 = vld [vmem:[%s10325_s5 + $0x128] sm:$0xff] }
 0x5b2   :  { %v8530_v50 = vadd.f32 %v3780_v43, %v3758_v53  ;;  %v8539_v30 = vadd.f32 %v3872_v47, %v3850_v10  ;;  %v8544_v32 = vadd.f32 %v3826_v6, %v3804_v15  ;;  %v8546_v20 = vadd.f32 %v3918_v59, %v3896_v29  ;;  %v4285_v43 = vld [vmem:[%s10325_s5 + $0x70] sm:$0xff]  ;;  %v4283_v6 = vld [vmem:[%s10325_s5 + $0x60] sm:$0xff]  ;;  %v4278_v19 = vld [vmem:[%s10325_s5 + $0x38] sm:$0xff] }
 0x5b3   :  { %v8557_v21 = vadd.f32 %v3964_v23, %v3942_v62  ;;  %4869 = vmatpush.msra.mxu3 %v4285_v43  ;;  %4929 = vmatpush.msra.mxu0 %v4333_v4  ;;  %v4315_v47 = vld [vmem:[%s10325_s5 + $0x160] sm:$0xff]  ;;  %v4326_v53 = vld [vmem:[%s10325_s5 + $0x1b8] sm:$0xff]  ;;  %v4309_v10 = vld [vmem:[%s10325_s5 + $0x130] sm:$0xff] }
 0x5b4   :  { %v3972_v54 = vmax.f32 %v8530_v50, 0.0  ;;  %v3974_v39 = vmax.f32 %v8539_v30, 0.0  ;;  %v3973_v35 = vmax.f32 %v8544_v32, 0.0  ;;  %v3975_v57 = vmax.f32 %v8546_v20, 0.0  ;;  %v4276_v15 = vld [vmem:[%s10325_s5 + $0x28] sm:$0xff]  ;;  %v4274_v5 = vld [vmem:[%s10325_s5 + $0x18] sm:$0xff] }
 0x5b5   :  { %v3976_v16 = vmax.f32 %v8557_v21, 0.0  ;;  %4870 = vmatpush.msra.mxu3 %v4284_v42  ;;  %4930 = vmatpush.msra.mxu0 %v4332_v49  ;;  %v4292_v29 = vld [vmem:[%s10325_s5 + $0xa8] sm:$0xff]  ;;  %v4290_v43 = vld [vmem:[%s10325_s5 + $0x98] sm:$0xff]  ;;  %v4273_v42 = vld [vmem:[%s10325_s5 + $0x10] sm:$0xff] }
 0x5b6   :  { %v4324_v62 = vld [vmem:[%s10325_s5 + $0x1a8] sm:$0xff]  ;;  %v4322_v4 = vld [vmem:[%s10325_s5 + $0x198] sm:$0xff] }
 0x5b7   :  { %4871 = vmatpush.msra.mxu3 %v4283_v6  ;;  %4931 = vmatpush.msra.mxu0 %v4331_v63  ;;  %v4320_v49 = vld [vmem:[%s10325_s5 + $0x188] sm:$0xff]  ;;  %v4303_v63 = vld [vmem:[%s10325_s5 + $0x100] sm:$0xff]  ;;  %v4414_v20 = vld [vmem:[%s10325_s5 + $0x478] sm:$0xff] }
 0x5b8   :  { %v4352_v50 = vld [vmem:[%s10325_s5 + $0x288] sm:$0xff]  ;;  %v4639_v6 = vld [vmem:[%s10325_s5 + $0xb80] sm:$0xff] }
 0x5b9   :  { %4872 = vmatpush.msra.mxu3 %v4282_v14  ;;  %4932 = vmatpush.msra.mxu0 %v4330_v11  ;;  %v4319_v14 = vld [vmem:[%s10325_s5 + $0x180] sm:$0xff]  ;;  %v4384_v32 = vld [vmem:[%s10325_s5 + $0x388] sm:$0xff] }
 0x5bb   :  { %4933 = vmatpush.msra.mxu0 %v4329_v44 }
 0x5be   :  { %v4018_v25 = vpop.permute.xlu1 %4017 }
 0x5bf   :  { %v4035_v60 = vsel %vm10392_vm1, %v4016_v58, %v4018_v25  ;;  %v4036_v55 = vsel %vm10393_vm4, %v4018_v25, %v4020_v22  ;;  %v4312_v58 = vld [vmem:[%s10325_s5 + $0x148] sm:$0xff]  ;;  %v4279_v25 = vld [vmem:[%s10325_s5 + $0x40] sm:$0xff]  ;;  %vm10409_vm1 = vmmov %vm10397_vm2  ;;  %vm10410_vm4 = vcmask 1043456  }
 0x5c0   :  { %v8517_v27 = vmax.f32 %v3967_v3, %v4035_v60  ;;  %v8519_v40 = vmax.f32 %v3968_v2, %v4036_v55  ;;  %v4318_v3 = vld [vmem:[%s10325_s5 + $0x178] sm:$0xff]  ;;  %v4295_v60 = vld [vmem:[%s10325_s5 + $0xc0] sm:$0xff] }
 0x5c1   :  { %4908 = vmatpush.msrb.mxu2 %v4318_v3  ;;  %v4311_v55 = vld [vmem:[%s10325_s5 + $0x140] sm:$0xff] }
 0x5c2   :  { %4081 = vrot.lane.b32.xlu0 %v8517_v27, %s5725_s12  ;;  %4083 = vrot.lane.b32.xlu1 %v8519_v40, %s5725_s12  ;;  %v4307_v3 = vld [vmem:[%s10325_s5 + $0x120] sm:$0xff] }
 0x5c3   :  { %4909 = vmatpush.msrb.mxu2 %v4317_v9  ;;  %v4306_v9 = vld [vmem:[%s10325_s5 + $0x118] sm:$0xff] }
 0x5e6   :  { %v4022_v37 = vpop.permute.xlu0 %4021 }
 0x5e7   :  { %v4037_v8 = vsel %vm10394_vm0, %v4020_v22, %v4022_v37  ;;  %v4328_v22 = vld [vmem:[%s10325_s5 + $0x1c8] sm:$0xff]  ;;  %vm5528_vm0 = vcmask 982016  }
 0x5e8   :  { %v8526_v33 = vmax.f32 %v3969_v45, %v4037_v8  ;;  %v4316_v45 = vld [vmem:[%s10325_s5 + $0x168] sm:$0xff]  ;;  %4934 = vmatpush.msra.mxu0 %v4328_v22  ;;  %v4310_v8 = vld [vmem:[%s10325_s5 + $0x138] sm:$0xff]  ;;  %v4381_v22 = vld [vmem:[%s10325_s5 + $0x370] sm:$0xff] }
 0x5e9   :  { %4910 = vmatpush.msrb.mxu2 %v4316_v45  ;;  %v4304_v45 = vld [vmem:[%s10325_s5 + $0x108] sm:$0xff] }
 0x5ea   :  { %4085 = vrot.lane.b32.xlu2 %v8526_v33, %s5725_s12 }
 0x5eb   :  { %4911 = vmatpush.msrb.mxu2 %v4315_v47  ;;  %v4287_v47 = vld [vmem:[%s10325_s5 + $0x80] sm:$0xff] }
 0x5ed   :  { %v4024_v41 = vpop.permute.xlu1 %4023  ;;  %4912 = vmatpush.msrb.mxu2 %v4314_v56  ;;  %v4366_v56 = vld [vmem:[%s10325_s5 + $0x2f8] sm:$0xff] }
 0x5ee   :  { %v4038_v52 = vsel %vm10395_vm11, %v4022_v37, %v4024_v41  ;;  %v4065_v34 = vmax.f32 %v3971_v24, %v4024_v41  ;;  %v4296_v24 = vld [vmem:[%s10325_s5 + $0xc8] sm:$0xff]  ;;  %v4294_v37 = vld [vmem:[%s10325_s5 + $0xb8] sm:$0xff]  ;;  %v4293_v41 = vld [vmem:[%s10325_s5 + $0xb0] sm:$0xff]  ;;  %vm5568_vm11 = vcmask 687104  }
 0x5ef   :  { %v8533_v51 = vmax.f32 %v3970_v38, %v4038_v52  ;;  %v4281_v38 = vld [vmem:[%s10325_s5 + $0x50] sm:$0xff]  ;;  %4913 = vmatpush.msrb.mxu2 %v4313_v46  ;;  %4894 = vmatpush.msrb.mxu1 %v4296_v24  ;;  %v4398_v46 = vld [vmem:[%s10325_s5 + $0x3f8] sm:$0xff] }
 0x5f0   :  { %4089 = vrot.lane.b32.xlu1 %v4065_v34, %s5725_s12  ;;  %4873 = vmatpush.msra.mxu3 %v4281_v38  ;;  %v4325_v52 = vld [vmem:[%s10325_s5 + $0x1b0] sm:$0xff] }
 0x5f1   :  { %4087 = vrot.lane.b32.xlu0 %v8533_v51, %s5725_s12  ;;  %4914 = vmatpush.msrb.mxu2 %v4312_v58  ;;  %v4365_v24 = vld [vmem:[%s10325_s5 + $0x2f0] sm:$0xff] }
 0x5f2   :  { %4025 = vrot.lane.b32.xlu2 %v3972_v54, %s5723_s23  ;;  %4874 = vmatpush.msra.mxu3 %v4280_v48  ;;  %v4349_v48 = vld [vmem:[%s10325_s5 + $0x270] sm:$0xff] }
 0x5f3   :  { %4895 = vmatpush.msrb.mxu1 %v4295_v60  ;;  %4915 = vmatpush.msrb.mxu2 %v4311_v55 }
 0x5f4   :  { %4875 = vmatpush.msra.mxu3 %v4279_v25  ;;  %v4397_v25 = vld [vmem:[%s10325_s5 + $0x3f0] sm:$0xff] }
 0x5f5   :  { %4896 = vmatpush.msrb.mxu1 %v4294_v37  ;;  %4916 = vmatpush.msrb.mxu2 %v4310_v8  ;;  %v4348_v37 = vld [vmem:[%s10325_s5 + $0x268] sm:$0xff] }
 0x5f6   :  { %4876 = vmatpush.msra.mxu3 %v4278_v19  ;;  %v4364_v8 = vld [vmem:[%s10325_s5 + $0x2e8] sm:$0xff] }
 0x5f7   :  { %4897 = vmatpush.msrb.mxu1 %v4293_v41  ;;  %4917 = vmatpush.msrb.mxu2 %v4309_v10  ;;  %v4347_v41 = vld [vmem:[%s10325_s5 + $0x260] sm:$0xff] }
 0x5f8   :  { %4029 = vrot.lane.b32.xlu1 %v3974_v39, %s5723_s23  ;;  %4877 = vmatpush.msra.mxu3 %v4277_v36  ;;  %v4396_v36 = vld [vmem:[%s10325_s5 + $0x3e8] sm:$0xff]  ;;  %v4363_v10 = vld [vmem:[%s10325_s5 + $0x2e0] sm:$0xff] }
 0x5f9   :  { %4027 = vrot.lane.b32.xlu0 %v3973_v35, %s5723_s23  ;;  %4898 = vmatpush.msrb.mxu1 %v4292_v29  ;;  %v4346_v29 = vld [vmem:[%s10325_s5 + $0x258] sm:$0xff] }
 0x5fa   :  { %4031 = vrot.lane.b32.xlu2 %v3975_v57, %s5723_s23  ;;  %4878 = vmatpush.msra.mxu3 %v4276_v15  ;;  %v4395_v15 = vld [vmem:[%s10325_s5 + $0x3e0] sm:$0xff] }
 0x5fb   :  { %4918 = vmatpush.msrb.mxu2 %v4308_v28  ;;  %4899 = vmatpush.msrb.mxu1 %v4291_v13  ;;  %v4378_v28 = vld [vmem:[%s10325_s5 + $0x358] sm:$0xff]  ;;  %v4377_v13 = vld [vmem:[%s10325_s5 + $0x350] sm:$0xff] }
 0x5fc   :  { %4879 = vmatpush.msra.mxu3 %v4275_v0  ;;  %v4361_v0 = vld [vmem:[%s10325_s5 + $0x2d0] sm:$0xff] }
 0x5fd   :  { %4919 = vmatpush.msrb.mxu2 %v4307_v3  ;;  %4900 = vmatpush.msrb.mxu1 %v4290_v43  ;;  %v4393_v3 = vld [vmem:[%s10325_s5 + $0x3d0] sm:$0xff]  ;;  %v4376_v43 = vld [vmem:[%s10325_s5 + $0x348] sm:$0xff] }
 0x5fe   :  { %4880 = vmatpush.msra.mxu3 %v4274_v5  ;;  %v4360_v5 = vld [vmem:[%s10325_s5 + $0x2c8] sm:$0xff] }
 0x5ff   :  { %4920 = vmatpush.msrb.mxu2 %v4306_v9  ;;  %4901 = vmatpush.msrb.mxu1 %v4289_v12  ;;  %v4343_v9 = vld [vmem:[%s10325_s5 + $0x240] sm:$0xff] }
 0x600   :  { %4881 = vmatpush.msra.mxu3 %v4273_v42  ;;  %v4375_v12 = vld [vmem:[%s10325_s5 + $0x340] sm:$0xff] }
 0x601   :  { %4033 = vrot.lane.b32.xlu0 %v3976_v16, %s5723_s23 }
 0x634   :  { %v4082_v18 = vpop.permute.xlu0 %4081  ;;  %v8596_v61 = vpop.permute.xlu1 %4083 }
 0x635   :  { %v4101_v1 = vsel %vm10396_vm12, %v4082_v18, %v8596_v61  ;;  %v4305_v18 = vld [vmem:[%s10325_s5 + $0x110] sm:$0xff]  ;;  %vm5595_vm12 = vcmask 74752  }
 0x636   :  { %v4117_v2 = vmax.f32 %v8517_v27, %v4101_v1  ;;  %v4327_v27 = vld [vmem:[%s10325_s5 + $0x1c0] sm:$0xff]  ;;  %v4272_v1 = vld [vmem:[%s10325_s5 + $0x8] sm:$0xff]  ;;  %4921 = vmatpush.msrb.mxu2 %v4305_v18 }
 0x637   :  { %4935 = vmatpush.msra.mxu0 %v4327_v27  ;;  %4882 = vmatpush.msra.mxu3 %v4272_v1  ;;  %v4391_v18 = vld [vmem:[%s10325_s5 + $0x3c0] sm:$0xff]  ;;  %v4358_v1 = vld [vmem:[%s10325_s5 + $0x2b8] sm:$0xff] }
 0x638   :  { %4125 = vst [vmem:[#allocation7] sm:$0xff] %v4117_v2  ;;  %v4288_v2 = vld [vmem:[%s10325_s5 + $0x88] sm:$0xff]  ;;  %4922 = vmatpush.msrb.mxu2 %v4304_v45  ;;  %v4374_v45 = vld [vmem:[%s10325_s5 + $0x338] sm:$0xff] }
 0x639   :  { %4936 = vmatpush.msra.mxu0 %v4326_v53  ;;  %4902 = vmatpush.msrb.mxu1 %v4288_v2  ;;  %v4380_v53 = vld [vmem:[%s10325_s5 + $0x368] sm:$0xff] }
 0x63a   :  { %4883 = vmatpush.msra.mxu3 %v4271_v26  ;;  %4923 = vmatpush.msrb.mxu2 %v4303_v63  ;;  %v4357_v63 = vld [vmem:[%s10325_s5 + $0x2b0] sm:$0xff] }
 0x63b   :  { %4937 = vmatpush.msra.mxu0 %v4325_v52  ;;  %4903 = vmatpush.msrb.mxu1 %v4287_v47  ;;  %v4379_v52 = vld [vmem:[%s10325_s5 + $0x360] sm:$0xff]  ;;  %v4341_v47 = vld [vmem:[%s10325_s5 + $0x230] sm:$0xff] }
 0x63c   :  { %4948 = vmatpush.msrb.mxu3 %v4350_v31  ;;  %4988 = vmatpush.msra.mxu2 %v4382_v7 }
 0x63d   :  { %4938 = vmatpush.msra.mxu0 %v4324_v62  ;;  %4968 = vmatpush.msra.mxu1 %v4366_v56  ;;  %v4394_v62 = vld [vmem:[%s10325_s5 + $0x3d8] sm:$0xff]  ;;  %v4373_v56 = vld [vmem:[%s10325_s5 + $0x330] sm:$0xff] }
 0x63e   :  { %4949 = vmatpush.msrb.mxu3 %v4349_v48  ;;  %4989 = vmatpush.msra.mxu2 %v4381_v22  ;;  %v4355_v48 = vld [vmem:[%s10325_s5 + $0x2a0] sm:$0xff]  ;;  %v4338_v22 = vld [vmem:[%s10325_s5 + $0x218] sm:$0xff] }
 0x63f   :  { %4969 = vmatpush.msra.mxu1 %v4365_v24  ;;  %v4371_v24 = vld [vmem:[%s10325_s5 + $0x320] sm:$0xff] }
 0x640   :  { %4950 = vmatpush.msrb.mxu3 %v4348_v37  ;;  %4990 = vmatpush.msra.mxu2 %v4380_v53  ;;  %v4337_v53 = vld [vmem:[%s10325_s5 + $0x210] sm:$0xff] }
 0x641   :  { %4970 = vmatpush.msra.mxu1 %v4364_v8 }
 0x642   :  { %4951 = vmatpush.msrb.mxu3 %v4347_v41  ;;  %4991 = vmatpush.msra.mxu2 %v4379_v52  ;;  %v4353_v52 = vld [vmem:[%s10325_s5 + $0x290] sm:$0xff] }
 0x643   :  { %4971 = vmatpush.msra.mxu1 %v4363_v10 }
 0x644   :  { %v8691_v34 = vpop.permute.xlu2 %4085  ;;  %4952 = vmatpush.msrb.mxu3 %v4346_v29  ;;  %4992 = vmatpush.msra.mxu2 %v4378_v28 }
 0x645   :  { %v4102_v59 = vsel %vm10397_vm2, %v8596_v61, %v8691_v34  ;;  %v4321_v61 = vld [vmem:[%s10325_s5 + $0x190] sm:$0xff] }
 0x646   :  { %v4118_v23 = vmax.f32 %v8519_v40, %v4102_v59  ;;  %v4323_v40 = vld [vmem:[%s10325_s5 + $0x1a0] sm:$0xff]  ;;  %v4362_v59 = vld [vmem:[%s10325_s5 + $0x2d8] sm:$0xff]  ;;  %4993 = vmatpush.msra.mxu2 %v4377_v13 }
 0x647   :  { %4939 = vmatpush.msra.mxu0 %v4323_v40  ;;  %4972 = vmatpush.msra.mxu1 %v4362_v59  ;;  %v4344_v40 = vld [vmem:[%s10325_s5 + $0x248] sm:$0xff] }
 0x648   :  { %4126 = vst [vmem:[#allocation7 + $0x8] sm:$0xff] %v4118_v23  ;;  %v4345_v23 = vld [vmem:[%s10325_s5 + $0x250] sm:$0xff]  ;;  %4994 = vmatpush.msra.mxu2 %v4376_v43  ;;  %v4336_v59 = vld [vmem:[%s10325_s5 + $0x208] sm:$0xff] }
 0x649   :  { %4940 = vmatpush.msra.mxu0 %v4322_v4  ;;  %4953 = vmatpush.msrb.mxu3 %v4345_v23  ;;  %v4359_v4 = vld [vmem:[%s10325_s5 + $0x2c0] sm:$0xff] }
 0x64a   :  { %4973 = vmatpush.msra.mxu1 %v4361_v0  ;;  %4995 = vmatpush.msra.mxu2 %v4375_v12  ;;  %v4351_v23 = vld [vmem:[%s10325_s5 + $0x280] sm:$0xff] }
 0x64b   :  { %4941 = vmatpush.msra.mxu0 %v4321_v61  ;;  %4954 = vmatpush.msrb.mxu3 %v4344_v40  ;;  %v4342_v61 = vld [vmem:[%s10325_s5 + $0x238] sm:$0xff]  ;;  %v4367_v0 = vld [vmem:[%s10325_s5 + $0x300] sm:$0xff] }
 0x64c   :  { %v4026_v42 = vpop.permute.xlu2 %4025  ;;  %4974 = vmatpush.msra.mxu1 %v4360_v5  ;;  %4996 = vmatpush.msra.mxu2 %v4374_v45 }
 0x64d   :  { %4942 = vmatpush.msra.mxu0 %v4320_v49  ;;  %4955 = vmatpush.msrb.mxu3 %v4343_v9  ;;  %v4390_v49 = vld [vmem:[%s10325_s5 + $0x3b8] sm:$0xff] }
 0x64e   :  { %4975 = vmatpush.msra.mxu1 %v4359_v4  ;;  %4997 = vmatpush.msra.mxu2 %v4373_v56  ;;  %v4461_v56 = vld [vmem:[%s10325_s5 + $0x5f0] sm:$0xff] }
 0x64f   :  { %v4133_v11 = vld [vmem:[#allocation7] ss:$8 sm:$0x3]  ;;  %v4140_v38 = vld [vmem:[#allocation7 + $0x1] ss:$8 sm:$0x3]  ;;  %4943 = vmatpush.msra.mxu0 %v4319_v14  ;;  %4956 = vmatpush.msrb.mxu3 %v4342_v61 }
 0x650   :  { %4138 = vst.msk [vmem:[#allocation8] ss:$2 sm:$0x3] %vm8757_vm15, %v4133_v11  ;;  %v4144_v44 = vld [vmem:[#allocation7 + $0x2] ss:$8 sm:$0x3]  ;;  %4976 = vmatpush.msra.mxu1 %v4358_v1 }
 0x651   :  { %4142 = vst.msk [vmem:[#allocation8 + $0x4] ss:$2 sm:$0x3] %vm8757_vm15, %v4140_v38  ;;  %v4148_v58 = vld [vmem:[#allocation7 + $0x3] ss:$8 sm:$0x3]  ;;  %5008 = vmatpush.msrb.mxu0 %v4398_v46  ;;  %4957 = vmatpush.msrb.mxu3 %v4341_v47 }
 0x652   :  { %4146 = vst.msk [vmem:[#allocation8 + $0x8] ss:$2 sm:$0x3] %vm8757_vm15, %v4144_v44  ;;  %v4152_v60 = vld [vmem:[#allocation7 + $0x4] ss:$8 sm:$0x3]  ;;  %4977 = vmatpush.msra.mxu1 %v4357_v63 }
 0x653   :  { %4150 = vst.msk [vmem:[#allocation8 + $0xc] ss:$2 sm:$0x3] %vm8757_vm15, %v4148_v58  ;;  %v4156_v55 = vld [vmem:[#allocation7 + $0x5] ss:$8 sm:$0x3]  ;;  %5009 = vmatpush.msrb.mxu0 %v4397_v25 }
 0x654   :  { %4154 = vst.msk [vmem:[#allocation8 + $0x10] ss:$2 sm:$0x3] %vm8757_vm15, %v4152_v60  ;;  %v4160_v27 = vld [vmem:[#allocation7 + $0x6] ss:$8 sm:$0x3]  ;;  %v4032_v60 = vpop.permute.xlu2 %4031 }
 0x655   :  { %4158 = vst.msk [vmem:[#allocation8 + $0x14] ss:$2 sm:$0x3] %vm8757_vm15, %v4156_v55  ;;  %v4164_v19 = vld [vmem:[#allocation7 + $0x7] ss:$8 sm:$0x3]  ;;  %5010 = vmatpush.msrb.mxu0 %v4396_v36 }
 0x656   :  { %4162 = vst.msk [vmem:[#allocation8 + $0x18] ss:$2 sm:$0x3] %vm8757_vm15, %v4160_v27  ;;  %v4389_v11 = vld [vmem:[%s10325_s5 + $0x3b0] sm:$0xff]  ;;  %v4356_v46 = vld [vmem:[%s10325_s5 + $0x2a8] sm:$0xff]  ;;  %v4387_v58 = vld [vmem:[%s10325_s5 + $0x3a0] sm:$0xff] }
 0x657   :  { %4166 = vst.msk [vmem:[#allocation8 + $0x1c] ss:$2 sm:$0x3] %vm8757_vm15, %v4164_v19  ;;  %5011 = vmatpush.msrb.mxu0 %v4395_v15  ;;  %v4372_v44 = vld [vmem:[%s10325_s5 + $0x328] sm:$0xff]  ;;  %4978 = vmatpush.msra.mxu1 %v4356_v46  ;;  %v4354_v25 = vld [vmem:[%s10325_s5 + $0x298] sm:$0xff]  ;;  %v4369_v15 = vld [vmem:[%s10325_s5 + $0x310] sm:$0xff] }
 0x658   :  { %4998 = vmatpush.msra.mxu2 %v4372_v44  ;;  %v4370_v27 = vld [vmem:[%s10325_s5 + $0x318] sm:$0xff]  ;;  %v4429_v47 = vld [vmem:[%s10325_s5 + $0x4f0] sm:$0xff]  ;;  %v4428_v46 = vld [vmem:[%s10325_s5 + $0x4e8] sm:$0xff] }
 0x659   :  { %5012 = vmatpush.msrb.mxu0 %v4394_v62  ;;  %4979 = vmatpush.msra.mxu1 %v4355_v48  ;;  %v4386_v19 = vld [vmem:[%s10325_s5 + $0x398] sm:$0xff]  ;;  %v4460_v48 = vld [vmem:[%s10325_s5 + $0x5e8] sm:$0xff] }
 0x65a   :  { %4999 = vmatpush.msra.mxu2 %v4371_v24  ;;  %v4446_v1 = vld [vmem:[%s10325_s5 + $0x578] sm:$0xff]  ;;  %v4411_v24 = vld [vmem:[%s10325_s5 + $0x460] sm:$0xff] }
 0x65b   :  { %5013 = vmatpush.msrb.mxu0 %v4393_v3  ;;  %4980 = vmatpush.msra.mxu1 %v4354_v25  ;;  %v4383_v3 = vld [vmem:[%s10325_s5 + $0x380] sm:$0xff] }
 0x65c   :  { %5000 = vmatpush.msra.mxu2 %v4370_v27  ;;  %v4459_v25 = vld [vmem:[%s10325_s5 + $0x5e0] sm:$0xff]  ;;  %v4442_v27 = vld [vmem:[%s10325_s5 + $0x558] sm:$0xff] }
 0x65d   :  { %5014 = vmatpush.msrb.mxu0 %v4392_v17  ;;  %4981 = vmatpush.msra.mxu1 %v4353_v52  ;;  %v4424_v52 = vld [vmem:[%s10325_s5 + $0x4c8] sm:$0xff] }
 0x65e   :  { %5001 = vmatpush.msra.mxu2 %v4369_v15  ;;  %v4440_v15 = vld [vmem:[%s10325_s5 + $0x548] sm:$0xff] }
 0x65f   :  { %5015 = vmatpush.msrb.mxu0 %v4391_v18  ;;  %4982 = vmatpush.msra.mxu1 %v4352_v50  ;;  %v4423_v50 = vld [vmem:[%s10325_s5 + $0x4c0] sm:$0xff] }
 0x661   :  { %5016 = vmatpush.msrb.mxu0 %v4390_v49  ;;  %4983 = vmatpush.msra.mxu1 %v4351_v23  ;;  %v4454_v23 = vld [vmem:[%s10325_s5 + $0x5b8] sm:$0xff] }
 0x662   :  { %v4090_v2 = vpop.permute.xlu1 %4089 }
 0x663   :  { %v4088_v26 = vpop.permute.xlu0 %4087  ;;  %5017 = vmatpush.msrb.mxu0 %v4389_v11  ;;  %v4412_v11 = vld [vmem:[%s10325_s5 + $0x468] sm:$0xff] }
 0x664   :  { %v4103_v14 = vsel %vm10400_vm9, %v8691_v34, %v4088_v26  ;;  %v4104_v31 = vsel %vm10401_vm6, %v4088_v26, %v4090_v2  ;;  %v4340_v34 = vld [vmem:[%s10325_s5 + $0x228] sm:$0xff]  ;;  %v4462_v2 = vld [vmem:[%s10325_s5 + $0x5f8] sm:$0xff]  ;;  %v4413_v26 = vld [vmem:[%s10325_s5 + $0x470] sm:$0xff] }
 0x665   :  { %v4119_v38 = vmax.f32 %v8526_v33, %v4103_v14  ;;  %v4120_v7 = vmax.f32 %v8533_v51, %v4104_v31  ;;  %v4388_v33 = vld [vmem:[%s10325_s5 + $0x3a8] sm:$0xff]  ;;  %v4339_v51 = vld [vmem:[%s10325_s5 + $0x220] sm:$0xff]  ;;  %4958 = vmatpush.msrb.mxu3 %v4340_v34  ;;  %v4445_v31 = vld [vmem:[%s10325_s5 + $0x570] sm:$0xff] }
 0x666   :  { %5018 = vmatpush.msrb.mxu0 %v4388_v33 }
 0x667   :  { %4127 = vst [vmem:[#allocation7 + $0x10] sm:$0xff] %v4119_v38  ;;  %4959 = vmatpush.msrb.mxu3 %v4339_v51  ;;  %v4444_v51 = vld [vmem:[%s10325_s5 + $0x568] sm:$0xff] }
 0x668   :  { %4128 = vst [vmem:[#allocation7 + $0x18] sm:$0xff] %v4120_v7  ;;  %5019 = vmatpush.msrb.mxu0 %v4387_v58  ;;  %v4427_v58 = vld [vmem:[%s10325_s5 + $0x4e0] sm:$0xff] }
 0x669   :  { %4960 = vmatpush.msrb.mxu3 %v4338_v22  ;;  %v4443_v22 = vld [vmem:[%s10325_s5 + $0x560] sm:$0xff] }
 0x66a   :  { %v4030_v55 = vpop.permute.xlu1 %4029  ;;  %5020 = vmatpush.msrb.mxu0 %v4386_v19  ;;  %v4458_v19 = vld [vmem:[%s10325_s5 + $0x5d8] sm:$0xff] }
 0x66b   :  { %v4041_v37 = vsel %vm10402_vm13, %v4030_v55, %v4032_v60  ;;  %v4028_v8 = vpop.permute.xlu0 %4027  ;;  %4961 = vmatpush.msrb.mxu3 %v4337_v53  ;;  %v4441_v53 = vld [vmem:[%s10325_s5 + $0x550] sm:$0xff] }
 0x66c   :  { %v8956_v36 = vmax.f32 %v3974_v39, %v4041_v37  ;;  %v4039_v41 = vsel %vm10403_vm10, %v4026_v42, %v4028_v8  ;;  %v4040_v10 = vsel %vm10404_vm5, %v4028_v8, %v4030_v55  ;;  %v4385_v39 = vld [vmem:[%s10325_s5 + $0x390] sm:$0xff]  ;;  %v4426_v55 = vld [vmem:[%s10325_s5 + $0x4d8] sm:$0xff] }
 0x66d   :  { %v8968_v29 = vmax.f32 %v3972_v54, %v4039_v41  ;;  %v8972_v30 = vmax.f32 %v3973_v35, %v4040_v10  ;;  %v4368_v54 = vld [vmem:[%s10325_s5 + $0x308] sm:$0xff]  ;;  %v4335_v35 = vld [vmem:[%s10325_s5 + $0x200] sm:$0xff]  ;;  %5021 = vmatpush.msrb.mxu0 %v4385_v39  ;;  %4962 = vmatpush.msrb.mxu3 %v4336_v59  ;;  %v4409_v37 = vld [vmem:[%s10325_s5 + $0x450] sm:$0xff] }
 0x66e   :  { %4095 = vrot.lane.b32.xlu0 %v8956_v36, %s5725_s12  ;;  %5002 = vmatpush.msra.mxu2 %v4368_v54  ;;  %v4425_v8 = vld [vmem:[%s10325_s5 + $0x4d0] sm:$0xff]  ;;  %v4408_v10 = vld [vmem:[%s10325_s5 + $0x448] sm:$0xff]  ;;  %v4407_v59 = vld [vmem:[%s10325_s5 + $0x440] sm:$0xff] }
 0x66f   :  { %v4200_v28 = vld [vmem:[#allocation7 + $0x10] ss:$8 sm:$0x3]  ;;  %v4204_v62 = vld [vmem:[#allocation7 + $0x11] ss:$8 sm:$0x3]  ;;  %4091 = vrot.lane.b32.xlu1 %v8968_v29, %s5725_s12  ;;  %4093 = vrot.lane.b32.xlu2 %v8972_v30, %s5725_s12 }
 0x670   :  { %4202 = vst.msk [vmem:[#allocation8 + $0x1] ss:$2 sm:$0x3] %vm8757_vm15, %v4200_v28  ;;  %v4208_v13 = vld [vmem:[#allocation7 + $0x12] ss:$8 sm:$0x3]  ;;  %5022 = vmatpush.msrb.mxu0 %v4384_v32  ;;  %4963 = vmatpush.msrb.mxu3 %v4335_v35 }
 0x671   :  { %4206 = vst.msk [vmem:[#allocation8 + $0x5] ss:$2 sm:$0x3] %vm8757_vm15, %v4204_v62  ;;  %v4212_v40 = vld [vmem:[#allocation7 + $0x13] ss:$8 sm:$0x3]  ;;  %5003 = vmatpush.msra.mxu2 %v4367_v0 }
 0x672   :  { %4210 = vst.msk [vmem:[#allocation8 + $0x9] ss:$2 sm:$0x3] %vm8757_vm15, %v4208_v13  ;;  %v4216_v5 = vld [vmem:[#allocation7 + $0x14] ss:$8 sm:$0x3]  ;;  %5023 = vmatpush.msrb.mxu0 %v4383_v3 }
 0x673   :  { %4214 = vst.msk [vmem:[#allocation8 + $0xd] ss:$2 sm:$0x3] %vm8757_vm15, %v4212_v40  ;;  %v4220_v43 = vld [vmem:[#allocation7 + $0x15] ss:$8 sm:$0x3]  ;;  %v4034_v17 = vpop.permute.xlu0 %4033 }
 0x674   :  { %4218 = vst.msk [vmem:[#allocation8 + $0x11] ss:$2 sm:$0x3] %vm8757_vm15, %v4216_v5  ;;  %v4224_v9 = vld [vmem:[#allocation7 + $0x16] ss:$8 sm:$0x3]  ;;  %v4042_v4 = vsel %vm10405_vm14, %v4032_v60, %v4034_v17  ;;  %v4070_v42 = vmax.f32 %v3976_v16, %v4034_v17 }
 0x675   :  { %4222 = vst.msk [vmem:[#allocation8 + $0x15] ss:$2 sm:$0x3] %vm8757_vm15, %v4220_v43  ;;  %v4228_v12 = vld [vmem:[#allocation7 + $0x17] ss:$8 sm:$0x3]  ;;  %v9024_v18 = vmax.f32 %v3975_v57, %v4042_v4 }
 0x676   :  { %4226 = vst.msk [vmem:[#allocation8 + $0x19] ss:$2 sm:$0x3] %vm8757_vm15, %v4224_v9  ;;  %v4430_v57 = vld [vmem:[%s10325_s5 + $0x4f8] sm:$0xff]  ;;  %v4457_v41 = vld [vmem:[%s10325_s5 + $0x5d0] sm:$0xff]  ;;  %v4456_v39 = vld [vmem:[%s10325_s5 + $0x5c8] sm:$0xff] }
 0x677   :  { %4230 = vst.msk [vmem:[#allocation8 + $0x1d] ss:$2 sm:$0x3] %vm8757_vm15, %v4228_v12  ;;  %4097 = vrot.lane.b32.xlu1 %v9024_v18, %s5725_s12  ;;  %4099 = vrot.lane.b32.xlu2 %v4070_v42, %s5725_s12  ;;  %v4410_v60 = vld [vmem:[%s10325_s5 + $0x458] sm:$0xff]  ;;  %v4439_v54 = vld [vmem:[%s10325_s5 + $0x540] sm:$0xff] }
 0x678   :  { %v4263_v21 = vld [vmem:[#allocation8] sm:$0xff]  ;;  %v4455_v32 = vld [vmem:[%s10325_s5 + $0x5c0] sm:$0xff]  ;;  %v4406_v35 = vld [vmem:[%s10325_s5 + $0x438] sm:$0xff] }
 0x679   :  { %4795 = vst [vmem:[#allocation1] ss:$4 sm:$0xff] %v4263_v21  ;;  %v4422_v28 = vld [vmem:[%s10325_s5 + $0x4b8] sm:$0xff]  ;;  %v4405_v0 = vld [vmem:[%s10325_s5 + $0x430] sm:$0xff]  ;;  %v4404_v5 = vld [vmem:[%s10325_s5 + $0x428] sm:$0xff] }
 0x67a   :  { %v4264_v16 = vld [vmem:[#allocation8 + $0x8] sm:$0xff]  ;;  %v4421_v13 = vld [vmem:[%s10325_s5 + $0x4b0] sm:$0xff]  ;;  %v4420_v43 = vld [vmem:[%s10325_s5 + $0x4a8] sm:$0xff] }
 0x67b   :  { %4797 = vst [vmem:[#allocation1 + $0x20] ss:$4 sm:$0xff] %v4264_v16  ;;  %v4438_v62 = vld [vmem:[%s10325_s5 + $0x538] sm:$0xff]  ;;  %v4437_v3 = vld [vmem:[%s10325_s5 + $0x530] sm:$0xff]  ;;  %v4436_v17 = vld [vmem:[%s10325_s5 + $0x528] sm:$0xff] }
 0x67c   :  { %v4265_v61 = vld [vmem:[#allocation8 + $0x10] sm:$0xff]  ;;  %v4453_v40 = vld [vmem:[%s10325_s5 + $0x5b0] sm:$0xff]  ;;  %v4452_v9 = vld [vmem:[%s10325_s5 + $0x5a8] sm:$0xff] }
 0x67d   :  { %v4403_v4 = vld [vmem:[%s10325_s5 + $0x420] sm:$0xff]  ;;  %v4402_v16 = vld [vmem:[%s10325_s5 + $0x418] sm:$0xff] }
 0x67e   :  { %v4266_v44 = vld [vmem:[#allocation8 + $0x18] sm:$0xff]  ;;  %v4419_v42 = vld [vmem:[%s10325_s5 + $0x4a0] sm:$0xff] }
 0x67f   :  { %v4435_v12 = vld [vmem:[%s10325_s5 + $0x520] sm:$0xff] }
 0x680   :  { %v4798_v45 = vld.sshfl [vmem:[#allocation1] sm:$0xff pattern:$0x73625140]  ;;  %v4799_v49 = vld.sshfl [vmem:[#allocation1 + $0x8] sm:$0xff pattern:$0x73625140] }
 0x681   :  { %4884 = vmatmul.f32.vlgmr.msra.gmra.mxu3 %v4798_v45  ;;  %4904 = vmatmul.f32.vlgmr.msrb.gmra.mxu1 %v4799_v49  ;;  %v4800_v63 = vld.sshfl [vmem:[#allocation1 + $0x10] sm:$0xff pattern:$0x73625140]  ;;  %v4801_v14 = vld.sshfl [vmem:[#allocation1 + $0x18] sm:$0xff pattern:$0x73625140] }
 0x682   :  { %4924 = vmatmul.f32.vlgmr.msrb.gmra.mxu2 %v4800_v63  ;;  %4806 = vst [vmem:[#allocation1] ss:$4 sm:$0xff] %v4265_v61  ;;  %4944 = vmatmul.f32.vlgmr.msra.gmra.mxu0 %v4801_v14  ;;  %v4802_v38 = vld.sshfl [vmem:[#allocation1 + $0x20] sm:$0xff pattern:$0x73625140]  ;;  %v4450_v61 = vld [vmem:[%s10325_s5 + $0x598] sm:$0xff] }
 0x683   :  { %5028 = vmatpush.msra.mxu3 %v4414_v20  ;;  %5048 = vmatpush.msrb.mxu1 %v4430_v57  ;;  %v4803_v7 = vld.sshfl [vmem:[#allocation1 + $0x28] sm:$0xff pattern:$0x73625140]  ;;  %v4804_v34 = vld.sshfl [vmem:[#allocation1 + $0x30] sm:$0xff pattern:$0x73625140] }
 0x684   :  { %5068 = vmatpush.msrb.mxu2 %v4446_v1  ;;  %5088 = vmatpush.msra.mxu0 %v4462_v2  ;;  %v4805_v33 = vld.sshfl [vmem:[#allocation1 + $0x38] sm:$0xff pattern:$0x73625140]  ;;  %v4451_v21 = vld [vmem:[%s10325_s5 + $0x5a0] sm:$0xff]  ;;  %v4401_v1 = vld [vmem:[%s10325_s5 + $0x410] sm:$0xff] }
 0x685   :  { %5029 = vmatpush.msra.mxu3 %v4413_v26  ;;  %5049 = vmatpush.msrb.mxu1 %v4429_v47  ;;  %4807 = vst [vmem:[#allocation1 + $0x20] ss:$4 sm:$0xff] %v4266_v44  ;;  %v4418_v20 = vld [vmem:[%s10325_s5 + $0x498] sm:$0xff]  ;;  %v4417_v2 = vld [vmem:[%s10325_s5 + $0x490] sm:$0xff]  ;;  %v4400_v26 = vld [vmem:[%s10325_s5 + $0x408] sm:$0xff] }
 0x686   :  { %5069 = vmatpush.msrb.mxu2 %v4445_v31  ;;  %5089 = vmatpush.msra.mxu0 %v4461_v56  ;;  %v4434_v57 = vld [vmem:[%s10325_s5 + $0x518] sm:$0xff]  ;;  %v4433_v45 = vld [vmem:[%s10325_s5 + $0x510] sm:$0xff]  ;;  %v4416_v47 = vld [vmem:[%s10325_s5 + $0x488] sm:$0xff] }
 0x687   :  { %5030 = vmatpush.msra.mxu3 %v4412_v11  ;;  %5050 = vmatpush.msrb.mxu1 %v4428_v46  ;;  %v4449_v49 = vld [vmem:[%s10325_s5 + $0x590] sm:$0xff]  ;;  %v4432_v63 = vld [vmem:[%s10325_s5 + $0x508] sm:$0xff]  ;;  %v4399_v31 = vld [vmem:[%s10325_s5 + $0x400] sm:$0xff] }
 0x688   :  { %5070 = vmatpush.msrb.mxu2 %v4444_v51  ;;  %5090 = vmatpush.msra.mxu0 %v4460_v48  ;;  %v4448_v14 = vld [vmem:[%s10325_s5 + $0x588] sm:$0xff]  ;;  %v4415_v56 = vld [vmem:[%s10325_s5 + $0x480] sm:$0xff]  ;;  %v4478_v44 = vld [vmem:[%s10325_s5 + $0x678] sm:$0xff] }
 0x689   :  { %5031 = vmatpush.msra.mxu3 %v4411_v24  ;;  %5051 = vmatpush.msrb.mxu1 %v4427_v58  ;;  %v4431_v11 = vld [vmem:[%s10325_s5 + $0x500] sm:$0xff]  ;;  %v4810_v46 = vld.sshfl [vmem:[#allocation1 + $0x10] sm:$0xff pattern:$0x73625140]  ;;  %v4510_v48 = vld [vmem:[%s10325_s5 + $0x778] sm:$0xff] }
 0x68a   :  { %5071 = vmatpush.msrb.mxu2 %v4443_v22  ;;  %5091 = vmatpush.msra.mxu0 %v4459_v25  ;;  %v4811_v51 = vld.sshfl [vmem:[#allocation1 + $0x18] sm:$0xff pattern:$0x73625140]  ;;  %v4477_v58 = vld [vmem:[%s10325_s5 + $0x670] sm:$0xff] }
 0x68b   :  { %4964 = vmatmul.f32.vlgmr.msrb.gmra.mxu3 %v4802_v38  ;;  %4984 = vmatmul.f32.vlgmr.msra.gmra.mxu1 %v4803_v7  ;;  %v4447_v38 = vld [vmem:[%s10325_s5 + $0x580] sm:$0xff]  ;;  %v4526_v24 = vld [vmem:[%s10325_s5 + $0x7f8] sm:$0xff]  ;;  %v4493_v22 = vld [vmem:[%s10325_s5 + $0x6f0] sm:$0xff] }
 0x68c   :  { %5004 = vmatmul.f32.vlgmr.msra.gmra.mxu2 %v4804_v34  ;;  %5024 = vmatmul.f32.vlgmr.msrb.gmra.mxu0 %v4805_v33  ;;  %v4808_v7 = vld.sshfl [vmem:[#allocation1] sm:$0xff pattern:$0x73625140]  ;;  %v4809_v34 = vld.sshfl [vmem:[#allocation1 + $0x8] sm:$0xff pattern:$0x73625140] }
 0x68d   :  { %5032 = vmatpush.msra.mxu3 %v4410_v60  ;;  %5052 = vmatpush.msrb.mxu1 %v4426_v55  ;;  %v4494_v33 = vld [vmem:[%s10325_s5 + $0x6f8] sm:$0xff]  ;;  %v4509_v25 = vld [vmem:[%s10325_s5 + $0x770] sm:$0xff]  ;;  %v4476_v55 = vld [vmem:[%s10325_s5 + $0x668] sm:$0xff] }
 0x68e   :  { %5072 = vmatpush.msrb.mxu2 %v4442_v27  ;;  %5092 = vmatpush.msra.mxu0 %v4458_v19  ;;  %v4525_v60 = vld [vmem:[%s10325_s5 + $0x7f0] sm:$0xff]  ;;  %v4492_v27 = vld [vmem:[%s10325_s5 + $0x6e8] sm:$0xff] }
 0x68f   :  { %5033 = vmatpush.msra.mxu3 %v4409_v37  ;;  %5053 = vmatpush.msrb.mxu1 %v4425_v8  ;;  %v4508_v19 = vld [vmem:[%s10325_s5 + $0x768] sm:$0xff]  ;;  %v4475_v8 = vld [vmem:[%s10325_s5 + $0x660] sm:$0xff] }
 0x690   :  { %5073 = vmatpush.msrb.mxu2 %v4441_v53  ;;  %5093 = vmatpush.msra.mxu0 %v4457_v41  ;;  %v4524_v37 = vld [vmem:[%s10325_s5 + $0x7e8] sm:$0xff]  ;;  %v4491_v53 = vld [vmem:[%s10325_s5 + $0x6e0] sm:$0xff] }
 0x691   :  { %5034 = vmatpush.msra.mxu3 %v4408_v10  ;;  %5054 = vmatpush.msrb.mxu1 %v4424_v52  ;;  %v4507_v41 = vld [vmem:[%s10325_s5 + $0x760] sm:$0xff]  ;;  %v4474_v52 = vld [vmem:[%s10325_s5 + $0x658] sm:$0xff] }
 0x692   :  { %5074 = vmatpush.msrb.mxu2 %v4440_v15  ;;  %5094 = vmatpush.msra.mxu0 %v4456_v39  ;;  %v4523_v10 = vld [vmem:[%s10325_s5 + $0x7e0] sm:$0xff]  ;;  %v4490_v15 = vld [vmem:[%s10325_s5 + $0x6d8] sm:$0xff] }
 0x693   :  { %5035 = vmatpush.msra.mxu3 %v4407_v59  ;;  %5055 = vmatpush.msrb.mxu1 %v4423_v50  ;;  %v4506_v39 = vld [vmem:[%s10325_s5 + $0x758] sm:$0xff]  ;;  %v4473_v50 = vld [vmem:[%s10325_s5 + $0x650] sm:$0xff] }
 0x694   :  { %5075 = vmatpush.msrb.mxu2 %v4439_v54  ;;  %5095 = vmatpush.msra.mxu0 %v4455_v32  ;;  %v4522_v59 = vld [vmem:[%s10325_s5 + $0x7d8] sm:$0xff]  ;;  %v4489_v54 = vld [vmem:[%s10325_s5 + $0x6d0] sm:$0xff] }
 0x695   :  { %5036 = vmatpush.msra.mxu3 %v4406_v35  ;;  %5056 = vmatpush.msrb.mxu1 %v4422_v28  ;;  %v4505_v32 = vld [vmem:[%s10325_s5 + $0x750] sm:$0xff]  ;;  %v4472_v28 = vld [vmem:[%s10325_s5 + $0x648] sm:$0xff] }
 0x696   :  { %5076 = vmatpush.msrb.mxu2 %v4438_v62  ;;  %5096 = vmatpush.msra.mxu0 %v4454_v23  ;;  %v4521_v35 = vld [vmem:[%s10325_s5 + $0x7d0] sm:$0xff]  ;;  %v4488_v62 = vld [vmem:[%s10325_s5 + $0x6c8] sm:$0xff] }
 0x697   :  { %5037 = vmatpush.msra.mxu3 %v4405_v0  ;;  %5057 = vmatpush.msrb.mxu1 %v4421_v13  ;;  %v4504_v23 = vld [vmem:[%s10325_s5 + $0x748] sm:$0xff]  ;;  %v4471_v13 = vld [vmem:[%s10325_s5 + $0x640] sm:$0xff] }
 0x698   :  { %5077 = vmatpush.msrb.mxu2 %v4437_v3  ;;  %5097 = vmatpush.msra.mxu0 %v4453_v40  ;;  %v4520_v0 = vld [vmem:[%s10325_s5 + $0x7c8] sm:$0xff]  ;;  %v4487_v3 = vld [vmem:[%s10325_s5 + $0x6c0] sm:$0xff] }
 0x699   :  { %5038 = vmatpush.msra.mxu3 %v4404_v5  ;;  %5058 = vmatpush.msrb.mxu1 %v4420_v43  ;;  %v4503_v40 = vld [vmem:[%s10325_s5 + $0x740] sm:$0xff]  ;;  %v4470_v43 = vld [vmem:[%s10325_s5 + $0x638] sm:$0xff] }
 0x69a   :  { %5078 = vmatpush.msrb.mxu2 %v4436_v17  ;;  %5098 = vmatpush.msra.mxu0 %v4452_v9  ;;  %v4519_v5 = vld [vmem:[%s10325_s5 + $0x7c0] sm:$0xff]  ;;  %v4486_v17 = vld [vmem:[%s10325_s5 + $0x6b8] sm:$0xff] }
 0x69b   :  { %5039 = vmatpush.msra.mxu3 %v4403_v4  ;;  %5059 = vmatpush.msrb.mxu1 %v4419_v42  ;;  %v4502_v9 = vld [vmem:[%s10325_s5 + $0x738] sm:$0xff]  ;;  %v4469_v42 = vld [vmem:[%s10325_s5 + $0x630] sm:$0xff] }
 0x69c   :  { %5079 = vmatpush.msrb.mxu2 %v4435_v12  ;;  %5099 = vmatpush.msra.mxu0 %v4451_v21  ;;  %v4518_v4 = vld [vmem:[%s10325_s5 + $0x7b8] sm:$0xff]  ;;  %v4485_v12 = vld [vmem:[%s10325_s5 + $0x6b0] sm:$0xff] }
 0x69d   :  { %5040 = vmatpush.msra.mxu3 %v4402_v16  ;;  %5060 = vmatpush.msrb.mxu1 %v4418_v20  ;;  %v4501_v21 = vld [vmem:[%s10325_s5 + $0x730] sm:$0xff]  ;;  %v4468_v20 = vld [vmem:[%s10325_s5 + $0x628] sm:$0xff] }
 0x69e   :  { %5080 = vmatpush.msrb.mxu2 %v4434_v57  ;;  %5100 = vmatpush.msra.mxu0 %v4450_v61  ;;  %v4517_v16 = vld [vmem:[%s10325_s5 + $0x7b0] sm:$0xff]  ;;  %v4484_v57 = vld [vmem:[%s10325_s5 + $0x6a8] sm:$0xff] }
 0x69f   :  { %5041 = vmatpush.msra.mxu3 %v4401_v1  ;;  %5061 = vmatpush.msrb.mxu1 %v4417_v2  ;;  %v4500_v61 = vld [vmem:[%s10325_s5 + $0x728] sm:$0xff]  ;;  %v4467_v2 = vld [vmem:[%s10325_s5 + $0x620] sm:$0xff] }
 0x6a0   :  { %5081 = vmatpush.msrb.mxu2 %v4433_v45  ;;  %5101 = vmatpush.msra.mxu0 %v4449_v49  ;;  %v4516_v1 = vld [vmem:[%s10325_s5 + $0x7a8] sm:$0xff]  ;;  %v4483_v45 = vld [vmem:[%s10325_s5 + $0x6a0] sm:$0xff] }
 0x6a1   :  { %5042 = vmatpush.msra.mxu3 %v4400_v26  ;;  %5062 = vmatpush.msrb.mxu1 %v4416_v47  ;;  %v4499_v49 = vld [vmem:[%s10325_s5 + $0x720] sm:$0xff]  ;;  %v4466_v47 = vld [vmem:[%s10325_s5 + $0x618] sm:$0xff] }
 0x6a2   :  { %5082 = vmatpush.msrb.mxu2 %v4432_v63  ;;  %5102 = vmatpush.msra.mxu0 %v4448_v14  ;;  %v4515_v26 = vld [vmem:[%s10325_s5 + $0x7a0] sm:$0xff]  ;;  %v4482_v63 = vld [vmem:[%s10325_s5 + $0x698] sm:$0xff] }
 0x6a3   :  { %5043 = vmatpush.msra.mxu3 %v4399_v31  ;;  %5063 = vmatpush.msrb.mxu1 %v4415_v56  ;;  %v4498_v14 = vld [vmem:[%s10325_s5 + $0x718] sm:$0xff]  ;;  %v4465_v56 = vld [vmem:[%s10325_s5 + $0x610] sm:$0xff] }
 0x6a4   :  { %5083 = vmatpush.msrb.mxu2 %v4431_v11  ;;  %5103 = vmatpush.msra.mxu0 %v4447_v38  ;;  %v4514_v31 = vld [vmem:[%s10325_s5 + $0x798] sm:$0xff]  ;;  %v4481_v11 = vld [vmem:[%s10325_s5 + $0x690] sm:$0xff] }
 0x6a5   :  { %5044 = vmatmul.f32.vlgmr.msra.gmra.mxu3 %v4808_v7  ;;  %5064 = vmatmul.f32.vlgmr.msrb.gmra.mxu1 %v4809_v34  ;;  %v4497_v38 = vld [vmem:[%s10325_s5 + $0x710] sm:$0xff]  ;;  %v4464_v34 = vld [vmem:[%s10325_s5 + $0x608] sm:$0xff] }
 0x6a6   :  { %5084 = vmatmul.f32.vlgmr.msrb.gmra.mxu2 %v4810_v46  ;;  %5104 = vmatmul.f32.vlgmr.msra.gmra.mxu0 %v4811_v51  ;;  %v4513_v7 = vld [vmem:[%s10325_s5 + $0x790] sm:$0xff]  ;;  %v4480_v46 = vld [vmem:[%s10325_s5 + $0x688] sm:$0xff]  ;;  %v4463_v51 = vld [vmem:[%s10325_s5 + $0x600] sm:$0xff] }
 0x6a7   :  { %5108 = vmatpush.msrb.mxu3 %v4478_v44  ;;  %5128 = vmatpush.msra.mxu1 %v4494_v33  ;;  %v4496_v44 = vld [vmem:[%s10325_s5 + $0x708] sm:$0xff] }
 0x6a8   :  { %5148 = vmatpush.msra.mxu2 %v4510_v48  ;;  %5168 = vmatpush.msrb.mxu0 %v4526_v24  ;;  %v4512_v33 = vld [vmem:[%s10325_s5 + $0x788] sm:$0xff]  ;;  %v4479_v48 = vld [vmem:[%s10325_s5 + $0x680] sm:$0xff] }
 0x6a9   :  { %5109 = vmatpush.msrb.mxu3 %v4477_v58  ;;  %5129 = vmatpush.msra.mxu1 %v4493_v22  ;;  %v4495_v24 = vld [vmem:[%s10325_s5 + $0x700] sm:$0xff] }
 0x6aa   :  { %5149 = vmatpush.msra.mxu2 %v4509_v25  ;;  %5169 = vmatpush.msrb.mxu0 %v4525_v60  ;;  %v4511_v58 = vld [vmem:[%s10325_s5 + $0x780] sm:$0xff]  ;;  %v4813_v25 = vld.sshfl [vmem:[#allocation1 + $0x28] sm:$0xff pattern:$0x73625140] }
 0x6ab   :  { %5110 = vmatpush.msrb.mxu3 %v4476_v55  ;;  %5130 = vmatpush.msra.mxu1 %v4492_v27  ;;  %v4812_v22 = vld.sshfl [vmem:[#allocation1 + $0x20] sm:$0xff pattern:$0x73625140]  ;;  %v4814_v60 = vld.sshfl [vmem:[#allocation1 + $0x30] sm:$0xff pattern:$0x73625140] }
 0x6ac   :  { %5150 = vmatpush.msra.mxu2 %v4508_v19  ;;  %5170 = vmatpush.msrb.mxu0 %v4524_v37  ;;  %v4542_v55 = vld [vmem:[%s10325_s5 + $0x878] sm:$0xff] }
 0x6ad   :  { %5111 = vmatpush.msrb.mxu3 %v4475_v8  ;;  %5131 = vmatpush.msra.mxu1 %v4491_v53  ;;  %v4558_v27 = vld [vmem:[%s10325_s5 + $0x8f8] sm:$0xff]  ;;  %v4541_v53 = vld [vmem:[%s10325_s5 + $0x870] sm:$0xff] }
 0x6ae   :  { %5151 = vmatpush.msra.mxu2 %v4507_v41  ;;  %5171 = vmatpush.msrb.mxu0 %v4523_v10  ;;  %v4815_v19 = vld.sshfl [vmem:[#allocation1 + $0x38] sm:$0xff pattern:$0x73625140]  ;;  %v4557_v41 = vld [vmem:[%s10325_s5 + $0x8f0] sm:$0xff] }
 0x6af   :  { %5112 = vmatpush.msrb.mxu3 %v4474_v52  ;;  %5132 = vmatpush.msra.mxu1 %v4490_v15  ;;  %v4574_v37 = vld [vmem:[%s10325_s5 + $0x978] sm:$0xff]  ;;  %v4573_v10 = vld [vmem:[%s10325_s5 + $0x970] sm:$0xff]  ;;  %v4540_v15 = vld [vmem:[%s10325_s5 + $0x868] sm:$0xff] }
 0x6b0   :  { %5152 = vmatpush.msra.mxu2 %v4506_v39  ;;  %5172 = vmatpush.msrb.mxu0 %v4522_v59  ;;  %v4590_v8 = vld [vmem:[%s10325_s5 + $0x9f8] sm:$0xff]  ;;  %v4589_v52 = vld [vmem:[%s10325_s5 + $0x9f0] sm:$0xff]  ;;  %v4556_v39 = vld [vmem:[%s10325_s5 + $0x8e8] sm:$0xff] }
 0x6b1   :  { %5113 = vmatpush.msrb.mxu3 %v4473_v50  ;;  %5133 = vmatpush.msra.mxu1 %v4489_v54  ;;  %v4572_v59 = vld [vmem:[%s10325_s5 + $0x968] sm:$0xff]  ;;  %v4539_v54 = vld [vmem:[%s10325_s5 + $0x860] sm:$0xff] }
 0x6b2   :  { %5153 = vmatpush.msra.mxu2 %v4505_v32  ;;  %5173 = vmatpush.msrb.mxu0 %v4521_v35  ;;  %v4588_v50 = vld [vmem:[%s10325_s5 + $0x9e8] sm:$0xff]  ;;  %v4555_v32 = vld [vmem:[%s10325_s5 + $0x8e0] sm:$0xff] }
 0x6b3   :  { %5114 = vmatpush.msrb.mxu3 %v4472_v28  ;;  %5134 = vmatpush.msra.mxu1 %v4488_v62  ;;  %v4571_v35 = vld [vmem:[%s10325_s5 + $0x960] sm:$0xff]  ;;  %v4538_v62 = vld [vmem:[%s10325_s5 + $0x858] sm:$0xff] }
 0x6b4   :  { %5154 = vmatpush.msra.mxu2 %v4504_v23  ;;  %5174 = vmatpush.msrb.mxu0 %v4520_v0  ;;  %v4587_v28 = vld [vmem:[%s10325_s5 + $0x9e0] sm:$0xff]  ;;  %v4554_v23 = vld [vmem:[%s10325_s5 + $0x8d8] sm:$0xff] }
 0x6b5   :  { %5115 = vmatpush.msrb.mxu3 %v4471_v13  ;;  %5135 = vmatpush.msra.mxu1 %v4487_v3  ;;  %v4570_v0 = vld [vmem:[%s10325_s5 + $0x958] sm:$0xff]  ;;  %v4537_v3 = vld [vmem:[%s10325_s5 + $0x850] sm:$0xff] }
 0x6b6   :  { %5155 = vmatpush.msra.mxu2 %v4503_v40  ;;  %5175 = vmatpush.msrb.mxu0 %v4519_v5  ;;  %v4586_v13 = vld [vmem:[%s10325_s5 + $0x9d8] sm:$0xff]  ;;  %v4553_v40 = vld [vmem:[%s10325_s5 + $0x8d0] sm:$0xff] }
 0x6b7   :  { %5116 = vmatpush.msrb.mxu3 %v4470_v43  ;;  %5136 = vmatpush.msra.mxu1 %v4486_v17  ;;  %v4569_v5 = vld [vmem:[%s10325_s5 + $0x950] sm:$0xff]  ;;  %v4536_v17 = vld [vmem:[%s10325_s5 + $0x848] sm:$0xff] }
 0x6b8   :  { %5156 = vmatpush.msra.mxu2 %v4502_v9  ;;  %5176 = vmatpush.msrb.mxu0 %v4518_v4  ;;  %v4585_v43 = vld [vmem:[%s10325_s5 + $0x9d0] sm:$0xff]  ;;  %v4552_v9 = vld [vmem:[%s10325_s5 + $0x8c8] sm:$0xff] }
 0x6b9   :  { %5117 = vmatpush.msrb.mxu3 %v4469_v42  ;;  %5137 = vmatpush.msra.mxu1 %v4485_v12  ;;  %v4568_v4 = vld [vmem:[%s10325_s5 + $0x948] sm:$0xff]  ;;  %v4535_v12 = vld [vmem:[%s10325_s5 + $0x840] sm:$0xff] }
 0x6ba   :  { %5157 = vmatpush.msra.mxu2 %v4501_v21  ;;  %5177 = vmatpush.msrb.mxu0 %v4517_v16  ;;  %v4584_v42 = vld [vmem:[%s10325_s5 + $0x9c8] sm:$0xff]  ;;  %v4551_v21 = vld [vmem:[%s10325_s5 + $0x8c0] sm:$0xff] }
 0x6bb   :  { %5118 = vmatpush.msrb.mxu3 %v4468_v20  ;;  %5138 = vmatpush.msra.mxu1 %v4484_v57  ;;  %v4567_v16 = vld [vmem:[%s10325_s5 + $0x940] sm:$0xff]  ;;  %v4534_v57 = vld [vmem:[%s10325_s5 + $0x838] sm:$0xff] }
 0x6bc   :  { %5158 = vmatpush.msra.mxu2 %v4500_v61  ;;  %5178 = vmatpush.msrb.mxu0 %v4516_v1  ;;  %v4583_v20 = vld [vmem:[%s10325_s5 + $0x9c0] sm:$0xff]  ;;  %v4550_v61 = vld [vmem:[%s10325_s5 + $0x8b8] sm:$0xff] }
 0x6bd   :  { %5119 = vmatpush.msrb.mxu3 %v4467_v2  ;;  %5139 = vmatpush.msra.mxu1 %v4483_v45  ;;  %v4566_v1 = vld [vmem:[%s10325_s5 + $0x938] sm:$0xff]  ;;  %v4533_v45 = vld [vmem:[%s10325_s5 + $0x830] sm:$0xff] }
 0x6be   :  { %5159 = vmatpush.msra.mxu2 %v4499_v49  ;;  %5179 = vmatpush.msrb.mxu0 %v4515_v26  ;;  %v4582_v2 = vld [vmem:[%s10325_s5 + $0x9b8] sm:$0xff]  ;;  %v4549_v49 = vld [vmem:[%s10325_s5 + $0x8b0] sm:$0xff] }
 0x6bf   :  { %5120 = vmatpush.msrb.mxu3 %v4466_v47  ;;  %5140 = vmatpush.msra.mxu1 %v4482_v63  ;;  %v4565_v26 = vld [vmem:[%s10325_s5 + $0x930] sm:$0xff]  ;;  %v4532_v63 = vld [vmem:[%s10325_s5 + $0x828] sm:$0xff] }
 0x6c0   :  { %5160 = vmatpush.msra.mxu2 %v4498_v14  ;;  %5180 = vmatpush.msrb.mxu0 %v4514_v31  ;;  %v4581_v47 = vld [vmem:[%s10325_s5 + $0x9b0] sm:$0xff]  ;;  %v4548_v14 = vld [vmem:[%s10325_s5 + $0x8a8] sm:$0xff] }
 0x6c1   :  { %5121 = vmatpush.msrb.mxu3 %v4465_v56  ;;  %5141 = vmatpush.msra.mxu1 %v4481_v11  ;;  %v4564_v31 = vld [vmem:[%s10325_s5 + $0x928] sm:$0xff]  ;;  %v4531_v11 = vld [vmem:[%s10325_s5 + $0x820] sm:$0xff] }
 0x6c2   :  { %5161 = vmatpush.msra.mxu2 %v4497_v38  ;;  %5181 = vmatpush.msrb.mxu0 %v4513_v7  ;;  %v4580_v56 = vld [vmem:[%s10325_s5 + $0x9a8] sm:$0xff]  ;;  %v4547_v38 = vld [vmem:[%s10325_s5 + $0x8a0] sm:$0xff] }
 0x6c3   :  { %5122 = vmatpush.msrb.mxu3 %v4464_v34  ;;  %5142 = vmatpush.msra.mxu1 %v4480_v46  ;;  %v4563_v7 = vld [vmem:[%s10325_s5 + $0x920] sm:$0xff]  ;;  %v4530_v46 = vld [vmem:[%s10325_s5 + $0x818] sm:$0xff] }
 0x6c4   :  { %5162 = vmatpush.msra.mxu2 %v4496_v44  ;;  %5182 = vmatpush.msrb.mxu0 %v4512_v33  ;;  %v4579_v34 = vld [vmem:[%s10325_s5 + $0x9a0] sm:$0xff]  ;;  %v4546_v44 = vld [vmem:[%s10325_s5 + $0x898] sm:$0xff] }
 0x6c5   :  { %5123 = vmatpush.msrb.mxu3 %v4463_v51  ;;  %5143 = vmatpush.msra.mxu1 %v4479_v48  ;;  %v4562_v33 = vld [vmem:[%s10325_s5 + $0x918] sm:$0xff] }
 0x6c6   :  { %5163 = vmatpush.msra.mxu2 %v4495_v24  ;;  %5183 = vmatpush.msrb.mxu0 %v4511_v58  ;;  %v4578_v51 = vld [vmem:[%s10325_s5 + $0x998] sm:$0xff]  ;;  %v4529_v58 = vld [vmem:[%s10325_s5 + $0x810] sm:$0xff] }
 0x6c7   :  { %5124 = vmatmul.f32.vlgmr.msrb.gmra.mxu3 %v4812_v22  ;;  %5144 = vmatmul.f32.vlgmr.msra.gmra.mxu1 %v4813_v25  ;;  %v4545_v22 = vld [vmem:[%s10325_s5 + $0x890] sm:$0xff] }
 0x6c8   :  { %5164 = vmatmul.f32.vlgmr.msra.gmra.mxu2 %v4814_v60  ;;  %5184 = vmatmul.f32.vlgmr.msrb.gmra.mxu0 %v4815_v19  ;;  %v4561_v60 = vld [vmem:[%s10325_s5 + $0x910] sm:$0xff] }
 0x6c9   :  { %5188 = vmatpush.msra.mxu3 %v4542_v55  ;;  %5208 = vmatpush.msrb.mxu1 %v4558_v27  ;;  %v4094_v48 = vpop.permute.xlu2 %4093  ;;  %v4577_v55 = vld [vmem:[%s10325_s5 + $0x990] sm:$0xff] }
 0x6ca   :  { %5228 = vmatpush.msrb.mxu2 %v4574_v37  ;;  %5248 = vmatpush.msra.mxu0 %v4590_v8  ;;  %v4528_v8 = vld [vmem:[%s10325_s5 + $0x808] sm:$0xff] }
 0x6cb   :  { %5189 = vmatpush.msra.mxu3 %v4541_v53  ;;  %5209 = vmatpush.msrb.mxu1 %v4557_v41  ;;  %v4544_v53 = vld [vmem:[%s10325_s5 + $0x888] sm:$0xff] }
 0x6cc   :  { %5229 = vmatpush.msrb.mxu2 %v4573_v10  ;;  %5249 = vmatpush.msra.mxu0 %v4589_v52  ;;  %v4560_v10 = vld [vmem:[%s10325_s5 + $0x908] sm:$0xff]  ;;  %v4527_v52 = vld [vmem:[%s10325_s5 + $0x800] sm:$0xff] }
 0x6cd   :  { %5190 = vmatpush.msra.mxu3 %v4540_v15  ;;  %5210 = vmatpush.msrb.mxu1 %v4556_v39  ;;  %v4543_v15 = vld [vmem:[%s10325_s5 + $0x880] sm:$0xff] }
 0x6ce   :  { %5230 = vmatpush.msrb.mxu2 %v4572_v59  ;;  %5250 = vmatpush.msra.mxu0 %v4588_v50  ;;  %v4575_v39 = vld [vmem:[%s10325_s5 + $0x980] sm:$0xff]  ;;  %v4606_v59 = vld [vmem:[%s10325_s5 + $0xa78] sm:$0xff] }
 0x6cf   :  { %5191 = vmatpush.msra.mxu3 %v4539_v54  ;;  %5211 = vmatpush.msrb.mxu1 %v4555_v32  ;;  %v4622_v50 = vld [vmem:[%s10325_s5 + $0xaf8] sm:$0xff] }
 0x6d0   :  { %5231 = vmatpush.msrb.mxu2 %v4571_v35  ;;  %5251 = vmatpush.msra.mxu0 %v4587_v28  ;;  %v4638_v54 = vld [vmem:[%s10325_s5 + $0xb78] sm:$0xff]  ;;  %v4605_v35 = vld [vmem:[%s10325_s5 + $0xa70] sm:$0xff] }
 0x6d1   :  { %5192 = vmatpush.msra.mxu3 %v4538_v62  ;;  %5212 = vmatpush.msrb.mxu1 %v4554_v23  ;;  %v4654_v32 = vld [vmem:[%s10325_s5 + $0xbf8] sm:$0xff]  ;;  %v4621_v28 = vld [vmem:[%s10325_s5 + $0xaf0] sm:$0xff] }
 0x6d2   :  { %5232 = vmatpush.msrb.mxu2 %v4570_v0  ;;  %5252 = vmatpush.msra.mxu0 %v4586_v13  ;;  %v4637_v62 = vld [vmem:[%s10325_s5 + $0xb70] sm:$0xff]  ;;  %v4604_v0 = vld [vmem:[%s10325_s5 + $0xa68] sm:$0xff] }
 0x6d3   :  { %5193 = vmatpush.msra.mxu3 %v4537_v3  ;;  %5213 = vmatpush.msrb.mxu1 %v4553_v40  ;;  %v4653_v23 = vld [vmem:[%s10325_s5 + $0xbf0] sm:$0xff]  ;;  %v4620_v13 = vld [vmem:[%s10325_s5 + $0xae8] sm:$0xff] }
 0x6d4   :  { %5233 = vmatpush.msrb.mxu2 %v4569_v5  ;;  %5253 = vmatpush.msra.mxu0 %v4585_v43  ;;  %v4636_v3 = vld [vmem:[%s10325_s5 + $0xb68] sm:$0xff]  ;;  %v4603_v5 = vld [vmem:[%s10325_s5 + $0xa60] sm:$0xff] }
 0x6d5   :  { %5194 = vmatpush.msra.mxu3 %v4536_v17  ;;  %5214 = vmatpush.msrb.mxu1 %v4552_v9  ;;  %v4652_v40 = vld [vmem:[%s10325_s5 + $0xbe8] sm:$0xff]  ;;  %v4619_v17 = vld [vmem:[%s10325_s5 + $0xae0] sm:$0xff] }
 0x6d6   :  { %5234 = vmatpush.msrb.mxu2 %v4568_v4  ;;  %5254 = vmatpush.msra.mxu0 %v4584_v42  ;;  %v4635_v9 = vld [vmem:[%s10325_s5 + $0xb60] sm:$0xff] }
 0x6d7   :  { %5195 = vmatpush.msra.mxu3 %v4535_v12  ;;  %5215 = vmatpush.msrb.mxu1 %v4551_v21  ;;  %v4651_v4 = vld [vmem:[%s10325_s5 + $0xbe0] sm:$0xff]  ;;  %v4602_v21 = vld [vmem:[%s10325_s5 + $0xa58] sm:$0xff] }
 0x6d8   :  { %5235 = vmatpush.msrb.mxu2 %v4567_v16  ;;  %5255 = vmatpush.msra.mxu0 %v4583_v20  ;;  %v4618_v16 = vld [vmem:[%s10325_s5 + $0xad8] sm:$0xff] }
 0x6d9   :  { %5196 = vmatpush.msra.mxu3 %v4534_v57  ;;  %5216 = vmatpush.msrb.mxu1 %v4550_v61  ;;  %v4634_v57 = vld [vmem:[%s10325_s5 + $0xb58] sm:$0xff] }
 0x6da   :  { %5236 = vmatpush.msrb.mxu2 %v4566_v1  ;;  %5256 = vmatpush.msra.mxu0 %v4582_v2  ;;  %v4650_v61 = vld [vmem:[%s10325_s5 + $0xbd8] sm:$0xff]  ;;  %v4100_v1 = vpop.permute.xlu2 %4099 }
 0x6db   :  { %5197 = vmatpush.msra.mxu3 %v4533_v45  ;;  %5217 = vmatpush.msrb.mxu1 %v4549_v49  ;;  %v4601_v49 = vld [vmem:[%s10325_s5 + $0xa50] sm:$0xff] }
 0x6dc   :  { %5237 = vmatpush.msrb.mxu2 %v4565_v26  ;;  %5257 = vmatpush.msra.mxu0 %v4581_v47  ;;  %v4617_v26 = vld [vmem:[%s10325_s5 + $0xad0] sm:$0xff] }
 0x6dd   :  { %5198 = vmatpush.msra.mxu3 %v4532_v63  ;;  %5218 = vmatpush.msrb.mxu1 %v4548_v14  ;;  %v4633_v14 = vld [vmem:[%s10325_s5 + $0xb50] sm:$0xff] }
 0x6de   :  { %5238 = vmatpush.msrb.mxu2 %v4564_v31  ;;  %5258 = vmatpush.msra.mxu0 %v4580_v56  ;;  %v4649_v31 = vld [vmem:[%s10325_s5 + $0xbd0] sm:$0xff] }
 0x6df   :  { %5199 = vmatpush.msra.mxu3 %v4531_v11  ;;  %5219 = vmatpush.msrb.mxu1 %v4547_v38  ;;  %v4600_v11 = vld [vmem:[%s10325_s5 + $0xa48] sm:$0xff] }
 0x6e0   :  { %5239 = vmatpush.msrb.mxu2 %v4563_v7  ;;  %5259 = vmatpush.msra.mxu0 %v4579_v34  ;;  %v9573_v24 = vpop.permute.xlu0 %4095  ;;  %v4616_v38 = vld [vmem:[%s10325_s5 + $0xac8] sm:$0xff] }
 0x6e1   :  { %5200 = vmatpush.msra.mxu3 %v4530_v46  ;;  %5220 = vmatpush.msrb.mxu1 %v4546_v44  ;;  %v4106_v25 = vsel %vm10406_vm8, %v4094_v48, %v9573_v24  ;;  %v4092_v27 = vpop.permute.xlu1 %4091 }
 0x6e2   :  { %5240 = vmatpush.msrb.mxu2 %v4562_v33  ;;  %5260 = vmatpush.msra.mxu0 %v4578_v51  ;;  %v4122_v19 = vmax.f32 %v8972_v30, %v4106_v25  ;;  %v4105_v37 = vsel %vm10407_vm3, %v4092_v27, %v4094_v48  ;;  %v4576_v30 = vld [vmem:[%s10325_s5 + $0x988] sm:$0xff]  ;;  %v4615_v51 = vld [vmem:[%s10325_s5 + $0xac0] sm:$0xff]  ;;  %v4630_v25 = vld [vmem:[%s10325_s5 + $0xb38] sm:$0xff] }
 0x6e3   :  { %5201 = vmatpush.msra.mxu3 %v4529_v58  ;;  %5221 = vmatpush.msrb.mxu1 %v4545_v22  ;;  %v4121_v41 = vmax.f32 %v8968_v29, %v4105_v37  ;;  %v4559_v29 = vld [vmem:[%s10325_s5 + $0x900] sm:$0xff]  ;;  %v4632_v33 = vld [vmem:[%s10325_s5 + $0xb48] sm:$0xff]  ;;  %v4598_v58 = vld [vmem:[%s10325_s5 + $0xa38] sm:$0xff] }
 0x6e4   :  { %4130 = vst [vmem:[#allocation7 + $0x28] sm:$0xff] %v4122_v19  ;;  %5241 = vmatpush.msrb.mxu2 %v4561_v60  ;;  %5261 = vmatpush.msra.mxu0 %v4577_v55  ;;  %v4631_v48 = vld [vmem:[%s10325_s5 + $0xb40] sm:$0xff]  ;;  %v4614_v22 = vld [vmem:[%s10325_s5 + $0xab8] sm:$0xff]  ;;  %v4597_v55 = vld [vmem:[%s10325_s5 + $0xa30] sm:$0xff] }
 0x6e5   :  { %4129 = vst [vmem:[#allocation7 + $0x20] sm:$0xff] %v4121_v41  ;;  %5202 = vmatpush.msra.mxu3 %v4528_v8  ;;  %5222 = vmatpush.msrb.mxu1 %v4544_v53  ;;  %v4646_v60 = vld [vmem:[%s10325_s5 + $0xbb8] sm:$0xff]  ;;  %v4613_v27 = vld [vmem:[%s10325_s5 + $0xab0] sm:$0xff]  ;;  %v4596_v8 = vld [vmem:[%s10325_s5 + $0xa28] sm:$0xff] }
 0x6e6   :  { %5242 = vmatpush.msrb.mxu2 %v4560_v10  ;;  %5262 = vmatpush.msra.mxu0 %v4576_v30  ;;  %v4629_v19 = vld [vmem:[%s10325_s5 + $0xb30] sm:$0xff]  ;;  %v4612_v53 = vld [vmem:[%s10325_s5 + $0xaa8] sm:$0xff]  ;;  %v4595_v30 = vld [vmem:[%s10325_s5 + $0xa20] sm:$0xff] }
 0x6e7   :  { %5203 = vmatpush.msra.mxu3 %v4527_v52  ;;  %5223 = vmatpush.msrb.mxu1 %v4543_v15  ;;  %v4645_v37 = vld [vmem:[%s10325_s5 + $0xbb0] sm:$0xff]  ;;  %v4628_v41 = vld [vmem:[%s10325_s5 + $0xb28] sm:$0xff]  ;;  %v4611_v52 = vld [vmem:[%s10325_s5 + $0xaa0] sm:$0xff] }
 0x6e8   :  { %5243 = vmatpush.msrb.mxu2 %v4559_v29  ;;  %5263 = vmatpush.msra.mxu0 %v4575_v39  ;;  %v4644_v10 = vld [vmem:[%s10325_s5 + $0xba8] sm:$0xff]  ;;  %v4627_v15 = vld [vmem:[%s10325_s5 + $0xb20] sm:$0xff]  ;;  %v4594_v39 = vld [vmem:[%s10325_s5 + $0xa18] sm:$0xff] }
 0x6e9   :  { %5268 = vmatpush.msrb.mxu3 %v4606_v59  ;;  %5288 = vmatpush.msra.mxu1 %v4622_v50  ;;  %v4098_v43 = vpop.permute.xlu1 %4097  ;;  %v4643_v29 = vld [vmem:[%s10325_s5 + $0xba0] sm:$0xff]  ;;  %v4610_v59 = vld [vmem:[%s10325_s5 + $0xa98] sm:$0xff] }
 0x6ea   :  { %5308 = vmatpush.msra.mxu2 %v4638_v54  ;;  %5328 = vmatpush.msrb.mxu0 %v4654_v32  ;;  %v4107_v45 = vsel %vm10408_vm7, %v9573_v24, %v4098_v43  ;;  %v4108_v63 = vsel %vm10409_vm1, %v4098_v43, %v4100_v1  ;;  %v4647_v24 = vld [vmem:[%s10325_s5 + $0xbc0] sm:$0xff]  ;;  %v4626_v32 = vld [vmem:[%s10325_s5 + $0xb18] sm:$0xff] }
 0x6eb   :  { %5269 = vmatpush.msrb.mxu3 %v4605_v35  ;;  %5289 = vmatpush.msra.mxu1 %v4621_v28  ;;  %v4123_v34 = vmax.f32 %v8956_v36, %v4107_v45  ;;  %v4124_v44 = vmax.f32 %v9024_v18, %v4108_v63  ;;  %v4648_v36 = vld [vmem:[%s10325_s5 + $0xbc8] sm:$0xff]  ;;  %v4599_v18 = vld [vmem:[%s10325_s5 + $0xa40] sm:$0xff]  ;;  %v4642_v35 = vld [vmem:[%s10325_s5 + $0xb98] sm:$0xff] }
 0x6ec   :  { %v4168_v42 = vld [vmem:[#allocation7 + $0x20] ss:$8 sm:$0x3]  ;;  %v4172_v12 = vld [vmem:[#allocation7 + $0x21] ss:$8 sm:$0x3]  ;;  %5309 = vmatpush.msra.mxu2 %v4637_v62  ;;  %5329 = vmatpush.msrb.mxu0 %v4653_v23 }
 0x6ed   :  { %4170 = vst.msk [vmem:[#allocation8 + $0x20] ss:$2 sm:$0x3] %vm8757_vm15, %v4168_v42  ;;  %v4176_v20 = vld [vmem:[#allocation7 + $0x22] ss:$8 sm:$0x3]  ;;  %5270 = vmatpush.msrb.mxu3 %v4604_v0  ;;  %5290 = vmatpush.msra.mxu1 %v4620_v13 }
 0x6ee   :  { %4174 = vst.msk [vmem:[#allocation8 + $0x24] ss:$2 sm:$0x3] %vm8757_vm15, %v4172_v12  ;;  %v4180_v2 = vld [vmem:[#allocation7 + $0x23] ss:$8 sm:$0x3]  ;;  %5310 = vmatpush.msra.mxu2 %v4636_v3  ;;  %5330 = vmatpush.msrb.mxu0 %v4652_v40 }
 0x6ef   :  { %4178 = vst.msk [vmem:[#allocation8 + $0x28] ss:$2 sm:$0x3] %vm8757_vm15, %v4176_v20  ;;  %v4184_v47 = vld [vmem:[#allocation7 + $0x24] ss:$8 sm:$0x3]  ;;  %5271 = vmatpush.msrb.mxu3 %v4603_v5  ;;  %5291 = vmatpush.msra.mxu1 %v4619_v17 }
 0x6f0   :  { %4182 = vst.msk [vmem:[#allocation8 + $0x2c] ss:$2 sm:$0x3] %vm8757_vm15, %v4180_v2  ;;  %v4188_v56 = vld [vmem:[#allocation7 + $0x25] ss:$8 sm:$0x3]  ;;  %5311 = vmatpush.msra.mxu2 %v4635_v9  ;;  %5331 = vmatpush.msrb.mxu0 %v4651_v4 }
 0x6f1   :  { %4186 = vst.msk [vmem:[#allocation8 + $0x30] ss:$2 sm:$0x3] %vm8757_vm15, %v4184_v47  ;;  %v4192_v7 = vld [vmem:[#allocation7 + $0x26] ss:$8 sm:$0x3]  ;;  %5272 = vmatpush.msrb.mxu3 %v4602_v21  ;;  %5292 = vmatpush.msra.mxu1 %v4618_v16 }
 0x6f2   :  { %4190 = vst.msk [vmem:[#allocation8 + $0x34] ss:$2 sm:$0x3] %vm8757_vm15, %v4188_v56  ;;  %v4196_v46 = vld [vmem:[#allocation7 + $0x27] ss:$8 sm:$0x3]  ;;  %5312 = vmatpush.msra.mxu2 %v4634_v57  ;;  %5332 = vmatpush.msrb.mxu0 %v4650_v61 }
 0x6f3   :  { %4194 = vst.msk [vmem:[#allocation8 + $0x38] ss:$2 sm:$0x3] %vm8757_vm15, %v4192_v7  ;;  %5273 = vmatpush.msrb.mxu3 %v4601_v49  ;;  %5293 = vmatpush.msra.mxu1 %v4617_v26  ;;  %v4593_v62 = vld [vmem:[%s10325_s5 + $0xa10] sm:$0xff]  ;;  %v4592_v5 = vld [vmem:[%s10325_s5 + $0xa08] sm:$0xff]  ;;  %v4591_v21 = vld [vmem:[%s10325_s5 + $0xa00] sm:$0xff] }
 0x6f4   :  { %4198 = vst.msk [vmem:[#allocation8 + $0x3c] ss:$2 sm:$0x3] %vm8757_vm15, %v4196_v46  ;;  %5313 = vmatpush.msra.mxu2 %v4633_v14  ;;  %5333 = vmatpush.msrb.mxu0 %v4649_v31  ;;  %v4609_v23 = vld [vmem:[%s10325_s5 + $0xa90] sm:$0xff]  ;;  %v4608_v4 = vld [vmem:[%s10325_s5 + $0xa88] sm:$0xff]  ;;  %v4607_v16 = vld [vmem:[%s10325_s5 + $0xa80] sm:$0xff] }
 0x6f5   :  { %4131 = vst [vmem:[#allocation7 + $0x30] sm:$0xff] %v4123_v34  ;;  %5274 = vmatpush.msrb.mxu3 %v4600_v11  ;;  %5294 = vmatpush.msra.mxu1 %v4616_v38  ;;  %v4625_v13 = vld [vmem:[%s10325_s5 + $0xb10] sm:$0xff]  ;;  %v4624_v42 = vld [vmem:[%s10325_s5 + $0xb08] sm:$0xff]  ;;  %v4623_v20 = vld [vmem:[%s10325_s5 + $0xb00] sm:$0xff] }
 0x6f6   :  { %4132 = vst [vmem:[#allocation7 + $0x38] sm:$0xff] %v4124_v44  ;;  %5314 = vmatpush.msra.mxu2 %v4632_v33  ;;  %5334 = vmatpush.msrb.mxu0 %v4648_v36  ;;  %v4641_v3 = vld [vmem:[%s10325_s5 + $0xb90] sm:$0xff]  ;;  %v4640_v12 = vld [vmem:[%s10325_s5 + $0xb88] sm:$0xff]  ;;  %v4670_v61 = vld [vmem:[%s10325_s5 + $0xc78] sm:$0xff] }
 0x6f7   :  { %5275 = vmatpush.msrb.mxu3 %v4599_v18  ;;  %5295 = vmatpush.msra.mxu1 %v4615_v51  ;;  %v4686_v1 = vld [vmem:[%s10325_s5 + $0xcf8] sm:$0xff]  ;;  %v4669_v14 = vld [vmem:[%s10325_s5 + $0xc70] sm:$0xff]  ;;  %v4668_v34 = vld [vmem:[%s10325_s5 + $0xc68] sm:$0xff] }
 0x6f8   :  { %5315 = vmatpush.msra.mxu2 %v4631_v48  ;;  %5335 = vmatpush.msrb.mxu0 %v4647_v24  ;;  %v4702_v49 = vld [vmem:[%s10325_s5 + $0xd78] sm:$0xff]  ;;  %v4685_v11 = vld [vmem:[%s10325_s5 + $0xcf0] sm:$0xff]  ;;  %v4684_v46 = vld [vmem:[%s10325_s5 + $0xce8] sm:$0xff] }
 0x6f9   :  { %5276 = vmatpush.msrb.mxu3 %v4598_v58  ;;  %5296 = vmatpush.msra.mxu1 %v4614_v22  ;;  %v4718_v26 = vld [vmem:[%s10325_s5 + $0xdf8] sm:$0xff]  ;;  %v4701_v38 = vld [vmem:[%s10325_s5 + $0xd70] sm:$0xff]  ;;  %v4700_v44 = vld [vmem:[%s10325_s5 + $0xd68] sm:$0xff] }
 0x6fa   :  { %5316 = vmatpush.msra.mxu2 %v4630_v25  ;;  %5336 = vmatpush.msrb.mxu0 %v4646_v60  ;;  %v4717_v7 = vld [vmem:[%s10325_s5 + $0xdf0] sm:$0xff]  ;;  %v4716_v33 = vld [vmem:[%s10325_s5 + $0xde8] sm:$0xff]  ;;  %v4667_v36 = vld [vmem:[%s10325_s5 + $0xc60] sm:$0xff] }
 0x6fb   :  { %5277 = vmatpush.msrb.mxu3 %v4597_v55  ;;  %5297 = vmatpush.msra.mxu1 %v4613_v27  ;;  %v4683_v18 = vld [vmem:[%s10325_s5 + $0xce0] sm:$0xff]  ;;  %v4666_v55 = vld [vmem:[%s10325_s5 + $0xc58] sm:$0xff] }
 0x6fc   :  { %5317 = vmatpush.msra.mxu2 %v4629_v19  ;;  %5337 = vmatpush.msrb.mxu0 %v4645_v37  ;;  %v4699_v48 = vld [vmem:[%s10325_s5 + $0xd60] sm:$0xff]  ;;  %v4682_v27 = vld [vmem:[%s10325_s5 + $0xcd8] sm:$0xff] }
 0x6fd   :  { %v4232_v50 = vld [vmem:[#allocation7 + $0x30] ss:$8 sm:$0x3]  ;;  %v4236_v54 = vld [vmem:[#allocation7 + $0x31] ss:$8 sm:$0x3]  ;;  %5278 = vmatpush.msrb.mxu3 %v4596_v8  ;;  %5298 = vmatpush.msra.mxu1 %v4612_v53 }
 0x6fe   :  { %4234 = vst.msk [vmem:[#allocation8 + $0x21] ss:$2 sm:$0x3] %vm8757_vm15, %v4232_v50  ;;  %v4240_v28 = vld [vmem:[#allocation7 + $0x32] ss:$8 sm:$0x3]  ;;  %5318 = vmatpush.msra.mxu2 %v4628_v41  ;;  %5338 = vmatpush.msrb.mxu0 %v4644_v10 }
 0x6ff   :  { %4238 = vst.msk [vmem:[#allocation8 + $0x25] ss:$2 sm:$0x3] %vm8757_vm15, %v4236_v54  ;;  %v4244_v0 = vld [vmem:[#allocation7 + $0x33] ss:$8 sm:$0x3]  ;;  %5279 = vmatpush.msrb.mxu3 %v4595_v30  ;;  %5299 = vmatpush.msra.mxu1 %v4611_v52 }
 0x700   :  { %4242 = vst.msk [vmem:[#allocation8 + $0x29] ss:$2 sm:$0x3] %vm8757_vm15, %v4240_v28  ;;  %v4248_v40 = vld [vmem:[#allocation7 + $0x34] ss:$8 sm:$0x3]  ;;  %5319 = vmatpush.msra.mxu2 %v4627_v15  ;;  %5339 = vmatpush.msrb.mxu0 %v4643_v29 }
 0x701   :  { %4246 = vst.msk [vmem:[#allocation8 + $0x2d] ss:$2 sm:$0x3] %vm8757_vm15, %v4244_v0  ;;  %v4252_v43 = vld [vmem:[#allocation7 + $0x35] ss:$8 sm:$0x3]  ;;  %5280 = vmatpush.msrb.mxu3 %v4594_v39  ;;  %5300 = vmatpush.msra.mxu1 %v4610_v59 }
 0x702   :  { %4250 = vst.msk [vmem:[#allocation8 + $0x31] ss:$2 sm:$0x3] %vm8757_vm15, %v4248_v40  ;;  %v4256_v17 = vld [vmem:[#allocation7 + $0x36] ss:$8 sm:$0x3]  ;;  %5320 = vmatpush.msra.mxu2 %v4626_v32  ;;  %5340 = vmatpush.msrb.mxu0 %v4642_v35 }
 0x703   :  { %4254 = vst.msk [vmem:[#allocation8 + $0x35] ss:$2 sm:$0x3] %vm8757_vm15, %v4252_v43  ;;  %v4260_v9 = vld [vmem:[#allocation7 + $0x37] ss:$8 sm:$0x3]  ;;  %5281 = vmatpush.msrb.mxu3 %v4593_v62  ;;  %5301 = vmatpush.msra.mxu1 %v4609_v23 }
 0x704   :  { %4258 = vst.msk [vmem:[#allocation8 + $0x39] ss:$2 sm:$0x3] %vm8757_vm15, %v4256_v17  ;;  %5321 = vmatpush.msra.mxu2 %v4625_v13  ;;  %5341 = vmatpush.msrb.mxu0 %v4641_v3  ;;  %v4715_v24 = vld [vmem:[%s10325_s5 + $0xde0] sm:$0xff]  ;;  %v4698_v19 = vld [vmem:[%s10325_s5 + $0xd58] sm:$0xff]  ;;  %v4665_v8 = vld [vmem:[%s10325_s5 + $0xc50] sm:$0xff] }
 0x705   :  { %4262 = vst.msk [vmem:[#allocation8 + $0x3d] ss:$2 sm:$0x3] %vm8757_vm15, %v4260_v9  ;;  %5282 = vmatpush.msrb.mxu3 %v4592_v5  ;;  %5302 = vmatpush.msra.mxu1 %v4608_v4  ;;  %v4714_v37 = vld [vmem:[%s10325_s5 + $0xdd8] sm:$0xff]  ;;  %v4681_v53 = vld [vmem:[%s10325_s5 + $0xcd0] sm:$0xff]  ;;  %v4664_v30 = vld [vmem:[%s10325_s5 + $0xc48] sm:$0xff] }
 0x706   :  { %5322 = vmatpush.msra.mxu2 %v4624_v42  ;;  %5342 = vmatpush.msrb.mxu0 %v4640_v12  ;;  %v4267_v57 = vld [vmem:[#allocation8 + $0x20] sm:$0xff]  ;;  %v4680_v52 = vld [vmem:[%s10325_s5 + $0xcc8] sm:$0xff]  ;;  %v4663_v39 = vld [vmem:[%s10325_s5 + $0xc40] sm:$0xff] }
 0x707   :  { %5283 = vmatpush.msrb.mxu3 %v4591_v21  ;;  %5303 = vmatpush.msra.mxu1 %v4607_v16  ;;  %4816 = vst [vmem:[#allocation1] ss:$4 sm:$0xff] %v4267_v57  ;;  %v4697_v41 = vld [vmem:[%s10325_s5 + $0xd50] sm:$0xff]  ;;  %v4696_v15 = vld [vmem:[%s10325_s5 + $0xd48] sm:$0xff]  ;;  %v4679_v59 = vld [vmem:[%s10325_s5 + $0xcc0] sm:$0xff] }
 0x708   :  { %5323 = vmatpush.msra.mxu2 %v4623_v20  ;;  %5343 = vmatpush.msrb.mxu0 %v4639_v6  ;;  %v4268_v2 = vld [vmem:[#allocation8 + $0x28] sm:$0xff]  ;;  %v4713_v10 = vld [vmem:[%s10325_s5 + $0xdd0] sm:$0xff]  ;;  %v4712_v29 = vld [vmem:[%s10325_s5 + $0xdc8] sm:$0xff] }
 0x709   :  { %4817 = vst [vmem:[#allocation1 + $0x20] ss:$4 sm:$0xff] %v4268_v2  ;;  %v4695_v50 = vld [vmem:[%s10325_s5 + $0xd40] sm:$0xff]  ;;  %v4662_v32 = vld [vmem:[%s10325_s5 + $0xc38] sm:$0xff]  ;;  %v4661_v23 = vld [vmem:[%s10325_s5 + $0xc30] sm:$0xff] }
 0x70a   :  { %v4269_v45 = vld [vmem:[#allocation8 + $0x30] sm:$0xff]  ;;  %v4678_v35 = vld [vmem:[%s10325_s5 + $0xcb8] sm:$0xff]  ;;  %v4677_v0 = vld [vmem:[%s10325_s5 + $0xcb0] sm:$0xff] }
 0x70b   :  { %v4711_v54 = vld [vmem:[%s10325_s5 + $0xdc0] sm:$0xff]  ;;  %v4694_v28 = vld [vmem:[%s10325_s5 + $0xd38] sm:$0xff]  ;;  %v4693_v13 = vld [vmem:[%s10325_s5 + $0xd30] sm:$0xff] }
 0x70c   :  { %v4270_v51 = vld [vmem:[#allocation8 + $0x38] sm:$0xff]  ;;  %v4710_v62 = vld [vmem:[%s10325_s5 + $0xdb8] sm:$0xff]  ;;  %v4709_v3 = vld [vmem:[%s10325_s5 + $0xdb0] sm:$0xff] }
 0x70d   :  { %v4660_v40 = vld [vmem:[%s10325_s5 + $0xc28] sm:$0xff]  ;;  %v4659_v9 = vld [vmem:[%s10325_s5 + $0xc20] sm:$0xff]  ;;  %v4658_v21 = vld [vmem:[%s10325_s5 + $0xc18] sm:$0xff] }
 0x70e   :  { %v4818_v47 = vld.sshfl [vmem:[#allocation1] sm:$0xff pattern:$0x73625140]  ;;  %v4819_v63 = vld.sshfl [vmem:[#allocation1 + $0x8] sm:$0xff pattern:$0x73625140] }
 0x70f   :  { %5204 = vmatmul.f32.vlgmr.msra.gmra.mxu3 %v4818_v47  ;;  %5224 = vmatmul.f32.vlgmr.msrb.gmra.mxu1 %v4819_v63  ;;  %v4820_v31 = vld.sshfl [vmem:[#allocation1 + $0x10] sm:$0xff pattern:$0x73625140]  ;;  %v4821_v56 = vld.sshfl [vmem:[#allocation1 + $0x18] sm:$0xff pattern:$0x73625140] }
 0x710   :  { %5244 = vmatmul.f32.vlgmr.msrb.gmra.mxu2 %v4820_v31  ;;  %5264 = vmatmul.f32.vlgmr.msra.gmra.mxu0 %v4821_v56  ;;  %4826 = vst [vmem:[#allocation1] ss:$4 sm:$0xff] %v4269_v45  ;;  %v4822_v58 = vld.sshfl [vmem:[#allocation1 + $0x20] sm:$0xff pattern:$0x73625140]  ;;  %v4676_v5 = vld [vmem:[%s10325_s5 + $0xca8] sm:$0xff] }
 0x711   :  { %5348 = vmatpush.msra.mxu3 %v4670_v61  ;;  %5368 = vmatpush.msrb.mxu1 %v4686_v1  ;;  %v4823_v22 = vld.sshfl [vmem:[#allocation1 + $0x28] sm:$0xff pattern:$0x73625140]  ;;  %v4824_v25 = vld.sshfl [vmem:[#allocation1 + $0x30] sm:$0xff pattern:$0x73625140] }
 0x712   :  { %5388 = vmatpush.msrb.mxu2 %v4702_v49  ;;  %5408 = vmatpush.msra.mxu0 %v4718_v26  ;;  %v4825_v60 = vld.sshfl [vmem:[#allocation1 + $0x38] sm:$0xff pattern:$0x73625140]  ;;  %v4692_v43 = vld [vmem:[%s10325_s5 + $0xd28] sm:$0xff]  ;;  %v4675_v4 = vld [vmem:[%s10325_s5 + $0xca0] sm:$0xff] }
 0x713   :  { %5349 = vmatpush.msra.mxu3 %v4669_v14  ;;  %5369 = vmatpush.msrb.mxu1 %v4685_v11  ;;  %4827 = vst [vmem:[#allocation1 + $0x20] ss:$4 sm:$0xff] %v4270_v51  ;;  %v4708_v17 = vld [vmem:[%s10325_s5 + $0xda8] sm:$0xff]  ;;  %v4691_v42 = vld [vmem:[%s10325_s5 + $0xd20] sm:$0xff]  ;;  %v4674_v16 = vld [vmem:[%s10325_s5 + $0xc98] sm:$0xff] }
 0x714   :  { %5389 = vmatpush.msrb.mxu2 %v4701_v38  ;;  %5409 = vmatpush.msra.mxu0 %v4717_v7  ;;  %v4707_v12 = vld [vmem:[%s10325_s5 + $0xda0] sm:$0xff]  ;;  %v4690_v20 = vld [vmem:[%s10325_s5 + $0xd18] sm:$0xff]  ;;  %v4657_v57 = vld [vmem:[%s10325_s5 + $0xc10] sm:$0xff] }
 0x715   :  { %5350 = vmatpush.msra.mxu3 %v4668_v34  ;;  %5370 = vmatpush.msrb.mxu1 %v4684_v46  ;;  %v4706_v6 = vld [vmem:[%s10325_s5 + $0xd98] sm:$0xff]  ;;  %v4673_v61 = vld [vmem:[%s10325_s5 + $0xc90] sm:$0xff]  ;;  %v4656_v45 = vld [vmem:[%s10325_s5 + $0xc08] sm:$0xff] }
 0x716   :  { %5390 = vmatpush.msrb.mxu2 %v4700_v44  ;;  %5410 = vmatpush.msra.mxu0 %v4716_v33  ;;  %v4689_v1 = vld [vmem:[%s10325_s5 + $0xd10] sm:$0xff]  ;;  %v4672_v49 = vld [vmem:[%s10325_s5 + $0xc88] sm:$0xff]  ;;  %v4655_v63 = vld [vmem:[%s10325_s5 + $0xc00] sm:$0xff] }
 0x717   :  { %5351 = vmatpush.msra.mxu3 %v4667_v36  ;;  %5371 = vmatpush.msrb.mxu1 %v4683_v18  ;;  %v4705_v2 = vld [vmem:[%s10325_s5 + $0xd90] sm:$0xff]  ;;  %v4688_v26 = vld [vmem:[%s10325_s5 + $0xd08] sm:$0xff]  ;;  %v4671_v14 = vld [vmem:[%s10325_s5 + $0xc80] sm:$0xff] }
 0x718   :  { %5391 = vmatpush.msrb.mxu2 %v4699_v48  ;;  %5411 = vmatpush.msra.mxu0 %v4715_v24  ;;  %v4704_v47 = vld [vmem:[%s10325_s5 + $0xd88] sm:$0xff]  ;;  %v4687_v31 = vld [vmem:[%s10325_s5 + $0xd00] sm:$0xff]  ;;  %v4830_v7 = vld.sshfl [vmem:[#allocation1 + $0x10] sm:$0xff pattern:$0x73625140] }
 0x719   :  { %5284 = vmatmul.f32.vlgmr.msrb.gmra.mxu3 %v4822_v58  ;;  %5304 = vmatmul.f32.vlgmr.msra.gmra.mxu1 %v4823_v22  ;;  %v4703_v56 = vld [vmem:[%s10325_s5 + $0xd80] sm:$0xff]  ;;  %v4829_v38 = vld.sshfl [vmem:[#allocation1 + $0x8] sm:$0xff pattern:$0x73625140]  ;;  %v4734_v34 = vld [vmem:[%s10325_s5 + $0xe78] sm:$0xff] }
 0x71a   :  { %5324 = vmatmul.f32.vlgmr.msra.gmra.mxu2 %v4824_v25  ;;  %5344 = vmatmul.f32.vlgmr.msrb.gmra.mxu0 %v4825_v60  ;;  %v4828_v11 = vld.sshfl [vmem:[#allocation1] sm:$0xff pattern:$0x73625140]  ;;  %v4750_v46 = vld [vmem:[%s10325_s5 + $0xef8] sm:$0xff]  ;;  %v4733_v18 = vld [vmem:[%s10325_s5 + $0xe70] sm:$0xff] }
 0x71b   :  { %5352 = vmatpush.msra.mxu3 %v4666_v55  ;;  %5372 = vmatpush.msrb.mxu1 %v4682_v27  ;;  %v4831_v44 = vld.sshfl [vmem:[#allocation1 + $0x18] sm:$0xff pattern:$0x73625140]  ;;  %v4749_v51 = vld [vmem:[%s10325_s5 + $0xef0] sm:$0xff]  ;;  %v4732_v58 = vld [vmem:[%s10325_s5 + $0xe68] sm:$0xff] }
 0x71c   :  { %5392 = vmatpush.msrb.mxu2 %v4698_v19  ;;  %5412 = vmatpush.msra.mxu0 %v4714_v37  ;;  %v4766_v33 = vld [vmem:[%s10325_s5 + $0xf78] sm:$0xff]  ;;  %v4765_v48 = vld [vmem:[%s10325_s5 + $0xf70] sm:$0xff]  ;;  %v4748_v22 = vld [vmem:[%s10325_s5 + $0xee8] sm:$0xff] }
 0x71d   :  { %5353 = vmatpush.msra.mxu3 %v4665_v8  ;;  %5373 = vmatpush.msrb.mxu1 %v4681_v53  ;;  %v4782_v36 = vld [vmem:[%s10325_s5 + $0xff8] sm:$0xff]  ;;  %v4781_v24 = vld [vmem:[%s10325_s5 + $0xff0] sm:$0xff]  ;;  %v4764_v25 = vld [vmem:[%s10325_s5 + $0xf68] sm:$0xff] }
 0x71e   :  { %5393 = vmatpush.msrb.mxu2 %v4697_v41  ;;  %5413 = vmatpush.msra.mxu0 %v4713_v10  ;;  %v4780_v60 = vld [vmem:[%s10325_s5 + $0xfe8] sm:$0xff]  ;;  %v4731_v55 = vld [vmem:[%s10325_s5 + $0xe60] sm:$0xff]  ;;  %v4730_v8 = vld [vmem:[%s10325_s5 + $0xe58] sm:$0xff] }
 0x71f   :  { %5354 = vmatpush.msra.mxu3 %v4664_v30  ;;  %5374 = vmatpush.msrb.mxu1 %v4680_v52  ;;  %v4747_v27 = vld [vmem:[%s10325_s5 + $0xee0] sm:$0xff]  ;;  %v4746_v53 = vld [vmem:[%s10325_s5 + $0xed8] sm:$0xff]  ;;  %v4729_v30 = vld [vmem:[%s10325_s5 + $0xe50] sm:$0xff] }
 0x720   :  { %5394 = vmatpush.msrb.mxu2 %v4696_v15  ;;  %5414 = vmatpush.msra.mxu0 %v4712_v29  ;;  %v4763_v19 = vld [vmem:[%s10325_s5 + $0xf60] sm:$0xff]  ;;  %v4762_v41 = vld [vmem:[%s10325_s5 + $0xf58] sm:$0xff]  ;;  %v4745_v52 = vld [vmem:[%s10325_s5 + $0xed0] sm:$0xff] }
 0x721   :  { %5355 = vmatpush.msra.mxu3 %v4663_v39  ;;  %5375 = vmatpush.msrb.mxu1 %v4679_v59  ;;  %v4779_v37 = vld [vmem:[%s10325_s5 + $0xfe0] sm:$0xff]  ;;  %v4778_v10 = vld [vmem:[%s10325_s5 + $0xfd8] sm:$0xff]  ;;  %v4761_v15 = vld [vmem:[%s10325_s5 + $0xf50] sm:$0xff] }
 0x722   :  { %5395 = vmatpush.msrb.mxu2 %v4695_v50  ;;  %5415 = vmatpush.msra.mxu0 %v4711_v54  ;;  %v4777_v29 = vld [vmem:[%s10325_s5 + $0xfd0] sm:$0xff]  ;;  %v4728_v39 = vld [vmem:[%s10325_s5 + $0xe48] sm:$0xff] }
 0x723   :  { %5356 = vmatpush.msra.mxu3 %v4662_v32  ;;  %5376 = vmatpush.msrb.mxu1 %v4678_v35  ;;  %v4744_v59 = vld [vmem:[%s10325_s5 + $0xec8] sm:$0xff]  ;;  %v4727_v32 = vld [vmem:[%s10325_s5 + $0xe40] sm:$0xff] }
 0x724   :  { %5396 = vmatpush.msrb.mxu2 %v4694_v28  ;;  %5416 = vmatpush.msra.mxu0 %v4710_v62  ;;  %v4760_v50 = vld [vmem:[%s10325_s5 + $0xf48] sm:$0xff]  ;;  %v4743_v35 = vld [vmem:[%s10325_s5 + $0xec0] sm:$0xff] }
 0x725   :  { %5357 = vmatpush.msra.mxu3 %v4661_v23  ;;  %5377 = vmatpush.msrb.mxu1 %v4677_v0  ;;  %v4776_v54 = vld [vmem:[%s10325_s5 + $0xfc8] sm:$0xff]  ;;  %v4759_v28 = vld [vmem:[%s10325_s5 + $0xf40] sm:$0xff]  ;;  %v4726_v23 = vld [vmem:[%s10325_s5 + $0xe38] sm:$0xff] }
 0x726   :  { %5397 = vmatpush.msrb.mxu2 %v4693_v13  ;;  %5417 = vmatpush.msra.mxu0 %v4709_v3  ;;  %v4775_v62 = vld [vmem:[%s10325_s5 + $0xfc0] sm:$0xff]  ;;  %v4742_v0 = vld [vmem:[%s10325_s5 + $0xeb8] sm:$0xff] }
 0x727   :  { %5358 = vmatpush.msra.mxu3 %v4660_v40  ;;  %5378 = vmatpush.msrb.mxu1 %v4676_v5  ;;  %v4758_v13 = vld [vmem:[%s10325_s5 + $0xf38] sm:$0xff]  ;;  %v4725_v40 = vld [vmem:[%s10325_s5 + $0xe30] sm:$0xff] }
 0x728   :  { %5398 = vmatpush.msrb.mxu2 %v4692_v43  ;;  %5418 = vmatpush.msra.mxu0 %v4708_v17  ;;  %v4774_v3 = vld [vmem:[%s10325_s5 + $0xfb8] sm:$0xff]  ;;  %v4741_v5 = vld [vmem:[%s10325_s5 + $0xeb0] sm:$0xff] }
 0x729   :  { %5359 = vmatpush.msra.mxu3 %v4659_v9  ;;  %5379 = vmatpush.msrb.mxu1 %v4675_v4  ;;  %v4757_v43 = vld [vmem:[%s10325_s5 + $0xf30] sm:$0xff]  ;;  %v4724_v9 = vld [vmem:[%s10325_s5 + $0xe28] sm:$0xff] }
 0x72a   :  { %5399 = vmatpush.msrb.mxu2 %v4691_v42  ;;  %5419 = vmatpush.msra.mxu0 %v4707_v12  ;;  %v4773_v17 = vld [vmem:[%s10325_s5 + $0xfb0] sm:$0xff]  ;;  %v4740_v4 = vld [vmem:[%s10325_s5 + $0xea8] sm:$0xff] }
 0x72b   :  { %5360 = vmatpush.msra.mxu3 %v4658_v21  ;;  %5380 = vmatpush.msrb.mxu1 %v4674_v16  ;;  %v4756_v42 = vld [vmem:[%s10325_s5 + $0xf28] sm:$0xff]  ;;  %v4723_v21 = vld [vmem:[%s10325_s5 + $0xe20] sm:$0xff] }
 0x72c   :  { %5400 = vmatpush.msrb.mxu2 %v4690_v20  ;;  %5420 = vmatpush.msra.mxu0 %v4706_v6  ;;  %v4772_v12 = vld [vmem:[%s10325_s5 + $0xfa8] sm:$0xff]  ;;  %v4739_v16 = vld [vmem:[%s10325_s5 + $0xea0] sm:$0xff] }
 0x72d   :  { %5361 = vmatpush.msra.mxu3 %v4657_v57  ;;  %5381 = vmatpush.msrb.mxu1 %v4673_v61  ;;  %v4755_v20 = vld [vmem:[%s10325_s5 + $0xf20] sm:$0xff]  ;;  %v4722_v57 = vld [vmem:[%s10325_s5 + $0xe18] sm:$0xff] }
 0x72e   :  { %5401 = vmatpush.msrb.mxu2 %v4689_v1  ;;  %5421 = vmatpush.msra.mxu0 %v4705_v2  ;;  %v4771_v6 = vld [vmem:[%s10325_s5 + $0xfa0] sm:$0xff]  ;;  %v4738_v61 = vld [vmem:[%s10325_s5 + $0xe98] sm:$0xff] }
 0x72f   :  { %5362 = vmatpush.msra.mxu3 %v4656_v45  ;;  %5382 = vmatpush.msrb.mxu1 %v4672_v49  ;;  %v4754_v1 = vld [vmem:[%s10325_s5 + $0xf18] sm:$0xff]  ;;  %v4721_v45 = vld [vmem:[%s10325_s5 + $0xe10] sm:$0xff] }
 0x730   :  { %5402 = vmatpush.msrb.mxu2 %v4688_v26  ;;  %5422 = vmatpush.msra.mxu0 %v4704_v47  ;;  %v4770_v2 = vld [vmem:[%s10325_s5 + $0xf98] sm:$0xff]  ;;  %v4737_v49 = vld [vmem:[%s10325_s5 + $0xe90] sm:$0xff] }
 0x731   :  { %5363 = vmatpush.msra.mxu3 %v4655_v63  ;;  %5383 = vmatpush.msrb.mxu1 %v4671_v14  ;;  %v4753_v26 = vld [vmem:[%s10325_s5 + $0xf10] sm:$0xff]  ;;  %v4720_v63 = vld [vmem:[%s10325_s5 + $0xe08] sm:$0xff] }
 0x732   :  { %5403 = vmatpush.msrb.mxu2 %v4687_v31  ;;  %5423 = vmatpush.msra.mxu0 %v4703_v56  ;;  %v4769_v47 = vld [vmem:[%s10325_s5 + $0xf90] sm:$0xff]  ;;  %v4736_v14 = vld [vmem:[%s10325_s5 + $0xe88] sm:$0xff] }
 0x733   :  { %5364 = vmatmul.f32.vlgmr.msra.gmra.mxu3 %v4828_v11  ;;  %5384 = vmatmul.f32.vlgmr.msrb.gmra.mxu1 %v4829_v38  ;;  %v4752_v31 = vld [vmem:[%s10325_s5 + $0xf08] sm:$0xff]  ;;  %v4719_v11 = vld [vmem:[%s10325_s5 + $0xe00] sm:$0xff] }
 0x734   :  { %5404 = vmatmul.f32.vlgmr.msrb.gmra.mxu2 %v4830_v7  ;;  %5424 = vmatmul.f32.vlgmr.msra.gmra.mxu0 %v4831_v44  ;;  %v4768_v56 = vld [vmem:[%s10325_s5 + $0xf88] sm:$0xff]  ;;  %v4735_v38 = vld [vmem:[%s10325_s5 + $0xe80] sm:$0xff] }
 0x735   :  { %5428 = vmatpush.msrb.mxu3 %v4734_v34  ;;  %5448 = vmatpush.msra.mxu1 %v4750_v46  ;;  %v4751_v7 = vld [vmem:[%s10325_s5 + $0xf00] sm:$0xff]  ;;  %v4833_v44 = vld.sshfl [vmem:[#allocation1 + $0x28] sm:$0xff pattern:$0x73625140] }
 0x736   :  { %5468 = vmatpush.msra.mxu2 %v4766_v33  ;;  %5488 = vmatpush.msrb.mxu0 %v4782_v36  ;;  %v4767_v34 = vld [vmem:[%s10325_s5 + $0xf80] sm:$0xff]  ;;  %v4834_v33 = vld.sshfl [vmem:[#allocation1 + $0x30] sm:$0xff pattern:$0x73625140] }
 0x737   :  { %5429 = vmatpush.msrb.mxu3 %v4733_v18  ;;  %5449 = vmatpush.msra.mxu1 %v4749_v51  ;;  %v4832_v46 = vld.sshfl [vmem:[#allocation1 + $0x20] sm:$0xff pattern:$0x73625140]  ;;  %v4835_v36 = vld.sshfl [vmem:[#allocation1 + $0x38] sm:$0xff pattern:$0x73625140]  ;;  %v4885_v51 = vpop.f32.mrf.mxu3 }
 0x738   :  { %5469 = vmatpush.msra.mxu2 %v4765_v48  ;;  %5489 = vmatpush.msrb.mxu0 %v4781_v24  ;;  %v5690_v18 = vld [vmem:[%s10326_s6] ss:$0 sm:$0xff]  ;;  %v4905_v24 = vpop.f32.mrf.mxu1 }
 0x739   :  { %5430 = vmatpush.msrb.mxu3 %v4732_v58  ;;  %5450 = vmatpush.msra.mxu1 %v4748_v22  ;;  %v4886_v48 = vadd.f32 %v5690_v18, %v4885_v51  ;;  %v4925_v22 = vpop.f32.mrf.mxu2  ;;  %v5560_v18 = vld [vmem:[%s10329_s9 + $0x38] sm:$0xff] }
 0x73a   :  { %5470 = vmatpush.msra.mxu2 %v4764_v25  ;;  %5490 = vmatpush.msrb.mxu0 %v4780_v60  ;;  %v4945_v60 = vpop.f32.mrf.mxu0 }
 0x73b   :  { %5431 = vmatpush.msrb.mxu3 %v4731_v55  ;;  %5451 = vmatpush.msra.mxu1 %v4747_v27  ;;  %v4906_v58 = vadd.f32 %v4905_v24, %v4886_v48 }
 0x73c   :  { %5471 = vmatpush.msra.mxu2 %v4763_v19  ;;  %5491 = vmatpush.msrb.mxu0 %v4779_v37 }
 0x73d   :  { %5432 = vmatpush.msrb.mxu3 %v4730_v8  ;;  %5452 = vmatpush.msra.mxu1 %v4746_v53  ;;  %v4926_v25 = vadd.f32 %v4925_v22, %v4906_v58  ;;  %v5509_v58 = vld [vmem:[%s10327_s7] sm:$0xff]  ;;  %v5559_v22 = vld [vmem:[%s10329_s9 + $0x30] sm:$0xff] }
 0x73e   :  { %5472 = vmatpush.msra.mxu2 %v4762_v41  ;;  %5492 = vmatpush.msrb.mxu0 %v4778_v10 }
 0x73f   :  { %5433 = vmatpush.msrb.mxu3 %v4729_v30  ;;  %5453 = vmatpush.msra.mxu1 %v4745_v52  ;;  %v4946_v55 = vadd.f32 %v4945_v60, %v4926_v25  ;;  %v4965_v27 = vpop.f32.mrf.mxu3  ;;  %v5558_v60 = vld [vmem:[%s10329_s9 + $0x28] sm:$0xff] }
 0x740   :  { %5473 = vmatpush.msra.mxu2 %v4761_v15  ;;  %5493 = vmatpush.msrb.mxu0 %v4777_v29  ;;  %v4985_v37 = vpop.f32.mrf.mxu1 }
 0x741   :  { %5434 = vmatpush.msrb.mxu3 %v4728_v39  ;;  %5454 = vmatpush.msra.mxu1 %v4744_v59  ;;  %v4966_v19 = vadd.f32 %v4965_v27, %v4946_v55  ;;  %v5005_v53 = vpop.f32.mrf.mxu2  ;;  %v5557_v55 = vld [vmem:[%s10329_s9 + $0x20] sm:$0xff] }
 0x742   :  { %5474 = vmatpush.msra.mxu2 %v4760_v50  ;;  %5494 = vmatpush.msrb.mxu0 %v4776_v54  ;;  %v5025_v10 = vpop.f32.mrf.mxu0  ;;  %v5523_v54 = vld [vmem:[%s10327_s7 + $0x70] sm:$0xff] }
 0x743   :  { %5435 = vmatpush.msrb.mxu3 %v4727_v32  ;;  %5455 = vmatpush.msra.mxu1 %v4743_v35  ;;  %v4986_v8 = vadd.f32 %v4985_v37, %v4966_v19  ;;  %v5522_v32 = vld [vmem:[%s10327_s7 + $0x68] sm:$0xff]  ;;  %v5556_v37 = vld [vmem:[%s10329_s9 + $0x18] sm:$0xff] }
 0x744   :  { %5475 = vmatpush.msra.mxu2 %v4759_v28  ;;  %5495 = vmatpush.msrb.mxu0 %v4775_v62 }
 0x745   :  { %5436 = vmatpush.msrb.mxu3 %v4726_v23  ;;  %5456 = vmatpush.msra.mxu1 %v4742_v0  ;;  %v5006_v41 = vadd.f32 %v5005_v53, %v4986_v8  ;;  %v5521_v23 = vld [vmem:[%s10327_s7 + $0x60] sm:$0xff] }
 0x746   :  { %5476 = vmatpush.msra.mxu2 %v4758_v13  ;;  %5496 = vmatpush.msrb.mxu0 %v4774_v3  ;;  %v5520_v13 = vld [vmem:[%s10327_s7 + $0x58] sm:$0xff]  ;;  %v5519_v3 = vld [vmem:[%s10327_s7 + $0x50] sm:$0xff] }
 0x747   :  { %5437 = vmatpush.msrb.mxu3 %v4725_v40  ;;  %5457 = vmatpush.msra.mxu1 %v4741_v5  ;;  %v5045_v30 = vpop.f32.mrf.mxu3  ;;  %v5026_v52 = vadd.f32 %v5025_v10, %v5006_v41 }
 0x748   :  { %5477 = vmatpush.msra.mxu2 %v4757_v43  ;;  %5497 = vmatpush.msrb.mxu0 %v4773_v17  ;;  %v5065_v29 = vpop.f32.mrf.mxu1  ;;  %v5518_v43 = vld [vmem:[%s10327_s7 + $0x48] sm:$0xff] }
 0x749   :  { %5438 = vmatpush.msrb.mxu3 %v4724_v9  ;;  %5458 = vmatpush.msra.mxu1 %v4740_v4  ;;  %v5046_v15 = vadd.f32 %v5045_v30, %v5026_v52  ;;  %v5085_v59 = vpop.f32.mrf.mxu2 }
 0x74a   :  { %5478 = vmatpush.msra.mxu2 %v4756_v42  ;;  %5498 = vmatpush.msrb.mxu0 %v4772_v12  ;;  %v5105_v35 = vpop.f32.mrf.mxu0 }
 0x74b   :  { %5439 = vmatpush.msrb.mxu3 %v4723_v21  ;;  %5459 = vmatpush.msra.mxu1 %v4739_v16  ;;  %v5066_v39 = vadd.f32 %v5065_v29, %v5046_v15 }
 0x74c   :  { %5479 = vmatpush.msra.mxu2 %v4755_v20  ;;  %5499 = vmatpush.msrb.mxu0 %v4771_v6  ;;  %v5517_v6 = vld [vmem:[%s10327_s7 + $0x40] sm:$0xff] }
 0x74d   :  { %5440 = vmatpush.msrb.mxu3 %v4722_v57  ;;  %5460 = vmatpush.msra.mxu1 %v4738_v61  ;;  %v5086_v50 = vadd.f32 %v5085_v59, %v5066_v39  ;;  %v5516_v57 = vld [vmem:[%s10327_s7 + $0x38] sm:$0xff] }
 0x74e   :  { %5480 = vmatpush.msra.mxu2 %v4754_v1  ;;  %5500 = vmatpush.msrb.mxu0 %v4770_v2  ;;  %v5515_v2 = vld [vmem:[%s10327_s7 + $0x30] sm:$0xff] }
 0x74f   :  { %5441 = vmatpush.msrb.mxu3 %v4721_v45  ;;  %5461 = vmatpush.msra.mxu1 %v4737_v49  ;;  %v5125_v28 = vpop.f32.mrf.mxu3  ;;  %v5106_v62 = vadd.f32 %v5105_v35, %v5086_v50  ;;  %v5555_v35 = vld [vmem:[%s10329_s9 + $0x10] sm:$0xff] }
 0x750   :  { %5481 = vmatpush.msra.mxu2 %v4753_v26  ;;  %5501 = vmatpush.msrb.mxu0 %v4769_v47  ;;  %v5145_v40 = vpop.f32.mrf.mxu1 }
 0x751   :  { %5442 = vmatpush.msrb.mxu3 %v4720_v63  ;;  %5462 = vmatpush.msra.mxu1 %v4736_v14  ;;  %v5126_v0 = vadd.f32 %v5125_v28, %v5106_v62  ;;  %v5165_v17 = vpop.f32.mrf.mxu2  ;;  %v5554_v28 = vld [vmem:[%s10329_s9 + $0x8] sm:$0xff]  ;;  %v5553_v62 = vld [vmem:[%s10329_s9] sm:$0xff] }
 0x752   :  { %5482 = vmatpush.msra.mxu2 %v4752_v31  ;;  %5502 = vmatpush.msrb.mxu0 %v4768_v56  ;;  %v5185_v4 = vpop.f32.mrf.mxu0  ;;  %v5514_v31 = vld [vmem:[%s10327_s7 + $0x28] sm:$0xff]  ;;  %v5513_v56 = vld [vmem:[%s10327_s7 + $0x20] sm:$0xff] }
 0x753   :  { %5443 = vmatpush.msrb.mxu3 %v4719_v11  ;;  %5463 = vmatpush.msra.mxu1 %v4735_v38  ;;  %v5146_v5 = vadd.f32 %v5145_v40, %v5126_v0  ;;  %v5512_v11 = vld [vmem:[%s10327_s7 + $0x18] sm:$0xff]  ;;  %v5563_v38 = vld [vmem:[%s10329_s9 + $0x50] sm:$0xf]  ;;  %v5692_v40 = vld [vmem:[%s10330_s10] ss:$0 sm:$0xff] }
 0x754   :  { %5483 = vmatpush.msra.mxu2 %v4751_v7  ;;  %5503 = vmatpush.msrb.mxu0 %v4767_v34  ;;  %v5562_v7 = vld [vmem:[%s10329_s9 + $0x48] sm:$0xff] }
 0x755   :  { %5444 = vmatmul.f32.vlgmr.msrb.gmra.mxu3 %v4832_v46  ;;  %5464 = vmatmul.f32.vlgmr.msra.gmra.mxu1 %v4833_v44  ;;  %v5166_v9 = vadd.f32 %v5165_v17, %v5146_v5  ;;  %v5511_v44 = vld [vmem:[%s10327_s7 + $0x10] sm:$0xff] }
 0x756   :  { %5484 = vmatmul.f32.vlgmr.msra.gmra.mxu2 %v4834_v33  ;;  %5504 = vmatmul.f32.vlgmr.msrb.gmra.mxu0 %v4835_v36  ;;  %v5561_v33 = vld [vmem:[%s10329_s9 + $0x40] sm:$0xff]  ;;  %v5510_v36 = vld [vmem:[%s10327_s7 + $0x8] sm:$0xff]  ;;  %s5604_s9 = sshll.u32 %s10331_s11, 4  ;;  %s5605_s9 = int_to_ptr.hbm [resolvable:$true] %s5604_s9 }
 0x757   :  { %5533 = vmatpush.msra.mxu3 %v5523_v54  ;;  %v5186_v12 = vadd.f32 %v5185_v4, %v5166_v9  ;;  %5659 = vmatpush.msk.msrb.mxu1 %vm10410_vm4, %v5563_v38 }
 0x759   :  { %5534 = vmatpush.msra.mxu3 %v5522_v32  ;;  %5581 = vmatpush.msrb.mxu1 %v5562_v7 }
 0x75b   :  { %5535 = vmatpush.msra.mxu3 %v5521_v23  ;;  %5582 = vmatpush.msrb.mxu1 %v5561_v33  ;;  %v5691_v23 = vld [vmem:[%s10328_s8] ss:$0 sm:$0xff] }
 0x75d   :  { %5536 = vmatpush.msra.mxu3 %v5520_v13  ;;  %5583 = vmatpush.msrb.mxu1 %v5560_v18 }
 0x75f   :  { %5537 = vmatpush.msra.mxu3 %v5519_v3  ;;  %5584 = vmatpush.msrb.mxu1 %v5559_v22 }
 0x761   :  { %5538 = vmatpush.msra.mxu3 %v5518_v43  ;;  %5585 = vmatpush.msrb.mxu1 %v5558_v60 }
 0x763   :  { %5539 = vmatpush.msra.mxu3 %v5517_v6  ;;  %5586 = vmatpush.msrb.mxu1 %v5557_v55 }
 0x765   :  { %5540 = vmatpush.msra.mxu3 %v5516_v57  ;;  %5587 = vmatpush.msrb.mxu1 %v5556_v37 }
 0x767   :  { %5541 = vmatpush.msra.mxu3 %v5515_v2  ;;  %5588 = vmatpush.msrb.mxu1 %v5555_v35 }
 0x769   :  { %5542 = vmatpush.msra.mxu3 %v5514_v31  ;;  %5589 = vmatpush.msrb.mxu1 %v5554_v28 }
 0x76b   :  { %5543 = vmatpush.msra.mxu3 %v5513_v56  ;;  %5590 = vmatpush.msrb.mxu1 %v5553_v62 }
 0x76d   :  { %5544 = vmatpush.msra.mxu3 %v5512_v11 }
 0x76f   :  { %5545 = vmatpush.msra.mxu3 %v5511_v44 }
 0x771   :  { %5546 = vmatpush.msra.mxu3 %v5510_v36 }
 0x773   :  { %5547 = vmatpush.msra.mxu3 %v5509_v58 }
 0x78c   :  { %v5225_v16 = vpop.f32.mrf.mxu1 }
 0x78d   :  { %v5265_v45 = vpop.f32.mrf.mxu0 }
 0x792   :  { %v5205_v42 = vpop.f32.mrf.mxu3 }
 0x793   :  { %v5206_v21 = vadd.f32 %v5205_v42, %v5186_v12  ;;  %v5245_v61 = vpop.f32.mrf.mxu2 }
 0x795   :  { %v5226_v20 = vadd.f32 %v5225_v16, %v5206_v21 }
 0x796   :  { %v5305_v63 = vpop.f32.mrf.mxu1 }
 0x797   :  { %v5246_v1 = vadd.f32 %v5245_v61, %v5226_v20  ;;  %v5345_v51 = vpop.f32.mrf.mxu0 }
 0x799   :  { %v5266_v49 = vadd.f32 %v5265_v45, %v5246_v1 }
 0x79c   :  { %v5285_v26 = vpop.f32.mrf.mxu3 }
 0x79d   :  { %v5286_v47 = vadd.f32 %v5285_v26, %v5266_v49  ;;  %v5325_v34 = vpop.f32.mrf.mxu2 }
 0x79f   :  { %v5306_v14 = vadd.f32 %v5305_v63, %v5286_v47 }
 0x7a1   :  { %v5326_v46 = vadd.f32 %v5325_v34, %v5306_v14 }
 0x7a3   :  { %v5346_v24 = vadd.f32 %v5345_v51, %v5326_v46 }
 0x7b0   :  { %v5385_v27 = vpop.f32.mrf.mxu1 }
 0x7b1   :  { %v5425_v41 = vpop.f32.mrf.mxu0 }
 0x7b6   :  { %v5365_v48 = vpop.f32.mrf.mxu3 }
 0x7b7   :  { %v5366_v25 = vadd.f32 %v5365_v48, %v5346_v24  ;;  %v5405_v8 = vpop.f32.mrf.mxu2 }
 0x7b9   :  { %v5386_v19 = vadd.f32 %v5385_v27, %v5366_v25 }
 0x7bb   :  { %v5406_v53 = vadd.f32 %v5405_v8, %v5386_v19 }
 0x7bd   :  { %v5426_v10 = vadd.f32 %v5425_v41, %v5406_v53 }
 0x7d2   :  { %v5465_v15 = vpop.f32.mrf.mxu1 }
 0x7d3   :  { %v5505_v50 = vpop.f32.mrf.mxu0 }
 0x7d8   :  { %v5445_v30 = vpop.f32.mrf.mxu3 }
 0x7d9   :  { %v5446_v52 = vadd.f32 %v5445_v30, %v5426_v10  ;;  %v5485_v39 = vpop.f32.mrf.mxu2 }
 0x7db   :  { %v5466_v29 = vadd.f32 %v5465_v15, %v5446_v52 }
 0x7dd   :  { %v5486_v59 = vadd.f32 %v5485_v39, %v5466_v29 }
 0x7df   :  { %v5506_v54 = vadd.f32 %v5505_v50, %v5486_v59 }
 0x7e1   :  { %v5508_v32 = vmax.f32 %v5506_v54, 0.0 }
 0x7e3   :  { %5658 = vmatmul.msk.f32.vlgmr.msra.gmra.mxu3 %vm5528_vm0, %v5508_v32 }
 0x866   :  { %v5549_v0 = vpop.f32.mrf.mxu3 }
 0x867   :  { %v5550_v13 = vadd.f32 %v5691_v23, %v5549_v0 }
 0x869   :  { %v5552_v3 = vmax.f32 %v5550_v13, 0.0 }
 0x86b   :  { %5660 = vmatmul.msk.f32.vlgmr.msrb.gmra.mxu1 %vm5568_vm11, %v5552_v3 }
 0x8e8   :  { %v5592_v5 = vpop.f32.mrf.mxu1 }
 0x8e9   :  { %v5593_v43 = vadd.f32 %v5692_v40, %v5592_v5 }
 0x8eb   :  { %5596 = vst.msk [vmem:[#allocation9] sm:$0x3] %vm5595_vm12, %v5593_v43 }
 0x8ec   :  { %5607 = dma.vmem_to_hbm [thread:$0]  %s5603_s24, 32, %s5605_s9, [#allocation10]  }
 0x8ed   :  { %5721 = dma.done.wait [#allocation10], 32  }
 0x8ee   :  { %5722 = vsyncadd [#allocation10], 4294967264 }
 0x8ef   :  { %5612 = vsyncpa [#allocation10], 1 }

</bundles_post_ra>
